<compile_context>
chip_gen: v7x
topology: tpu7x:2x2x1
jax: 0.10.0
libtpu: 0.0.40
codegen_flags: <defaults>
</compile_context>

<pallas_src>
import numpy as np
import jax
import jax.numpy as jnp
from jax.experimental import pallas as pl
from jax.experimental.pallas import tpu as pltpu

EPS = 1e-9  # AmpEncoder eps default


def _make_kernel(wp, lens, cnt):
    L0, L1, L2, L3, L4 = lens
    offs = tuple(di * wp + dj for di in range(3) for dj in range(3))

    def conv_c1(x, w, b, l_out):
        # x: (1, Lin); w: (8, 9).  9 VPU broadcast-FMAs (Cin=1, MXU not worth it).
        acc = w[:, 0:1] * x[:, offs[0]:offs[0] + l_out]
        for t in range(1, 9):
            o = offs[t]
            acc = acc + w[:, t:t + 1] * x[:, o:o + l_out]
        return jnp.maximum(acc + b, 0.0)

    def conv_c8(x, w, b, l_out, relu):
        # x: (8, Lin); w: (Cout, 72).  Fused im2col + one K=72 MXU matmul.
        patches = jnp.concatenate([x[:, o:o + l_out] for o in offs], axis=0)
        y = jnp.dot(w, patches, preferred_element_type=jnp.float32) + b
        if relu:
            y = jnp.maximum(y, 0.0)
        return y

    def kernel(x_ref, z_ref, w1a_ref, w1b_ref, w2a_ref, w2b_ref,
               wfc_ref, small_ref, m_ref, mt_ref, o_ref):
        small = small_ref[...]                      # (8, 8) packed biases / alpha

        # conv1 = Conv(1->8) ReLU Conv(8->8) ReLU   (NB samples folded into lanes)
        x0 = x_ref[0]                                                   # (1, L0)
        y = conv_c1(x0, w1a_ref[...], small[:, 0:1], L1)                # (8, L1)
        y = conv_c8(y, w1b_ref[...], small[:, 1:2], L2, True)           # (8, L2)

        # ---- AdaIN: per-sample masked stats via constant 0/1 matmuls ----
        stacked = jnp.concatenate([y, y * y], axis=0)                   # (16, L2)
        sums = jnp.dot(stacked, m_ref[...],
                       preferred_element_type=jnp.float32)              # (16, NB)
        s1 = sums[0:8, :]
        s2 = sums[8:16, :]
        mean = s1 * (1.0 / cnt)
        # single-pass unbiased variance, clamped against tiny negative rounding
        var = jnp.maximum((s2 - mean * s1) * (1.0 / (cnt - 1.0)), 0.0)
        std = jnp.sqrt(var)

        # rand_fc(z): weights were pre-scaled by alpha[1] in the wrapper
        hT = jnp.dot(wfc_ref[...], z_ref[0],
                     preferred_element_type=jnp.float32)                # (16, NB)
        g1 = hT[0:8, :] + small[:, 4:5]      # = alpha1 * gamma^T
        b1 = hT[8:16, :] + small[:, 5:6]     # = alpha1 * beta^T
        a0 = small[0:1, 6:7]                 # alpha0
        mean_hat = a0 * mean + b1
        std_hat = a0 * std + g1
        A = std_hat / (std + EPS)
        Bc = mean_hat - mean * A
        # broadcast per-sample affine back to full lane width (valid lanes only)
        AB = jnp.dot(jnp.concatenate([A, Bc], axis=0), mt_ref[...],
                     preferred_element_type=jnp.float32)                # (16, L2)
        y = y * AB[0:8, :] + AB[8:16, :]

        # conv2 = Conv(8->8) ReLU Conv(8->1)
        y = conv_c8(y, w2a_ref[...], small[:, 2:3], L3, True)           # (8, L3)
        y = conv_c8(y, w2b_ref[...], small[0:1, 3:4], L4, False)        # (1, L4)
        o_ref[0] = y

    return kernel


def _full_spec(arr):
    nd = arr.ndim
    return pl.BlockSpec(arr.shape, lambda i, _nd=nd: (0,) * _nd)


def generator_forward(x, params, z):
    """x: (B, P, H, W) float32; z: (B*P, zdim) the AdaIN noise."""
    B, P, H, W = x.shape
    n = B * P
    hp, wp = H + 8, W + 8
    h2, w2 = H + 4, W + 4                 # conv1-output valid extent (AdaIN region)
    S = hp * wp + 8                       # per-sample flat stride (stage-0 length)
    shrink = 2 * wp + 2                   # flat-length shrink per 3x3 VALID conv
    zdim = params["wfc"].shape[1]

    # Samples per grid step: amortize ~0.35us/step overhead, keep >=2 grid steps
    # (both v7x TensorCores get work), bound the im2col slab to ~4 MiB of VMEM.
    nb_vmem = max(1, (4 * 1024 * 1024) // (9 * 8 * 4 * S))
    NB = max(1, min(-(-n // 2), 8, nb_vmem))
    G = -(-n // NB)

    # tail padding so the final (stage-4) length is lane-dense (multiple of 128)
    T = (-(NB * S - 4 * shrink)) % 128
    lens = tuple(NB * S + T - i * shrink for i in range(5))
    L0, L1, L2, L3, L4 = lens

    # ---------------- glue: reflect pad, flatten, concatenate samples ----------
    xr = x.reshape(n, H, W).astype(jnp.float32)
    xp = jnp.pad(xr, ((0, 0), (4, 4), (4, 4)), mode="reflect")      # (n, hp, wp)
    xf = xp.reshape(n, hp * wp)
    xf = jnp.pad(xf, ((0, G * NB - n), (0, S - hp * wp)))           # (G*NB, S)
    xf = xf.reshape(G, NB * S)
    xf = jnp.pad(xf, ((0, 0), (0, T)))                              # (G, L0)
    x_in = xf.reshape(G, 1, L0)

    zf = jnp.pad(z.astype(jnp.float32), ((0, G * NB - n), (0, 0)))  # (G*NB, zdim)
    z_in = jnp.transpose(zf.reshape(G, NB, zdim), (0, 2, 1))        # (G, zdim, NB)

    # ---------------- parameter repack ----------------
    def fuse(w):  # (Co, Ci, 3, 3) -> (Co, 9*Ci), column index = (di*3+dj)*Ci + ci
        co, ci = w.shape[0], w.shape[1]
        return jnp.transpose(w, (0, 2, 3, 1)).reshape(co, 9 * ci).astype(jnp.float32)

    w1a, w1b = fuse(params["w1a"]), fuse(params["w1b"])
    w2a, w2b = fuse(params["w2a"]), fuse(params["w2b"])
    a0, a1 = params["alpha"][0], params["alpha"][1]
    wfc_s = (a1 * params["wfc"]).astype(jnp.float32)                # (16, zdim)

    small = jnp.zeros((8, 8), jnp.float32)
    small = small.at[:, 0].set(params["b1a"])
    small = small.at[:, 1].set(params["b1b"])
    small = small.at[:, 2].set(params["b2a"])
    small = small.at[0, 3].set(params["b2b"][0])
    small = small.at[:, 4].set(a1 * params["bfc"][:8])
    small = small.at[:, 5].set(a1 * params["bfc"][8:])
    small = small.at[0, 6].set(a0)

    # Trace-time constant 0/1 selection matrix: column b marks sample b's valid
    # AdaIN positions (row < h2, col < w2 inside its own slab).
    lane = np.arange(L2)
    samp = lane // S
    pos = lane % S
    row = pos // wp
    col = pos % wp
    valid = (samp < NB) & (pos < hp * wp) & (row < h2) & (col < w2)
    M_np = np.zeros((L2, NB), np.float32)
    M_np[lane[valid], samp[valid]] = 1.0
    M = jnp.asarray(M_np)
    MT = jnp.asarray(M_np.T)

    kernel = _make_kernel(wp, lens, float(h2 * w2))

    in_specs = [
        pl.BlockSpec((1, 1, L0), lambda i: (i, 0, 0)),      # x   (NB samples/step)
        pl.BlockSpec((1, zdim, NB), lambda i: (i, 0, 0)),   # z^T (NB samples/step)
        _full_spec(w1a), _full_spec(w1b), _full_spec(w2a), _full_spec(w2b),
        _full_spec(wfc_s), _full_spec(small), _full_spec(M), _full_spec(MT),
    ]
    out_spec = pl.BlockSpec((1, 1, L4), lambda i: (i, 0, 0))

    out = pl.pallas_call(
        kernel,
        out_shape=jax.ShapeDtypeStruct((G, 1, L4), jnp.float32),
        grid_spec=pltpu.PrefetchScalarGridSpec(
            num_scalar_prefetch=0,
            grid=(G,),
            in_specs=in_specs,
            out_specs=out_spec,
        ),
        compiler_params=pltpu.CompilerParams(
            dimension_semantics=("parallel",)),
    )(x_in, z_in, w1a, w1b, w2a, w2b, wfc_s, small, M, MT)

    # ---- crop: per-sample valid region (physical width wp -> valid width W) ----
    outf = out.reshape(G, L4)
    if L4 < NB * S:
        outf = jnp.pad(outf, ((0, 0), (0, NB * S - L4)))
    else:
        outf = outf[:, :NB * S]
    x1 = outf.reshape(G * NB, S)[:n, :H * wp]
    x1 = x1.reshape(n, H, wp)[:, :, :W].reshape(B, P, H, W)

    x1_rev = x1          # ReverseLayerF.forward is identity
    x_recon = None       # AmpEncoder.forward returns None for recon
    return x1, x1_rev, x_recon


# ----------------------- pure-JAX reference (for checking) ------------------
def reference_forward(x, params, z):
    B, P, H, W = x.shape
    n = B * P
    xr = x.reshape(n, 1, H, W).astype(jnp.float32)
    x0 = jnp.pad(xr, ((0, 0), (0, 0), (4, 4), (4, 4)), mode="reflect")

    def conv(v, w, b):
        y = jax.lax.conv_general_dilated(
            v, w, window_strides=(1, 1), padding="VALID",
            dimension_numbers=("NCHW", "OIHW", "NCHW"))
        return y + b[None, :, None, None]

    y = jax.nn.relu(conv(x0, params["w1a"], params["b1a"]))
    y = jax.nn.relu(conv(y, params["w1b"], params["b1b"]))
    mean = jnp.mean(y, axis=(-2, -1), keepdims=True)
    std = jnp.std(y, axis=(-2, -1), keepdims=True, ddof=1)   # torch.std unbiased
    yn = (y - mean) / (std + EPS)
    h = z @ params["wfc"].T + params["bfc"]
    gamma, beta = h[:, :8], h[:, 8:]
    a = params["alpha"]
    mean_hat = a[0] * mean + a[1] * beta[:, :, None, None]
    std_hat = a[0] * std + a[1] * gamma[:, :, None, None]
    y = yn * std_hat + mean_hat
    y = jax.nn.relu(conv(y, params["w2a"], params["b2a"]))
    y = conv(y, params["w2b"], params["b2b"])
    return y.reshape(B, P, H, W)


def init_params(key, zdim=10):
    ks = jax.random.split(key, 10)

    def u(k, shape, fan_in):
        b = 1.0 / np.sqrt(fan_in)
        return jax.random.uniform(k, shape, jnp.float32, -b, b)

    p = {}
    p["w1a"] = u(ks[0], (8, 1, 3, 3), 1 * 9)
    p["b1a"] = u(ks[1], (8,), 1 * 9)
    p["w1b"] = u(ks[2], (8, 8, 3, 3), 8 * 9)
    p["b1b"] = u(ks[3], (8,), 8 * 9)
    p["w2a"] = u(ks[4], (8, 8, 3, 3), 8 * 9)
    p["b2a"] = u(ks[5], (8,), 8 * 9)
    p["w2b"] = u(ks[6], (1, 8, 3, 3), 8 * 9)
    p["b2b"] = u(ks[7], (1,), 8 * 9)
    p["wfc"] = u(ks[8], (16, zdim), zdim)          # rand_fc: Linear(zdim, 16)
    p["bfc"] = u(ks[9], (16,), zdim)
    p["alpha"] = jnp.array([0.5, 0.5], jnp.float32)
    return p


if __name__ == "__main__":
    key = jax.random.PRNGKey(0)
    kp, kx, kz = jax.random.split(key, 3)

    B, P, H, W = 2, 4, 16, 16
    zdim = 10   # Generator default
    params = init_params(kp, zdim=zdim)

    x = jax.random.normal(kx, (B, P, H, W), jnp.float32)
    # deterministic stand-in for torch.randn(...) inside get_adain
    z = jax.random.normal(kz, (B * P, zdim), jnp.float32)

    x1, x1_rev, x_recon = generator_forward(x, params, z)
    x1 = jax.block_until_ready(x1)

    ref = reference_forward(x, params, z)
    assert x1.shape == (B, P, H, W)
    assert x_recon is None
    np.testing.assert_allclose(np.asarray(x1), np.asarray(ref),
                               atol=5e-4, rtol=5e-4)
    np.testing.assert_allclose(np.asarray(x1_rev), np.asarray(x1))
    print("KERNEL_OK")
</pallas_src>

<mosaic_0001>
module attributes {stable_mosaic.version = 11 : i64} {
  func.func @kernel(%arg0: i32, %arg1: memref<1x1x2376xf32, #tpu.memory_space<vmem>>, %arg2: memref<1x10x4xf32, #tpu.memory_space<vmem>>, %arg3: memref<8x9xf32, #tpu.memory_space<vmem>>, %arg4: memref<8x72xf32, #tpu.memory_space<vmem>>, %arg5: memref<8x72xf32, #tpu.memory_space<vmem>>, %arg6: memref<1x72xf32, #tpu.memory_space<vmem>>, %arg7: memref<16x10xf32, #tpu.memory_space<vmem>>, %arg8: memref<8x8xf32, #tpu.memory_space<vmem>>, %arg9: memref<2276x4xf32, #tpu.memory_space<vmem>>, %arg10: memref<4x2276xf32, #tpu.memory_space<vmem>>, %arg11: memref<1x1x2176xf32, #tpu.memory_space<vmem>>) attributes {dimension_semantics = [#tpu.dimension_semantics<parallel>], iteration_bounds = array<i64: 2>, scalar_prefetch = 0 : i64, scratch_operands = 0 : i64, tpu.core_type = #tpu.core_type<tc>, window_params = [{transform_indices = @transform_0, window_bounds = array<i64: 1, 1, 2376>}, {transform_indices = @transform_1, window_bounds = array<i64: 1, 10, 4>}, {pipeline_mode = #tpu.pipeline_mode<synchronous>, transform_indices = @transform_2, window_bounds = array<i64: 8, 9>}, {pipeline_mode = #tpu.pipeline_mode<synchronous>, transform_indices = @transform_3, window_bounds = array<i64: 8, 72>}, {pipeline_mode = #tpu.pipeline_mode<synchronous>, transform_indices = @transform_4, window_bounds = array<i64: 8, 72>}, {pipeline_mode = #tpu.pipeline_mode<synchronous>, transform_indices = @transform_5, window_bounds = array<i64: 1, 72>}, {pipeline_mode = #tpu.pipeline_mode<synchronous>, transform_indices = @transform_6, window_bounds = array<i64: 16, 10>}, {pipeline_mode = #tpu.pipeline_mode<synchronous>, transform_indices = @transform_7, window_bounds = array<i64: 8, 8>}, {pipeline_mode = #tpu.pipeline_mode<synchronous>, transform_indices = @transform_8, window_bounds = array<i64: 2276, 4>}, {pipeline_mode = #tpu.pipeline_mode<synchronous>, transform_indices = @transform_9, window_bounds = array<i64: 4, 2276>}, {transform_indices = @transform_10, window_bounds = array<i64: 1, 1, 2176>}]} {
    %c0 = arith.constant 0 : index
    %c0_0 = arith.constant 0 : index
    %0 = vector.load %arg8[%c0, %c0_0] : memref<8x8xf32, #tpu.memory_space<vmem>>, vector<8x8xf32>
    %c0_1 = arith.constant 0 : index
    %c0_2 = arith.constant 0 : index
    %c0_3 = arith.constant 0 : index
    %1 = vector.load %arg1[%c0_1, %c0_2, %c0_3] : memref<1x1x2376xf32, #tpu.memory_space<vmem>>, vector<1x1x2376xf32>
    %2 = vector.shape_cast %1 : vector<1x1x2376xf32> to vector<1x2376xf32>
    %c0_4 = arith.constant 0 : index
    %c0_5 = arith.constant 0 : index
    %3 = vector.load %arg3[%c0_4, %c0_5] : memref<8x9xf32, #tpu.memory_space<vmem>>, vector<8x9xf32>
    %4 = vector.extract_strided_slice %0 {offsets = [0, 0], sizes = [8, 1], strides = [1, 1]} : vector<8x8xf32> to vector<8x1xf32>
    %5 = vector.extract_strided_slice %3 {offsets = [0, 0], sizes = [8, 1], strides = [1, 1]} : vector<8x9xf32> to vector<8x1xf32>
    %6 = vector.extract_strided_slice %2 {offsets = [0, 0], sizes = [1, 2326], strides = [1, 1]} : vector<1x2376xf32> to vector<1x2326xf32>
    %7 = vector.broadcast %5 : vector<8x1xf32> to vector<8x2326xf32>
    %8 = vector.broadcast %6 : vector<1x2326xf32> to vector<8x2326xf32>
    %9 = arith.mulf %7, %8 : vector<8x2326xf32>
    %10 = vector.extract_strided_slice %3 {offsets = [0, 1], sizes = [8, 1], strides = [1, 1]} : vector<8x9xf32> to vector<8x1xf32>
    %11 = vector.extract_strided_slice %2 {offsets = [0, 1], sizes = [1, 2326], strides = [1, 1]} : vector<1x2376xf32> to vector<1x2326xf32>
    %12 = vector.broadcast %10 : vector<8x1xf32> to vector<8x2326xf32>
    %13 = vector.broadcast %11 : vector<1x2326xf32> to vector<8x2326xf32>
    %14 = arith.mulf %12, %13 : vector<8x2326xf32>
    %15 = arith.addf %9, %14 : vector<8x2326xf32>
    %16 = vector.extract_strided_slice %3 {offsets = [0, 2], sizes = [8, 1], strides = [1, 1]} : vector<8x9xf32> to vector<8x1xf32>
    %17 = vector.extract_strided_slice %2 {offsets = [0, 2], sizes = [1, 2326], strides = [1, 1]} : vector<1x2376xf32> to vector<1x2326xf32>
    %18 = vector.broadcast %16 : vector<8x1xf32> to vector<8x2326xf32>
    %19 = vector.broadcast %17 : vector<1x2326xf32> to vector<8x2326xf32>
    %20 = arith.mulf %18, %19 : vector<8x2326xf32>
    %21 = arith.addf %15, %20 : vector<8x2326xf32>
    %22 = vector.extract_strided_slice %3 {offsets = [0, 3], sizes = [8, 1], strides = [1, 1]} : vector<8x9xf32> to vector<8x1xf32>
    %23 = vector.extract_strided_slice %2 {offsets = [0, 24], sizes = [1, 2326], strides = [1, 1]} : vector<1x2376xf32> to vector<1x2326xf32>
    %24 = vector.broadcast %22 : vector<8x1xf32> to vector<8x2326xf32>
    %25 = vector.broadcast %23 : vector<1x2326xf32> to vector<8x2326xf32>
    %26 = arith.mulf %24, %25 : vector<8x2326xf32>
    %27 = arith.addf %21, %26 : vector<8x2326xf32>
    %28 = vector.extract_strided_slice %3 {offsets = [0, 4], sizes = [8, 1], strides = [1, 1]} : vector<8x9xf32> to vector<8x1xf32>
    %29 = vector.extract_strided_slice %2 {offsets = [0, 25], sizes = [1, 2326], strides = [1, 1]} : vector<1x2376xf32> to vector<1x2326xf32>
    %30 = vector.broadcast %28 : vector<8x1xf32> to vector<8x2326xf32>
    %31 = vector.broadcast %29 : vector<1x2326xf32> to vector<8x2326xf32>
    %32 = arith.mulf %30, %31 : vector<8x2326xf32>
    %33 = arith.addf %27, %32 : vector<8x2326xf32>
    %34 = vector.extract_strided_slice %3 {offsets = [0, 5], sizes = [8, 1], strides = [1, 1]} : vector<8x9xf32> to vector<8x1xf32>
    %35 = vector.extract_strided_slice %2 {offsets = [0, 26], sizes = [1, 2326], strides = [1, 1]} : vector<1x2376xf32> to vector<1x2326xf32>
    %36 = vector.broadcast %34 : vector<8x1xf32> to vector<8x2326xf32>
    %37 = vector.broadcast %35 : vector<1x2326xf32> to vector<8x2326xf32>
    %38 = arith.mulf %36, %37 : vector<8x2326xf32>
    %39 = arith.addf %33, %38 : vector<8x2326xf32>
    %40 = vector.extract_strided_slice %3 {offsets = [0, 6], sizes = [8, 1], strides = [1, 1]} : vector<8x9xf32> to vector<8x1xf32>
    %41 = vector.extract_strided_slice %2 {offsets = [0, 48], sizes = [1, 2326], strides = [1, 1]} : vector<1x2376xf32> to vector<1x2326xf32>
    %42 = vector.broadcast %40 : vector<8x1xf32> to vector<8x2326xf32>
    %43 = vector.broadcast %41 : vector<1x2326xf32> to vector<8x2326xf32>
    %44 = arith.mulf %42, %43 : vector<8x2326xf32>
    %45 = arith.addf %39, %44 : vector<8x2326xf32>
    %46 = vector.extract_strided_slice %3 {offsets = [0, 7], sizes = [8, 1], strides = [1, 1]} : vector<8x9xf32> to vector<8x1xf32>
    %47 = vector.extract_strided_slice %2 {offsets = [0, 49], sizes = [1, 2326], strides = [1, 1]} : vector<1x2376xf32> to vector<1x2326xf32>
    %48 = vector.broadcast %46 : vector<8x1xf32> to vector<8x2326xf32>
    %49 = vector.broadcast %47 : vector<1x2326xf32> to vector<8x2326xf32>
    %50 = arith.mulf %48, %49 : vector<8x2326xf32>
    %51 = arith.addf %45, %50 : vector<8x2326xf32>
    %52 = vector.extract_strided_slice %3 {offsets = [0, 8], sizes = [8, 1], strides = [1, 1]} : vector<8x9xf32> to vector<8x1xf32>
    %53 = vector.extract_strided_slice %2 {offsets = [0, 50], sizes = [1, 2326], strides = [1, 1]} : vector<1x2376xf32> to vector<1x2326xf32>
    %54 = vector.broadcast %52 : vector<8x1xf32> to vector<8x2326xf32>
    %55 = vector.broadcast %53 : vector<1x2326xf32> to vector<8x2326xf32>
    %56 = arith.mulf %54, %55 : vector<8x2326xf32>
    %57 = arith.addf %51, %56 : vector<8x2326xf32>
    %58 = vector.broadcast %4 : vector<8x1xf32> to vector<8x2326xf32>
    %59 = arith.addf %57, %58 : vector<8x2326xf32>
    %cst = arith.constant 0.000000e+00 : f32
    %60 = vector.broadcast %cst : f32 to vector<8x2326xf32>
    %61 = arith.maximumf %59, %60 : vector<8x2326xf32>
    %c0_6 = arith.constant 0 : index
    %c0_7 = arith.constant 0 : index
    %62 = vector.load %arg4[%c0_6, %c0_7] : memref<8x72xf32, #tpu.memory_space<vmem>>, vector<8x72xf32>
    %63 = vector.extract_strided_slice %0 {offsets = [0, 1], sizes = [8, 1], strides = [1, 1]} : vector<8x8xf32> to vector<8x1xf32>
    %64 = vector.extract_strided_slice %61 {offsets = [0, 0], sizes = [8, 2276], strides = [1, 1]} : vector<8x2326xf32> to vector<8x2276xf32>
    %65 = vector.extract_strided_slice %61 {offsets = [0, 1], sizes = [8, 2276], strides = [1, 1]} : vector<8x2326xf32> to vector<8x2276xf32>
    %66 = vector.extract_strided_slice %61 {offsets = [0, 2], sizes = [8, 2276], strides = [1, 1]} : vector<8x2326xf32> to vector<8x2276xf32>
    %67 = vector.extract_strided_slice %61 {offsets = [0, 24], sizes = [8, 2276], strides = [1, 1]} : vector<8x2326xf32> to vector<8x2276xf32>
    %68 = vector.extract_strided_slice %61 {offsets = [0, 25], sizes = [8, 2276], strides = [1, 1]} : vector<8x2326xf32> to vector<8x2276xf32>
    %69 = vector.extract_strided_slice %61 {offsets = [0, 26], sizes = [8, 2276], strides = [1, 1]} : vector<8x2326xf32> to vector<8x2276xf32>
    %70 = vector.extract_strided_slice %61 {offsets = [0, 48], sizes = [8, 2276], strides = [1, 1]} : vector<8x2326xf32> to vector<8x2276xf32>
    %71 = vector.extract_strided_slice %61 {offsets = [0, 49], sizes = [8, 2276], strides = [1, 1]} : vector<8x2326xf32> to vector<8x2276xf32>
    %72 = vector.extract_strided_slice %61 {offsets = [0, 50], sizes = [8, 2276], strides = [1, 1]} : vector<8x2326xf32> to vector<8x2276xf32>
    %73 = tpu.concatenate %64, %65, %66, %67, %68, %69, %70, %71, %72 in 0 : vector<8x2276xf32>, vector<8x2276xf32>, vector<8x2276xf32>, vector<8x2276xf32>, vector<8x2276xf32>, vector<8x2276xf32>, vector<8x2276xf32>, vector<8x2276xf32>, vector<8x2276xf32> -> vector<72x2276xf32>
    %cst_8 = arith.constant dense<0.000000e+00> : vector<8x2276xf32>
    %74 = tpu.matmul %62, %73, %cst_8 {dimension_numbers = #tpu.dot_dimension_numbers<[1], [0], [0], [1], [0, 0, 1, 1], [], []>} : vector<8x72xf32>, vector<72x2276xf32>, vector<8x2276xf32> -> vector<8x2276xf32>
    %75 = vector.broadcast %63 : vector<8x1xf32> to vector<8x2276xf32>
    %76 = arith.addf %74, %75 : vector<8x2276xf32>
    %cst_9 = arith.constant 0.000000e+00 : f32
    %77 = vector.broadcast %cst_9 : f32 to vector<8x2276xf32>
    %78 = arith.maximumf %76, %77 : vector<8x2276xf32>
    %79 = arith.mulf %78, %78 : vector<8x2276xf32>
    %80 = tpu.concatenate %78, %79 in 0 : vector<8x2276xf32>, vector<8x2276xf32> -> vector<16x2276xf32>
    %c0_10 = arith.constant 0 : index
    %c0_11 = arith.constant 0 : index
    %81 = vector.load %arg9[%c0_10, %c0_11] : memref<2276x4xf32, #tpu.memory_space<vmem>>, vector<2276x4xf32>
    %cst_12 = arith.constant dense<0.000000e+00> : vector<16x4xf32>
    %82 = tpu.matmul %80, %81, %cst_12 {dimension_numbers = #tpu.dot_dimension_numbers<[1], [0], [0], [1], [0, 0, 1, 1], [], []>} : vector<16x2276xf32>, vector<2276x4xf32>, vector<16x4xf32> -> vector<16x4xf32>
    %83 = vector.extract_strided_slice %82 {offsets = [0, 0], sizes = [8, 4], strides = [1, 1]} : vector<16x4xf32> to vector<8x4xf32>
    %84 = vector.extract_strided_slice %82 {offsets = [8, 0], sizes = [8, 4], strides = [1, 1]} : vector<16x4xf32> to vector<8x4xf32>
    %cst_13 = arith.constant 2.500000e-03 : f32
    %85 = vector.broadcast %cst_13 : f32 to vector<8x4xf32>
    %86 = arith.mulf %83, %85 : vector<8x4xf32>
    %87 = arith.mulf %86, %83 : vector<8x4xf32>
    %88 = arith.subf %84, %87 : vector<8x4xf32>
    %cst_14 = arith.constant 0.00250626565 : f32
    %89 = vector.broadcast %cst_14 : f32 to vector<8x4xf32>
    %90 = arith.mulf %88, %89 : vector<8x4xf32>
    %cst_15 = arith.constant 0.000000e+00 : f32
    %91 = vector.broadcast %cst_15 : f32 to vector<8x4xf32>
    %92 = arith.maximumf %90, %91 : vector<8x4xf32>
    %93 = math.sqrt %92 : vector<8x4xf32>
    %c0_16 = arith.constant 0 : index
    %c0_17 = arith.constant 0 : index
    %94 = vector.load %arg7[%c0_16, %c0_17] : memref<16x10xf32, #tpu.memory_space<vmem>>, vector<16x10xf32>
    %c0_18 = arith.constant 0 : index
    %c0_19 = arith.constant 0 : index
    %c0_20 = arith.constant 0 : index
    %95 = vector.load %arg2[%c0_18, %c0_19, %c0_20] : memref<1x10x4xf32, #tpu.memory_space<vmem>>, vector<1x10x4xf32>
    %96 = vector.shape_cast %95 : vector<1x10x4xf32> to vector<10x4xf32>
    %cst_21 = arith.constant dense<0.000000e+00> : vector<16x4xf32>
    %97 = tpu.matmul %94, %96, %cst_21 {dimension_numbers = #tpu.dot_dimension_numbers<[1], [0], [0], [1], [0, 0, 1, 1], [], []>} : vector<16x10xf32>, vector<10x4xf32>, vector<16x4xf32> -> vector<16x4xf32>
    %98 = vector.extract_strided_slice %97 {offsets = [0, 0], sizes = [8, 4], strides = [1, 1]} : vector<16x4xf32> to vector<8x4xf32>
    %99 = vector.extract_strided_slice %0 {offsets = [0, 4], sizes = [8, 1], strides = [1, 1]} : vector<8x8xf32> to vector<8x1xf32>
    %100 = vector.broadcast %99 : vector<8x1xf32> to vector<8x4xf32>
    %101 = arith.addf %98, %100 : vector<8x4xf32>
    %102 = vector.extract_strided_slice %97 {offsets = [8, 0], sizes = [8, 4], strides = [1, 1]} : vector<16x4xf32> to vector<8x4xf32>
    %103 = vector.extract_strided_slice %0 {offsets = [0, 5], sizes = [8, 1], strides = [1, 1]} : vector<8x8xf32> to vector<8x1xf32>
    %104 = vector.broadcast %103 : vector<8x1xf32> to vector<8x4xf32>
    %105 = arith.addf %102, %104 : vector<8x4xf32>
    %106 = vector.extract_strided_slice %0 {offsets = [0, 6], sizes = [1, 1], strides = [1, 1]} : vector<8x8xf32> to vector<1x1xf32>
    %107 = vector.broadcast %106 : vector<1x1xf32> to vector<8x4xf32>
    %108 = arith.mulf %107, %86 : vector<8x4xf32>
    %109 = arith.addf %108, %105 : vector<8x4xf32>
    %110 = vector.broadcast %106 : vector<1x1xf32> to vector<8x4xf32>
    %111 = arith.mulf %110, %93 : vector<8x4xf32>
    %112 = arith.addf %111, %101 : vector<8x4xf32>
    %cst_22 = arith.constant 9.99999971E-10 : f32
    %113 = vector.broadcast %cst_22 : f32 to vector<8x4xf32>
    %114 = arith.addf %93, %113 : vector<8x4xf32>
    %115 = arith.divf %112, %114 : vector<8x4xf32>
    %116 = arith.mulf %86, %115 : vector<8x4xf32>
    %117 = arith.subf %109, %116 : vector<8x4xf32>
    %118 = tpu.concatenate %115, %117 in 0 : vector<8x4xf32>, vector<8x4xf32> -> vector<16x4xf32>
    %c0_23 = arith.constant 0 : index
    %c0_24 = arith.constant 0 : index
    %119 = vector.load %arg10[%c0_23, %c0_24] : memref<4x2276xf32, #tpu.memory_space<vmem>>, vector<4x2276xf32>
    %cst_25 = arith.constant dense<0.000000e+00> : vector<16x2276xf32>
    %120 = tpu.matmul %118, %119, %cst_25 {dimension_numbers = #tpu.dot_dimension_numbers<[1], [0], [0], [1], [0, 0, 1, 1], [], []>} : vector<16x4xf32>, vector<4x2276xf32>, vector<16x2276xf32> -> vector<16x2276xf32>
    %121 = vector.extract_strided_slice %120 {offsets = [0, 0], sizes = [8, 2276], strides = [1, 1]} : vector<16x2276xf32> to vector<8x2276xf32>
    %122 = arith.mulf %78, %121 : vector<8x2276xf32>
    %123 = vector.extract_strided_slice %120 {offsets = [8, 0], sizes = [8, 2276], strides = [1, 1]} : vector<16x2276xf32> to vector<8x2276xf32>
    %124 = arith.addf %122, %123 : vector<8x2276xf32>
    %c0_26 = arith.constant 0 : index
    %c0_27 = arith.constant 0 : index
    %125 = vector.load %arg5[%c0_26, %c0_27] : memref<8x72xf32, #tpu.memory_space<vmem>>, vector<8x72xf32>
    %126 = vector.extract_strided_slice %0 {offsets = [0, 2], sizes = [8, 1], strides = [1, 1]} : vector<8x8xf32> to vector<8x1xf32>
    %127 = vector.extract_strided_slice %124 {offsets = [0, 0], sizes = [8, 2226], strides = [1, 1]} : vector<8x2276xf32> to vector<8x2226xf32>
    %128 = vector.extract_strided_slice %124 {offsets = [0, 1], sizes = [8, 2226], strides = [1, 1]} : vector<8x2276xf32> to vector<8x2226xf32>
    %129 = vector.extract_strided_slice %124 {offsets = [0, 2], sizes = [8, 2226], strides = [1, 1]} : vector<8x2276xf32> to vector<8x2226xf32>
    %130 = vector.extract_strided_slice %124 {offsets = [0, 24], sizes = [8, 2226], strides = [1, 1]} : vector<8x2276xf32> to vector<8x2226xf32>
    %131 = vector.extract_strided_slice %124 {offsets = [0, 25], sizes = [8, 2226], strides = [1, 1]} : vector<8x2276xf32> to vector<8x2226xf32>
    %132 = vector.extract_strided_slice %124 {offsets = [0, 26], sizes = [8, 2226], strides = [1, 1]} : vector<8x2276xf32> to vector<8x2226xf32>
    %133 = vector.extract_strided_slice %124 {offsets = [0, 48], sizes = [8, 2226], strides = [1, 1]} : vector<8x2276xf32> to vector<8x2226xf32>
    %134 = vector.extract_strided_slice %124 {offsets = [0, 49], sizes = [8, 2226], strides = [1, 1]} : vector<8x2276xf32> to vector<8x2226xf32>
    %135 = vector.extract_strided_slice %124 {offsets = [0, 50], sizes = [8, 2226], strides = [1, 1]} : vector<8x2276xf32> to vector<8x2226xf32>
    %136 = tpu.concatenate %127, %128, %129, %130, %131, %132, %133, %134, %135 in 0 : vector<8x2226xf32>, vector<8x2226xf32>, vector<8x2226xf32>, vector<8x2226xf32>, vector<8x2226xf32>, vector<8x2226xf32>, vector<8x2226xf32>, vector<8x2226xf32>, vector<8x2226xf32> -> vector<72x2226xf32>
    %cst_28 = arith.constant dense<0.000000e+00> : vector<8x2226xf32>
    %137 = tpu.matmul %125, %136, %cst_28 {dimension_numbers = #tpu.dot_dimension_numbers<[1], [0], [0], [1], [0, 0, 1, 1], [], []>} : vector<8x72xf32>, vector<72x2226xf32>, vector<8x2226xf32> -> vector<8x2226xf32>
    %138 = vector.broadcast %126 : vector<8x1xf32> to vector<8x2226xf32>
    %139 = arith.addf %137, %138 : vector<8x2226xf32>
    %cst_29 = arith.constant 0.000000e+00 : f32
    %140 = vector.broadcast %cst_29 : f32 to vector<8x2226xf32>
    %141 = arith.maximumf %139, %140 : vector<8x2226xf32>
    %c0_30 = arith.constant 0 : index
    %c0_31 = arith.constant 0 : index
    %142 = vector.load %arg6[%c0_30, %c0_31] : memref<1x72xf32, #tpu.memory_space<vmem>>, vector<1x72xf32>
    %143 = vector.extract_strided_slice %0 {offsets = [0, 3], sizes = [1, 1], strides = [1, 1]} : vector<8x8xf32> to vector<1x1xf32>
    %144 = vector.extract_strided_slice %141 {offsets = [0, 0], sizes = [8, 2176], strides = [1, 1]} : vector<8x2226xf32> to vector<8x2176xf32>
    %145 = vector.extract_strided_slice %141 {offsets = [0, 1], sizes = [8, 2176], strides = [1, 1]} : vector<8x2226xf32> to vector<8x2176xf32>
    %146 = vector.extract_strided_slice %141 {offsets = [0, 2], sizes = [8, 2176], strides = [1, 1]} : vector<8x2226xf32> to vector<8x2176xf32>
    %147 = vector.extract_strided_slice %141 {offsets = [0, 24], sizes = [8, 2176], strides = [1, 1]} : vector<8x2226xf32> to vector<8x2176xf32>
    %148 = vector.extract_strided_slice %141 {offsets = [0, 25], sizes = [8, 2176], strides = [1, 1]} : vector<8x2226xf32> to vector<8x2176xf32>
    %149 = vector.extract_strided_slice %141 {offsets = [0, 26], sizes = [8, 2176], strides = [1, 1]} : vector<8x2226xf32> to vector<8x2176xf32>
    %150 = vector.extract_strided_slice %141 {offsets = [0, 48], sizes = [8, 2176], strides = [1, 1]} : vector<8x2226xf32> to vector<8x2176xf32>
    %151 = vector.extract_strided_slice %141 {offsets = [0, 49], sizes = [8, 2176], strides = [1, 1]} : vector<8x2226xf32> to vector<8x2176xf32>
    %152 = vector.extract_strided_slice %141 {offsets = [0, 50], sizes = [8, 2176], strides = [1, 1]} : vector<8x2226xf32> to vector<8x2176xf32>
    %153 = tpu.concatenate %144, %145, %146, %147, %148, %149, %150, %151, %152 in 0 : vector<8x2176xf32>, vector<8x2176xf32>, vector<8x2176xf32>, vector<8x2176xf32>, vector<8x2176xf32>, vector<8x2176xf32>, vector<8x2176xf32>, vector<8x2176xf32>, vector<8x2176xf32> -> vector<72x2176xf32>
    %cst_32 = arith.constant dense<0.000000e+00> : vector<1x2176xf32>
    %154 = tpu.matmul %142, %153, %cst_32 {dimension_numbers = #tpu.dot_dimension_numbers<[1], [0], [0], [1], [0, 0, 1, 1], [], []>} : vector<1x72xf32>, vector<72x2176xf32>, vector<1x2176xf32> -> vector<1x2176xf32>
    %155 = vector.broadcast %143 : vector<1x1xf32> to vector<1x2176xf32>
    %156 = arith.addf %154, %155 : vector<1x2176xf32>
    %c0_33 = arith.constant 0 : index
    %c0_34 = arith.constant 0 : index
    %c0_35 = arith.constant 0 : index
    %157 = vector.load %arg11[%c0_33, %c0_34, %c0_35] : memref<1x1x2176xf32, #tpu.memory_space<vmem>>, vector<1x1x2176xf32>
    %158 = vector.shape_cast %157 : vector<1x1x2176xf32> to vector<1x2176xf32>
    %159 = vector.shape_cast %156 : vector<1x2176xf32> to vector<1x1x2176xf32>
    tpu.vector_store %arg11[%c0_33, %c0_34, %c0_35], %159 {strides = array<i32>} : memref<1x1x2176xf32, #tpu.memory_space<vmem>>, vector<1x1x2176xf32>,
    return
  }
  func.func @transform_0(%arg0: i32) -> (i32, i32, i32) {
    %c0_i32 = arith.constant 0 : i32
    %c0_i32_0 = arith.constant 0 : i32
    %c0_i32_1 = arith.constant 0 : i32
    return %arg0, %c0_i32, %c0_i32_0 : i32, i32, i32
  }
  func.func @transform_1(%arg0: i32) -> (i32, i32, i32) {
    %c0_i32 = arith.constant 0 : i32
    %c0_i32_0 = arith.constant 0 : i32
    %c0_i32_1 = arith.constant 0 : i32
    return %arg0, %c0_i32, %c0_i32_0 : i32, i32, i32
  }
  func.func @transform_2(%arg0: i32) -> (i32, i32) {
    %c0_i32 = arith.constant 0 : i32
    %c0_i32_0 = arith.constant 0 : i32
    %c0_i32_1 = arith.constant 0 : i32
    return %c0_i32, %c0_i32_0 : i32, i32
  }
  func.func @transform_3(%arg0: i32) -> (i32, i32) {
    %c0_i32 = arith.constant 0 : i32
    %c0_i32_0 = arith.constant 0 : i32
    %c0_i32_1 = arith.constant 0 : i32
    return %c0_i32, %c0_i32_0 : i32, i32
  }
  func.func @transform_4(%arg0: i32) -> (i32, i32) {
    %c0_i32 = arith.constant 0 : i32
    %c0_i32_0 = arith.constant 0 : i32
    %c0_i32_1 = arith.constant 0 : i32
    return %c0_i32, %c0_i32_0 : i32, i32
  }
  func.func @transform_5(%arg0: i32) -> (i32, i32) {
    %c0_i32 = arith.constant 0 : i32
    %c0_i32_0 = arith.constant 0 : i32
    %c0_i32_1 = arith.constant 0 : i32
    return %c0_i32, %c0_i32_0 : i32, i32
  }
  func.func @transform_6(%arg0: i32) -> (i32, i32) {
    %c0_i32 = arith.constant 0 : i32
    %c0_i32_0 = arith.constant 0 : i32
    %c0_i32_1 = arith.constant 0 : i32
    return %c0_i32, %c0_i32_0 : i32, i32
  }
  func.func @transform_7(%arg0: i32) -> (i32, i32) {
    %c0_i32 = arith.constant 0 : i32
    %c0_i32_0 = arith.constant 0 : i32
    %c0_i32_1 = arith.constant 0 : i32
    return %c0_i32, %c0_i32_0 : i32, i32
  }
  func.func @transform_8(%arg0: i32) -> (i32, i32) {
    %c0_i32 = arith.constant 0 : i32
    %c0_i32_0 = arith.constant 0 : i32
    %c0_i32_1 = arith.constant 0 : i32
    return %c0_i32, %c0_i32_0 : i32, i32
  }
  func.func @transform_9(%arg0: i32) -> (i32, i32) {
    %c0_i32 = arith.constant 0 : i32
    %c0_i32_0 = arith.constant 0 : i32
    %c0_i32_1 = arith.constant 0 : i32
    return %c0_i32, %c0_i32_0 : i32, i32
  }
  func.func @transform_10(%arg0: i32) -> (i32, i32, i32) {
    %c0_i32 = arith.constant 0 : i32
    %c0_i32_0 = arith.constant 0 : i32
    %c0_i32_1 = arith.constant 0 : i32
    return %arg0, %c0_i32, %c0_i32_0 : i32, i32, i32
  }
}

</mosaic_0001>

<bundles_post_ra>
// kernel: tpu_custom_call.1
= control target key start
LH: loop header
LB: loop body
LE: loop exit
PB: predicated region body
PF: predicated region fallthrough
CT: control target
= control target key end

     0   :  { %s14824_s0 = inlined_call_operand.vmem [shape: f32[2,1,2376], index: 0, kind: input, shape index: {}]   ;;  %s14825_s1 = inlined_call_operand.vmem [shape: f32[2,10,4], index: 1, kind: input, shape index: {}]   ;;  %s14826_s2 = inlined_call_operand.vmem [shape: f32[8,9], index: 2, kind: input, shape index: {}]   ;;  %s14827_s3 = inlined_call_operand.vmem [shape: f32[8,72], index: 3, kind: input, shape index: {}]   ;;  %s14828_s4 = inlined_call_operand.vmem [shape: f32[8,72], index: 4, kind: input, shape index: {}]   ;;  %s14829_s5 = inlined_call_operand.vmem [shape: f32[1,72], index: 5, kind: input, shape index: {}]   ;;  %s14830_s6 = inlined_call_operand.vmem [shape: f32[16,10], index: 6, kind: input, shape index: {}]   ;;  %s14831_s7 = inlined_call_operand.vmem [shape: f32[8,8], index: 7, kind: input, shape index: {}]   ;;  %s14832_s8 = inlined_call_operand.vmem [shape: f32[2276,4], index: 8, kind: input, shape index: {}]   ;;  %s14833_s9 = inlined_call_operand.vmem [shape: f32[4,2276], index: 9, kind: input, shape index: {}]   ;;  %s14834_s10 = inlined_call_operand.hbm [shape: f32[2,1,2176], index: 10, kind: output, shape index: {}]  }
   0x1   :  { %14968 = sst [smem:[#allocation46_spill]] %s14824_s0 }
   0x2   :  { %14969 = sst [smem:[#allocation47_spill]] %s14826_s2 }
   0x3   :  { %15 = vsyncpa [#allocation3], 0 }
   0x4   :  { %17 = vsyncpa [#allocation3 + $0x1], 0  ;;  %s9797_s13 = smov 0   ;;  %s9799_s14 = smov 0  }
   0x5   :  { %s9801_s15 = smov 0   ;;  %s9803_s16 = smov 0  }
   0x6 LB: > { %s9818_s17 = sadd.s32 4294967295, %s9716_s16   ;;  %s7517_s18 = sadd.s32 4294967294, %s9716_s16   ;;  %s9716_s16 = sphi %s9803_s16, %s15171_s16   ;;  %s9712_s15 = sphi %s9801_s15, %s15170_s15   ;;  %s9708_s14 = sphi %s9799_s14, %s15169_s14   ;;  %s9704_s13 = sphi %s9797_s13, %s15168_s13  }
   0x7   : > { %s9822_s19 = sadd.s32 1, %s9716_s16   ;;  %s250_s20 = sadd.s32 1, %s9712_s15 }
   0x8   : > { %s247_s21 = ssub.s32 %s9716_s16, %s9822_s19  ;;  %p260_p0 = scmp.ne.s32.totalorder %s9712_s15, %s9708_s14 }
   0x9   : > { %p248_p1 = scmp.eq.s32.totalorder %s247_s21, 0  ;;  %p261_p2 = scmp.eq.s32.totalorder %s9818_s17, 1 }
   0xa   : > { %p266_p3 = scmp.ne.s32.totalorder %s9708_s14, %s9704_s13  ;;  %p267_p4 = scmp.eq.s32.totalorder %s7517_s18, 1 }
   0xb   : > { %s9833_s22 = scalar_select %p248_p1, %s9712_s15, %s250_s20  }
   0xc   : > { %p9835_p5 = por %p261_p2, %p260_p0  ;;  %p9839_p6 = por %p267_p4, %p266_p3 }
   0xd   : > { %p7520_p7 = scmp.ge.s32.totalorder %s9716_s16, 1  ;;  %p324_p8 = scmp.lt.s32.totalorder %s9716_s16, 3 }
   0xf   : > { %p325_p9 = pnand %p7520_p7, %p324_p8 }
  0x11   : > { %328 = sbr.rel (%p325_p9) target bundleno = 2531 (0x9e3), region = 60 }
  0x18   : > { %s14972_s2 = sld [smem:[#allocation47_spill]]  ;;  %p366_p10 = scmp.lt.s32.totalorder %s9818_s17, 1  ;;  %v14836_v1 = vmov 2   ;;  %v14837_v2 = vmov 3   ;;  %v14835_v3 = vlaneseq  ;;  %v9720_v5 = vmov 6   ;;  %v375_v29 = vld [vmem:[%s14831_s7] sm:$0xff] }
  0x19   : > { %8741 = vset.pattern.permute.xlu0 %v14836_v1  ;;  %8742 = vset.pattern.permute.xlu1 %v14837_v2  ;;  %s14974_s0 = sld [smem:[#allocation46_spill]]  ;;  %v9721_v10 = vmov 4   ;;  %v9722_v16 = vmov 0   ;;  %v14839_v17 = vmov 5   ;;  %v9724_v22 = vmov 1   ;;  %s14948_s20 = smov 127  }
  0x1a   : > { %s9852_s27 = scalar_select %p366_p10, %s9818_s17, 1  ;;  %v9856_v4 = vshrl.u32 %v14835_v3, 7  ;;  %v9725_v23 = vmov 7   ;;  %v9726_v28 = vmov 8   ;;  %vm582_vm0 = vcmask 1039360  }
  0x1b   : > { %s14954_s21 = smov 126   ;;  %s14946_s25 = smov 104   ;;  %vm719_vm1 = vcmask 1031168   ;;  %vm856_vm2 = vcmask 850944   ;;  %vm993_vm3 = vcmask 842752   ;;  %vm1130_vm4 = vcmask 834560  }
  0x1c   : > { %s8675_s28 = smul.u32 19, %s9852_s27  ;;  %14973 = vst [vmem:[#allocation5_spill] sm:$0xff] %v9856_v4  ;;  %v402_v6 = vsub.s32 3, %v9856_v4  ;;  %v394_v7 = vsub.s32 1, %v9856_v4  ;;  %v398_v8 = vsub.s32 2, %v9856_v4  ;;  %v390_v9 = vsub.s32 0, %v9856_v4 }
  0x1d   : > { %v414_v18 = vsub.s32 6, %v9856_v4  ;;  %v410_v19 = vsub.s32 5, %v9856_v4  ;;  %v406_v20 = vsub.s32 4, %v9856_v4  ;;  %v418_v21 = vsub.s32 7, %v9856_v4  ;;  %s14944_s26 = smov 103   ;;  %s14942_s29 = smov 80  }
  0x1e   : > { %v379_v0 = vld [vmem:[%s14972_s2] sm:$0xff]  ;;  %s14950_s30 = smov 79   ;;  %vm1267_vm5 = vcmask 654336   ;;  %vm1404_vm6 = vcmask 646144   ;;  %vm1541_vm7 = vcmask 637952   ;;  %vm2242_vm8 = vcmask 588800  }
  0x1f   : > { %640 = vperm.xlu0 %8741, %v379_v0   ;;  %777 = vperm.xlu1 %8742, %v379_v0   ;;  %s9861_s11 = scalar_lea.vmem %s14974_s0, %s8675_s28  ;;  %s14952_s28 = smov 102   ;;  %vm3213_vm9 = vcmask 1043456   ;;  %vm3915_vm10 = vcmask 1041408   ;;  %vm9738_vm11 = vmmov 1   ;;  %vm3206_vm13 = vcmask 818176  }
  0x20   : > { %v377_v11 = vld [vmem:[%s9861_s11 + $0x8] sm:$0xff]  ;;  %v378_v30 = vld [vmem:[%s9861_s11 + $0x10] sm:$0x7]  ;;  %v9914_v37 = vld [vmem:[%s9861_s11] sm:$0xff]  ;;  %s14956_s11 = smov 78   ;;  %vm3908_vm14 = vcmask 80896  }
  0x21   : > { %v9868_v12 = vrot.slane %v377_v11, %v398_v8  ;;  %v9870_v13 = vrot.slane %v377_v11, %v394_v7  ;;  %v9872_v14 = vrot.slane %v377_v11, %v390_v9  ;;  %v9874_v15 = vrot.slane %v377_v11, %v402_v6  ;;  %vm13007_vm12 = vmpackc.low %vm3915_vm10, %vm9738_vm11  ;;  %s15143_s2 = smov 78   ;;  %s15144_s12 = smov 126  }
  0x22   : > { %v9883_v24 = vrot.slane %v377_v11, %v414_v18  ;;  %v9887_v25 = vrot.slane %v377_v11, %v410_v19  ;;  %v9891_v26 = vrot.slane %v377_v11, %v406_v20  ;;  %v9895_v27 = vrot.slane %v377_v11, %v418_v21  ;;  %s15148_s18 = smov 104   ;;  %s15150_s0 = smov 80  }
  0x23   : > { %8745 = vset.pattern.permute.xlu0 %v9720_v5  ;;  %8743 = vset.pattern.permute.xlu1 %v9721_v10  ;;  %14975 = vst [vmem:[#allocation6_spill] sm:$0xff] %v9868_v12  ;;  %14976 = vst [vmem:[#allocation7_spill] sm:$0xff] %v9870_v13  ;;  %v9901_v31 = vrot.slane %v378_v30, %v394_v7  ;;  %v9903_v32 = vrot.slane %v378_v30, %v390_v9  ;;  %vm4045_vm11 = vcmask 31744  }
  0x24   : > { %1188 = vperm.xlu0 %8745, %v379_v0   ;;  %914 = vperm.xlu1 %8743, %v379_v0   ;;  %14977 = vst [vmem:[#allocation8_spill] sm:$0xff] %v9872_v14  ;;  %14978 = vst [vmem:[#allocation9_spill] sm:$0xff] %v9874_v15  ;;  %v9905_v33 = vrot.slane %v378_v30, %v398_v8  ;;  %v9917_v38 = vrot.slane %v9914_v37, %v402_v6 }
  0x25   : > { %14979 = vst [vmem:[#allocation10_spill] sm:$0xff] %v9895_v27  ;;  %14980 = vst [vmem:[#allocation11_spill] sm:$0xff] %v9901_v31  ;;  %v9920_v39 = vrot.slane %v9914_v37, %v394_v7  ;;  %v9931_v43 = vrot.slane %v9914_v37, %v398_v8  ;;  %v9940_v46 = vrot.slane %v9914_v37, %v390_v9 }
  0x26   : > { %14981 = vst [vmem:[#allocation12_spill] sm:$0xff] %v9903_v32  ;;  %14982 = vst [vmem:[#allocation13_spill] sm:$0xff] %v9905_v33 }
  0x27   : > { %14985 = vst [vmem:[#allocation16_spill] sm:$0xff] %v9917_v38 }
  0x28   : > { %8748 = vset.pattern.permute.xlu0 %v9722_v16  ;;  %8744 = vset.pattern.permute.xlu1 %v14839_v17 }
  0x29   : > { %382 = vperm.xlu0 %8748, %v379_v0   ;;  %1051 = vperm.xlu1 %8744, %v379_v0  }
  0x2d   : > { %8749 = vset.pattern.permute.xlu0 %v9724_v22  ;;  %8746 = vset.pattern.permute.xlu1 %v9725_v23 }
  0x2e   : > { %503 = vperm.xlu0 %8749, %v379_v0   ;;  %1325 = vperm.xlu1 %8746, %v379_v0  }
  0x32   : > { %8747 = vset.pattern.permute.xlu1 %v9726_v28 }
  0x33   : > { %1462 = vperm.xlu1 %8747, %v379_v0  }
  0x37   : > { %8750 = vset.pattern.permute.xlu1 %v9722_v16 }
  0x38   : > { %1600 = vperm.xlu1 %8750, %v375_v29  }
  0x3c   : > { %9051 = vset.pattern.permute.xlu1 %v9721_v10 }
  0x9e   : > { %v9907_v34 = vpop.permute.xlu0 %640  ;;  %v9942_v47 = vpop.permute.xlu1 %777 }
  0x9f   : > { %14983 = vst [vmem:[#allocation14_spill] sm:$0xff] %v9907_v34  ;;  %v644_v44 = vmul.f32 %v9907_v34, %v9920_v39  ;;  %14987 = vst [vmem:[#allocation18_spill] sm:$0xff] %v9942_v47  ;;  %v646_v48 = vmul.f32 %v9907_v34, %v9917_v38  ;;  %v781_v50 = vmul.f32 %v9942_v47, %v9920_v39 }
  0xa0   : > { %v645_v51 = vmul.f32 %v9907_v34, %v9931_v43  ;;  %v783_v53 = vmul.f32 %v9942_v47, %v9917_v38  ;;  %v643_v54 = vmul.f32 %v9907_v34, %v9940_v46  ;;  %v782_v56 = vmul.f32 %v9942_v47, %v9931_v43 }
  0xa1   : > { %v780_v59 = vmul.f32 %v9942_v47, %v9940_v46 }
  0xa3   : > { %v9909_v35 = vpop.permute.xlu0 %1188  ;;  %v9956_v52 = vpop.permute.xlu1 %914 }
  0xa4   : > { %14984 = vst [vmem:[#allocation15_spill] sm:$0xff] %v9909_v35  ;;  %v918_v55 = vmul.f32 %v9956_v52, %v9920_v39  ;;  %v920_v58 = vmul.f32 %v9956_v52, %v9917_v38  ;;  %v919_v61 = vmul.f32 %v9956_v52, %v9931_v43  ;;  %v917_v63 = vmul.f32 %v9956_v52, %v9940_v46 }
  0xa5   : > { %v1192_v0 = vmul.f32 %v9909_v35, %v9920_v39  ;;  %v1194_v6 = vmul.f32 %v9909_v35, %v9917_v38  ;;  %v1191_v9 = vmul.f32 %v9909_v35, %v9940_v46  ;;  %v1193_v10 = vmul.f32 %v9909_v35, %v9931_v43 }
  0xa8   : > { %v9911_v36 = vpop.permute.xlu0 %382  ;;  %v9970_v57 = vpop.permute.xlu1 %1051 }
  0xa9   : > { %v1055_v60 = vmul.f32 %v9970_v57, %v9920_v39  ;;  %v1057_v62 = vmul.f32 %v9970_v57, %v9917_v38  ;;  %v1056_v5 = vmul.f32 %v9970_v57, %v9931_v43  ;;  %v1054_v7 = vmul.f32 %v9970_v57, %v9940_v46 }
  0xad   : > { %v9922_v40 = vpop.permute.xlu0 %503  ;;  %v10002_v8 = vpop.permute.xlu1 %1325 }
  0xae   : > { %14986 = vst [vmem:[#allocation17_spill] sm:$0xff] %v9922_v40  ;;  %v509_v41 = vmul.f32 %v9922_v40, %v9917_v38  ;;  %v507_v42 = vmul.f32 %v9922_v40, %v9920_v39  ;;  %v508_v45 = vmul.f32 %v9922_v40, %v9931_v43  ;;  %v506_v49 = vmul.f32 %v9922_v40, %v9940_v46 }
  0xaf   : > { %14988 = vst [vmem:[#allocation19_spill] sm:$0xff] %v10002_v8  ;;  %v1330_v11 = vmul.f32 %v10002_v8, %v9931_v43  ;;  %v1329_v16 = vmul.f32 %v10002_v8, %v9920_v39  ;;  %v1328_v23 = vmul.f32 %v10002_v8, %v9940_v46  ;;  %v1331_v28 = vmul.f32 %v10002_v8, %v9917_v38 }
  0xb0   : > { %550 = vrot.lane.b32.xlu0 %v509_v41, %s14948_s20  ;;  %546 = vrot.lane.b32.xlu1 %v507_v42, %s14948_s20 }
  0xb2   : > { %v10016_v22 = vpop.permute.xlu1 %1462 }
  0xb3   : > { %14989 = vst [vmem:[#allocation20_spill] sm:$0xff] %v10016_v22  ;;  %v1467_v29 = vmul.f32 %v10016_v22, %v9931_v43  ;;  %v1466_v30 = vmul.f32 %v10016_v22, %v9920_v39  ;;  %v1465_v41 = vmul.f32 %v10016_v22, %v9940_v46  ;;  %v1468_v42 = vmul.f32 %v10016_v22, %v9917_v38 }
  0xb4   : > { %683 = vrot.lane.b32.xlu0 %v644_v44, %s14954_s21  ;;  %548 = vrot.lane.b32.xlu1 %v508_v45, %s14948_s20  ;;  %v10039_v44 = vrot.slane %v9914_v37, %v414_v18  ;;  %v10044_v45 = vrot.slane %v9914_v37, %v410_v19  ;;  %v10055_v18 = vrot.slane %v9914_v37, %v406_v20 }
  0xb5   : > { %v10060_v19 = vrot.slane %v9914_v37, %v418_v21  ;;  %v1474_v38 = vmul.f32 %v10016_v22, %v9870_v13 }
  0xb6   : > { %v648_v20 = vmul.f32 %v9907_v34, %v10044_v45  ;;  %v647_v21 = vmul.f32 %v9907_v34, %v10055_v18 }
  0xb7   : > { %14990 = vst [vmem:[#allocation21_spill] sm:$0xff] %v10060_v19  ;;  %v650_v37 = vmul.f32 %v9907_v34, %v10060_v19 }
  0xb8   : > { %687 = vrot.lane.b32.xlu0 %v646_v48, %s14954_s21  ;;  %544 = vrot.lane.b32.xlu1 %v506_v49, %s14948_s20  ;;  %v512_v48 = vmul.f32 %v9922_v40, %v10039_v44  ;;  %v511_v49 = vmul.f32 %v9922_v40, %v10044_v45 }
  0xbc   : > { %820 = vrot.lane.b32.xlu0 %v781_v50, %s14946_s25  ;;  %685 = vrot.lane.b32.xlu1 %v645_v51, %s14954_s21  ;;  %v510_v50 = vmul.f32 %v9922_v40, %v10055_v18  ;;  %v513_v51 = vmul.f32 %v9922_v40, %v10060_v19 }
  0xc0   : > { %824 = vrot.lane.b32.xlu0 %v783_v53, %s14946_s25  ;;  %681 = vrot.lane.b32.xlu1 %v643_v54, %s14954_s21  ;;  %v649_v53 = vmul.f32 %v9907_v34, %v10039_v44  ;;  %v786_v54 = vmul.f32 %v9942_v47, %v10039_v44 }
  0xc4   : > { %957 = vrot.lane.b32.xlu0 %v918_v55, %s14944_s26  ;;  %822 = vrot.lane.b32.xlu1 %v782_v56, %s14946_s25  ;;  %v785_v55 = vmul.f32 %v9942_v47, %v10044_v45  ;;  %v784_v56 = vmul.f32 %v9942_v47, %v10055_v18 }
  0xc8   : > { %961 = vrot.lane.b32.xlu0 %v920_v58, %s14944_s26  ;;  %818 = vrot.lane.b32.xlu1 %v780_v59, %s14946_s25  ;;  %v787_v58 = vmul.f32 %v9942_v47, %v10060_v19  ;;  %v923_v59 = vmul.f32 %v9956_v52, %v10039_v44 }
  0xcc   : > { %1094 = vrot.lane.b32.xlu0 %v1055_v60, %s14952_s28  ;;  %959 = vrot.lane.b32.xlu1 %v919_v61, %s14944_s26  ;;  %v922_v60 = vmul.f32 %v9956_v52, %v10044_v45  ;;  %v921_v61 = vmul.f32 %v9956_v52, %v10055_v18 }
  0xd0   : > { %1098 = vrot.lane.b32.xlu0 %v1057_v62, %s14952_s28  ;;  %955 = vrot.lane.b32.xlu1 %v917_v63, %s14944_s26  ;;  %v924_v62 = vmul.f32 %v9956_v52, %v10060_v19  ;;  %v1060_v63 = vmul.f32 %v9970_v57, %v10039_v44 }
  0xd4   : > { %1231 = vrot.lane.b32.xlu0 %v1192_v0, %s14942_s29  ;;  %1096 = vrot.lane.b32.xlu1 %v1056_v5, %s14952_s28  ;;  %v1059_v0 = vmul.f32 %v9970_v57, %v10044_v45  ;;  %v1058_v5 = vmul.f32 %v9970_v57, %v10055_v18 }
  0xd8   : > { %1235 = vrot.lane.b32.xlu0 %v1194_v6, %s14942_s29  ;;  %1092 = vrot.lane.b32.xlu1 %v1054_v7, %s14952_s28  ;;  %v1061_v6 = vmul.f32 %v9970_v57, %v10060_v19  ;;  %v1197_v7 = vmul.f32 %v9909_v35, %v10039_v44 }
  0xdc   : > { %1229 = vrot.lane.b32.xlu0 %v1191_v9, %s14942_s29  ;;  %1233 = vrot.lane.b32.xlu1 %v1193_v10, %s14942_s29  ;;  %v1196_v9 = vmul.f32 %v9909_v35, %v10044_v45  ;;  %v1195_v10 = vmul.f32 %v9909_v35, %v10055_v18 }
  0xe0   : > { %1370 = vrot.lane.b32.xlu0 %v1330_v11, %s14950_s30  ;;  %1368 = vrot.lane.b32.xlu1 %v1329_v16, %s14950_s30  ;;  %v1198_v11 = vmul.f32 %v9909_v35, %v10060_v19  ;;  %v10128_v16 = vpop.permute.xlu1 %1600 }
  0xe4   : > { %1366 = vrot.lane.b32.xlu0 %v1328_v23, %s14950_s30  ;;  %1372 = vrot.lane.b32.xlu1 %v1331_v28, %s14950_s30  ;;  %v1334_v23 = vmul.f32 %v10002_v8, %v10039_v44  ;;  %v1333_v28 = vmul.f32 %v10002_v8, %v10044_v45 }
  0xe8   : > { %1507 = vrot.lane.b32.xlu0 %v1467_v29, %s14956_s11  ;;  %1505 = vrot.lane.b32.xlu1 %v1466_v30, %s14956_s11 }
  0xec   : > { %1503 = vrot.lane.b32.xlu0 %v1465_v41, %s14956_s11  ;;  %1509 = vrot.lane.b32.xlu1 %v1468_v42, %s14956_s11  ;;  %v1332_v41 = vmul.f32 %v10002_v8, %v10055_v18  ;;  %v1335_v42 = vmul.f32 %v10002_v8, %v10060_v19 }
  0xf0   : > { %556 = vrot.lane.b32.xlu0 %v512_v48, %s14948_s20  ;;  %554 = vrot.lane.b32.xlu1 %v511_v49, %s14948_s20 }
  0xf4   : > { %552 = vrot.lane.b32.xlu0 %v510_v50, %s14948_s20  ;;  %558 = vrot.lane.b32.xlu1 %v513_v51, %s14948_s20  ;;  %v1471_v50 = vmul.f32 %v10016_v22, %v10039_v44  ;;  %v1470_v51 = vmul.f32 %v10016_v22, %v10044_v45 }
  0xf8   : > { %693 = vrot.lane.b32.xlu0 %v649_v53, %s14954_s21  ;;  %691 = vrot.lane.b32.xlu1 %v648_v20, %s14954_s21 }
  0xfc   : > { %689 = vrot.lane.b32.xlu0 %v647_v21, %s14954_s21  ;;  %695 = vrot.lane.b32.xlu1 %v650_v37, %s14954_s21  ;;  %v1469_v21 = vmul.f32 %v10016_v22, %v10055_v18  ;;  %v1472_v37 = vmul.f32 %v10016_v22, %v10060_v19 }
 0x100   : > { %830 = vrot.lane.b32.xlu0 %v786_v54, %s14946_s25  ;;  %828 = vrot.lane.b32.xlu1 %v785_v55, %s14946_s25 }
 0x104   : > { %826 = vrot.lane.b32.xlu0 %v784_v56, %s14946_s25  ;;  %832 = vrot.lane.b32.xlu1 %v787_v58, %s14946_s25  ;;  %v516_v56 = vmul.f32 %v9922_v40, %v9868_v12  ;;  %v515_v58 = vmul.f32 %v9922_v40, %v9870_v13 }
 0x108   : > { %967 = vrot.lane.b32.xlu0 %v923_v59, %s14944_s26  ;;  %965 = vrot.lane.b32.xlu1 %v922_v60, %s14944_s26 }
 0x10c   : > { %963 = vrot.lane.b32.xlu0 %v921_v61, %s14944_s26  ;;  %969 = vrot.lane.b32.xlu1 %v924_v62, %s14944_s26  ;;  %v514_v61 = vmul.f32 %v9922_v40, %v9872_v14  ;;  %v517_v62 = vmul.f32 %v9922_v40, %v9874_v15 }
 0x110   : > { %1104 = vrot.lane.b32.xlu0 %v1060_v63, %s14952_s28  ;;  %1102 = vrot.lane.b32.xlu1 %v1059_v0, %s14952_s28 }
 0x114   : > { %1100 = vrot.lane.b32.xlu0 %v1058_v5, %s14952_s28  ;;  %1106 = vrot.lane.b32.xlu1 %v1061_v6, %s14952_s28  ;;  %v653_v5 = vmul.f32 %v9907_v34, %v9868_v12  ;;  %v652_v6 = vmul.f32 %v9907_v34, %v9870_v13 }
 0x118   : > { %1241 = vrot.lane.b32.xlu0 %v1197_v7, %s14942_s29  ;;  %1239 = vrot.lane.b32.xlu1 %v1196_v9, %s14942_s29 }
 0x11c   : > { %1237 = vrot.lane.b32.xlu0 %v1195_v10, %s14942_s29  ;;  %1243 = vrot.lane.b32.xlu1 %v1198_v11, %s14942_s29  ;;  %v651_v10 = vmul.f32 %v9907_v34, %v9872_v14  ;;  %v654_v11 = vmul.f32 %v9907_v34, %v9874_v15 }
 0x120   : > { %1378 = vrot.lane.b32.xlu0 %v1334_v23, %s14950_s30  ;;  %1376 = vrot.lane.b32.xlu1 %v1333_v28, %s14950_s30 }
 0x122   : > { %v10136_v29 = vpop.permute.xlu0 %550  ;;  %v10138_v30 = vpop.permute.xlu1 %546 }
 0x123   : > { %14991 = vst [vmem:[#allocation22_spill] sm:$0xff] %v10136_v29 }
 0x124   : > { %1374 = vrot.lane.b32.xlu0 %v1332_v41, %s14950_s30  ;;  %1380 = vrot.lane.b32.xlu1 %v1335_v42, %s14950_s30  ;;  %v790_v41 = vmul.f32 %v9942_v47, %v9868_v12  ;;  %v789_v42 = vmul.f32 %v9942_v47, %v9870_v13 }
 0x126   : > { %v10146_v48 = vpop.permute.xlu0 %683  ;;  %v10148_v49 = vpop.permute.xlu1 %548 }
 0x128   : > { %1515 = vrot.lane.b32.xlu0 %v1471_v50, %s14956_s11  ;;  %1513 = vrot.lane.b32.xlu1 %v1470_v51, %s14956_s11 }
 0x12a   : > { %v10156_v53 = vpop.permute.xlu0 %687  ;;  %v10158_v20 = vpop.permute.xlu1 %544 }
 0x12b   : > { %14992 = vst [vmem:[#allocation23_spill] sm:$0xff] %v10156_v53 }
 0x12c   : > { %1511 = vrot.lane.b32.xlu0 %v1469_v21, %s14956_s11  ;;  %1517 = vrot.lane.b32.xlu1 %v1472_v37, %s14956_s11  ;;  %v788_v21 = vmul.f32 %v9942_v47, %v9872_v14  ;;  %v791_v37 = vmul.f32 %v9942_v47, %v9874_v15 }
 0x12e   : > { %v10166_v54 = vpop.permute.xlu0 %820  ;;  %v10168_v55 = vpop.permute.xlu1 %685 }
 0x130   : > { %564 = vrot.lane.b32.xlu0 %v516_v56, %s14948_s20  ;;  %562 = vrot.lane.b32.xlu1 %v515_v58, %s14948_s20 }
 0x132   : > { %v10176_v59 = vpop.permute.xlu0 %824  ;;  %v10178_v60 = vpop.permute.xlu1 %681 }
 0x133   : > { %14993 = vst [vmem:[#allocation24_spill] sm:$0xff] %v10176_v59 }
 0x134   : > { %560 = vrot.lane.b32.xlu0 %v514_v61, %s14948_s20  ;;  %566 = vrot.lane.b32.xlu1 %v517_v62, %s14948_s20  ;;  %v927_v61 = vmul.f32 %v9956_v52, %v9868_v12  ;;  %v926_v62 = vmul.f32 %v9956_v52, %v9870_v13 }
 0x136   : > { %v10186_v63 = vpop.permute.xlu0 %957  ;;  %v10188_v0 = vpop.permute.xlu1 %822 }
 0x138   : > { %701 = vrot.lane.b32.xlu0 %v653_v5, %s14954_s21  ;;  %699 = vrot.lane.b32.xlu1 %v652_v6, %s14954_s21 }
 0x13a   : > { %v10196_v7 = vpop.permute.xlu0 %961  ;;  %v10198_v9 = vpop.permute.xlu1 %818 }
 0x13b   : > { %14994 = vst [vmem:[#allocation25_spill] sm:$0xff] %v10196_v7 }
 0x13c   : > { %697 = vrot.lane.b32.xlu0 %v651_v10, %s14954_s21  ;;  %703 = vrot.lane.b32.xlu1 %v654_v11, %s14954_s21  ;;  %v925_v10 = vmul.f32 %v9956_v52, %v9872_v14  ;;  %v928_v11 = vmul.f32 %v9956_v52, %v9874_v15 }
 0x13e   : > { %v10206_v23 = vpop.permute.xlu0 %1094  ;;  %v10208_v28 = vpop.permute.xlu1 %959 }
 0x140   : > { %838 = vrot.lane.b32.xlu0 %v790_v41, %s14946_s25  ;;  %836 = vrot.lane.b32.xlu1 %v789_v42, %s14946_s25 }
 0x142   : > { %v10216_v50 = vpop.permute.xlu0 %1098  ;;  %v10218_v51 = vpop.permute.xlu1 %955 }
 0x144   : > { %834 = vrot.lane.b32.xlu0 %v788_v21, %s14946_s25  ;;  %840 = vrot.lane.b32.xlu1 %v791_v37, %s14946_s25  ;;  %v1064_v21 = vmul.f32 %v9970_v57, %v9868_v12  ;;  %v1063_v37 = vmul.f32 %v9970_v57, %v9870_v13 }
 0x146   : > { %v10226_v56 = vpop.permute.xlu0 %1231  ;;  %v10228_v58 = vpop.permute.xlu1 %1096 }
 0x148   : > { %975 = vrot.lane.b32.xlu0 %v927_v61, %s14944_s26  ;;  %973 = vrot.lane.b32.xlu1 %v926_v62, %s14944_s26 }
 0x14a   : > { %v10236_v5 = vpop.permute.xlu0 %1235  ;;  %v10238_v6 = vpop.permute.xlu1 %1092 }
 0x14c   : > { %971 = vrot.lane.b32.xlu0 %v925_v10, %s14944_s26  ;;  %977 = vrot.lane.b32.xlu1 %v928_v11, %s14944_s26  ;;  %v1062_v10 = vmul.f32 %v9970_v57, %v9872_v14  ;;  %v1065_v11 = vmul.f32 %v9970_v57, %v9874_v15 }
 0x14e   : > { %v10246_v41 = vpop.permute.xlu0 %1229  ;;  %v10248_v42 = vpop.permute.xlu1 %1233 }
 0x150   : > { %1112 = vrot.lane.b32.xlu0 %v1064_v21, %s14952_s28  ;;  %1110 = vrot.lane.b32.xlu1 %v1063_v37, %s14952_s28  ;;  %v1201_v21 = vmul.f32 %v9909_v35, %v9868_v12  ;;  %v1200_v37 = vmul.f32 %v9909_v35, %v9870_v13 }
 0x152   : > { %v10256_v61 = vpop.permute.xlu0 %1370  ;;  %v10258_v62 = vpop.permute.xlu1 %1368 }
 0x154   : > { %1108 = vrot.lane.b32.xlu0 %v1062_v10, %s14952_s28  ;;  %1114 = vrot.lane.b32.xlu1 %v1065_v11, %s14952_s28  ;;  %v1199_v10 = vmul.f32 %v9909_v35, %v9872_v14  ;;  %v1202_v11 = vmul.f32 %v9909_v35, %v9874_v15 }
 0x156   : > { %v10266_v3 = vpop.permute.xlu0 %1366  ;;  %v10268_v1 = vpop.permute.xlu1 %1372 }
 0x157   : > { %14995 = vst [vmem:[#allocation26_spill] sm:$0xff] %v10268_v1 }
 0x158   : > { %1249 = vrot.lane.b32.xlu0 %v1201_v21, %s14942_s29  ;;  %1247 = vrot.lane.b32.xlu1 %v1200_v37, %s14942_s29  ;;  %v1338_v21 = vmul.f32 %v10002_v8, %v9868_v12  ;;  %v1337_v37 = vmul.f32 %v10002_v8, %v9870_v13  ;;  %v722_v13 = vsel %vm719_vm1, %v10168_v55, %v10156_v53 }
 0x15a   : > { %v10276_v2 = vpop.permute.xlu0 %1507  ;;  %v10278_v17 = vpop.permute.xlu1 %1505 }
 0x15c   : > { %1245 = vrot.lane.b32.xlu0 %v1199_v10, %s14942_s29  ;;  %1251 = vrot.lane.b32.xlu1 %v1202_v11, %s14942_s29  ;;  %v1336_v10 = vmul.f32 %v10002_v8, %v9872_v14  ;;  %v1339_v11 = vmul.f32 %v10002_v8, %v9874_v15 }
 0x15e   : > { %v10286_v4 = vpop.permute.xlu0 %1503  ;;  %v10288_v19 = vpop.permute.xlu1 %1509 }
 0x15f   : > { %14996 = vst [vmem:[#allocation27_spill] sm:$0xff] %v10288_v19 }
 0x160   : > { %1386 = vrot.lane.b32.xlu0 %v1338_v21, %s14950_s30  ;;  %1384 = vrot.lane.b32.xlu1 %v1337_v37, %s14950_s30  ;;  %v1475_v37 = vmul.f32 %v10016_v22, %v9868_v12  ;;  %v1473_v12 = vmul.f32 %v10016_v22, %v9872_v14  ;;  %v520_v14 = vmul.f32 %v9922_v40, %v9883_v24 }
 0x162   : > { %v10296_v33 = vpop.permute.xlu0 %556  ;;  %v10298_v32 = vpop.permute.xlu1 %554 }
 0x164   : > { %1382 = vrot.lane.b32.xlu0 %v1336_v10, %s14950_s30  ;;  %1388 = vrot.lane.b32.xlu1 %v1339_v11, %s14950_s30  ;;  %v585_v10 = vsel %vm582_vm0, %v10148_v49, %v10136_v29  ;;  %v485_v11 = vmul.f32 %v9931_v43, %v9911_v36  ;;  %v484_v43 = vmul.f32 %v9920_v39, %v9911_v36 }
 0x166   : > { %v10306_v31 = vpop.permute.xlu0 %552  ;;  %v10308_v21 = vpop.permute.xlu1 %558  ;;  %v622_v29 = vadd.f32 %v585_v10, %v485_v11  ;;  %v996_v11 = vsel %vm993_vm3, %v10208_v28, %v10196_v7 }
 0x167   : > { %14997 = vst [vmem:[#allocation28_spill] sm:$0xff] %v10308_v21 }
 0x168   : > { %1523 = vrot.lane.b32.xlu0 %v1475_v37, %s14956_s11  ;;  %1521 = vrot.lane.b32.xlu1 %v1474_v38, %s14956_s11  ;;  %v1476_v37 = vmul.f32 %v10016_v22, %v9874_v15  ;;  %v584_v38 = vsel %vm582_vm0, %v10138_v30, %v10148_v49  ;;  %v721_v15 = vsel %vm719_vm1, %v10146_v48, %v10168_v55 }
 0x169   : > { %v859_v49 = vsel %vm856_vm2, %v10188_v0, %v10176_v59  ;;  %v621_v22 = vadd.f32 %v584_v38, %v484_v43  ;;  %v759_v53 = vadd.f32 %v722_v13, %v622_v29  ;;  %v858_v55 = vsel %vm856_vm2, %v10166_v54, %v10188_v0 }
 0x16a   : > { %v10321_v8 = vpop.permute.xlu0 %693  ;;  %v10323_v35 = vpop.permute.xlu1 %691  ;;  %v995_v13 = vsel %vm993_vm3, %v10186_v63, %v10208_v28  ;;  %v1133_v29 = vsel %vm1130_vm4, %v10228_v58, %v10216_v50 }
 0x16b   : > { %v896_v59 = vadd.f32 %v859_v49, %v759_v53  ;;  %v1270_v53 = vsel %vm1267_vm5, %v10248_v42, %v10236_v5  ;;  %v1269_v49 = vsel %vm1267_vm5, %v10226_v56, %v10248_v42  ;;  %v1406_v42 = vsel %vm1404_vm6, %v10258_v62, %v10256_v61 }
 0x16c   : > { %1519 = vrot.lane.b32.xlu0 %v1473_v12, %s14956_s11  ;;  %1525 = vrot.lane.b32.xlu1 %v1476_v37, %s14956_s11  ;;  %v519_v12 = vmul.f32 %v9922_v40, %v9887_v25  ;;  %v758_v37 = vadd.f32 %v721_v15, %v621_v22  ;;  %v518_v15 = vmul.f32 %v9922_v40, %v9891_v26 }
 0x16d   : > { %v1033_v38 = vadd.f32 %v996_v11, %v896_v59  ;;  %v1132_v22 = vsel %vm1130_vm4, %v10206_v23, %v10228_v58  ;;  %v657_v58 = vmul.f32 %v9907_v34, %v9883_v24 }
 0x16e   : > { %v10347_v39 = vpop.permute.xlu0 %689  ;;  %v10349_v10 = vpop.permute.xlu1 %695  ;;  %v895_v0 = vadd.f32 %v858_v55, %v758_v37 }
 0x16f   : > { %14998 = vst [vmem:[#allocation29_spill] sm:$0xff] %v10349_v10  ;;  %v1170_v59 = vadd.f32 %v1133_v29, %v1033_v38  ;;  %v656_v29 = vmul.f32 %v9907_v34, %v9887_v25 }
 0x170   : > { %572 = vrot.lane.b32.xlu0 %v520_v14, %s14948_s20  ;;  %570 = vrot.lane.b32.xlu1 %v519_v12, %s14948_s20  ;;  %v521_v14 = vmul.f32 %v9922_v40, %v9895_v27  ;;  %v1032_v28 = vadd.f32 %v995_v13, %v895_v0  ;;  %v1407_v12 = vsel %vm1404_vm6, %v10256_v61, %v10268_v1 }
 0x171   : > { %v1307_v11 = vadd.f32 %v1270_v53, %v1170_v59  ;;  %v1544_v0 = vsel %vm1541_vm7, %v10276_v2, %v10288_v19  ;;  %v793_v61 = vmul.f32 %v9942_v47, %v9887_v25 }
 0x172   : > { %v10367_v43 = vpop.permute.xlu0 %830  ;;  %v10369_v7 = vpop.permute.xlu1 %828  ;;  %v1169_v55 = vadd.f32 %v1132_v22, %v1032_v28 }
 0x174   : > { %568 = vrot.lane.b32.xlu0 %v518_v15, %s14948_s20  ;;  %574 = vrot.lane.b32.xlu1 %v521_v14, %s14948_s20  ;;  %v1306_v38 = vadd.f32 %v1269_v49, %v1169_v55  ;;  %v1444_v15 = vadd.f32 %v1407_v12, %v1307_v11  ;;  %v1543_v14 = vsel %vm1541_vm7, %v10278_v17, %v10276_v2 }
 0x175   : > { %v658_v49 = vmul.f32 %v9907_v34, %v9895_v27  ;;  %v655_v11 = vmul.f32 %v9907_v34, %v9891_v26  ;;  %v857_v34 = vsel %vm856_vm2, %v10198_v9, %v10166_v54 }
 0x176   : > { %v10391_v37 = vpop.permute.xlu0 %826  ;;  %v10393_v13 = vpop.permute.xlu1 %832  ;;  %v1443_v22 = vadd.f32 %v1406_v42, %v1306_v38  ;;  %v1581_v53 = vadd.f32 %v1544_v0, %v1444_v15  ;;  %v794_v15 = vmul.f32 %v9942_v47, %v9883_v24 }
 0x178   : > { %709 = vrot.lane.b32.xlu0 %v657_v58, %s14954_s21  ;;  %707 = vrot.lane.b32.xlu1 %v656_v29, %s14954_s21  ;;  %v1580_v12 = vadd.f32 %v1543_v14, %v1443_v22  ;;  %v1605_v58 = vadd.f32 %v10128_v16, %v1581_v53 }
 0x17a   : > { %v10408_v28 = vpop.permute.xlu0 %967  ;;  %v10410_v59 = vpop.permute.xlu1 %965  ;;  %v1604_v29 = vadd.f32 %v10128_v16, %v1580_v12  ;;  %v10427_v42 = vmax.f32 %v1605_v58, 0.0  ;;  %v483_v12 = vmul.f32 %v9940_v46, %v9911_v36  ;;  %v720_v58 = vsel %vm719_vm1, %v10178_v60, %v10146_v48 }
 0x17b   : > { %v588_v46 = vsel %vm582_vm0, %v10298_v32, %v10296_v33  ;;  %v994_v48 = vsel %vm993_vm3, %v10218_v51, %v10186_v63  ;;  %v725_v60 = vsel %vm719_vm1, %v10323_v35, %v10321_v8  ;;  %v1268_v51 = vsel %vm1267_vm5, %v10246_v41, %v10226_v56 }
 0x17c   : > { %844 = vrot.lane.b32.xlu0 %v793_v61, %s14946_s25  ;;  %711 = vrot.lane.b32.xlu1 %v658_v49, %s14954_s21  ;;  %14999 = vst [vmem:[#allocation30_spill] sm:$0xff] %v10427_v42  ;;  %v10435_v14 = vmax.f32 %v1604_v29, 0.0  ;;  %v583_v49 = vsel %vm582_vm0, %v10158_v20, %v10138_v30  ;;  %v488_v20 = vmul.f32 %v10044_v45, %v9911_v36 }
 0x17d   : > { %v1131_v45 = vsel %vm1130_vm4, %v10238_v6, %v10206_v23  ;;  %v1405_v23 = vsel %vm1404_vm6, %v10266_v3, %v10258_v62  ;;  %v1542_v41 = vsel %vm1541_vm7, %v10286_v4, %v10278_v17 }
 0x17e   : > { %v10419_v2 = vpop.permute.xlu0 %963  ;;  %v10421_v55 = vpop.permute.xlu1 %969  ;;  %15000 = vst [vmem:[#allocation31_spill] sm:$0xff] %v10435_v14  ;;  %v10444_v61 = vpack.i.bf16 %v10427_v42, %v10435_v14  ;;  %v625_v9 = vadd.f32 %v588_v46, %v488_v20 }
 0x180   : > { %705 = vrot.lane.b32.xlu1 %v655_v11, %s14954_s21  ;;  %v620_v11 = vadd.f32 %v583_v49, %v483_v12  ;;  %v762_v63 = vadd.f32 %v725_v60, %v625_v9 }
 0x182   : > { %v10429_v0 = vpop.permute.xlu0 %1104  ;;  %v10431_v38 = vpop.permute.xlu1 %1102  ;;  %v757_v30 = vadd.f32 %v720_v58, %v620_v11  ;;  %v862_v58 = vsel %vm856_vm2, %v10369_v7, %v10367_v43 }
 0x183   : > { %v1136_v6 = vsel %vm1130_vm4, %v10431_v38, %v10429_v0 }
 0x184   : > { %846 = vrot.lane.b32.xlu1 %v794_v15, %s14946_s25  ;;  %v894_v54 = vadd.f32 %v857_v34, %v757_v30  ;;  %v999_v34 = vsel %vm993_vm3, %v10410_v59, %v10408_v28  ;;  %v899_v30 = vadd.f32 %v862_v58, %v762_v63 }
 0x186   : > { %v10438_v22 = vpop.permute.xlu0 %1100  ;;  %v10440_v53 = vpop.permute.xlu1 %1106  ;;  %v1031_v11 = vadd.f32 %v994_v48, %v894_v54  ;;  %v1036_v56 = vadd.f32 %v999_v34, %v899_v30 }
 0x188   : > { %8752 = vrot.lane.b32.xlu1 %v10444_v61, %s14948_s20  ;;  %v1168_v46 = vadd.f32 %v1131_v45, %v1031_v11  ;;  %v1173_v9 = vadd.f32 %v1136_v6, %v1036_v56 }
 0x18a   : > { %v10456_v29 = vpop.permute.xlu0 %1241  ;;  %v10458_v15 = vpop.permute.xlu1 %1239  ;;  %v1305_v48 = vadd.f32 %v1268_v51, %v1168_v46 }
 0x18b   : > { %v1273_v60 = vsel %vm1267_vm5, %v10458_v15, %v10456_v29 }
 0x18c   : > { %8762 = vrot.lane.b32.xlu1 %v10444_v61, %s14954_s21  ;;  %v1442_v54 = vadd.f32 %v1405_v23, %v1305_v48  ;;  %v1310_v11 = vadd.f32 %v1273_v60, %v1173_v9 }
 0x18e   : > { %v10476_v49 = vpop.permute.xlu0 %1237  ;;  %v10478_v12 = vpop.permute.xlu1 %1243  ;;  %v1579_v62 = vadd.f32 %v1542_v41, %v1442_v54 }
 0x190   : > { %v1603_v34 = vadd.f32 %v10128_v16, %v1579_v62 }
 0x192   : > { %v10492_v20 = vpop.permute.xlu0 %1378  ;;  %v10494_v40 = vpop.permute.xlu1 %1376  ;;  %v10528_v48 = vmax.f32 %v1603_v34, 0.0 }
 0x193   : > { %v1410_v3 = vsel %vm1404_vm6, %v10494_v40, %v10492_v20 }
 0x194   : > { %v1447_v63 = vadd.f32 %v1410_v3, %v1310_v11  ;;  %15002 = vst [vmem:[#allocation33_spill] sm:$0xff] %v10528_v48 }
 0x196   : > { %v10508_v45 = vpop.permute.xlu0 %1374  ;;  %v10510_v58 = vpop.permute.xlu1 %1380 }
 0x19a   : > { %v10515_v51 = vpop.permute.xlu0 %1515  ;;  %v10517_v4 = vpop.permute.xlu1 %1513 }
 0x19b   : > { %v1547_v17 = vsel %vm1541_vm7, %v10517_v4, %v10515_v51 }
 0x19c   : > { %v1584_v46 = vadd.f32 %v1547_v17, %v1447_v63 }
 0x19e   : > { %v1608_v30 = vadd.f32 %v10128_v16, %v1584_v46  ;;  %v10524_v23 = vpop.permute.xlu0 %1511  ;;  %v10526_v6 = vpop.permute.xlu1 %1517 }
 0x19f   : > { %15001 = vst [vmem:[#allocation32_spill] sm:$0xff] %v10526_v6 }
 0x1a0   : > { %v10530_v56 = vmax.f32 %v1608_v30, 0.0 }
 0x1a2   : > { %15003 = vst [vmem:[#allocation34_spill] sm:$0xff] %v10530_v56  ;;  %v10532_v41 = vpop.permute.xlu0 %564  ;;  %v10534_v60 = vpop.permute.xlu1 %562  ;;  %v8771_v54 = vpack.i.bf16 %v10530_v56, %v10528_v48 }
 0x1a4   : > { %8772 = vrot.lane.b32.xlu1 %v8771_v54, %s14954_s21  ;;  %8757 = vrot.lane.b32.xlu0 %v8771_v54, %s14948_s20 }
 0x1a6   : > { %v10540_v9 = vpop.permute.xlu0 %560  ;;  %v10542_v3 = vpop.permute.xlu1 %566 }
 0x1a7   : > { %15004 = vst [vmem:[#allocation35_spill] sm:$0xff] %v10542_v3 }
 0x1a8   : > { %8782 = vrot.lane.b32.xlu1 %v10444_v61, %s14944_s26  ;;  %8767 = vrot.lane.b32.xlu0 %v10444_v61, %s14946_s25 }
 0x1aa   : > { %v10548_v62 = vpop.permute.xlu0 %701  ;;  %v10550_v11 = vpop.permute.xlu1 %699 }
 0x1ac   : > { %8792 = vrot.lane.b32.xlu1 %v8771_v54, %s14944_s26  ;;  %8777 = vrot.lane.b32.xlu0 %v8771_v54, %s14946_s25 }
 0x1ae   : > { %v10554_v63 = vpop.permute.xlu0 %697  ;;  %v10556_v17 = vpop.permute.xlu1 %703 }
 0x1af   : > { %15005 = vst [vmem:[#allocation36_spill] sm:$0xff] %v10554_v63  ;;  %15006 = vst [vmem:[#allocation37_spill] sm:$0xff] %v10556_v17  ;;  %v792_v17 = vmul.f32 %v9942_v47, %v9891_v26  ;;  %v929_v63 = vmul.f32 %v9956_v52, %v9891_v26 }
 0x1b0   : > { %8802 = vrot.lane.b32.xlu1 %v10444_v61, %s14942_s29  ;;  %8787 = vrot.lane.b32.xlu0 %v10444_v61, %s14952_s28 }
 0x1b2   : > { %v10562_v34 = vpop.permute.xlu0 %838  ;;  %v10564_v46 = vpop.permute.xlu1 %836 }
 0x1b4   : > { %8812 = vrot.lane.b32.xlu1 %v8771_v54, %s14942_s29  ;;  %8797 = vrot.lane.b32.xlu0 %v8771_v54, %s14952_s28 }
 0x1b6   : > { %v10568_v30 = vpop.permute.xlu0 %834  ;;  %v10570_v56 = vpop.permute.xlu1 %840 }
 0x1b7   : > { %15007 = vst [vmem:[#allocation38_spill] sm:$0xff] %v10568_v30  ;;  %15008 = vst [vmem:[#allocation39_spill] sm:$0xff] %v10570_v56 }
 0x1b8   : > { %2166 = vrot.lane.b32.xlu1 %v10435_v14, %s14956_s11  ;;  %8807 = vrot.lane.b32.xlu0 %v10444_v61, %s14950_s30  ;;  %v931_v14 = vmul.f32 %v9956_v52, %v9883_v24 }
 0x1ba   : > { %v10576_v19 = vpop.permute.xlu0 %975  ;;  %v10578_v1 = vpop.permute.xlu1 %973 }
 0x1bc   : > { %842 = vrot.lane.b32.xlu1 %v792_v17, %s14946_s25  ;;  %8817 = vrot.lane.b32.xlu0 %v8771_v54, %s14950_s30 }
 0x1be   : > { %v10584_v30 = vpop.permute.xlu0 %971  ;;  %v10586_v56 = vpop.permute.xlu1 %977 }
 0x1bf   : > { %15009 = vst [vmem:[#allocation40_spill] sm:$0xff] %v10584_v30  ;;  %15010 = vst [vmem:[#allocation41_spill] sm:$0xff] %v10586_v56  ;;  %v587_v56 = vsel %vm582_vm0, %v10306_v31, %v10298_v32  ;;  %v724_v32 = vsel %vm719_vm1, %v10347_v39, %v10323_v35 }
 0x1c0   : > { %983 = vrot.lane.b32.xlu1 %v931_v14, %s14944_s26  ;;  %2168 = vrot.lane.b32.xlu0 %v10427_v42, %s14956_s11  ;;  %v1068_v14 = vmul.f32 %v9970_v57, %v9883_v24  ;;  %v795_v42 = vmul.f32 %v9942_v47, %v9895_v27 }
 0x1c2   : > { %v10593_v61 = vpop.permute.xlu1 %1110  ;;  %v10597_v17 = vpop.permute.xlu0 %1112 }
 0x1c4   : > { %979 = vrot.lane.b32.xlu1 %v929_v63, %s14944_s26  ;;  %2164 = vrot.lane.b32.xlu0 %v10528_v48, %s14956_s11  ;;  %v589_v63 = vsel %vm582_vm0, %v10296_v33, %v10308_v21  ;;  %v487_v48 = vmul.f32 %v10055_v18, %v9911_v36  ;;  %v726_v33 = vsel %vm719_vm1, %v10321_v8, %v10349_v10  ;;  %v15015_v10 = vld [vmem:[#allocation15_spill] sm:$0xff] }
 0x1c5   : > { %v930_v18 = vmul.f32 %v9956_v52, %v9887_v25  ;;  %v861_v21 = vsel %vm856_vm2, %v10391_v37, %v10369_v7  ;;  %v1000_v7 = vsel %vm993_vm3, %v10408_v28, %v10421_v55 }
 0x1c6   : > { %v10602_v54 = vpop.permute.xlu1 %1114  ;;  %v10620_v30 = vpop.permute.xlu0 %1108 }
 0x1c7   : > { %15011 = vst [vmem:[#allocation42_spill] sm:$0xff] %v10602_v54  ;;  %v489_v54 = vmul.f32 %v10039_v44, %v9911_v36  ;;  %15012 = vst [vmem:[#allocation43_spill] sm:$0xff] %v10620_v30  ;;  %v863_v30 = vsel %vm856_vm2, %v10367_v43, %v10393_v13  ;;  %v932_v43 = vmul.f32 %v9956_v52, %v9895_v27 }
 0x1c8   : > { %1120 = vrot.lane.b32.xlu1 %v1068_v14, %s14952_s28  ;;  %848 = vrot.lane.b32.xlu0 %v795_v42, %s14946_s25  ;;  %v1066_v14 = vmul.f32 %v9970_v57, %v9891_v26  ;;  %v624_v42 = vadd.f32 %v587_v56, %v487_v48  ;;  %v1205_v48 = vmul.f32 %v15015_v10, %v9883_v24 }
 0x1c9   : > { %v626_v44 = vadd.f32 %v589_v63, %v489_v54  ;;  %v998_v56 = vsel %vm993_vm3, %v10419_v2, %v10410_v59  ;;  %v1137_v59 = vsel %vm1130_vm4, %v10429_v0, %v10440_v53  ;;  %v1067_v0 = vmul.f32 %v9970_v57, %v9887_v25 }
 0x1ca   : > { %v10622_v47 = vpop.permute.xlu1 %1247  ;;  %v761_v35 = vadd.f32 %v724_v32, %v624_v42  ;;  %v1135_v32 = vsel %vm1130_vm4, %v10438_v22, %v10431_v38  ;;  %v1274_v38 = vsel %vm1267_vm5, %v10456_v29, %v10478_v12 }
 0x1cb   : > { %15013 = vst [vmem:[#allocation44_spill] sm:$0xff] %v10622_v47  ;;  %v763_v47 = vadd.f32 %v726_v33, %v626_v44  ;;  %v1409_v44 = vsel %vm1404_vm6, %v10508_v45, %v10494_v40  ;;  %v1548_v40 = vsel %vm1541_vm7, %v10515_v51, %v10526_v6 }
 0x1cc   : > { %1116 = vrot.lane.b32.xlu1 %v1066_v14, %s14952_s28  ;;  %981 = vrot.lane.b32.xlu0 %v930_v18, %s14944_s26  ;;  %v898_v54 = vadd.f32 %v861_v21, %v761_v35  ;;  %v10654_v14 = vpop.permute.xlu0 %1249  ;;  %v1272_v21 = vsel %vm1267_vm5, %v10476_v49, %v10458_v15  ;;  %v1411_v35 = vsel %vm1404_vm6, %v10492_v20, %v10510_v58 }
 0x1cd   : > { %v900_v63 = vadd.f32 %v863_v30, %v763_v47  ;;  %v1203_v47 = vmul.f32 %v15015_v10, %v9891_v26  ;;  %v1069_v20 = vmul.f32 %v9970_v57, %v9895_v27 }
 0x1ce   : > { %v10642_v8 = vpop.permute.xlu1 %1251  ;;  %v1035_v28 = vadd.f32 %v998_v56, %v898_v54  ;;  %v1546_v54 = vsel %vm1541_vm7, %v10524_v23, %v10517_v4 }
 0x1cf   : > { %15014 = vst [vmem:[#allocation45_spill] sm:$0xff] %v10642_v8  ;;  %v1037_v33 = vadd.f32 %v1000_v7, %v900_v63  ;;  %v15017_v7 = vld [vmem:[#allocation19_spill] sm:$0xff] }
 0x1d0   : > { %1257 = vrot.lane.b32.xlu1 %v1205_v48, %s14942_s29  ;;  %985 = vrot.lane.b32.xlu0 %v932_v43, %s14944_s26  ;;  %v1172_v30 = vadd.f32 %v1135_v32, %v1035_v28  ;;  %v10684_v29 = vpop.permute.xlu0 %1245  ;;  %v1342_v43 = vmul.f32 %v15017_v7, %v9883_v24  ;;  %v1340_v4 = vmul.f32 %v15017_v7, %v9891_v26 }
 0x1d1   : > { %v1174_v42 = vadd.f32 %v1137_v59, %v1037_v33 }
 0x1d2   : > { %v10664_v18 = vpop.permute.xlu1 %1384  ;;  %v1309_v15 = vadd.f32 %v1272_v21, %v1172_v30  ;;  %v1204_v21 = vmul.f32 %v15015_v10, %v9887_v25 }
 0x1d3   : > { %v1311_v48 = vadd.f32 %v1274_v38, %v1174_v42  ;;  %v15019_v38 = vld [vmem:[#allocation16_spill] sm:$0xff]  ;;  %v15020_v42 = vld [vmem:[#allocation23_spill] sm:$0xff] }
 0x1d4   : > { %1253 = vrot.lane.b32.xlu1 %v1203_v47, %s14942_s29  ;;  %1118 = vrot.lane.b32.xlu0 %v1067_v0, %s14952_s28  ;;  %v1446_v63 = vadd.f32 %v1409_v44, %v1309_v15  ;;  %v15018_v47 = vld [vmem:[#allocation22_spill] sm:$0xff]  ;;  %v486_v0 = vmul.f32 %v15019_v38, %v9911_v36  ;;  %v10711_v30 = vpop.permute.xlu0 %1386  ;;  %v723_v44 = vsel %vm719_vm1, %v15020_v42, %v10347_v39  ;;  %v15024_v39 = vld [vmem:[#allocation24_spill] sm:$0xff] }
 0x1d5   : > { %v1448_v32 = vadd.f32 %v1411_v35, %v1311_v48  ;;  %v586_v51 = vsel %vm582_vm0, %v15018_v47, %v10306_v31  ;;  %v15021_v35 = vld [vmem:[#allocation7_spill] sm:$0xff]  ;;  %v592_v31 = vsel %vm582_vm0, %v10534_v60, %v10532_v41  ;;  %v1206_v47 = vmul.f32 %v15015_v10, %v9895_v27 }
 0x1d6   : > { %v10686_v56 = vpop.permute.xlu1 %1388  ;;  %v1583_v59 = vadd.f32 %v1546_v54, %v1446_v63  ;;  %v492_v15 = vmul.f32 %v15021_v35, %v9911_v36  ;;  %v623_v48 = vadd.f32 %v586_v51, %v486_v0  ;;  %v866_v38 = vsel %vm856_vm2, %v10564_v46, %v10562_v34 }
 0x1d7   : > { %15016 = vst [vmem:[#allocation15_spill] sm:$0xff] %v10686_v56  ;;  %v1585_v28 = vadd.f32 %v1548_v40, %v1448_v32  ;;  %v860_v32 = vsel %vm856_vm2, %v15024_v39, %v10391_v37 }
 0x1d8   : > { %1394 = vrot.lane.b32.xlu1 %v1342_v43, %s14950_s30  ;;  %1122 = vrot.lane.b32.xlu0 %v1069_v20, %s14952_s28  ;;  %v1607_v43 = vadd.f32 %v10128_v16, %v1583_v59  ;;  %v15023_v20 = vld [vmem:[#allocation20_spill] sm:$0xff]  ;;  %v760_v51 = vadd.f32 %v723_v44, %v623_v48  ;;  %v629_v59 = vadd.f32 %v592_v31, %v492_v15  ;;  %v10751_v15 = vpop.permute.xlu0 %1382 }
 0x1d9   : > { %v1609_v54 = vadd.f32 %v10128_v16, %v1585_v28  ;;  %v1479_v63 = vmul.f32 %v15023_v20, %v9883_v24  ;;  %v15025_v28 = vld [vmem:[#allocation25_spill] sm:$0xff]  ;;  %v1477_v37 = vmul.f32 %v15023_v20, %v9891_v26  ;;  %v1003_v48 = vsel %vm993_vm3, %v10578_v1, %v10576_v19 }
 0x1da   : > { %v10700_v33 = vpop.permute.xlu1 %1521  ;;  %v897_v0 = vadd.f32 %v860_v32, %v760_v51  ;;  %v10747_v42 = vmax.f32 %v1607_v43, 0.0 }
 0x1db   : > { %v10749_v44 = vmax.f32 %v1609_v54, 0.0  ;;  %v15027_v54 = vld [vmem:[#allocation8_spill] sm:$0xff] }
 0x1dc   : > { %1390 = vrot.lane.b32.xlu1 %v1340_v4, %s14950_s30  ;;  %1255 = vrot.lane.b32.xlu0 %v1204_v21, %s14942_s29  ;;  %v729_v4 = vsel %vm719_vm1, %v10550_v11, %v10548_v62  ;;  %v997_v21 = vsel %vm993_vm3, %v15025_v28, %v10419_v2  ;;  %v1134_v2 = vsel %vm1130_vm4, %v10216_v50, %v10438_v22 }
 0x1dd   : > { %15026 = vst [vmem:[#allocation22_spill] sm:$0xff] %v10749_v44  ;;  %v766_v35 = vadd.f32 %v729_v4, %v629_v59  ;;  %v1034_v43 = vadd.f32 %v997_v21, %v897_v0  ;;  %v491_v39 = vmul.f32 %v15027_v54, %v9911_v36  ;;  %v1271_v4 = vsel %vm1267_vm5, %v10236_v5, %v10476_v49  ;;  %v15028_v59 = vld [vmem:[#allocation6_spill] sm:$0xff]  ;;  %v15031_v0 = vld [vmem:[#allocation44_spill] sm:$0xff] }
 0x1de   : > { %v10725_v40 = vpop.permute.xlu1 %1525  ;;  %v591_v50 = vsel %vm582_vm0, %v10540_v9, %v10534_v60  ;;  %v593_v22 = vsel %vm582_vm0, %v10532_v41, %v10542_v3  ;;  %v493_v28 = vmul.f32 %v15028_v59, %v9911_v36  ;;  %v10785_v49 = vpack.i.bf16 %v10747_v42, %v10749_v44  ;;  %v15029_v60 = vld [vmem:[#allocation36_spill] sm:$0xff]  ;;  %v15034_v3 = vld [vmem:[#allocation39_spill] sm:$0xff] }
 0x1df   : > { %15022 = vst [vmem:[#allocation19_spill] sm:$0xff] %v10725_v40  ;;  %v903_v32 = vadd.f32 %v866_v38, %v766_v35  ;;  %v1171_v51 = vadd.f32 %v1134_v2, %v1034_v43  ;;  %v728_v41 = vsel %vm719_vm1, %v15029_v60, %v10550_v11  ;;  %v15030_v38 = vld [vmem:[#allocation37_spill] sm:$0xff]  ;;  %v1277_v35 = vsel %vm1267_vm5, %v15031_v0, %v10654_v14  ;;  %v15032_v11 = vld [vmem:[#allocation26_spill] sm:$0xff] }
 0x1e0   : > { %1531 = vrot.lane.b32.xlu1 %v1479_v63, %s14956_s11  ;;  %1259 = vrot.lane.b32.xlu0 %v1206_v47, %s14942_s29  ;;  %v1341_v63 = vmul.f32 %v15017_v7, %v9887_v25  ;;  %v1140_v47 = vsel %vm1130_vm4, %v10593_v61, %v10597_v17  ;;  %v1343_v2 = vmul.f32 %v15017_v7, %v9895_v27 }
 0x1e1   : > { %v1040_v21 = vadd.f32 %v1003_v48, %v903_v32  ;;  %v1308_v48 = vadd.f32 %v1271_v4, %v1171_v51  ;;  %v630_v43 = vadd.f32 %v593_v22, %v493_v28  ;;  %v1524_v32 = vpop.permute.xlu0 %1523  ;;  %v1408_v59 = vsel %vm1404_vm6, %v15032_v11, %v10508_v45  ;;  %v15035_v45 = vld [vmem:[#allocation40_spill] sm:$0xff] }
 0x1e2   : > { %v10753_v31 = vpop.permute.xlu1 %570  ;;  %v867_v6 = vsel %vm856_vm2, %v10562_v34, %v15034_v3  ;;  %v1002_v51 = vsel %vm993_vm3, %v15035_v45, %v10578_v1  ;;  %v1551_v34 = vsel %vm1541_vm7, %v10700_v33, %v1524_v32 }
 0x1e3   : > { %v1177_v54 = vadd.f32 %v1140_v47, %v1040_v21  ;;  %v1478_v21 = vmul.f32 %v15023_v20, %v9887_v25 }
 0x1e4   : > { %1527 = vrot.lane.b32.xlu1 %v1477_v37, %s14956_s11  ;;  %1392 = vrot.lane.b32.xlu0 %v1341_v63, %s14950_s30  ;;  %v730_v37 = vsel %vm719_vm1, %v10548_v62, %v15030_v38  ;;  %v628_v63 = vadd.f32 %v591_v50, %v491_v39  ;;  %v15033_v62 = vld [vmem:[#allocation38_spill] sm:$0xff]  ;;  %v1414_v39 = vsel %vm1404_vm6, %v10664_v18, %v10711_v30 }
 0x1e5   : > { %v865_v38 = vsel %vm856_vm2, %v15033_v62, %v10564_v46  ;;  %v767_v50 = vadd.f32 %v730_v37, %v630_v43  ;;  %v1314_v22 = vadd.f32 %v1277_v35, %v1177_v54  ;;  %v15036_v46 = vld [vmem:[#allocation41_spill] sm:$0xff]  ;;  %v15038_v43 = vld [vmem:[#allocation43_spill] sm:$0xff]  ;;  %v15039_v54 = vld [vmem:[#allocation42_spill] sm:$0xff] }
 0x1e6   : > { %v10781_v5 = vpop.permute.xlu1 %574  ;;  %v765_v4 = vadd.f32 %v728_v41, %v628_v63  ;;  %v1004_v28 = vsel %vm993_vm3, %v10576_v19, %v15036_v46  ;;  %v15037_v63 = vld [vmem:[#allocation27_spill] sm:$0xff]  ;;  %v1139_v19 = vsel %vm1130_vm4, %v15038_v43, %v10593_v61  ;;  %v1141_v11 = vsel %vm1130_vm4, %v10597_v17, %v15039_v54 }
 0x1e7   : > { %v904_v37 = vadd.f32 %v867_v6, %v767_v50  ;;  %v1451_v35 = vadd.f32 %v1414_v39, %v1314_v22  ;;  %v1545_v1 = vsel %vm1541_vm7, %v15037_v63, %v10524_v23  ;;  %v1276_v39 = vsel %vm1267_vm5, %v10684_v29, %v15031_v0 }
 0x1e8   : > { %8827 = vrot.lane.b32.xlu1 %v10785_v49, %s14954_s21  ;;  %1396 = vrot.lane.b32.xlu0 %v1343_v2, %s14950_s30  ;;  %v1445_v2 = vadd.f32 %v1408_v59, %v1308_v48  ;;  %v902_v41 = vadd.f32 %v865_v38, %v765_v4  ;;  %v1278_v23 = vsel %vm1267_vm5, %v10654_v14, %v10642_v8  ;;  %v14887_v4 = vmov 0.0  }
 0x1e9   : > { %v1041_v6 = vadd.f32 %v1004_v28, %v904_v37  ;;  %v1588_v48 = vadd.f32 %v1551_v34, %v1451_v35  ;;  %v1480_v61 = vmul.f32 %v15023_v20, %v9895_v27  ;;  %2310 = vmatprep.mubr.f32.mxu0 %v14887_v4  ;;  %2381 = vmatprep.mubr.f32.mxu1 %v14887_v4 }
 0x1ea   : > { %v10813_v47 = vpop.permute.xlu1 %707  ;;  %v1039_v38 = vadd.f32 %v1002_v51, %v902_v41  ;;  %v1582_v17 = vadd.f32 %v1545_v1, %v1445_v2  ;;  %v10849_v51 = vpop.permute.xlu0 %1519  ;;  %v1413_v14 = vsel %vm1404_vm6, %v10751_v15, %v10664_v18  ;;  %v1415_v0 = vsel %vm1404_vm6, %v10711_v30, %v10686_v56  ;;  %v15040_v30 = vld [vmem:[#allocation34_spill] sm:$0xff]  ;;  %v15053_v56 = vld [vmem:[#allocation33_spill] sm:$0xff] }
 0x1eb   : > { %v1178_v22 = vadd.f32 %v1141_v11, %v1041_v6  ;;  %v1550_v41 = vsel %vm1541_vm7, %v10849_v51, %v10700_v33  ;;  %v1552_v37 = vsel %vm1541_vm7, %v1524_v32, %v10725_v40 }
 0x1ec   : > { %8837 = vrot.lane.b32.xlu1 %v10785_v49, %s14944_s26  ;;  %1529 = vrot.lane.b32.xlu0 %v1478_v21, %s14956_s11  ;;  %v1176_v50 = vadd.f32 %v1139_v19, %v1039_v38  ;;  %v1612_v21 = vadd.f32 %v10128_v16, %v1588_v48  ;;  %v1606_v18 = vadd.f32 %v10128_v16, %v1582_v17 }
 0x1ed   : > { %v1315_v34 = vadd.f32 %v1278_v23, %v1178_v22 }
 0x1ee   : > { %v10837_v59 = vpop.permute.xlu1 %711  ;;  %v1313_v28 = vadd.f32 %v1276_v39, %v1176_v50  ;;  %v10873_v1 = vmax.f32 %v1612_v21, 0.0  ;;  %v10877_v33 = vmax.f32 %v1606_v18, 0.0 }
 0x1ef   : > { %v1452_v63 = vadd.f32 %v1415_v0, %v1315_v34 }
 0x1f0   : > { %8847 = vrot.lane.b32.xlu1 %v10785_v49, %s14942_s29  ;;  %1533 = vrot.lane.b32.xlu0 %v1480_v61, %s14956_s11  ;;  %v1450_v35 = vadd.f32 %v1413_v14, %v1313_v28  ;;  %15041 = vst [vmem:[#allocation16_spill] sm:$0xff] %v10877_v33  ;;  %v8861_v39 = vpack.i.bf16 %v10873_v1, %v10877_v33  ;;  %v15044_v14 = vld [vmem:[#allocation31_spill] sm:$0xff]  ;;  %v10903_v28 = vpop.permute.xlu0 %572 }
 0x1f1   : > { %v1589_v11 = vadd.f32 %v1552_v37, %v1452_v63  ;;  %v15046_v37 = vld [vmem:[#allocation17_spill] sm:$0xff]  ;;  %v15048_v63 = vld [vmem:[#allocation14_spill] sm:$0xff] }
 0x1f2   : > { %v10861_v2 = vpop.permute.xlu1 %705  ;;  %v1587_v19 = vadd.f32 %v1550_v41, %v1450_v35  ;;  %v15045_v41 = vld [vmem:[#allocation11_spill] sm:$0xff] }
 0x1f3   : > { %v1613_v6 = vadd.f32 %v10128_v16, %v1589_v11  ;;  %v523_v18 = vmul.f32 %v15046_v37, %v15045_v41 }
 0x1f4   : > { %2174 = vrot.lane.b32.xlu1 %v15040_v30, %s14956_s11  ;;  %8822 = vrot.lane.b32.xlu0 %v10785_v49, %s14948_s20  ;;  %v1611_v32 = vadd.f32 %v10128_v16, %v1587_v19  ;;  %v10915_v21 = vpop.permute.xlu0 %568  ;;  %v660_v19 = vmul.f32 %v15048_v63, %v15045_v41 }
 0x1f5   : > { %v10899_v22 = vmax.f32 %v1613_v6, 0.0 }
 0x1f6   : > { %v10875_v38 = vpop.permute.xlu1 %846  ;;  %v10897_v50 = vmax.f32 %v1611_v32, 0.0 }
 0x1f7   : > { %15043 = vst [vmem:[#allocation7_spill] sm:$0xff] %v10899_v22 }
 0x1f8   : > { %2172 = vrot.lane.b32.xlu1 %v10747_v42, %s14956_s11  ;;  %8832 = vrot.lane.b32.xlu0 %v10785_v49, %s14946_s25  ;;  %v10909_v34 = vpack.i.bf16 %v10897_v50, %v10899_v22 }
 0x1fa   : > { %v10885_v48 = vpop.permute.xlu1 %8752 }
 0x1fb   : > { %15042 = vst [vmem:[#allocation23_spill] sm:$0xff] %v10885_v48  ;;  %v14886_v23 = vunpack.i.h.bf16 %v10885_v48  ;;  %v8754_v61 = vunpack.i.l.bf16 %v10885_v48 }
 0x1fc   : > { %8862 = vrot.lane.b32.xlu1 %v8861_v39, %s14954_s21  ;;  %8842 = vrot.lane.b32.xlu0 %v10785_v49, %s14952_s28 }
 0x1fd   : > { %v1697_v17 = vsel %vm582_vm0, %v8754_v61, %v14886_v23 }
 0x1fe   : > { %v7942_v0 = vpack.c.bf16 %v1697_v17, %v15044_v14  ;;  %v10928_v35 = vpop.permute.xlu1 %8762 }
 0x1ff   : > { %15047 = vst [vmem:[#allocation20_spill] sm:$0xff] %v10928_v35  ;;  %v15055_v27 = vunpack.i.h.bf16 %v10928_v35 }
 0x200   : > { %7943 = vmatprep.subr.bf16.mxu0 %v7942_v0  ;;  %8872 = vrot.lane.b32.xlu1 %v8861_v39, %s14944_s26  ;;  %v8764_v0 = vunpack.i.l.bf16 %v10928_v35 }
 0x201   : > { %8852 = vrot.lane.b32.xlu0 %v10785_v49, %s14950_s30  ;;  %v10921_v49 = vpop.permute.xlu0 %709 }
 0x204   : > { %8882 = vrot.lane.b32.xlu1 %v10909_v34, %s14948_s20 }
 0x205   : > { %2176 = vrot.lane.b32.xlu0 %v10749_v44, %s14956_s11  ;;  %v10932_v11 = vpop.permute.xlu0 %844 }
 0x208   : > { %8892 = vrot.lane.b32.xlu1 %v8861_v39, %s14950_s30 }
 0x209   : > { %8857 = vrot.lane.b32.xlu0 %v8861_v39, %s14948_s20 }
 0x20c   : > { %8902 = vrot.lane.b32.xlu1 %v10909_v34, %s14946_s25 }
 0x20d   : > { %8867 = vrot.lane.b32.xlu0 %v8861_v39, %s14946_s25 }
 0x210   : > { %578 = vrot.lane.b32.xlu1 %v523_v18, %s14948_s20 }
 0x211   : > { %8877 = vrot.lane.b32.xlu0 %v8861_v39, %s14952_s28 }
 0x214   : > { %715 = vrot.lane.b32.xlu1 %v660_v19, %s14954_s21  ;;  %v15050_v19 = vld [vmem:[#allocation12_spill] sm:$0xff] }
 0x215   : > { %8887 = vrot.lane.b32.xlu0 %v8861_v39, %s14942_s29  ;;  %v15051_v39 = vld [vmem:[#allocation18_spill] sm:$0xff]  ;;  %v522_v40 = vmul.f32 %v15046_v37, %v15050_v19 }
 0x216   : > { %v10936_v32 = vpop.permute.xlu1 %8772  ;;  %v10938_v6 = vpop.permute.xlu0 %8757  ;;  %v796_v23 = vmul.f32 %v15051_v39, %v15050_v19 }
 0x217   : > { %v8759_v17 = vunpack.i.l.bf16 %v10938_v6  ;;  %v8774_v46 = vunpack.i.l.bf16 %v10936_v32 }
 0x218   : > { %8907 = vrot.lane.b32.xlu1 %v10909_v34, %s14944_s26 }
 0x219   : > { %8897 = vrot.lane.b32.xlu0 %v10909_v34, %s14954_s21  ;;  %v1696_v4 = vsel %vm582_vm0, %v8759_v17, %v8754_v61  ;;  %v15054_v61 = vld [vmem:[#allocation13_spill] sm:$0xff]  ;;  %v1767_v35 = vsel %vm719_vm1, %v8774_v46, %v8764_v0 }
 0x21a   : > { %v10947_v18 = vpop.permute.xlu1 %8782  ;;  %v10952_v44 = vpop.permute.xlu0 %8767  ;;  %v7944_v8 = vpack.c.bf16 %v1696_v4, %v15053_v56  ;;  %v524_v17 = vmul.f32 %v15046_v37, %v15054_v61  ;;  %v1768_v56 = vsel %vm719_vm1, %v8764_v0, %v15055_v27  ;;  %v934_v27 = vmul.f32 %v9956_v52, %v15045_v41 }
 0x21b   : > { %15049 = vst [vmem:[#allocation24_spill] sm:$0xff] %v10947_v18  ;;  %15052 = vst [vmem:[#allocation25_spill] sm:$0xff] %v10952_v44  ;;  %v14895_v54 = vunpack.i.h.bf16 %v10952_v44  ;;  %v8769_v14 = vunpack.i.l.bf16 %v10952_v44  ;;  %v15060_v46 = vunpack.i.h.bf16 %v10947_v18 }
 0x21c   : > { %850 = vrot.lane.b32.xlu1 %v796_v23, %s14946_s25  ;;  %7945 = vmatpush1.bf16.msra.mxu0 %v7944_v8  ;;  %v659_v8 = vmul.f32 %v15048_v63, %v15050_v19 }
 0x21d   : > { %576 = vrot.lane.b32.xlu0 %v522_v40, %s14948_s20  ;;  %v1839_v4 = vsel %vm856_vm2, %v8769_v14, %v14895_v54  ;;  %v8784_v54 = vunpack.i.l.bf16 %v10947_v18  ;;  %v797_v18 = vmul.f32 %v15051_v39, %v15045_v41 }
 0x21e   : > { %v10962_v3 = vpop.permute.xlu1 %8792  ;;  %v10972_v48 = vpop.permute.xlu0 %8777  ;;  %v7946_v40 = vpack.c.bf16 %v1839_v4, %v1768_v56 }
 0x21f   : > { %15056 = vst [vmem:[#allocation8_spill] sm:$0xff] %v10972_v48  ;;  %v8779_v23 = vunpack.i.l.bf16 %v10972_v48 }
 0x220   : > { %580 = vrot.lane.b32.xlu1 %v524_v17, %s14948_s20  ;;  %7947 = vmatprep.subr.bf16.mxu0 %v7946_v40  ;;  %v8794_v40 = vunpack.i.l.bf16 %v10962_v3 }
 0x221   : > { %713 = vrot.lane.b32.xlu0 %v659_v8, %s14954_s21  ;;  %v1838_v56 = vsel %vm856_vm2, %v8779_v23, %v8769_v14  ;;  %v1910_v14 = vsel %vm993_vm3, %v8784_v54, %v15060_v46 }
 0x222   : > { %v10983_v44 = vpop.permute.xlu1 %8802  ;;  %v10987_v4 = vpop.permute.xlu0 %8787  ;;  %v7948_v48 = vpack.c.bf16 %v1838_v56, %v1767_v35 }
 0x223   : > { %15057 = vst [vmem:[#allocation6_spill] sm:$0xff] %v10983_v44  ;;  %15058 = vst [vmem:[#allocation36_spill] sm:$0xff] %v10987_v4  ;;  %v14899_v17 = vunpack.i.h.bf16 %v10987_v4  ;;  %v8789_v8 = vunpack.i.l.bf16 %v10987_v4  ;;  %v8804_v46 = vunpack.i.l.bf16 %v10983_v44  ;;  %v1909_v4 = vsel %vm993_vm3, %v8794_v40, %v8784_v54 }
 0x224   : > { %989 = vrot.lane.b32.xlu1 %v934_v27, %s14944_s26  ;;  %7949 = vmatpush1.bf16.msra.mxu0 %v7948_v48  ;;  %v1070_v48 = vmul.f32 %v9970_v57, %v15050_v19  ;;  %v15063_v40 = vunpack.i.h.bf16 %v10983_v44 }
 0x225   : > { %2170 = vrot.lane.b32.xlu0 %v10877_v33, %s14956_s11  ;;  %v1981_v35 = vsel %vm1130_vm4, %v8789_v8, %v14899_v17 }
 0x226   : > { %v10995_v37 = vpop.permute.xlu1 %8812  ;;  %v11003_v0 = vpop.permute.xlu0 %8797  ;;  %v7950_v23 = vpack.c.bf16 %v1981_v35, %v1910_v14 }
 0x227   : > { %15059 = vst [vmem:[#allocation44_spill] sm:$0xff] %v10995_v37  ;;  %15061 = vst [vmem:[#allocation26_spill] sm:$0xff] %v11003_v0  ;;  %v8799_v27 = vunpack.i.l.bf16 %v11003_v0  ;;  %v8814_v56 = vunpack.i.l.bf16 %v10995_v37 }
 0x228   : > { %8922 = vrot.lane.b32.xlu1 %v10909_v34, %s14950_s30  ;;  %7951 = vmatprep.subr.bf16.mxu0 %v7950_v23 }
 0x229   : > { %8912 = vrot.lane.b32.xlu0 %v10909_v34, %s14952_s28  ;;  %v1980_v14 = vsel %vm1130_vm4, %v8799_v27, %v8789_v8  ;;  %v798_v8 = vmul.f32 %v15051_v39, %v15054_v61 }
 0x22a   : > { %v2167_v17 = vpop.permute.xlu1 %2166  ;;  %v11016_v35 = vpop.permute.xlu0 %8807  ;;  %v7952_v33 = vpack.c.bf16 %v1980_v14, %v1909_v4  ;;  %v2055_v4 = vsel %vm1267_vm5, %v8804_v46, %v15063_v40  ;;  %v1208_v40 = vmul.f32 %v15015_v10, %v15045_v41 }
 0x22b   : > { %15062 = vst [vmem:[#allocation38_spill] sm:$0xff] %v11016_v35  ;;  %v14904_v23 = vunpack.i.h.bf16 %v11016_v35  ;;  %v8809_v0 = vunpack.i.l.bf16 %v11016_v35 }
 0x22c   : > { %1124 = vrot.lane.b32.xlu1 %v1070_v48, %s14952_s28  ;;  %7953 = vmatpush1.bf16.msra.mxu0 %v7952_v33  ;;  %v933_v33 = vmul.f32 %v9956_v52, %v15050_v19 }
 0x22d   : > { %852 = vrot.lane.b32.xlu0 %v797_v18, %s14946_s25  ;;  %v2129_v27 = vsel %vm1404_vm6, %v8809_v0, %v14904_v23  ;;  %v2054_v23 = vsel %vm1267_vm5, %v8814_v56, %v8804_v46  ;;  %v1344_v56 = vmul.f32 %v15017_v7, %v15050_v19 }
 0x22e   : > { %v11025_v54 = vpop.permute.xlu1 %842  ;;  %v11035_v14 = vpop.permute.xlu0 %8817  ;;  %v7954_v18 = vpack.c.bf16 %v2129_v27, %v2055_v4  ;;  %v15066_v27 = vmov 0.0  }
 0x22f   : > { %v8819_v48 = vunpack.i.l.bf16 %v11035_v14 }
 0x230   : > { %854 = vrot.lane.b32.xlu1 %v798_v8, %s14946_s25  ;;  %7955 = vmatprep.subr.bf16.mxu0 %v7954_v18 }
 0x231   : > { %987 = vrot.lane.b32.xlu0 %v933_v33, %s14944_s26  ;;  %v2128_v44 = vsel %vm1404_vm6, %v8819_v48, %v8809_v0  ;;  %v661_v0 = vmul.f32 %v15048_v63, %v15054_v61  ;;  %v1071_v63 = vmul.f32 %v9970_v57, %v15045_v41  ;;  %v1072_v33 = vmul.f32 %v9970_v57, %v15054_v61 }
 0x232   : > { %v11042_v39 = vpop.permute.xlu1 %983  ;;  %v11048_v35 = vpop.permute.xlu0 %2168  ;;  %v7956_v37 = vpack.c.bf16 %v2128_v44, %v2054_v23  ;;  %v11064_v44 = vld [vmem:[%s14827_s3] sm:$0xff]  ;;  %v1207_v48 = vmul.f32 %v15015_v10, %v15050_v19 }
 0x233   : > { %15064 = vst [vmem:[#allocation40_spill] sm:$0xff] %v11048_v35  ;;  %v2203_v8 = vsel %vm1541_vm7, %v2167_v17, %v11048_v35  ;;  %15065 = vst [vmem:[#allocation27_spill] sm:$0xff] %v11064_v44 }
 0x234   : > { %1263 = vrot.lane.b32.xlu1 %v1208_v40, %s14942_s29  ;;  %7957 = vmatpush1.bf16.msra.mxu0 %v7956_v37 }
 0x235   : > { %8917 = vrot.lane.b32.xlu0 %v10909_v34, %s14942_s29  ;;  %2262 = vmatprep.subr.mxu0 %v2203_v8  ;;  %v1482_v8 = vmul.f32 %v15023_v20, %v15045_v41 }
 0x236   : > { %v11055_v4 = vpop.permute.xlu1 %979  ;;  %v2165_v46 = vpop.permute.xlu0 %2164 }
 0x237   : > { %v2202_v34 = vsel %vm1541_vm7, %v2165_v46, %v2167_v17  ;;  %v935_v46 = vmul.f32 %v9956_v52, %v15054_v61  ;;  %v1346_v52 = vmul.f32 %v15017_v7, %v15054_v61 }
 0x238   : > { %1398 = vrot.lane.b32.xlu1 %v1344_v56, %s14950_s30  ;;  %2263 = vmatpush1.msra.mxu0 %v2202_v34 }
 0x239   : > { %717 = vrot.lane.b32.xlu0 %v661_v0, %s14954_s21  ;;  %7523 = vmatmul.mubr.msk.f32.vlgmr.msra.gmra.mrb[0].mxu0 %vm2242_vm8, %v11064_v44  ;;  %v1209_v0 = vmul.f32 %v15015_v10, %v15054_v61  ;;  %v1481_v44 = vmul.f32 %v15023_v20, %v15050_v19 }
 0x23a   : > { %v11069_v37 = vpop.permute.xlu1 %1120  ;;  %v11073_v23 = vpop.permute.xlu0 %848  ;;  %2452 = vmatprep.mubr.f32.mxu0 %v15066_v27 }
 0x23c   : > { %2182 = vrot.lane.b32.xlu1 %v10873_v1, %s14956_s11 }
 0x23d   : > { %1126 = vrot.lane.b32.xlu0 %v1071_v63, %s14952_s28  ;;  %v1345_v63 = vmul.f32 %v15017_v7, %v15045_v41 }
 0x23e   : > { %v11081_v17 = vpop.permute.xlu1 %1116  ;;  %v11085_v18 = vpop.permute.xlu0 %981 }
 0x240   : > { %1128 = vrot.lane.b32.xlu1 %v1072_v33, %s14952_s28 }
 0x241   : > { %1261 = vrot.lane.b32.xlu0 %v1207_v48, %s14942_s29 }
 0x242   : > { %v11091_v40 = vpop.permute.xlu1 %1257  ;;  %v11095_v56 = vpop.permute.xlu0 %985 }
 0x244   : > { %1537 = vrot.lane.b32.xlu1 %v1482_v8, %s14956_s11  ;;  %v15067_v8 = vld [vmem:[#allocation28_spill] sm:$0xff] }
 0x245   : > { %991 = vrot.lane.b32.xlu0 %v935_v46, %s14944_s26  ;;  %v590_v10 = vsel %vm582_vm0, %v15067_v8, %v10540_v9  ;;  %v15068_v46 = vld [vmem:[#allocation21_spill] sm:$0xff]  ;;  %v864_v9 = vsel %vm856_vm2, %v10393_v13, %v15033_v62 }
 0x246   : > { %v11101_v57 = vpop.permute.xlu1 %1253  ;;  %v11105_v34 = vpop.permute.xlu0 %1118  ;;  %v490_v41 = vmul.f32 %v15068_v46, %v9911_v36  ;;  %v496_v46 = vmul.f32 %v9887_v25, %v9911_v36  ;;  %v1138_v25 = vsel %vm1130_vm4, %v10440_v53, %v15038_v43  ;;  %v734_v43 = vsel %vm719_vm1, %v10921_v49, %v10837_v59 }
 0x248   : > { %1265 = vrot.lane.b32.xlu1 %v1209_v0, %s14942_s29  ;;  %v15069_v0 = vld [vmem:[#allocation29_spill] sm:$0xff]  ;;  %v627_v7 = vadd.f32 %v590_v10, %v490_v41  ;;  %v733_v41 = vsel %vm719_vm1, %v10813_v47, %v10921_v49  ;;  %v1144_v49 = vsel %vm1130_vm4, %v11105_v34, %v11069_v37 }
 0x249   : > { %1400 = vrot.lane.b32.xlu0 %v1345_v63, %s14950_s30  ;;  %v727_v63 = vsel %vm719_vm1, %v15069_v0, %v15029_v60  ;;  %v1001_v60 = vsel %vm993_vm3, %v10421_v55, %v15035_v45  ;;  %v597_v55 = vsel %vm582_vm0, %v10903_v28, %v10781_v5  ;;  %v870_v45 = vsel %vm856_vm2, %v10932_v11, %v10875_v38 }
 0x24a   : > { %v11111_v33 = vpop.permute.xlu1 %1394  ;;  %v11115_v48 = vpop.permute.xlu0 %1122  ;;  %v764_v8 = vadd.f32 %v727_v63, %v627_v7  ;;  %v495_v7 = vmul.f32 %v9891_v26, %v9911_v36 }
 0x24c   : > { %1402 = vrot.lane.b32.xlu1 %v1346_v52, %s14950_s30  ;;  %v596_v52 = vsel %vm582_vm0, %v10753_v31, %v10903_v28  ;;  %v901_v13 = vadd.f32 %v864_v9, %v764_v8  ;;  %v497_v9 = vmul.f32 %v9883_v24, %v9911_v36  ;;  %v732_v28 = vsel %vm719_vm1, %v10861_v2, %v10813_v47 }
 0x24d   : > { %2184 = vrot.lane.b32.xlu0 %v10899_v22, %s14956_s11  ;;  %v633_v62 = vadd.f32 %v596_v52, %v496_v46  ;;  %v1007_v24 = vsel %vm993_vm3, %v11085_v18, %v11042_v39  ;;  %v871_v47 = vsel %vm856_vm2, %v10875_v38, %v11073_v23  ;;  %v1008_v38 = vsel %vm993_vm3, %v11042_v39, %v11095_v56 }
 0x24e   : > { %v11128_v35 = vpop.permute.xlu1 %1390  ;;  %v1256_v27 = vpop.permute.xlu0 %1255  ;;  %v1038_v63 = vadd.f32 %v1001_v60, %v901_v13  ;;  %v634_v46 = vadd.f32 %v597_v55, %v497_v9  ;;  %v15070_v55 = vld [vmem:[#allocation32_spill] sm:$0xff] }
 0x24f   : > { %v770_v53 = vadd.f32 %v733_v41, %v633_v62 }
 0x250   : > { %v1175_v52 = vadd.f32 %v1138_v25, %v1038_v63  ;;  %v771_v62 = vadd.f32 %v734_v43, %v634_v46 }
 0x251   : > { %1535 = vrot.lane.b32.xlu0 %v1481_v44, %s14956_s11  ;;  %v595_v44 = vsel %vm582_vm0, %v10915_v21, %v10753_v31  ;;  %v1275_v31 = vsel %vm1267_vm5, %v10478_v12, %v10684_v29  ;;  %v907_v60 = vadd.f32 %v870_v45, %v770_v53  ;;  %v1412_v12 = vsel %vm1404_vm6, %v10510_v58, %v10751_v15 }
 0x252   : > { %v11147_v10 = vpop.permute.xlu1 %1531  ;;  %v11149_v0 = vpop.permute.xlu0 %1259  ;;  %v632_v8 = vadd.f32 %v595_v44, %v495_v7  ;;  %v869_v29 = vsel %vm856_vm2, %v11025_v54, %v10932_v11  ;;  %v1312_v13 = vadd.f32 %v1275_v31, %v1175_v52  ;;  %v1549_v58 = vsel %vm1541_vm7, %v15070_v55, %v10849_v51 }
 0x253   : > { %v1044_v44 = vadd.f32 %v1007_v24, %v907_v60  ;;  %v1006_v15 = vsel %vm993_vm3, %v11055_v4, %v11085_v18  ;;  %v1281_v11 = vsel %vm1267_vm5, %v1256_v27, %v11091_v40  ;;  %v908_v9 = vadd.f32 %v871_v47, %v771_v62 }
 0x254   : > { %v769_v25 = vadd.f32 %v732_v28, %v632_v8  ;;  %v1449_v63 = vadd.f32 %v1412_v12, %v1312_v13  ;;  %v1143_v51 = vsel %vm1130_vm4, %v11081_v17, %v11105_v34  ;;  %v1145_v18 = vsel %vm1130_vm4, %v11069_v37, %v11115_v48 }
 0x255   : > { %2180 = vrot.lane.b32.xlu0 %v10897_v50, %s14956_s11  ;;  %v1181_v53 = vadd.f32 %v1144_v49, %v1044_v44  ;;  %v1045_v24 = vadd.f32 %v1008_v38, %v908_v9  ;;  %v1280_v8 = vsel %vm1267_vm5, %v11101_v57, %v1256_v27  ;;  %v1282_v46 = vsel %vm1267_vm5, %v11091_v40, %v11149_v0 }
 0x256   : > { %v11181_v26 = vpop.permute.xlu1 %1527  ;;  %v1393_v41 = vpop.permute.xlu0 %1392  ;;  %v906_v7 = vadd.f32 %v869_v29, %v769_v25  ;;  %v1586_v43 = vadd.f32 %v1549_v58, %v1449_v63 }
 0x257   : > { %v1418_v39 = vsel %vm1404_vm6, %v1393_v41, %v11111_v33  ;;  %v1318_v52 = vadd.f32 %v1281_v11, %v1181_v53  ;;  %v1182_v12 = vadd.f32 %v1145_v18, %v1045_v24  ;;  %v1417_v47 = vsel %vm1404_vm6, %v11128_v35, %v1393_v41 }
 0x258   : > { %v1043_v28 = vadd.f32 %v1006_v15, %v906_v7  ;;  %v1610_v13 = vadd.f32 %v10128_v16, %v1586_v43  ;;  %v8760_v43 = vunpack.i.h.bf16 %v10938_v6 }
 0x259   : > { %v1455_v29 = vadd.f32 %v1418_v39, %v1318_v52  ;;  %v1319_v40 = vadd.f32 %v1282_v46, %v1182_v12  ;;  %v1483_v52 = vmul.f32 %v15023_v20, %v15054_v61 }
 0x25a   : > { %v11206_v45 = vpop.permute.xlu1 %8827  ;;  %v11208_v31 = vpop.permute.xlu0 %1396  ;;  %v1180_v34 = vadd.f32 %v1143_v51, %v1043_v28  ;;  %v11243_v11 = vmax.f32 %v1610_v13, 0.0 }
 0x25b   : > { %v1419_v49 = vsel %vm1404_vm6, %v11111_v33, %v11208_v31  ;;  %v14913_v46 = vunpack.i.l.bf16 %v11206_v45 }
 0x25c   : > { %v1317_v62 = vadd.f32 %v1280_v8, %v1180_v34  ;;  %v1456_v15 = vadd.f32 %v1419_v49, %v1319_v40  ;;  %v8830_v8 = vunpack.i.h.bf16 %v11206_v45  ;;  %v8775_v49 = vunpack.i.h.bf16 %v10936_v32 }
 0x25e   : > { %v11223_v60 = vpop.permute.xlu1 %8837  ;;  %v1530_v37 = vpop.permute.xlu0 %1529  ;;  %v1454_v58 = vadd.f32 %v1417_v47, %v1317_v62  ;;  %v1772_v32 = vsel %vm719_vm1, %v8775_v49, %v14913_v46 }
 0x25f   : > { %v1555_v27 = vsel %vm1541_vm7, %v1530_v37, %v11147_v10  ;;  %v1554_v44 = vsel %vm1541_vm7, %v11181_v26, %v1530_v37 }
 0x260   : > { %v1592_v25 = vadd.f32 %v1555_v27, %v1455_v29  ;;  %v1591_v63 = vadd.f32 %v1554_v44, %v1454_v58  ;;  %v15072_v27 = vld [vmem:[#allocation8_spill] sm:$0xff]  ;;  %v8840_v44 = vunpack.i.h.bf16 %v11223_v60  ;;  %v14912_v58 = vunpack.i.l.bf16 %v11223_v60 }
 0x261   : > { %v8780_v13 = vunpack.i.h.bf16 %v15072_v27 }
 0x262   : > { %v11235_v55 = vpop.permute.xlu1 %8847  ;;  %v1616_v41 = vadd.f32 %v10128_v16, %v1592_v25  ;;  %v11238_v38 = vpop.permute.xlu0 %1533  ;;  %v1615_v24 = vadd.f32 %v10128_v16, %v1591_v63  ;;  %v8795_v25 = vunpack.i.h.bf16 %v10962_v3 }
 0x263   : > { %v1556_v33 = vsel %vm1541_vm7, %v11147_v10, %v11238_v38 }
 0x264   : > { %v11245_v7 = vmax.f32 %v1616_v41, 0.0  ;;  %v1593_v9 = vadd.f32 %v1556_v33, %v1456_v15  ;;  %v11289_v15 = vmax.f32 %v1615_v24, 0.0 }
 0x266   : > { %v11247_v53 = vpop.permute.xlu1 %2174  ;;  %v1617_v51 = vadd.f32 %v10128_v16, %v1593_v9  ;;  %v11250_v18 = vpop.permute.xlu0 %8822  ;;  %v11254_v39 = vpack.i.bf16 %v11245_v7, %v11243_v11 }
 0x267   : > { %v8825_v10 = vunpack.i.h.bf16 %v11250_v18  ;;  %v14918_v28 = vunpack.i.l.bf16 %v11250_v18 }
 0x268   : > { %8932 = vrot.lane.b32.xlu1 %v11254_v39, %s14954_s21  ;;  %8927 = vrot.lane.b32.xlu0 %v11254_v39, %s14948_s20  ;;  %v11276_v29 = vmax.f32 %v1617_v51, 0.0 }
 0x269   : > { %v1700_v6 = vsel %vm582_vm0, %v8825_v10, %v8760_v43  ;;  %v1701_v12 = vsel %vm582_vm0, %v8760_v43, %v14918_v28  ;;  %v15073_v43 = vld [vmem:[#allocation26_spill] sm:$0xff] }
 0x26a   : > { %v11271_v34 = vpop.permute.xlu1 %2172  ;;  %15071 = vst [vmem:[#allocation43_spill] sm:$0xff] %v11276_v29  ;;  %v11278_v37 = vpop.permute.xlu0 %8832  ;;  %v7974_v20 = vpack.c.bf16 %v1701_v12, %v15040_v30  ;;  %v7976_v47 = vpack.c.bf16 %v1700_v6, %v10747_v42  ;;  %v1771_v42 = vsel %vm719_vm1, %v8830_v8, %v8775_v49  ;;  %v11312_v63 = vpack.i.bf16 %v11289_v15, %v11276_v29 }
 0x26b   : > { %v8835_v62 = vunpack.i.h.bf16 %v11278_v37  ;;  %v14914_v40 = vunpack.i.l.bf16 %v11278_v37  ;;  %v8800_v24 = vunpack.i.h.bf16 %v15073_v43  ;;  %v1913_v12 = vsel %vm993_vm3, %v8840_v44, %v8795_v25 }
 0x26c   : > { %8942 = vrot.lane.b32.xlu1 %v11254_v39, %s14944_s26  ;;  %1539 = vrot.lane.b32.xlu0 %v1483_v52, %s14956_s11  ;;  %v14916_v49 = vunpack.i.l.bf16 %v11235_v55 }
 0x26d   : > { %v1842_v30 = vsel %vm856_vm2, %v8835_v62, %v8780_v13  ;;  %7975 = vmatprep.subr.bf16.mxu0 %v7974_v20  ;;  %v1843_v41 = vsel %vm856_vm2, %v8780_v13, %v14914_v40  ;;  %v1914_v20 = vsel %vm993_vm3, %v8795_v25, %v14912_v58  ;;  %v8820_v58 = vunpack.i.h.bf16 %v11035_v14 }
 0x26e   : > { %v11300_v3 = vpop.permute.xlu1 %8862  ;;  %7977 = vmatpush1.bf16.msra.mxu0 %v7976_v47  ;;  %v11308_v33 = vpop.permute.xlu0 %8842  ;;  %v7978_v9 = vpack.c.bf16 %v1843_v41, %v1772_v32  ;;  %v7980_v51 = vpack.c.bf16 %v1842_v30, %v1771_v42  ;;  %v14920_v47 = vunpack.i.h.bf16 %v11235_v55  ;;  %v15075_v41 = vld [vmem:[#allocation44_spill] sm:$0xff] }
 0x26f   : > { %v14922_v52 = vunpack.i.h.bf16 %v11308_v33  ;;  %v14917_v6 = vunpack.i.l.bf16 %v11308_v33  ;;  %v8815_v43 = vunpack.i.h.bf16 %v15075_v41 }
 0x270   : > { %8937 = vrot.lane.b32.xlu0 %v11254_v39, %s14946_s25  ;;  %8952 = vrot.lane.b32.xlu1 %v11312_v63, %s14948_s20 }
 0x271   : > { %v1984_v27 = vsel %vm1130_vm4, %v14922_v52, %v8800_v24  ;;  %7979 = vmatprep.subr.bf16.mxu0 %v7978_v9  ;;  %v1985_v42 = vsel %vm1130_vm4, %v8800_v24, %v14917_v6  ;;  %v2058_v9 = vsel %vm1267_vm5, %v14920_v47, %v8815_v43  ;;  %v2059_v24 = vsel %vm1267_vm5, %v8815_v43, %v14916_v49  ;;  %v15079_v6 = vld [vmem:[#allocation16_spill] sm:$0xff] }
 0x272   : > { %v11332_v13 = vpop.permute.xlu1 %8872  ;;  %7981 = vmatpush1.bf16.msra.mxu0 %v7980_v51  ;;  %v7982_v32 = vpack.c.bf16 %v1985_v42, %v1914_v20  ;;  %v7984_v25 = vpack.c.bf16 %v1984_v27, %v1913_v12 }
 0x273   : > { %v11337_v30 = vpop.permute.xlu0 %8852 }
 0x274   : > { %15074 = vst [vmem:[#allocation34_spill] sm:$0xff] %v11337_v30  ;;  %v14921_v46 = vunpack.i.h.bf16 %v11337_v30  ;;  %v14915_v40 = vunpack.i.l.bf16 %v11337_v30  ;;  %8947 = vrot.lane.b32.xlu0 %v11254_v39, %s14952_s28  ;;  %8962 = vrot.lane.b32.xlu1 %v11254_v39, %s14950_s30 }
 0x275   : > { %7983 = vmatprep.subr.bf16.mxu0 %v7982_v32 }
 0x276   : > { %v2132_v51 = vsel %vm1404_vm6, %v14921_v46, %v8820_v58  ;;  %v11353_v14 = vpop.permute.xlu1 %8882  ;;  %v2133_v12 = vsel %vm1404_vm6, %v8820_v58, %v14915_v40  ;;  %7985 = vmatpush1.bf16.msra.mxu0 %v7984_v25  ;;  %v15080_v46 = vld [vmem:[#allocation30_spill] sm:$0xff] }
 0x277   : > { %v11361_v20 = vpop.permute.xlu0 %2176  ;;  %v7986_v27 = vpack.c.bf16 %v2133_v12, %v2059_v24  ;;  %v7988_v42 = vpack.c.bf16 %v2132_v51, %v2058_v9  ;;  %v14919_v25 = vunpack.i.h.bf16 %v11353_v14  ;;  %v14923_v43 = vunpack.i.l.bf16 %v11353_v14 }
 0x278   : > { %15076 = vst [vmem:[#allocation31_spill] sm:$0xff] %v11361_v20  ;;  %8957 = vrot.lane.b32.xlu0 %v11254_v39, %s14942_s29  ;;  %8972 = vrot.lane.b32.xlu1 %v11312_v63, %s14946_s25  ;;  %v2207_v58 = vsel %vm1541_vm7, %v11247_v53, %v11361_v20  ;;  %v8864_v39 = vunpack.i.l.bf16 %v11300_v3  ;;  %v2206_v24 = vsel %vm1541_vm7, %v11271_v34, %v11247_v53 }
 0x279   : > { %7987 = vmatprep.subr.bf16.mxu0 %v7986_v27 }
 0x27a   : > { %v11367_v32 = vpop.permute.xlu1 %8892  ;;  %7989 = vmatpush1.bf16.msra.mxu0 %v7988_v42 }
 0x27b   : > { %v8858_v41 = vpop.permute.xlu0 %8857  ;;  %2404 = vmatprep.subr.mxu0 %v2207_v58  ;;  %v15077_v58 = vld [vmem:[#allocation23_spill] sm:$0xff] }
 0x27c   : > { %v8860_v9 = vunpack.i.h.bf16 %v8858_v41  ;;  %v8859_v51 = vunpack.i.l.bf16 %v8858_v41  ;;  %8967 = vrot.lane.b32.xlu0 %v11312_v63, %s14954_s21  ;;  %8977 = vrot.lane.b32.xlu1 %v11312_v63, %s14944_s26  ;;  %v15078_v40 = vunpack.i.h.bf16 %v15077_v58  ;;  %v15086_v58 = vmov 0.0  }
 0x27e   : > { %v1704_v12 = vsel %vm582_vm0, %v14919_v25, %v8860_v9  ;;  %v11385_v27 = vpop.permute.xlu1 %8902  ;;  %v1699_v42 = vsel %vm582_vm0, %v8859_v51, %v8825_v10  ;;  %v1705_v41 = vsel %vm582_vm0, %v8860_v9, %v14923_v43  ;;  %v1698_v49 = vsel %vm582_vm0, %v15078_v40, %v8859_v51  ;;  %2405 = vmatpush1.msra.mxu0 %v2206_v24  ;;  %v15081_v10 = vld [vmem:[#allocation27_spill] sm:$0xff]  ;;  %v15084_v24 = vld [vmem:[#allocation25_spill] sm:$0xff] }
 0x27f   : > { %v11396_v53 = vpop.permute.xlu0 %8867  ;;  %v7958_v28 = vpack.c.bf16 %v1699_v42, %v15079_v6  ;;  %v8006_v25 = vpack.c.bf16 %v1705_v41, %v10873_v1  ;;  %v7960_v52 = vpack.c.bf16 %v1698_v49, %v15080_v46  ;;  %7525 = vmatmul.mubr.msk.f32.vlgmr.msra.gmra.mrb[2].mxu0 %vm2242_vm8, %v15081_v10  ;;  %v8008_v9 = vpack.c.bf16 %v1704_v12, %v10897_v50  ;;  %v15082_v6 = vld [vmem:[#allocation20_spill] sm:$0xff] }
 0x280   : > { %v8869_v47 = vunpack.i.l.bf16 %v11396_v53  ;;  %2178 = vrot.lane.b32.xlu0 %v11243_v11, %s14956_s11  ;;  %8987 = vrot.lane.b32.xlu1 %v11312_v63, %s14942_s29  ;;  %v1770_v40 = vsel %vm719_vm1, %v8864_v39, %v8830_v8  ;;  %v8874_v1 = vunpack.i.l.bf16 %v11332_v13  ;;  %v15083_v49 = vunpack.i.h.bf16 %v15082_v6 }
 0x281   : > { %7959 = vmatprep.subr.bf16.mxu1 %v7958_v28  ;;  %8007 = vmatprep.subr.bf16.mxu0 %v8006_v25  ;;  %v15085_v12 = vunpack.i.h.bf16 %v15084_v24 }
 0x282   : > { %v11413_v46 = vpop.permute.xlu1 %578  ;;  %v1841_v50 = vsel %vm856_vm2, %v8869_v47, %v8835_v62  ;;  %v1769_v51 = vsel %vm719_vm1, %v15083_v49, %v8864_v39  ;;  %7961 = vmatpush1.bf16.msra.mxu1 %v7960_v52  ;;  %8009 = vmatpush1.bf16.msra.mxu0 %v8008_v9  ;;  %v8894_v62 = vunpack.i.l.bf16 %v11367_v32  ;;  %v1912_v52 = vsel %vm993_vm3, %v8874_v1, %v8840_v44  ;;  %v15090_v49 = vld [vmem:[#allocation36_spill] sm:$0xff] }
 0x283   : > { %v1840_v42 = vsel %vm856_vm2, %v15085_v12, %v8869_v47  ;;  %v11424_v8 = vpop.permute.xlu0 %8877  ;;  %v7962_v28 = vpack.c.bf16 %v1841_v50, %v1770_v40  ;;  %2594 = vmatprep.mubr.f32.mxu0 %v15086_v58  ;;  %v15087_v39 = vunpack.i.h.bf16 %v11308_v33  ;;  %v15088_v40 = vld [vmem:[#allocation24_spill] sm:$0xff]  ;;  %v14929_v44 = vunpack.i.h.bf16 %v11385_v27 }
 0x284   : > { %v7964_v25 = vpack.c.bf16 %v1840_v42, %v1769_v51  ;;  %v8879_v41 = vunpack.i.l.bf16 %v11424_v8  ;;  %8982 = vrot.lane.b32.xlu0 %v11312_v63, %s14952_s28  ;;  %2190 = vrot.lane.b32.xlu1 %v11245_v7, %s14956_s11  ;;  %v15089_v50 = vunpack.i.h.bf16 %v15088_v40  ;;  %v15091_v51 = vunpack.i.h.bf16 %v15090_v49  ;;  %v15096_v49 = vld [vmem:[#allocation6_spill] sm:$0xff] }
 0x285   : > { %7963 = vmatprep.subr.bf16.mxu1 %v7962_v28 }
 0x286   : > { %v11433_v47 = vpop.permute.xlu1 %715  ;;  %v1983_v9 = vsel %vm1130_vm4, %v8879_v41, %v15087_v39  ;;  %v1911_v6 = vsel %vm993_vm3, %v15089_v50, %v8874_v1  ;;  %v1982_v24 = vsel %vm1130_vm4, %v15091_v51, %v8879_v41  ;;  %7965 = vmatpush1.bf16.msra.mxu1 %v7964_v25  ;;  %v15092_v1 = vunpack.i.h.bf16 %v11337_v30  ;;  %v15093_v41 = vld [vmem:[#allocation38_spill] sm:$0xff] }
 0x287   : > { %v11447_v12 = vpop.permute.xlu0 %8887  ;;  %v7966_v42 = vpack.c.bf16 %v1983_v9, %v1912_v52  ;;  %v7968_v28 = vpack.c.bf16 %v1982_v24, %v1911_v6  ;;  %v15094_v25 = vunpack.i.h.bf16 %v15093_v41  ;;  %v14925_v52 = vunpack.i.l.bf16 %v11385_v27 }
 0x288   : > { %v8889_v43 = vunpack.i.l.bf16 %v11447_v12  ;;  %8992 = vrot.lane.b32.xlu0 %v11312_v63, %s14950_s30  ;;  %2188 = vrot.lane.b32.xlu1 %v11289_v15, %s14956_s11  ;;  %v2131_v39 = vsel %vm1404_vm6, %v8894_v62, %v15092_v1  ;;  %v8870_v9 = vunpack.i.h.bf16 %v11396_v53  ;;  %v15095_v63 = vunpack.i.h.bf16 %v11235_v55 }
 0x289   : > { %v2130_v40 = vsel %vm1404_vm6, %v15094_v25, %v8894_v62  ;;  %7967 = vmatprep.subr.bf16.mxu1 %v7966_v42  ;;  %v15097_v51 = vunpack.i.h.bf16 %v15096_v49  ;;  %v8865_v25 = vunpack.i.h.bf16 %v11300_v3 }
 0x28a   : > { %v11463_v50 = vpop.permute.xlu1 %8907  ;;  %v2057_v6 = vsel %vm1267_vm5, %v8889_v43, %v15095_v63  ;;  %7969 = vmatpush1.bf16.msra.mxu1 %v7968_v28  ;;  %v1846_v63 = vsel %vm856_vm2, %v14929_v44, %v8870_v9  ;;  %v1847_v28 = vsel %vm856_vm2, %v8870_v9, %v14925_v52 }
 0x28b   : > { %v2056_v24 = vsel %vm1267_vm5, %v15097_v51, %v8889_v43  ;;  %v11471_v1 = vpop.permute.xlu0 %8897  ;;  %v7970_v41 = vpack.c.bf16 %v2131_v39, %v2057_v6  ;;  %v14931_v52 = vunpack.i.l.bf16 %v11463_v50 }
 0x28c   : > { %v7972_v62 = vpack.c.bf16 %v2130_v40, %v2056_v24  ;;  %v14926_v53 = vunpack.i.h.bf16 %v11471_v1  ;;  %v14924_v42 = vunpack.i.l.bf16 %v11471_v1  ;;  %2192 = vrot.lane.b32.xlu0 %v11276_v29, %s14956_s11 }
 0x28d   : > { %7971 = vmatprep.subr.bf16.mxu1 %v7970_v41 }
 0x28e   : > { %v1775_v43 = vsel %vm719_vm1, %v14926_v53, %v8865_v25  ;;  %v1776_v3 = vsel %vm719_vm1, %v8865_v25, %v14924_v42  ;;  %7973 = vmatpush1.bf16.msra.mxu1 %v7972_v62  ;;  %v11490_v39 = vpop.permute.xlu1 %850  ;;  %v15098_v42 = vld [vmem:[#allocation40_spill] sm:$0xff]  ;;  %v14927_v62 = vunpack.i.h.bf16 %v11463_v50 }
 0x28f   : > { %v11492_v40 = vpop.permute.xlu0 %576  ;;  %v8010_v6 = vpack.c.bf16 %v1847_v28, %v1776_v3  ;;  %v8012_v49 = vpack.c.bf16 %v1846_v63, %v1775_v43  ;;  %v8875_v3 = vunpack.i.h.bf16 %v11332_v13 }
 0x291   : > { %8011 = vmatprep.subr.bf16.mxu0 %v8010_v6  ;;  %v1917_v6 = vsel %vm993_vm3, %v14927_v62, %v8875_v3  ;;  %v1918_v13 = vsel %vm993_vm3, %v8875_v3, %v14931_v52  ;;  %v8890_v52 = vunpack.i.h.bf16 %v11447_v12 }
 0x292   : > { %8013 = vmatpush1.bf16.msra.mxu0 %v8012_v49  ;;  %v11496_v24 = vpop.permute.xlu1 %580 }
 0x293   : > { %v11494_v51 = vpop.permute.xlu0 %713 }
 0x296   : > { %v11504_v63 = vpop.permute.xlu1 %989 }
 0x297   : > { %v2171_v41 = vpop.permute.xlu0 %2170 }
 0x298   : > { %v2205_v25 = vsel %vm1541_vm7, %v2171_v41, %v11271_v34  ;;  %v2204_v9 = vsel %vm1541_vm7, %v15098_v42, %v2171_v41  ;;  %v8880_v34 = vunpack.i.h.bf16 %v11424_v8 }
 0x299   : > { %2333 = vmatprep.subr.mxu1 %v2205_v25 }
 0x29a   : > { %2334 = vmatpush1.msra.mxu1 %v2204_v9  ;;  %v11529_v53 = vpop.permute.xlu1 %8922 }
 0x29b   : > { %v11506_v43 = vpop.permute.xlu0 %8912  ;;  %7524 = vmatmul.mubr.msk.f32.vlgmr.msra.gmra.mrb[0].mxu1 %vm2242_vm8, %v15081_v10  ;;  %v14938_v44 = vunpack.i.l.bf16 %v11529_v53 }
 0x29c   : > { %v14928_v28 = vunpack.i.h.bf16 %v11506_v43  ;;  %v14932_v42 = vunpack.i.l.bf16 %v11506_v43  ;;  %2523 = vmatprep.mubr.f32.mxu1 %v15086_v58 }
 0x29e   : > { %v1988_v49 = vsel %vm1130_vm4, %v14928_v28, %v8880_v34  ;;  %v1989_v8 = vsel %vm1130_vm4, %v8880_v34, %v14932_v42  ;;  %v14934_v28 = vunpack.i.h.bf16 %v11529_v53  ;;  %v11535_v29 = vpop.permute.xlu1 %1124  ;;  %v8895_v34 = vunpack.i.h.bf16 %v11367_v32 }
 0x29f   : > { %v11527_v41 = vpop.permute.xlu0 %852  ;;  %v8014_v25 = vpack.c.bf16 %v1989_v8, %v1918_v13  ;;  %v8016_v9 = vpack.c.bf16 %v1988_v49, %v1917_v6 }
 0x2a0   : > { %v2136_v13 = vsel %vm1404_vm6, %v14934_v28, %v8895_v34  ;;  %v2137_v32 = vsel %vm1404_vm6, %v8895_v34, %v14938_v44  ;;  %v598_v28 = vsel %vm582_vm0, %v10781_v5, %v11492_v40  ;;  %v15103_v5 = vld [vmem:[#allocation37_spill] sm:$0xff] }
 0x2a1   : > { %8015 = vmatprep.subr.bf16.mxu0 %v8014_v25 }
 0x2a2   : > { %8017 = vmatpush1.bf16.msra.mxu0 %v8016_v9  ;;  %v11557_v22 = vpop.permute.xlu1 %854 }
 0x2a3   : > { %v11531_v62 = vpop.permute.xlu0 %987 }
 0x2a6   : > { %v11577_v44 = vpop.permute.xlu1 %1263 }
 0x2a7   : > { %v11537_v3 = vpop.permute.xlu0 %8917 }
 0x2a8   : > { %15099 = vst [vmem:[#allocation17_spill] sm:$0xff] %v11537_v3  ;;  %v14935_v6 = vunpack.i.h.bf16 %v11537_v3  ;;  %v14937_v49 = vunpack.i.l.bf16 %v11537_v3 }
 0x2aa   : > { %v2062_v8 = vsel %vm1267_vm5, %v14935_v6, %v8890_v52  ;;  %v2063_v25 = vsel %vm1267_vm5, %v8890_v52, %v14937_v49  ;;  %v15100_v6 = vld [vmem:[#allocation10_spill] sm:$0xff]  ;;  %v15101_v49 = vld [vmem:[#allocation35_spill] sm:$0xff] }
 0x2ab   : > { %v11555_v12 = vpop.permute.xlu0 %717  ;;  %v8018_v9 = vpack.c.bf16 %v2137_v32, %v2063_v25  ;;  %v8020_v42 = vpack.c.bf16 %v2136_v13, %v2062_v8  ;;  %v498_v20 = vmul.f32 %v15100_v6, %v9911_v36  ;;  %v594_v34 = vsel %vm582_vm0, %v15101_v49, %v10915_v21  ;;  %v15102_v8 = vld [vmem:[#allocation9_spill] sm:$0xff]  ;;  %v15104_v21 = vld [vmem:[#allocation39_spill] sm:$0xff] }
 0x2ac   : > { %v735_v13 = vsel %vm719_vm1, %v10837_v59, %v11494_v51  ;;  %v494_v25 = vmul.f32 %v15102_v8, %v9911_v36  ;;  %v868_v49 = vsel %vm856_vm2, %v15104_v21, %v11025_v54  ;;  %v15105_v59 = vld [vmem:[#allocation41_spill] sm:$0xff] }
 0x2ad   : > { %8019 = vmatprep.subr.bf16.mxu0 %v8018_v9  ;;  %v635_v32 = vadd.f32 %v598_v28, %v498_v20  ;;  %v1005_v8 = vsel %vm993_vm3, %v15105_v59, %v11055_v4  ;;  %v872_v20 = vsel %vm856_vm2, %v11073_v23, %v11490_v39  ;;  %v15107_v4 = vld [vmem:[#allocation45_spill] sm:$0xff] }
 0x2ae   : > { %8021 = vmatpush1.bf16.msra.mxu0 %v8020_v42  ;;  %v731_v42 = vsel %vm719_vm1, %v15103_v5, %v10861_v2  ;;  %v631_v9 = vadd.f32 %v594_v34, %v494_v25  ;;  %v1009_v2 = vsel %vm993_vm3, %v11095_v56, %v11531_v62  ;;  %v15106_v25 = vld [vmem:[#allocation42_spill] sm:$0xff]  ;;  %v1279_v23 = vsel %vm1267_vm5, %v15107_v4, %v11101_v57  ;;  %v15108_v56 = vld [vmem:[#allocation15_spill] sm:$0xff] }
 0x2af   : > { %v11564_v52 = vpop.permute.xlu0 %1126  ;;  %v772_v6 = vadd.f32 %v735_v13, %v635_v32  ;;  %v1142_v54 = vsel %vm1130_vm4, %v15106_v25, %v11081_v17 }
 0x2b0   : > { %v768_v3 = vadd.f32 %v731_v42, %v631_v9  ;;  %v11598_v42 = vpop.permute.xlu1 %1398 }
 0x2b1   : > { %v909_v34 = vadd.f32 %v872_v20, %v772_v6  ;;  %v1146_v6 = vsel %vm1130_vm4, %v11115_v48, %v11535_v29  ;;  %v1420_v48 = vsel %vm1404_vm6, %v11208_v31, %v11598_v42 }
 0x2b2   : > { %v905_v28 = vadd.f32 %v868_v49, %v768_v3  ;;  %v1416_v3 = vsel %vm1404_vm6, %v15108_v56, %v11128_v35 }
 0x2b3   : > { %v11579_v30 = vpop.permute.xlu0 %1261  ;;  %v1046_v5 = vadd.f32 %v1009_v2, %v909_v34 }
 0x2b4   : > { %v1042_v32 = vadd.f32 %v1005_v8, %v905_v28  ;;  %v1283_v17 = vsel %vm1267_vm5, %v11149_v0, %v11579_v30  ;;  %v15109_v8 = vld [vmem:[#allocation19_spill] sm:$0xff]  ;;  %v2183_v2 = vpop.permute.xlu1 %2182 }
 0x2b5   : > { %v1183_v59 = vadd.f32 %v1146_v6, %v1046_v5  ;;  %v1553_v57 = vsel %vm1541_vm7, %v15109_v8, %v11181_v26  ;;  %v600_v6 = vsel %vm582_vm0, %v11413_v46, %v11496_v24 }
 0x2b6   : > { %v1179_v9 = vadd.f32 %v1142_v54, %v1042_v32 }
 0x2b7   : > { %v11593_v13 = vpop.permute.xlu0 %991  ;;  %v1320_v28 = vadd.f32 %v1283_v17, %v1183_v59  ;;  %v499_v17 = vmul.f32 %v15050_v19, %v9911_v36  ;;  %v873_v19 = vsel %vm856_vm2, %v11490_v39, %v11527_v41  ;;  %v1147_v39 = vsel %vm1130_vm4, %v11535_v29, %v11564_v52 }
 0x2b8   : > { %v1316_v49 = vadd.f32 %v1279_v23, %v1179_v9  ;;  %v11627_v5 = vpop.permute.xlu1 %1128 }
 0x2b9   : > { %v1457_v0 = vadd.f32 %v1420_v48, %v1320_v28 }
 0x2ba   : > { %v1453_v20 = vadd.f32 %v1416_v3, %v1316_v49  ;;  %v15110_v49 = vld [vmem:[#allocation11_spill] sm:$0xff] }
 0x2bb   : > { %v11603_v21 = vpop.permute.xlu0 %1400  ;;  %v500_v59 = vmul.f32 %v15110_v49, %v9911_v36 }
 0x2bc   : > { %v1590_v25 = vadd.f32 %v1553_v57, %v1453_v20  ;;  %v1538_v8 = vpop.permute.xlu1 %1537 }
 0x2bd   : > { %v637_v20 = vadd.f32 %v600_v6, %v500_v59 }
 0x2be   : > { %v1614_v26 = vadd.f32 %v10128_v16, %v1590_v25 }
 0x2bf   : > { %v11617_v34 = vpop.permute.xlu0 %2184 }
 0x2c0   : > { %v2211_v35 = vsel %vm1541_vm7, %v2183_v2, %v11617_v34  ;;  %v11634_v3 = vmax.f32 %v1614_v26, 0.0  ;;  %v1266_v25 = vpop.permute.xlu1 %1265  ;;  %v1284_v26 = vsel %vm1267_vm5, %v11579_v30, %v11577_v44  ;;  %v1148_v30 = vsel %vm1130_vm4, %v11564_v52, %v11627_v5 }
 0x2c1   : > { %2546 = vmatprep.subr.mxu0 %v2211_v35 }
 0x2c3   : > { %v1536_v54 = vpop.permute.xlu0 %1535 }
 0x2c4   : > { %v1557_v32 = vsel %vm1541_vm7, %v11238_v38, %v1536_v54  ;;  %v599_v38 = vsel %vm582_vm0, %v11492_v40, %v11413_v46  ;;  %v736_v40 = vsel %vm719_vm1, %v11494_v51, %v11433_v47  ;;  %v1010_v51 = vsel %vm993_vm3, %v11531_v62, %v11504_v63 }
 0x2c5   : > { %v1594_v4 = vadd.f32 %v1557_v32, %v1457_v0  ;;  %v636_v46 = vadd.f32 %v599_v38, %v499_v17  ;;  %v1011_v62 = vsel %vm993_vm3, %v11504_v63, %v11593_v13  ;;  %v501_v32 = vmul.f32 %v15054_v61, %v9911_v36  ;;  %v11693_v36 = vpop.permute.xlu1 %1402 }
 0x2c6   : > { %v1421_v63 = vsel %vm1404_vm6, %v11598_v42, %v11603_v21  ;;  %v1422_v52 = vsel %vm1404_vm6, %v11603_v21, %v11693_v36 }
 0x2c7   : > { %v1618_v23 = vadd.f32 %v10128_v16, %v1594_v4  ;;  %v11630_v9 = vpop.permute.xlu0 %2180  ;;  %v638_v29 = vadd.f32 %v11496_v24, %v501_v32  ;;  %v1285_v24 = vsel %vm1267_vm5, %v11577_v44, %v1266_v25  ;;  %v15112_v44 = vunpack.i.h.bf16 %v11353_v14 }
 0x2c8   : > { %v2210_v56 = vsel %vm1541_vm7, %v11630_v9, %v2183_v2  ;;  %v773_v2 = vadd.f32 %v736_v40, %v636_v46  ;;  %v15111_v40 = vunpack.i.l.bf16 %v11250_v18 }
 0x2c9   : > { %v11636_v31 = vmax.f32 %v1618_v23, 0.0  ;;  %2547 = vmatpush1.msra.mxu0 %v2210_v56  ;;  %v775_v61 = vadd.f32 %v11555_v12, %v638_v29  ;;  %v1558_v56 = vsel %vm1541_vm7, %v1536_v54, %v1538_v8 }
 0x2ca   : > { %7527 = vmatmul.mubr.msk.f32.vlgmr.msra.gmra.mrb[4].mxu0 %vm2242_vm8, %v15081_v10  ;;  %v737_v10 = vsel %vm719_vm1, %v11433_v47, %v11555_v12  ;;  %v910_v35 = vadd.f32 %v873_v19, %v773_v2  ;;  %v874_v47 = vsel %vm856_vm2, %v11527_v41, %v11557_v22 }
 0x2cb   : > { %v9001_v57 = vpack.i.bf16 %v11636_v31, %v11634_v3  ;;  %2736 = vmatprep.mubr.f32.mxu0 %v15086_v58  ;;  %v774_v28 = vadd.f32 %v737_v10, %v637_v20  ;;  %v912_v49 = vadd.f32 %v11557_v22, %v775_v61 }
 0x2cc   : > { %v1047_v48 = vadd.f32 %v1010_v51, %v910_v35 }
 0x2cd   : > { %9002 = vrot.lane.b32.xlu1 %v9001_v57, %s14954_s21  ;;  %8997 = vrot.lane.b32.xlu0 %v9001_v57, %s14948_s20  ;;  %v911_v0 = vadd.f32 %v874_v47, %v774_v28  ;;  %v1049_v57 = vadd.f32 %v11593_v13, %v912_v49  ;;  %v15113_v28 = vld [vmem:[#allocation22_spill] sm:$0xff] }
 0x2ce   : > { %v1184_v4 = vadd.f32 %v1147_v39, %v1047_v48 }
 0x2cf   : > { %v1048_v23 = vadd.f32 %v1011_v62, %v911_v0  ;;  %v1186_v18 = vadd.f32 %v11627_v5, %v1049_v57 }
 0x2d0   : > { %v1321_v41 = vadd.f32 %v1284_v26, %v1184_v4 }
 0x2d1   : > { %1895 = vrot.lane.b32.xlu1 %v11634_v3, %s14944_s26  ;;  %1824 = vrot.lane.b32.xlu0 %v11634_v3, %s14946_s25  ;;  %v1185_v38 = vadd.f32 %v1148_v30, %v1048_v23  ;;  %v1323_v4 = vadd.f32 %v1266_v25, %v1186_v18 }
 0x2d2   : > { %v1458_v6 = vadd.f32 %v1421_v63, %v1321_v41  ;;  %v15114_v41 = vunpack.i.l.bf16 %v11278_v37  ;;  %v15117_v37 = vunpack.i.h.bf16 %v11471_v1 }
 0x2d3   : > { %v1322_v59 = vadd.f32 %v1285_v24, %v1185_v38  ;;  %v15115_v38 = vunpack.i.h.bf16 %v11385_v27  ;;  %v15116_v24 = vunpack.i.l.bf16 %v11206_v45  ;;  %v1460_v18 = vadd.f32 %v11693_v36, %v1323_v4 }
 0x2d4   : > { %v1595_v42 = vadd.f32 %v1558_v56, %v1458_v6 }
 0x2d5   : > { %2038 = vrot.lane.b32.xlu1 %v11634_v3, %s14942_s29  ;;  %1966 = vrot.lane.b32.xlu0 %v11634_v3, %s14952_s28  ;;  %v1459_v20 = vadd.f32 %v1422_v52, %v1322_v59 }
 0x2d6   : > { %v1619_v19 = vadd.f32 %v10128_v16, %v1595_v42 }
 0x2d8   : > { %v11726_v47 = vmax.f32 %v1619_v19, 0.0  ;;  %v15120_v19 = vunpack.i.h.bf16 %v11506_v43 }
 0x2d9   : > { %2186 = vrot.lane.b32.xlu1 %v11634_v3, %s14956_s11  ;;  %2112 = vrot.lane.b32.xlu0 %v11634_v3, %s14950_s30 }
 0x2da   : > { %v11706_v17 = vpop.permute.xlu1 %8932  ;;  %v8928_v12 = vpop.permute.xlu0 %8927  ;;  %v9021_v52 = vpack.i.bf16 %v11726_v47, %v11636_v31 }
 0x2db   : > { %v8929_v54 = vunpack.i.l.bf16 %v8928_v12  ;;  %v8934_v0 = vunpack.i.l.bf16 %v11706_v17  ;;  %v8935_v4 = vunpack.i.h.bf16 %v11706_v17 }
 0x2dd   : > { %v1702_v10 = vsel %vm582_vm0, %v15111_v40, %v8929_v54  ;;  %v1703_v46 = vsel %vm582_vm0, %v8929_v54, %v15112_v44  ;;  %v1773_v42 = vsel %vm719_vm1, %v15116_v24, %v8934_v0  ;;  %v1774_v49 = vsel %vm719_vm1, %v8934_v0, %v15117_v37 }
 0x2de   : > { %v11720_v22 = vpop.permute.xlu1 %8942  ;;  %v1540_v2 = vpop.permute.xlu0 %1539  ;;  %v7990_v21 = vpack.c.bf16 %v1703_v46, %v11243_v11  ;;  %v7992_v51 = vpack.c.bf16 %v1702_v10, %v15113_v28  ;;  %v8930_v11 = vunpack.i.h.bf16 %v8928_v12  ;;  %v15118_v40 = vunpack.i.l.bf16 %v11308_v33 }
 0x2df   : > { %v1559_v13 = vsel %vm1541_vm7, %v1538_v8, %v1540_v2  ;;  %v8944_v23 = vunpack.i.l.bf16 %v11720_v22  ;;  %v15119_v46 = vunpack.i.h.bf16 %v11463_v50  ;;  %v15121_v28 = vunpack.i.l.bf16 %v11223_v60 }
 0x2e0   : > { %v1596_v35 = vadd.f32 %v1559_v13, %v1459_v20  ;;  %7991 = vmatprep.subr.bf16.mxu1 %v7990_v21  ;;  %v15122_v60 = vunpack.i.h.bf16 %v11529_v53 }
 0x2e1   : > { %7993 = vmatpush1.bf16.msra.mxu1 %v7992_v51  ;;  %v1916_v20 = vsel %vm993_vm3, %v8944_v23, %v15119_v46  ;;  %v1915_v51 = vsel %vm993_vm3, %v15121_v28, %v8944_v23  ;;  %v15128_v46 = vld [vmem:[#allocation31_spill] sm:$0xff] }
 0x2e2   : > { %v1620_v39 = vadd.f32 %v10128_v16, %v1596_v35  ;;  %v11729_v62 = vpop.permute.xlu1 %8952  ;;  %v11731_v48 = vpop.permute.xlu0 %8937 }
 0x2e3   : > { %v8955_v32 = vunpack.i.h.bf16 %v11729_v62  ;;  %v8954_v8 = vunpack.i.l.bf16 %v11729_v62  ;;  %v8939_v5 = vunpack.i.l.bf16 %v11731_v48  ;;  %v15139_v62 = vld [vmem:[#allocation43_spill] sm:$0xff] }
 0x2e4   : > { %v11736_v26 = vmax.f32 %v1620_v39, 0.0 }
 0x2e5   : > { %v1708_v29 = vsel %vm582_vm0, %v8955_v32, %v8930_v11  ;;  %v1709_v63 = vsel %vm582_vm0, %v8930_v11, %v8954_v8  ;;  %v1844_v61 = vsel %vm856_vm2, %v15114_v41, %v8939_v5  ;;  %v1845_v6 = vsel %vm856_vm2, %v8939_v5, %v15115_v38 }
 0x2e6   : > { %v11749_v30 = vpop.permute.xlu1 %8962  ;;  %v11751_v56 = vpop.permute.xlu0 %8947  ;;  %v9011_v25 = vpack.i.bf16 %v11736_v26, %v11726_v47  ;;  %v7994_v59 = vpack.c.bf16 %v1845_v6, %v1774_v49  ;;  %v8038_v45 = vpack.c.bf16 %v1709_v63, %v11245_v7  ;;  %v7996_v57 = vpack.c.bf16 %v1844_v61, %v1773_v42  ;;  %v15126_v61 = vld [vmem:[#allocation34_spill] sm:$0xff] }
 0x2e7   : > { %v8949_v12 = vunpack.i.l.bf16 %v11751_v56  ;;  %v8964_v54 = vunpack.i.l.bf16 %v11749_v30  ;;  %v8040_v44 = vpack.c.bf16 %v1708_v29, %v11289_v15  ;;  %v15123_v5 = vunpack.i.l.bf16 %v11235_v55  ;;  %v15124_v29 = vld [vmem:[#allocation17_spill] sm:$0xff] }
 0x2e8   : > { %9012 = vrot.lane.b32.xlu1 %v9011_v25, %s14954_s21  ;;  %9007 = vrot.lane.b32.xlu0 %v9011_v25, %s14948_s20  ;;  %v15125_v63 = vunpack.i.h.bf16 %v15124_v29  ;;  %v1597_v41 = vadd.f32 %v1540_v2, %v1460_v18  ;;  %v15127_v25 = vunpack.i.l.bf16 %v15126_v61  ;;  %v8940_v42 = vunpack.i.h.bf16 %v11731_v48  ;;  %s9737_s21 = smov 122   ;;  %s15149_s20 = smov 103  }
 0x2e9   : > { %v1986_v10 = vsel %vm1130_vm4, %v15118_v40, %v8949_v12  ;;  %v1987_v21 = vsel %vm1130_vm4, %v8949_v12, %v15120_v19  ;;  %7995 = vmatprep.subr.bf16.mxu1 %v7994_v59  ;;  %8039 = vmatprep.subr.bf16.mxu0 %v8038_v45  ;;  %v2135_v39 = vsel %vm1404_vm6, %v8964_v54, %v15122_v60 }
 0x2ea   : > { %v11784_v7 = vpop.permute.xlu1 %8972  ;;  %v11786_v33 = vpop.permute.xlu0 %8957  ;;  %v7998_v13 = vpack.c.bf16 %v1987_v21, %v1916_v20  ;;  %7997 = vmatpush1.bf16.msra.mxu1 %v7996_v57  ;;  %8041 = vmatpush1.bf16.msra.mxu0 %v8040_v44  ;;  %v8000_v35 = vpack.c.bf16 %v1986_v10, %v1915_v51  ;;  %v2134_v38 = vsel %vm1404_vm6, %v15127_v25, %v8964_v54  ;;  %v8950_v51 = vunpack.i.h.bf16 %v11751_v56 }
 0x2eb   : > { %v8959_v15 = vunpack.i.l.bf16 %v11786_v33  ;;  %v8975_v0 = vunpack.i.h.bf16 %v11784_v7  ;;  %v8974_v11 = vunpack.i.l.bf16 %v11784_v7  ;;  %v1621_v59 = vadd.f32 %v10128_v16, %v1597_v41 }
 0x2ec   : > { %9022 = vrot.lane.b32.xlu1 %v9021_v52, %s14944_s26  ;;  %9017 = vrot.lane.b32.xlu0 %v9021_v52, %s14946_s25  ;;  %v8945_v16 = vunpack.i.h.bf16 %v11720_v22  ;;  %v11853_v22 = vld [vmem:[%s14827_s3] sm:$0xff]  ;;  %v8965_v41 = vunpack.i.h.bf16 %v11749_v30 }
 0x2ed   : > { %v2060_v23 = vsel %vm1267_vm5, %v15123_v5, %v8959_v15  ;;  %7999 = vmatprep.subr.bf16.mxu1 %v7998_v13  ;;  %v2061_v36 = vsel %vm1267_vm5, %v8959_v15, %v15125_v63  ;;  %v1850_v17 = vsel %vm856_vm2, %v8975_v0, %v8940_v42  ;;  %v1851_v54 = vsel %vm856_vm2, %v8940_v42, %v8974_v11 }
 0x2ee   : > { %v11807_v6 = vpop.permute.xlu0 %8967  ;;  %v8002_v24 = vpack.c.bf16 %v2135_v39, %v2061_v36  ;;  %8001 = vmatpush1.bf16.msra.mxu1 %v8000_v35  ;;  %v11810_v55 = vpop.permute.xlu1 %8977  ;;  %v8004_v49 = vpack.c.bf16 %v2134_v38, %v2060_v23  ;;  %v1640_v28 = vmax.f32 %v1621_v59, 0.0  ;;  %v8960_v5 = vunpack.i.h.bf16 %v11786_v33 }
 0x2ef   : > { %v8970_v12 = vunpack.i.h.bf16 %v11807_v6  ;;  %v8969_v37 = vunpack.i.l.bf16 %v11807_v6  ;;  %v8980_v44 = vunpack.i.h.bf16 %v11810_v55  ;;  %v8979_v19 = vunpack.i.l.bf16 %v11810_v55 }
 0x2f0   : > { %1836 = vrot.lane.b32.xlu1 %v11736_v26, %s14946_s25  ;;  %9027 = vrot.lane.b32.xlu0 %v9021_v52, %s14952_s28  ;;  %v9046_v63 = vpack.i.bf16 %v1640_v28, %v11736_v26 }
 0x2f1   : > { %v1779_v2 = vsel %vm719_vm1, %v8970_v12, %v8935_v4  ;;  %8003 = vmatprep.subr.bf16.mxu1 %v8002_v24  ;;  %v1780_v48 = vsel %vm719_vm1, %v8935_v4, %v8969_v37  ;;  %v1921_v15 = vsel %vm993_vm3, %v8980_v44, %v8945_v16  ;;  %v1922_v60 = vsel %vm993_vm3, %v8945_v16, %v8979_v19 }
 0x2f2   : > { %v2179_v45 = vpop.permute.xlu0 %2178  ;;  %v8042_v57 = vpack.c.bf16 %v1851_v54, %v1780_v48  ;;  %v8044_v40 = vpack.c.bf16 %v1850_v17, %v1779_v2  ;;  %8005 = vmatpush1.bf16.msra.mxu1 %v8004_v49  ;;  %v11838_v21 = vpop.permute.xlu1 %8987 }
 0x2f3   : > { %v2209_v10 = vsel %vm1541_vm7, %v2179_v45, %v11630_v9  ;;  %v2208_v20 = vsel %vm1541_vm7, %v15128_v46, %v2179_v45  ;;  %v8990_v35 = vunpack.i.h.bf16 %v11838_v21  ;;  %v8989_v56 = vunpack.i.l.bf16 %v11838_v21  ;;  %v9650_v45 = vld [vmem:[%s14831_s7] sm:$0xff] }
 0x2f4   : > { %9037 = vrot.lane.b32.xlu1 %v9021_v52, %s14950_s30  ;;  %9032 = vrot.lane.b32.xlu0 %v9021_v52, %s14942_s29  ;;  %v15130_v46 = vmov 3  }
 0x2f5   : > { %2475 = vmatprep.subr.mxu1 %v2209_v10  ;;  %8043 = vmatprep.subr.bf16.mxu0 %v8042_v57  ;;  %v2066_v24 = vsel %vm1267_vm5, %v8990_v35, %v8960_v5  ;;  %v2067_v30 = vsel %vm1267_vm5, %v8960_v5, %v8989_v56  ;;  %v15129_v10 = vmov 5  }
 0x2f6   : > { %8045 = vmatpush1.bf16.msra.mxu0 %v8044_v40  ;;  %v11841_v9 = vpop.permute.xlu0 %8982  ;;  %2476 = vmatpush1.msra.mxu1 %v2208_v20  ;;  %v2191_v61 = vpop.permute.xlu1 %2190 }
 0x2f7   : > { %v8985_v52 = vunpack.i.h.bf16 %v11841_v9  ;;  %v8984_v13 = vunpack.i.l.bf16 %v11841_v9  ;;  %7526 = vmatmul.mubr.msk.f32.vlgmr.msra.gmra.mrb[2].mxu1 %vm2242_vm8, %v11853_v22 }
 0x2f8   : > { %1978 = vrot.lane.b32.xlu1 %v11736_v26, %s14952_s28  ;;  %1907 = vrot.lane.b32.xlu0 %v11736_v26, %s14944_s26  ;;  %s9741_s28 = smov [#allocation2]  }
 0x2f9   : > { %v1992_v18 = vsel %vm1130_vm4, %v8985_v52, %v8950_v51  ;;  %v1993_v39 = vsel %vm1130_vm4, %v8950_v51, %v8984_v13  ;;  %2665 = vmatprep.mubr.f32.mxu1 %v15086_v58 }
 0x2fa   : > { %v11873_v23 = vpop.permute.xlu0 %8992  ;;  %v8046_v36 = vpack.c.bf16 %v1993_v39, %v1922_v60  ;;  %v8048_v4 = vpack.c.bf16 %v1992_v18, %v1921_v15  ;;  %v2189_v48 = vpop.permute.xlu1 %2188  ;;  %v15131_v15 = vunpack.i.l.bf16 %v11353_v14 }
 0x2fb   : > { %v8995_v25 = vunpack.i.h.bf16 %v11873_v23  ;;  %v8994_v38 = vunpack.i.l.bf16 %v11873_v23  ;;  %v2214_v59 = vsel %vm1541_vm7, %v2189_v48, %v2191_v61 }
 0x2fc   : > { %9047 = vrot.lane.b32.xlu1 %v9046_v63, %s14950_s30  ;;  %8047 = vmatprep.subr.bf16.mxu0 %v8046_v36  ;;  %v15132_v36 = vld [vmem:[#allocation7_spill] sm:$0xff]  ;;  %s7595_s30 = sshll.u32 %s9852_s27, 4 }
 0x2fd   : > { %v2140_v33 = vsel %vm1404_vm6, %v8995_v25, %v8965_v41  ;;  %9042 = vrot.lane.b32.xlu0 %v9046_v63, %s14942_s29  ;;  %8049 = vmatpush1.bf16.msra.mxu0 %v8048_v4  ;;  %v2141_v42 = vsel %vm1404_vm6, %v8965_v41, %v8994_v38  ;;  %s15147_s29 = smov 127  }
 0x2fe   : > { %v11891_v49 = vpop.permute.xlu0 %2192  ;;  %v8050_v17 = vpack.c.bf16 %v2141_v42, %v2067_v30  ;;  %v8052_v2 = vpack.c.bf16 %v2140_v33, %v2066_v24  ;;  %v15133_v24 = vunpack.i.l.bf16 %v11385_v27 }
 0x2ff   : > { %v2215_v54 = vsel %vm1541_vm7, %v2191_v61, %v11891_v49 }
 0x300   : > { %2196 = vrot.lane.b32.xlu1 %v11726_v47, %s14956_s11  ;;  %8051 = vmatprep.subr.bf16.mxu0 %v8050_v17 }
 0x301   : > { %2194 = vrot.lane.b32.xlu0 %v11636_v31, %s14956_s11  ;;  %8053 = vmatpush1.bf16.msra.mxu0 %v8052_v2  ;;  %v15135_v2 = vunpack.i.l.bf16 %v11506_v43 }
 0x302   : > { %2688 = vmatprep.subr.mxu0 %v2215_v54 }
 0x304   : > { %2200 = vrot.lane.b32.xlu1 %v1640_v28, %s14956_s11 }
 0x305   : > { %2198 = vrot.lane.b32.xlu0 %v11736_v26, %s14956_s11  ;;  %2689 = vmatpush1.msra.mxu0 %v2214_v59  ;;  %s374_s11 = scalar_lea.vmem %s14825_s1, %s7595_s30  ;;  %s15146_s30 = smov 79  }
 0x306   : > { %7529 = vmatmul.mubr.msk.f32.vlgmr.msra.gmra.mrb[6].mxu0 %vm2242_vm8, %v11853_v22 }
 0x307   : > { %2878 = vmatprep.mubr.f32.mxu0 %v15086_v58 }
 0x309   : > { %2239 = vperm.xlu0 %8749, %v9650_v45  }
 0x30c   : > { %v11909_v57 = vpop.f32.mrb[0].mxu0 }
 0x30d   : > { %v11911_v40 = vpop.f32.mrb[1].mxu0  ;;  %9052 = vset.pattern.permute.xlu0 %v15129_v10 }
 0x30e   : > { %4000 = vperm.xlu0 %9052, %v9650_v45  }
 0x312   : > { %9635 = vset.pattern.permute.xlu0 %v15130_v46 }
 0x33f   : > { %v11915_v20 = vpop.permute.xlu1 %9002  ;;  %v8998_v16 = vpop.permute.xlu0 %8997 }
 0x340   : > { %v9004_v28 = vunpack.i.l.bf16 %v11915_v20  ;;  %v8999_v51 = vunpack.i.l.bf16 %v8998_v16 }
 0x342   : > { %v1706_v18 = vsel %vm582_vm0, %v15131_v15, %v8999_v51  ;;  %v1707_v5 = vsel %vm582_vm0, %v8999_v51, %v8955_v32  ;;  %v1778_v41 = vsel %vm719_vm1, %v9004_v28, %v8970_v12  ;;  %v15134_v12 = vunpack.i.l.bf16 %v11471_v1 }
 0x343   : > { %v1896_v60 = vpop.permute.xlu1 %1895  ;;  %v1825_v39 = vpop.permute.xlu0 %1824  ;;  %v8024_v4 = vpack.c.bf16 %v1706_v18, %v15132_v36  ;;  %v8022_v14 = vpack.c.bf16 %v1707_v5, %v11634_v3  ;;  %v15136_v1 = vunpack.i.l.bf16 %v11463_v50  ;;  %v15137_v51 = vunpack.i.l.bf16 %v11529_v53 }
 0x344   : > { %v1849_v63 = vsel %vm856_vm2, %v1825_v39, %v8975_v0  ;;  %v1848_v33 = vsel %vm856_vm2, %v15133_v24, %v1825_v39  ;;  %v1920_v32 = vsel %vm993_vm3, %v1896_v60, %v8980_v44  ;;  %v1777_v3 = vsel %vm719_vm1, %v15134_v12, %v9004_v28 }
 0x345   : > { %v8026_v61 = vpack.c.bf16 %v1849_v63, %v1778_v41  ;;  %8023 = vmatprep.subr.bf16.mxu1 %v8022_v14  ;;  %v8028_v17 = vpack.c.bf16 %v1848_v33, %v1777_v3  ;;  %v1919_v45 = vsel %vm993_vm3, %v15136_v1, %v1896_v60  ;;  %v15138_v15 = vunpack.i.l.bf16 %v15124_v29 }
 0x346   : > { %8025 = vmatpush1.bf16.msra.mxu1 %v8024_v4  ;;  %v9000_v5 = vunpack.i.h.bf16 %v8998_v16  ;;  %v9005_v41 = vunpack.i.h.bf16 %v11915_v20 }
 0x347   : > { %v1967_v30 = vpop.permute.xlu0 %1966  ;;  %v2039_v42 = vpop.permute.xlu1 %2038  ;;  %8027 = vmatprep.subr.bf16.mxu1 %v8026_v61 }
 0x348   : > { %v1991_v0 = vsel %vm1130_vm4, %v1967_v30, %v8985_v52  ;;  %v1990_v54 = vsel %vm1130_vm4, %v15135_v2, %v1967_v30  ;;  %v2065_v44 = vsel %vm1267_vm5, %v2039_v42, %v8990_v35  ;;  %v2064_v18 = vsel %vm1267_vm5, %v15138_v15, %v2039_v42 }
 0x349   : > { %v8030_v27 = vpack.c.bf16 %v1991_v0, %v1920_v32  ;;  %v8032_v28 = vpack.c.bf16 %v1990_v54, %v1919_v45 }
 0x34a   : > { %8029 = vmatpush1.bf16.msra.mxu1 %v8028_v17 }
 0x34b   : > { %v2113_v59 = vpop.permute.xlu0 %2112  ;;  %8031 = vmatprep.subr.bf16.mxu1 %v8030_v27  ;;  %v2187_v35 = vpop.permute.xlu1 %2186 }
 0x34c   : > { %v2139_v52 = vsel %vm1404_vm6, %v2113_v59, %v8995_v25  ;;  %v2138_v43 = vsel %vm1404_vm6, %v15137_v51, %v2113_v59  ;;  %v2213_v50 = vsel %vm1541_vm7, %v2187_v35, %v2189_v48  ;;  %v2212_v53 = vsel %vm1541_vm7, %v11617_v34, %v2187_v35 }
 0x34d   : > { %v8034_v10 = vpack.c.bf16 %v2139_v52, %v2065_v44  ;;  %v8036_v39 = vpack.c.bf16 %v2138_v43, %v2064_v18  ;;  %v1710_v48 = vsel %vm582_vm0, %v8954_v8, %v9000_v5  ;;  %v1781_v8 = vsel %vm719_vm1, %v8969_v37, %v9005_v41 }
 0x34e   : > { %8033 = vmatpush1.bf16.msra.mxu1 %v8032_v28  ;;  %v8056_v3 = vpack.c.bf16 %v1710_v48, %v15139_v62 }
 0x34f   : > { %8035 = vmatprep.subr.bf16.mxu1 %v8034_v10 }
 0x352   : > { %v11960_v25 = vpop.f32.mrb[2].mxu0  ;;  %8037 = vmatpush1.bf16.msra.mxu1 %v8036_v39 }
 0x353   : > { %v11963_v60 = vpop.f32.mrb[3].mxu0  ;;  %2617 = vmatprep.subr.mxu1 %v2213_v50 }
 0x356   : > { %2618 = vmatpush1.msra.mxu1 %v2212_v53 }
 0x357   : > { %7528 = vmatmul.mubr.msk.f32.vlgmr.msra.gmra.mrb[4].mxu1 %vm2242_vm8, %v11853_v22 }
 0x358   : > { %2807 = vmatprep.mubr.f32.mxu1 %v15086_v58 }
 0x35a   : > { %v9013_v29 = vpop.permute.xlu1 %9012  ;;  %v9008_v63 = vpop.permute.xlu0 %9007 }
 0x35b   : > { %v9010_v36 = vunpack.i.h.bf16 %v9008_v63  ;;  %v9009_v4 = vunpack.i.l.bf16 %v9008_v63  ;;  %v9014_v14 = vunpack.i.l.bf16 %v9013_v29  ;;  %v9015_v24 = vunpack.i.h.bf16 %v9013_v29 }
 0x35d   : > { %v1712_v34 = vsel %vm582_vm0, %v9009_v4, %v9010_v36  ;;  %v8070_v16 = vpack.c.bf16 %v9010_v36, %v11736_v26  ;;  %v1711_v61 = vsel %vm582_vm0, %v9000_v5, %v9009_v4  ;;  %v1783_v2 = vsel %vm719_vm1, %v9014_v14, %v9015_v24 }
 0x35e   : > { %v9023_v33 = vpop.permute.xlu1 %9022  ;;  %v9018_v30 = vpop.permute.xlu0 %9017  ;;  %v8054_v32 = vpack.c.bf16 %v1711_v61, %v11636_v31  ;;  %v8072_v0 = vpack.c.bf16 %v1712_v34, %v11726_v47  ;;  %v1782_v31 = vsel %vm719_vm1, %v9005_v41, %v9014_v14 }
 0x35f   : > { %v9020_v12 = vunpack.i.h.bf16 %v9018_v30  ;;  %v9019_v20 = vunpack.i.l.bf16 %v9018_v30  ;;  %8071 = vmatprep.subr.bf16.mxu0 %v8070_v16  ;;  %v9024_v42 = vunpack.i.l.bf16 %v9023_v33  ;;  %v9025_v26 = vunpack.i.h.bf16 %v9023_v33  ;;  %v2937_v33 = vld [vmem:[%s14832_s8 + $0x80] sm:$0xff]  ;;  %v2938_v30 = vld [vmem:[%s14832_s8 + $0x88] sm:$0xff] }
 0x360   : > { %8055 = vmatprep.subr.bf16.mxu1 %v8054_v32  ;;  %8073 = vmatpush1.bf16.msra.mxu0 %v8072_v0 }
 0x361   : > { %v1852_v27 = vsel %vm856_vm2, %v8974_v11, %v9019_v20  ;;  %8057 = vmatpush1.bf16.msra.mxu1 %v8056_v3  ;;  %v1853_v47 = vsel %vm856_vm2, %v9019_v20, %v9020_v12  ;;  %v1923_v7 = vsel %vm993_vm3, %v8979_v19, %v9024_v42  ;;  %v1924_v10 = vsel %vm993_vm3, %v9024_v42, %v9025_v26  ;;  %v2922_v20 = vld [vmem:[%s14832_s8 + $0x8] sm:$0xff]  ;;  %v2939_v42 = vld [vmem:[%s14832_s8 + $0x90] sm:$0xff] }
 0x362   : > { %v1837_v17 = vpop.permute.xlu1 %1836  ;;  %v9028_v54 = vpop.permute.xlu0 %9027  ;;  %v8058_v6 = vpack.c.bf16 %v1853_v47, %v1782_v31  ;;  %v8060_v59 = vpack.c.bf16 %v1852_v27, %v1781_v8 }
 0x363   : > { %v1854_v37 = vsel %vm856_vm2, %v9020_v12, %v1837_v17  ;;  %v8074_v44 = vpack.c.bf16 %v1837_v17, %v9015_v24  ;;  %v9030_v52 = vunpack.i.h.bf16 %v9028_v54  ;;  %v9029_v1 = vunpack.i.l.bf16 %v9028_v54  ;;  %v2921_v12 = vld [vmem:[%s14832_s8] sm:$0xff] }
 0x364   : > { %v8076_v11 = vpack.c.bf16 %v1854_v37, %v1783_v2  ;;  %8059 = vmatprep.subr.bf16.mxu1 %v8058_v6  ;;  %v8086_v17 = vpack.c.bf16 %v2938_v30, %v2937_v33  ;;  %v2969_v2 = vld [vmem:[%s14832_s8 + $0x180] sm:$0xff]  ;;  %v2970_v37 = vld [vmem:[%s14832_s8 + $0x188] sm:$0xff]  ;;  %v2975_v33 = vld [vmem:[%s14832_s8 + $0x1b0] sm:$0xff] }
 0x365   : > { %v1994_v45 = vsel %vm1130_vm4, %v8984_v13, %v9029_v1  ;;  %8061 = vmatpush1.bf16.msra.mxu1 %v8060_v59  ;;  %8075 = vmatprep.subr.bf16.mxu0 %v8074_v44  ;;  %v1995_v28 = vsel %vm1130_vm4, %v9029_v1, %v9030_v52  ;;  %v8088_v59 = vpack.c.bf16 %v2922_v20, %v2921_v12  ;;  %v2923_v44 = vld [vmem:[%s14832_s8 + $0x10] sm:$0xff]  ;;  %v2976_v30 = vld [vmem:[%s14832_s8 + $0x1b8] sm:$0xff]  ;;  %v2929_v12 = vld [vmem:[%s14832_s8 + $0x40] sm:$0xff] }
 0x366   : > { %v9038_v51 = vpop.permute.xlu1 %9037  ;;  %v9033_v43 = vpop.permute.xlu0 %9032  ;;  %8077 = vmatpush1.bf16.msra.mxu0 %v8076_v11  ;;  %v8062_v15 = vpack.c.bf16 %v1995_v28, %v1924_v10  ;;  %v8064_v18 = vpack.c.bf16 %v1994_v45, %v1923_v7  ;;  %v2954_v7 = vld [vmem:[%s14832_s8 + $0x108] sm:$0xff]  ;;  %v2941_v11 = vld [vmem:[%s14832_s8 + $0xa0] sm:$0xff]  ;;  %v2971_v28 = vld [vmem:[%s14832_s8 + $0x190] sm:$0xff] }
 0x367   : > { %v9040_v55 = vunpack.i.h.bf16 %v9038_v51  ;;  %v9039_v35 = vunpack.i.l.bf16 %v9038_v51  ;;  %v9035_v19 = vunpack.i.h.bf16 %v9033_v43  ;;  %v9034_v39 = vunpack.i.l.bf16 %v9033_v43  ;;  %v2942_v10 = vld [vmem:[%s14832_s8 + $0xa8] sm:$0xff]  ;;  %v2972_v51 = vld [vmem:[%s14832_s8 + $0x198] sm:$0xff] }
 0x368   : > { %8063 = vmatprep.subr.bf16.mxu1 %v8062_v15  ;;  %v8118_v15 = vpack.c.bf16 %v2970_v37, %v2969_v2  ;;  %v2930_v20 = vld [vmem:[%s14832_s8 + $0x48] sm:$0xff]  ;;  %v2932_v37 = vld [vmem:[%s14832_s8 + $0x58] sm:$0xff] }
 0x369   : > { %v2142_v9 = vsel %vm1404_vm6, %v8994_v38, %v9039_v35  ;;  %v2068_v13 = vsel %vm1267_vm5, %v8989_v56, %v9034_v39  ;;  %8065 = vmatpush1.bf16.msra.mxu1 %v8064_v18  ;;  %v2069_v50 = vsel %vm1267_vm5, %v9034_v39, %v9035_v19  ;;  %v2143_v53 = vsel %vm1404_vm6, %v9039_v35, %v9040_v55  ;;  %v2925_v39 = vld [vmem:[%s14832_s8 + $0x20] sm:$0xff] }
 0x36a   : > { %v1979_v5 = vpop.permute.xlu1 %1978  ;;  %v8066_v29 = vpack.c.bf16 %v2143_v53, %v2069_v50  ;;  %v8068_v63 = vpack.c.bf16 %v2142_v9, %v2068_v13  ;;  %v1908_v4 = vpop.permute.xlu0 %1907  ;;  %v2926_v9 = vld [vmem:[%s14832_s8 + $0x28] sm:$0xff]  ;;  %v8094_v13 = vpack.c.bf16 %v2942_v10, %v2941_v11  ;;  %v8122_v50 = vpack.c.bf16 %v2972_v51, %v2971_v28  ;;  %v2955_v53 = vld [vmem:[%s14832_s8 + $0x110] sm:$0xff]  ;;  %v2980_v11 = vld [vmem:[%s14832_s8 + $0x1d8] sm:$0xff] }
 0x36b   : > { %v1996_v36 = vsel %vm1130_vm4, %v9030_v52, %v1979_v5  ;;  %v1925_v41 = vsel %vm993_vm3, %v9025_v26, %v1908_v4  ;;  %v8078_v23 = vpack.c.bf16 %v1979_v5, %v1908_v4  ;;  %v2940_v26 = vld [vmem:[%s14832_s8 + $0x98] sm:$0xff]  ;;  %v2974_v4 = vld [vmem:[%s14832_s8 + $0x1a8] sm:$0xff]  ;;  %v2933_v51 = vld [vmem:[%s14832_s8 + $0x60] sm:$0xff] }
 0x36c   : > { %8067 = vmatprep.subr.bf16.mxu1 %v8066_v29  ;;  %v8080_v38 = vpack.c.bf16 %v1996_v36, %v1925_v41  ;;  %v2924_v52 = vld [vmem:[%s14832_s8 + $0x18] sm:$0xff]  ;;  %v8090_v1 = vpack.c.bf16 %v2940_v26, %v2939_v42  ;;  %v2943_v29 = vld [vmem:[%s14832_s8 + $0xb0] sm:$0xff]  ;;  %v2973_v36 = vld [vmem:[%s14832_s8 + $0x1a0] sm:$0xff]  ;;  %v8096_v41 = vpack.c.bf16 %v2926_v9, %v2925_v39 }
 0x36d   : > { %8069 = vmatpush1.bf16.msra.mxu1 %v8068_v63  ;;  %8079 = vmatprep.subr.bf16.mxu0 %v8078_v23  ;;  %v8092_v35 = vpack.c.bf16 %v2924_v52, %v2923_v44  ;;  %v2956_v5 = vld [vmem:[%s14832_s8 + $0x118] sm:$0xff]  ;;  %v2947_v26 = vld [vmem:[%s14832_s8 + $0xd0] sm:$0xff]  ;;  %v2961_v44 = vld [vmem:[%s14832_s8 + $0x140] sm:$0xff] }
 0x36e   : > { %v12008_v21 = vpop.f32.mrb[0].mxu1  ;;  %v9048_v56 = vpop.permute.xlu1 %9047  ;;  %8081 = vmatpush1.bf16.msra.mxu0 %v8080_v38  ;;  %v2944_v63 = vld [vmem:[%s14832_s8 + $0xb8] sm:$0xff]  ;;  %v8124_v23 = vpack.c.bf16 %v2956_v5, %v2955_v53  ;;  %v2927_v38 = vld [vmem:[%s14832_s8 + $0x30] sm:$0xff]  ;;  %v2962_v52 = vld [vmem:[%s14832_s8 + $0x148] sm:$0xff] }
 0x36f   : > { %v12010_v48 = vpop.f32.mrb[1].mxu1  ;;  %v9050_v14 = vunpack.i.h.bf16 %v9048_v56  ;;  %v9049_v34 = vunpack.i.l.bf16 %v9048_v56  ;;  %v9043_v16 = vpop.permute.xlu0 %9042  ;;  %v2928_v56 = vld [vmem:[%s14832_s8 + $0x38] sm:$0xff]  ;;  %v8136_v28 = vpack.c.bf16 %v2962_v52, %v2961_v44  ;;  %v3018_v44 = vld [vmem:[%s14832_s8 + $0x308] sm:$0xff]  ;;  %v3035_v52 = vld [vmem:[%s14832_s8 + $0x390] sm:$0xff] }
 0x370   : > { %v9045_v61 = vunpack.i.h.bf16 %v9043_v16  ;;  %v9044_v24 = vunpack.i.l.bf16 %v9043_v16  ;;  %v2958_v16 = vld [vmem:[%s14832_s8 + $0x128] sm:$0xff]  ;;  %v2960_v42 = vld [vmem:[%s14832_s8 + $0x138] sm:$0xff] }
 0x371   : > { %v2144_v32 = vsel %vm1404_vm6, %v9040_v55, %v9049_v34  ;;  %v2145_v0 = vsel %vm1404_vm6, %v9049_v34, %v9050_v14  ;;  %v8098_v14 = vpack.c.bf16 %v2944_v63, %v2943_v29  ;;  %v8126_v34 = vpack.c.bf16 %v2974_v4, %v2973_v36  ;;  %v2935_v63 = vld [vmem:[%s14832_s8 + $0x70] sm:$0xff]  ;;  %v2936_v36 = vld [vmem:[%s14832_s8 + $0x78] sm:$0xff] }
 0x372   : > { %v2070_v62 = vsel %vm1267_vm5, %v9035_v19, %v9044_v24  ;;  %v2197_v3 = vpop.permute.xlu1 %2196  ;;  %v2071_v8 = vsel %vm1267_vm5, %v9044_v24, %v9045_v61  ;;  %v2945_v61 = vld [vmem:[%s14832_s8 + $0xc0] sm:$0xff]  ;;  %v2946_v24 = vld [vmem:[%s14832_s8 + $0xc8] sm:$0xff] }
 0x373   : > { %v2195_v27 = vpop.permute.xlu0 %2194  ;;  %v8082_v31 = vpack.c.bf16 %v2145_v0, %v2071_v8  ;;  %v8084_v47 = vpack.c.bf16 %v2144_v32, %v2070_v62  ;;  %v8100_v32 = vpack.c.bf16 %v2928_v56, %v2927_v38  ;;  %v8102_v62 = vpack.c.bf16 %v2946_v24, %v2945_v61  ;;  %v2959_v8 = vld [vmem:[%s14832_s8 + $0x130] sm:$0xff]  ;;  %v2966_v38 = vld [vmem:[%s14832_s8 + $0x168] sm:$0xff] }
 0x374   : > { %v2217_v54 = vsel %vm1541_vm7, %v2195_v27, %v2197_v3  ;;  %v2216_v6 = vsel %vm1541_vm7, %v11891_v49, %v2195_v27  ;;  %v2953_v49 = vld [vmem:[%s14832_s8 + $0x100] sm:$0xff]  ;;  %v2948_v27 = vld [vmem:[%s14832_s8 + $0xd8] sm:$0xff]  ;;  %v8132_v2 = vpack.c.bf16 %v2960_v42, %v2959_v8  ;;  %v2983_v56 = vld [vmem:[%s14832_s8 + $0x1f0] sm:$0xff] }
 0x375   : > { %2759 = vmatprep.subr.mxu1 %v2217_v54  ;;  %8083 = vmatprep.subr.bf16.mxu0 %v8082_v31  ;;  %v8120_v19 = vpack.c.bf16 %v2954_v7, %v2953_v49  ;;  %v2977_v31 = vld [vmem:[%s14832_s8 + $0x1c0] sm:$0xff]  ;;  %v2931_v54 = vld [vmem:[%s14832_s8 + $0x50] sm:$0xff]  ;;  %v2950_v49 = vld [vmem:[%s14832_s8 + $0xe8] sm:$0xff] }
 0x376   : > { %2760 = vmatpush1.msra.mxu1 %v2216_v6  ;;  %8085 = vmatpush1.bf16.msra.mxu0 %v8084_v47  ;;  %v2201_v45 = vpop.permute.xlu1 %2200  ;;  %v2978_v47 = vld [vmem:[%s14832_s8 + $0x1c8] sm:$0xff]  ;;  %v8106_v6 = vpack.c.bf16 %v2948_v27, %v2947_v26  ;;  %v2979_v7 = vld [vmem:[%s14832_s8 + $0x1d0] sm:$0xff]  ;;  %v8108_v10 = vpack.c.bf16 %v2932_v37, %v2931_v54  ;;  %v3004_v8 = vld [vmem:[%s14832_s8 + $0x298] sm:$0xff] }
 0x377   : > { %v2199_v43 = vpop.permute.xlu0 %2198  ;;  %7530 = vmatmul.mubr.msk.f32.vlgmr.msra.gmra.mrb[6].mxu1 %vm2242_vm8, %v11853_v22  ;;  %8087 = vmatprep.subr.bf16.mxu1 %v8086_v17  ;;  %v8104_v17 = vpack.c.bf16 %v2930_v20, %v2929_v12  ;;  %v8138_v9 = vpack.c.bf16 %v2980_v11, %v2979_v7  ;;  %v2985_v12 = vld [vmem:[%s14832_s8 + $0x200] sm:$0xff]  ;;  %v2986_v20 = vld [vmem:[%s14832_s8 + $0x208] sm:$0xff] }
 0x378   : > { %8089 = vmatpush3.bf16.msra.mxu1 %v8088_v59  ;;  %v2219_v18 = vsel %vm1541_vm7, %v2199_v43, %v2201_v45  ;;  %v2218_v55 = vsel %vm1541_vm7, %v2197_v3, %v2199_v43  ;;  %v8130_v3 = vpack.c.bf16 %v2976_v30, %v2975_v33  ;;  %v8134_v59 = vpack.c.bf16 %v2978_v47, %v2977_v31  ;;  %v2934_v43 = vld [vmem:[%s14832_s8 + $0x68] sm:$0xff]  ;;  %v2987_v47 = vld [vmem:[%s14832_s8 + $0x210] sm:$0xff]  ;;  %v3017_v37 = vld [vmem:[%s14832_s8 + $0x300] sm:$0xff] }
 0x379   : > { %2830 = vmatprep.subr.mxu0 %v2219_v18  ;;  %8091 = vmatprep.subr.bf16.mxu1 %v8090_v1  ;;  %v2949_v1 = vld [vmem:[%s14832_s8 + $0xe0] sm:$0xff]  ;;  %v8112_v5 = vpack.c.bf16 %v2934_v43, %v2933_v51  ;;  %v8152_v27 = vpack.c.bf16 %v2986_v20, %v2985_v12  ;;  %v8184_v51 = vpack.c.bf16 %v3018_v44, %v3017_v37  ;;  %v3011_v12 = vld [vmem:[%s14832_s8 + $0x2d0] sm:$0xff]  ;;  %v3014_v37 = vld [vmem:[%s14832_s8 + $0x2e8] sm:$0xff] }
 0x37a   : > { %2831 = vmatpush1.msra.mxu0 %v2218_v55  ;;  %v2963_v55 = vld [vmem:[%s14832_s8 + $0x150] sm:$0xff]  ;;  %v8110_v39 = vpack.c.bf16 %v2950_v49, %v2949_v1  ;;  %v3036_v1 = vld [vmem:[%s14832_s8 + $0x398] sm:$0xff] }
 0x37b   : > { %7531 = vmatmul.mubr.msk.f32.vlgmr.msra.gmra.mrb[8].mxu0 %vm2242_vm8, %v11853_v22  ;;  %8119 = vmatprep.subr.bf16.mxu0 %v8118_v15  ;;  %v2957_v22 = vld [vmem:[%s14832_s8 + $0x120] sm:$0xff]  ;;  %v3043_v44 = vld [vmem:[%s14832_s8 + $0x3d0] sm:$0xff] }
 0x37c   : > { %8093 = vmatpush3.bf16.msra.mxu1 %v8092_v35  ;;  %8121 = vmatpush3.bf16.msra.mxu0 %v8120_v19  ;;  %v8128_v0 = vpack.c.bf16 %v2958_v16, %v2957_v22  ;;  %v2964_v35 = vld [vmem:[%s14832_s8 + $0x158] sm:$0xff]  ;;  %v2951_v19 = vld [vmem:[%s14832_s8 + $0xf0] sm:$0xff]  ;;  %v3002_v22 = vld [vmem:[%s14832_s8 + $0x288] sm:$0xff]  ;;  %v8116_v16 = vpack.c.bf16 %v2936_v36, %v2935_v63 }
 0x37d   : > { %8095 = vmatprep.subr.bf16.mxu1 %v8094_v13  ;;  %8123 = vmatprep.subr.bf16.mxu0 %v8122_v50  ;;  %v2982_v13 = vld [vmem:[%s14832_s8 + $0x1e8] sm:$0xff]  ;;  %v8140_v29 = vpack.c.bf16 %v2964_v35, %v2963_v55  ;;  %v3007_v55 = vld [vmem:[%s14832_s8 + $0x2b0] sm:$0xff]  ;;  %v8186_v35 = vpack.c.bf16 %v3036_v1, %v3035_v52  ;;  %v2997_v1 = vld [vmem:[%s14832_s8 + $0x260] sm:$0xff] }
 0x37e   : > { %v2991_v36 = vld [vmem:[%s14832_s8 + $0x230] sm:$0xff] }
 0x380   : > { %8097 = vmatpush3.bf16.msra.mxu1 %v8096_v41  ;;  %8125 = vmatpush3.bf16.msra.mxu0 %v8124_v23  ;;  %v2965_v23 = vld [vmem:[%s14832_s8 + $0x160] sm:$0xff] }
 0x381   : > { %8099 = vmatprep.subr.bf16.mxu1 %v8098_v14  ;;  %8127 = vmatprep.subr.bf16.mxu0 %v8126_v34  ;;  %v2984_v14 = vld [vmem:[%s14832_s8 + $0x1f8] sm:$0xff]  ;;  %v3001_v34 = vld [vmem:[%s14832_s8 + $0x280] sm:$0xff]  ;;  %v8144_v61 = vpack.c.bf16 %v2966_v38, %v2965_v23 }
 0x382   : > { %v8146_v33 = vpack.c.bf16 %v2984_v14, %v2983_v56  ;;  %v8150_v30 = vpack.c.bf16 %v3002_v22, %v3001_v34  ;;  %v3009_v38 = vld [vmem:[%s14832_s8 + $0x2c0] sm:$0xff]  ;;  %v3022_v34 = vld [vmem:[%s14832_s8 + $0x328] sm:$0xff] }
 0x383   : > { %v3021_v14 = vld [vmem:[%s14832_s8 + $0x320] sm:$0xff]  ;;  %v3010_v22 = vld [vmem:[%s14832_s8 + $0x2c8] sm:$0xff] }
 0x384   : > { %8101 = vmatpush3.bf16.msra.mxu1 %v8100_v32  ;;  %8129 = vmatpush3.bf16.msra.mxu0 %v8128_v0  ;;  %v2967_v32 = vld [vmem:[%s14832_s8 + $0x170] sm:$0xff]  ;;  %v2968_v0 = vld [vmem:[%s14832_s8 + $0x178] sm:$0xff] }
 0x385   : > { %8103 = vmatprep.subr.bf16.mxu1 %v8102_v62  ;;  %8131 = vmatprep.subr.bf16.mxu0 %v8130_v3  ;;  %v3034_v62 = vld [vmem:[%s14832_s8 + $0x388] sm:$0xff]  ;;  %v3003_v3 = vld [vmem:[%s14832_s8 + $0x290] sm:$0xff]  ;;  %v8148_v42 = vpack.c.bf16 %v2968_v0, %v2967_v32  ;;  %v8192_v32 = vpack.c.bf16 %v3022_v34, %v3021_v14  ;;  %v8166_v0 = vpack.c.bf16 %v3010_v22, %v3009_v38 }
 0x386   : > { %v3047_v38 = vld [vmem:[%s14832_s8 + $0x3f0] sm:$0xff] }
 0x388   : > { %v12169_v45 = vpop.permute.xlu0 %2239  ;;  %8105 = vmatpush3.bf16.msra.mxu1 %v8104_v17  ;;  %8133 = vmatpush3.bf16.msra.mxu0 %v8132_v2  ;;  %v2988_v17 = vld [vmem:[%s14832_s8 + $0x218] sm:$0xff] }
 0x389   : > { %v2386_v15 = vadd.f32 %v12010_v48, %v12169_v45  ;;  %8107 = vmatprep.subr.bf16.mxu1 %v8106_v6  ;;  %8135 = vmatprep.subr.bf16.mxu0 %v8134_v59  ;;  %v2315_v18 = vadd.f32 %v11911_v40, %v12169_v45  ;;  %v2952_v48 = vld [vmem:[%s14832_s8 + $0xf8] sm:$0xff]  ;;  %v2981_v40 = vld [vmem:[%s14832_s8 + $0x1e0] sm:$0xff]  ;;  %v2313_v24 = vadd.f32 %v11909_v57, %v12169_v45 }
 0x38a   : > { %v8114_v4 = vpack.c.bf16 %v2952_v48, %v2951_v19  ;;  %v8142_v41 = vpack.c.bf16 %v2982_v13, %v2981_v40  ;;  %v3033_v57 = vld [vmem:[%s14832_s8 + $0x380] sm:$0xff]  ;;  %v2384_v31 = vadd.f32 %v12008_v21, %v12169_v45  ;;  %v2457_v54 = vadd.f32 %v11963_v60, %v12169_v45  ;;  %v3006_v60 = vld [vmem:[%s14832_s8 + $0x2a8] sm:$0xff]  ;;  %v3019_v19 = vld [vmem:[%s14832_s8 + $0x310] sm:$0xff] }
 0x38b   : > { %v12199_v50 = vmax.f32 %v2386_v15, 0.0  ;;  %v12201_v53 = vmax.f32 %v2315_v18, 0.0  ;;  %v12255_v26 = vmax.f32 %v2313_v24, 0.0  ;;  %v8182_v2 = vpack.c.bf16 %v3034_v62, %v3033_v57  ;;  %v3005_v21 = vld [vmem:[%s14832_s8 + $0x2a0] sm:$0xff]  ;;  %v3038_v40 = vld [vmem:[%s14832_s8 + $0x3a8] sm:$0xff]  ;;  %v3023_v57 = vld [vmem:[%s14832_s8 + $0x330] sm:$0xff] }
 0x38c   : > { %8109 = vmatpush3.bf16.msra.mxu1 %v8108_v10  ;;  %8137 = vmatpush3.bf16.msra.mxu0 %v8136_v28  ;;  %v8154_v59 = vpack.c.bf16 %v3004_v8, %v3003_v3  ;;  %v12290_v7 = vmax.f32 %v2384_v31, 0.0  ;;  %v8156_v11 = vpack.c.bf16 %v2988_v17, %v2987_v47  ;;  %v2989_v10 = vld [vmem:[%s14832_s8 + $0x220] sm:$0xff]  ;;  %v2990_v28 = vld [vmem:[%s14832_s8 + $0x228] sm:$0xff]  ;;  %v12298_v43 = vmax.f32 %v2457_v54, 0.0  ;;  %v3024_v62 = vld [vmem:[%s14832_s8 + $0x338] sm:$0xff] }
 0x38d   : > { %3281 = vmatprep.mubr.f32.mxu1 %v12201_v53  ;;  %3356 = vmatprep.mubr.f32.mxu0 %v12199_v50  ;;  %v2904_v6 = vmul.f32 %v12201_v53, %v12201_v53  ;;  %v2903_v49 = vmul.f32 %v12255_v26, %v12255_v26  ;;  %v2906_v15 = vmul.f32 %v12199_v50, %v12199_v50  ;;  %v3037_v48 = vld [vmem:[%s14832_s8 + $0x3a0] sm:$0xff]  ;;  %v3012_v3 = vld [vmem:[%s14832_s8 + $0x2d8] sm:$0xff]  ;;  %v2995_v31 = vld [vmem:[%s14832_s8 + $0x250] sm:$0xff] }
 0x38e   : > { %8111 = vmatprep.subr.bf16.mxu1 %v8110_v39  ;;  %8139 = vmatprep.subr.bf16.mxu0 %v8138_v9  ;;  %v8158_v18 = vpack.c.bf16 %v3006_v60, %v3005_v21  ;;  %v3020_v39 = vld [vmem:[%s14832_s8 + $0x318] sm:$0xff]  ;;  %v8160_v63 = vpack.c.bf16 %v2990_v28, %v2989_v10  ;;  %v8190_v56 = vpack.c.bf16 %v3038_v40, %v3037_v48  ;;  %v3041_v8 = vld [vmem:[%s14832_s8 + $0x3c0] sm:$0xff]  ;;  %v3026_v21 = vld [vmem:[%s14832_s8 + $0x348] sm:$0xff] }
 0x38f   : > { %v3008_v9 = vld [vmem:[%s14832_s8 + $0x2b8] sm:$0xff]  ;;  %v8196_v17 = vpack.c.bf16 %v3024_v62, %v3023_v57  ;;  %v3013_v54 = vld [vmem:[%s14832_s8 + $0x2e0] sm:$0xff]  ;;  %v3015_v28 = vld [vmem:[%s14832_s8 + $0x2f0] sm:$0xff]  ;;  %v2455_v22 = vadd.f32 %v11960_v25, %v12169_v45 }
 0x390   : > { %8113 = vmatpush3.bf16.msra.mxu1 %v8112_v5  ;;  %8141 = vmatpush3.bf16.msra.mxu0 %v8140_v29  ;;  %v2905_v29 = vmul.f32 %v12290_v7, %v12290_v7  ;;  %v8162_v23 = vpack.c.bf16 %v3008_v9, %v3007_v55  ;;  %v2996_v47 = vld [vmem:[%s14832_s8 + $0x258] sm:$0xff]  ;;  %v8174_v10 = vpack.c.bf16 %v3014_v37, %v3013_v54  ;;  %v2999_v9 = vld [vmem:[%s14832_s8 + $0x270] sm:$0xff]  ;;  %v3054_v37 = vld [vmem:[%s14832_s8 + $0x428] sm:$0xff] }
 0x391   : > { %8115 = vmatprep.subr.bf16.mxu1 %v8114_v4  ;;  %8143 = vmatprep.subr.bf16.mxu0 %v8142_v41  ;;  %v2992_v4 = vld [vmem:[%s14832_s8 + $0x238] sm:$0xff]  ;;  %v8188_v41 = vpack.c.bf16 %v3020_v39, %v3019_v19  ;;  %v8172_v52 = vpack.c.bf16 %v2996_v47, %v2995_v31  ;;  %v3046_v19 = vld [vmem:[%s14832_s8 + $0x3e8] sm:$0xff]  ;;  %v3031_v25 = vld [vmem:[%s14832_s8 + $0x370] sm:$0xff]  ;;  %v12474_v62 = vmax.f32 %v2455_v22, 0.0  ;;  %v2908_v47 = vmul.f32 %v12298_v43, %v12298_v43 }
 0x392   : > { %v8164_v24 = vpack.c.bf16 %v2992_v4, %v2991_v36  ;;  %v3044_v60 = vld [vmem:[%s14832_s8 + $0x3d8] sm:$0xff]  ;;  %v3029_v4 = vld [vmem:[%s14832_s8 + $0x360] sm:$0xff] }
 0x393   : > { %v3016_v55 = vld [vmem:[%s14832_s8 + $0x2f8] sm:$0xff] }
 0x394   : > { %8117 = vmatpush3.bf16.msra.mxu1 %v8116_v16  ;;  %8145 = vmatpush3.bf16.msra.mxu0 %v8144_v61  ;;  %v3039_v16 = vld [vmem:[%s14832_s8 + $0x3b0] sm:$0xff]  ;;  %v3040_v61 = vld [vmem:[%s14832_s8 + $0x3b8] sm:$0xff] }
 0x395   : > { %8147 = vmatprep.subr.bf16.mxu0 %v8146_v33  ;;  %8151 = vmatprep.subr.bf16.mxu1 %v8150_v30  ;;  %v2993_v33 = vld [vmem:[%s14832_s8 + $0x240] sm:$0xff]  ;;  %v2994_v30 = vld [vmem:[%s14832_s8 + $0x248] sm:$0xff]  ;;  %v8194_v20 = vpack.c.bf16 %v3040_v61, %v3039_v16  ;;  %v3000_v48 = vld [vmem:[%s14832_s8 + $0x278] sm:$0xff] }
 0x396   : > { %v8180_v14 = vpack.c.bf16 %v3000_v48, %v2999_v9  ;;  %v3049_v61 = vld [vmem:[%s14832_s8 + $0x400] sm:$0xff] }
 0x397   : > { %3282 = vmatmul.mubr.f32.vlgmr.msra.gmra.mrb[8].mxu1 %v12255_v26 }
 0x398   : > { %3286 = vmatprep.mubr.f32.mxu1 %v2904_v6  ;;  %8149 = vmatpush3.bf16.msra.mxu0 %v8148_v42  ;;  %v3042_v42 = vld [vmem:[%s14832_s8 + $0x3c8] sm:$0xff] }
 0x399   : > { %8153 = vmatpush3.bf16.msra.mxu1 %v8152_v27  ;;  %8183 = vmatprep.subr.bf16.mxu0 %v8182_v2  ;;  %v8168_v27 = vpack.c.bf16 %v2994_v30, %v2993_v33  ;;  %v8170_v2 = vpack.c.bf16 %v3012_v3, %v3011_v12  ;;  %v8198_v6 = vpack.c.bf16 %v3042_v42, %v3041_v8  ;;  %v3067_v33 = vld [vmem:[%s14832_s8 + $0x490] sm:$0xff]  ;;  %v3097_v12 = vld [vmem:[%s14832_s8 + $0x580] sm:$0xff]  ;;  %v3052_v42 = vld [vmem:[%s14832_s8 + $0x418] sm:$0xff] }
 0x39a   : > { %8155 = vmatprep.subr.bf16.mxu1 %v8154_v59  ;;  %v3025_v59 = vld [vmem:[%s14832_s8 + $0x340] sm:$0xff]  ;;  %v3051_v8 = vld [vmem:[%s14832_s8 + $0x410] sm:$0xff] }
 0x39b   : > { %3287 = vmatmul.mubr.f32.gmra.mrb[10].mxu1 %v2903_v49  ;;  %3357 = vmatmul.mubr.f32.vlgmr.msra.gmra.mrb[10].mxu0 %v12290_v7  ;;  %v2998_v49 = vld [vmem:[%s14832_s8 + $0x268] sm:$0xff] }
 0x39c   : > { %3361 = vmatprep.mubr.f32.mxu0 %v2906_v15  ;;  %3431 = vmatprep.mubr.f32.mxu1 %v12298_v43  ;;  %v3027_v15 = vld [vmem:[%s14832_s8 + $0x350] sm:$0xff]  ;;  %v8176_v39 = vpack.c.bf16 %v2998_v49, %v2997_v1 }
 0x39d   : > { %v12322_v13 = vpop.f32.mrb[4].mxu0  ;;  %8157 = vmatpush3.bf16.msra.mxu1 %v8156_v11  ;;  %8185 = vmatpush3.bf16.msra.mxu0 %v8184_v51  ;;  %v8200_v11 = vpack.c.bf16 %v3026_v21, %v3025_v59  ;;  %v8202_v51 = vpack.c.bf16 %v3044_v60, %v3043_v44  ;;  %v3053_v21 = vld [vmem:[%s14832_s8 + $0x420] sm:$0xff]  ;;  %v3071_v60 = vld [vmem:[%s14832_s8 + $0x4b0] sm:$0xff] }
 0x39e   : > { %v12324_v5 = vpop.f32.mrb[5].mxu0  ;;  %8159 = vmatprep.subr.bf16.mxu1 %v8158_v18  ;;  %8187 = vmatprep.subr.bf16.mxu0 %v8186_v35  ;;  %v3028_v18 = vld [vmem:[%s14832_s8 + $0x358] sm:$0xff]  ;;  %v3045_v35 = vld [vmem:[%s14832_s8 + $0x3e0] sm:$0xff]  ;;  %v8224_v1 = vpack.c.bf16 %v3054_v37, %v3053_v21 }
 0x39f   : > { %3362 = vmatmul.mubr.f32.gmra.mrb[12].mxu0 %v2905_v29  ;;  %v8204_v40 = vpack.c.bf16 %v3028_v18, %v3027_v15  ;;  %v8178_v29 = vpack.c.bf16 %v3016_v55, %v3015_v28  ;;  %v8206_v36 = vpack.c.bf16 %v3046_v19, %v3045_v35  ;;  %v2599_v31 = vadd.f32 %v12324_v5, %v12169_v45  ;;  %v3073_v28 = vld [vmem:[%s14832_s8 + $0x4c0] sm:$0xff]  ;;  %v3058_v35 = vld [vmem:[%s14832_s8 + $0x448] sm:$0xff]  ;;  %v3075_v19 = vld [vmem:[%s14832_s8 + $0x4d0] sm:$0xff] }
 0x3a0   : > { %v2907_v5 = vmul.f32 %v12474_v62, %v12474_v62  ;;  %v3057_v55 = vld [vmem:[%s14832_s8 + $0x440] sm:$0xff] }
 0x3a1   : > { %8161 = vmatpush3.bf16.msra.mxu1 %v8160_v63  ;;  %8189 = vmatpush3.bf16.msra.mxu0 %v8188_v41  ;;  %v3065_v63 = vld [vmem:[%s14832_s8 + $0x480] sm:$0xff]  ;;  %v3030_v41 = vld [vmem:[%s14832_s8 + $0x368] sm:$0xff]  ;;  %v12501_v44 = vmax.f32 %v2599_v31, 0.0  ;;  %v8232_v9 = vpack.c.bf16 %v3058_v35, %v3057_v55 }
 0x3a2   : > { %8163 = vmatprep.subr.bf16.mxu1 %v8162_v23  ;;  %8191 = vmatprep.subr.bf16.mxu0 %v8190_v56  ;;  %v3066_v23 = vld [vmem:[%s14832_s8 + $0x488] sm:$0xff]  ;;  %v3048_v56 = vld [vmem:[%s14832_s8 + $0x3f8] sm:$0xff]  ;;  %v8208_v34 = vpack.c.bf16 %v3030_v41, %v3029_v4  ;;  %v3113_v37 = vld [vmem:[%s14832_s8 + $0x600] sm:$0xff] }
 0x3a3   : > { %v8214_v16 = vpack.c.bf16 %v3066_v23, %v3065_v63  ;;  %v8210_v30 = vpack.c.bf16 %v3048_v56, %v3047_v38  ;;  %v3077_v63 = vld [vmem:[%s14832_s8 + $0x4e0] sm:$0xff]  ;;  %v3062_v38 = vld [vmem:[%s14832_s8 + $0x468] sm:$0xff] }
 0x3a4   : > { %v3061_v23 = vld [vmem:[%s14832_s8 + $0x460] sm:$0xff] }
 0x3a5   : > { %8165 = vmatpush3.bf16.msra.mxu1 %v8164_v24  ;;  %8193 = vmatpush3.bf16.msra.mxu0 %v8192_v32  ;;  %v3050_v24 = vld [vmem:[%s14832_s8 + $0x408] sm:$0xff]  ;;  %v3068_v32 = vld [vmem:[%s14832_s8 + $0x498] sm:$0xff] }
 0x3a6   : > { %8167 = vmatprep.subr.bf16.mxu1 %v8166_v0  ;;  %8195 = vmatprep.subr.bf16.mxu0 %v8194_v20  ;;  %v3032_v0 = vld [vmem:[%s14832_s8 + $0x378] sm:$0xff]  ;;  %v3098_v20 = vld [vmem:[%s14832_s8 + $0x588] sm:$0xff]  ;;  %v8216_v57 = vpack.c.bf16 %v3050_v24, %v3049_v61  ;;  %v8218_v3 = vpack.c.bf16 %v3068_v32, %v3067_v33  ;;  %v3081_v61 = vld [vmem:[%s14832_s8 + $0x500] sm:$0xff] }
 0x3a7   : > { %v8246_v54 = vpack.c.bf16 %v3098_v20, %v3097_v12  ;;  %v3082_v24 = vld [vmem:[%s14832_s8 + $0x508] sm:$0xff]  ;;  %v3099_v32 = vld [vmem:[%s14832_s8 + $0x590] sm:$0xff]  ;;  %v3064_v20 = vld [vmem:[%s14832_s8 + $0x478] sm:$0xff] }
 0x3a8   : > { %v3063_v12 = vld [vmem:[%s14832_s8 + $0x470] sm:$0xff] }
 0x3a9   : > { %8169 = vmatpush3.bf16.msra.mxu1 %v8168_v27  ;;  %8197 = vmatpush3.bf16.msra.mxu0 %v8196_v17  ;;  %v8212_v27 = vpack.c.bf16 %v3032_v0, %v3031_v25  ;;  %v3069_v17 = vld [vmem:[%s14832_s8 + $0x4a0] sm:$0xff]  ;;  %v3100_v25 = vld [vmem:[%s14832_s8 + $0x598] sm:$0xff] }
 0x3aa   : > { %8171 = vmatprep.subr.bf16.mxu1 %v8170_v2  ;;  %8199 = vmatprep.subr.bf16.mxu0 %v8198_v6  ;;  %v3070_v2 = vld [vmem:[%s14832_s8 + $0x4a8] sm:$0xff]  ;;  %v8220_v6 = vpack.c.bf16 %v3052_v42, %v3051_v8  ;;  %v8248_v42 = vpack.c.bf16 %v3082_v24, %v3081_v61  ;;  %v8250_v31 = vpack.c.bf16 %v3100_v25, %v3099_v32 }
 0x3ab   : > { %v8222_v59 = vpack.c.bf16 %v3070_v2, %v3069_v17  ;;  %v3130_v8 = vld [vmem:[%s14832_s8 + $0x688] sm:$0xff]  ;;  %v3084_v17 = vld [vmem:[%s14832_s8 + $0x518] sm:$0xff] }
 0x3ac   : > { %v3118_v61 = vld [vmem:[%s14832_s8 + $0x628] sm:$0xff] }
 0x3ad   : > { %8173 = vmatpush3.bf16.msra.mxu1 %v8172_v52  ;;  %8201 = vmatpush3.bf16.msra.mxu0 %v8200_v11  ;;  %v3072_v52 = vld [vmem:[%s14832_s8 + $0x4b8] sm:$0xff]  ;;  %v3055_v11 = vld [vmem:[%s14832_s8 + $0x430] sm:$0xff] }
 0x3ae   : > { %8175 = vmatprep.subr.bf16.mxu1 %v8174_v10  ;;  %8203 = vmatprep.subr.bf16.mxu0 %v8202_v51  ;;  %v8226_v49 = vpack.c.bf16 %v3072_v52, %v3071_v60  ;;  %v3056_v10 = vld [vmem:[%s14832_s8 + $0x438] sm:$0xff]  ;;  %v3074_v51 = vld [vmem:[%s14832_s8 + $0x4c8] sm:$0xff]  ;;  %v3131_v52 = vld [vmem:[%s14832_s8 + $0x690] sm:$0xff] }
 0x3af   : > { %v8228_v15 = vpack.c.bf16 %v3056_v10, %v3055_v11  ;;  %v8230_v18 = vpack.c.bf16 %v3074_v51, %v3073_v28  ;;  %v3114_v60 = vld [vmem:[%s14832_s8 + $0x608] sm:$0xff]  ;;  %v3085_v10 = vld [vmem:[%s14832_s8 + $0x520] sm:$0xff] }
 0x3b0   : > { %v3086_v28 = vld [vmem:[%s14832_s8 + $0x528] sm:$0xff]  ;;  %v8280_v51 = vpack.c.bf16 %v3114_v60, %v3113_v37  ;;  %v3109_v60 = vld [vmem:[%s14832_s8 + $0x5e0] sm:$0xff] }
 0x3b1   : > { %8177 = vmatpush3.bf16.msra.mxu1 %v8176_v39  ;;  %8205 = vmatpush3.bf16.msra.mxu0 %v8204_v40  ;;  %v3076_v39 = vld [vmem:[%s14832_s8 + $0x4d8] sm:$0xff]  ;;  %v3059_v40 = vld [vmem:[%s14832_s8 + $0x450] sm:$0xff] }
 0x3b2   : > { %8179 = vmatprep.subr.bf16.mxu1 %v8178_v29  ;;  %8207 = vmatprep.subr.bf16.mxu0 %v8206_v36  ;;  %v8234_v48 = vpack.c.bf16 %v3076_v39, %v3075_v19  ;;  %v3060_v29 = vld [vmem:[%s14832_s8 + $0x458] sm:$0xff]  ;;  %v3078_v36 = vld [vmem:[%s14832_s8 + $0x4e8] sm:$0xff]  ;;  %v3115_v19 = vld [vmem:[%s14832_s8 + $0x610] sm:$0xff] }
 0x3b3   : > { %v8236_v4 = vpack.c.bf16 %v3060_v29, %v3059_v40  ;;  %v8238_v41 = vpack.c.bf16 %v3078_v36, %v3077_v63  ;;  %v3116_v39 = vld [vmem:[%s14832_s8 + $0x618] sm:$0xff]  ;;  %v3134_v40 = vld [vmem:[%s14832_s8 + $0x6a8] sm:$0xff]  ;;  %v8256_v29 = vpack.c.bf16 %v3086_v28, %v3085_v10  ;;  %v3087_v36 = vld [vmem:[%s14832_s8 + $0x530] sm:$0xff] }
 0x3b4   : > { %v3140_v10 = vld [vmem:[%s14832_s8 + $0x6d8] sm:$0xff] }
 0x3b5   : > { %8181 = vmatpush3.bf16.msra.mxu1 %v8180_v14  ;;  %8209 = vmatpush3.bf16.msra.mxu0 %v8208_v34  ;;  %v3079_v14 = vld [vmem:[%s14832_s8 + $0x4f0] sm:$0xff]  ;;  %v3080_v34 = vld [vmem:[%s14832_s8 + $0x4f8] sm:$0xff] }
 0x3b6   : > { %8215 = vmatprep.subr.bf16.mxu1 %v8214_v16  ;;  %8211 = vmatprep.subr.bf16.mxu0 %v8210_v30  ;;  %v8240_v30 = vpack.c.bf16 %v3062_v38, %v3061_v23  ;;  %v8242_v0 = vpack.c.bf16 %v3080_v34, %v3079_v14  ;;  %v8284_v23 = vpack.c.bf16 %v3116_v39, %v3115_v19  ;;  %v3105_v38 = vld [vmem:[%s14832_s8 + $0x5c0] sm:$0xff]  ;;  %v3111_v19 = vld [vmem:[%s14832_s8 + $0x5f0] sm:$0xff]  ;;  %v3112_v39 = vld [vmem:[%s14832_s8 + $0x5f8] sm:$0xff] }
 0x3b8   : > { %3432 = vmatmul.mubr.f32.vlgmr.msra.gmra.mrb[12].mxu1 %v12474_v62 }
 0x3b9   : > { %3436 = vmatprep.mubr.f32.mxu1 %v2908_v47  ;;  %8217 = vmatpush3.bf16.msra.mxu1 %v8216_v57  ;;  %v3083_v47 = vld [vmem:[%s14832_s8 + $0x510] sm:$0xff] }
 0x3ba   : > { %8219 = vmatprep.subr.bf16.mxu1 %v8218_v3  ;;  %8213 = vmatpush3.bf16.msra.mxu0 %v8212_v27  ;;  %v3129_v3 = vld [vmem:[%s14832_s8 + $0x680] sm:$0xff] }
 0x3bb   : > { %8247 = vmatprep.subr.bf16.mxu0 %v8246_v54  ;;  %v8244_v54 = vpack.c.bf16 %v3064_v20, %v3063_v12  ;;  %v8278_v21 = vpack.c.bf16 %v3130_v8, %v3129_v3  ;;  %v3090_v12 = vld [vmem:[%s14832_s8 + $0x548] sm:$0xff]  ;;  %v3107_v8 = vld [vmem:[%s14832_s8 + $0x5d0] sm:$0xff] }
 0x3bc   : > { %3437 = vmatmul.mubr.f32.gmra.mrb[14].mxu1 %v2907_v5  ;;  %v3102_v5 = vld [vmem:[%s14832_s8 + $0x5a8] sm:$0xff] }
 0x3bd   : > { %8221 = vmatpush3.bf16.msra.mxu1 %v8220_v6  ;;  %3581 = vmatprep.mubr.f32.mxu1 %v12501_v44  ;;  %v3101_v6 = vld [vmem:[%s14832_s8 + $0x5a0] sm:$0xff] }
 0x3be   : > { %8223 = vmatprep.subr.bf16.mxu1 %v8222_v59  ;;  %v2597_v59 = vadd.f32 %v12322_v13, %v12169_v45  ;;  %v3132_v13 = vld [vmem:[%s14832_s8 + $0x698] sm:$0xff]  ;;  %v8254_v11 = vpack.c.bf16 %v3102_v5, %v3101_v6 }
 0x3bf   : > { %v8282_v35 = vpack.c.bf16 %v3132_v13, %v3131_v52  ;;  %v3110_v52 = vld [vmem:[%s14832_s8 + $0x5e8] sm:$0xff] }
 0x3c0   : > { %v12632_v55 = vmax.f32 %v2597_v59, 0.0  ;;  %v3091_v59 = vld [vmem:[%s14832_s8 + $0x550] sm:$0xff] }
 0x3c1   : > { %8225 = vmatpush3.bf16.msra.mxu1 %v8224_v1  ;;  %v8252_v1 = vpack.c.bf16 %v3084_v17, %v3083_v47  ;;  %v3119_v47 = vld [vmem:[%s14832_s8 + $0x630] sm:$0xff]  ;;  %v3120_v17 = vld [vmem:[%s14832_s8 + $0x638] sm:$0xff] }
 0x3c2   : > { %8227 = vmatprep.subr.bf16.mxu1 %v8226_v49  ;;  %v2911_v34 = vmul.f32 %v12632_v55, %v12632_v55  ;;  %v8292_v37 = vpack.c.bf16 %v3120_v17, %v3119_v47  ;;  %v3178_v47 = vld [vmem:[%s14832_s8 + $0x808] sm:$0xff] }
 0x3c5   : > { %8229 = vmatpush3.bf16.msra.mxu1 %v8228_v15  ;;  %v3103_v15 = vld [vmem:[%s14832_s8 + $0x5b0] sm:$0xff] }
 0x3c6   : > { %8231 = vmatprep.subr.bf16.mxu1 %v8230_v18  ;;  %v3104_v18 = vld [vmem:[%s14832_s8 + $0x5b8] sm:$0xff] }
 0x3c7   : > { %v8258_v63 = vpack.c.bf16 %v3104_v18, %v3103_v15  ;;  %v3093_v15 = vld [vmem:[%s14832_s8 + $0x560] sm:$0xff]  ;;  %v3094_v18 = vld [vmem:[%s14832_s8 + $0x568] sm:$0xff] }
 0x3c9   : > { %8233 = vmatpush3.bf16.msra.mxu1 %v8232_v9  ;;  %v2912_v9 = vmul.f32 %v12501_v44, %v12501_v44 }
 0x3ca   : > { %8235 = vmatprep.subr.bf16.mxu1 %v8234_v48  ;;  %v2525_v56 = vpop.f32.mrb[2].mxu1  ;;  %v3133_v48 = vld [vmem:[%s14832_s8 + $0x6a0] sm:$0xff] }
 0x3cb   : > { %v2526_v22 = vadd.f32 %v2525_v56, %v12169_v45  ;;  %v2527_v16 = vpop.f32.mrb[3].mxu1  ;;  %v3106_v56 = vld [vmem:[%s14832_s8 + $0x5c8] sm:$0xff] }
 0x3cc   : > { %v2528_v33 = vadd.f32 %v2527_v16, %v12169_v45  ;;  %v3117_v16 = vld [vmem:[%s14832_s8 + $0x620] sm:$0xff]  ;;  %v8262_v25 = vpack.c.bf16 %v3106_v56, %v3105_v38  ;;  %v3096_v38 = vld [vmem:[%s14832_s8 + $0x578] sm:$0xff] }
 0x3cd   : > { %8237 = vmatpush3.bf16.msra.mxu1 %v8236_v4  ;;  %v12586_v27 = vmax.f32 %v2526_v22, 0.0  ;;  %v3088_v4 = vld [vmem:[%s14832_s8 + $0x538] sm:$0xff]  ;;  %v8286_v22 = vpack.c.bf16 %v3134_v40, %v3133_v48  ;;  %v8288_v3 = vpack.c.bf16 %v3118_v61, %v3117_v16  ;;  %v3123_v48 = vld [vmem:[%s14832_s8 + $0x650] sm:$0xff]  ;;  %v3125_v16 = vld [vmem:[%s14832_s8 + $0x660] sm:$0xff] }
 0x3ce   : > { %8239 = vmatprep.subr.bf16.mxu1 %v8238_v41  ;;  %v12578_v57 = vmax.f32 %v2528_v33, 0.0  ;;  %v3135_v33 = vld [vmem:[%s14832_s8 + $0x6b0] sm:$0xff]  ;;  %v8260_v32 = vpack.c.bf16 %v3088_v4, %v3087_v36  ;;  %v3124_v40 = vld [vmem:[%s14832_s8 + $0x658] sm:$0xff]  ;;  %v8272_v36 = vpack.c.bf16 %v3094_v18, %v3093_v15  ;;  %v8274_v4 = vpack.c.bf16 %v3112_v39, %v3111_v19  ;;  %v3126_v61 = vld [vmem:[%s14832_s8 + $0x668] sm:$0xff] }
 0x3cf   : > { %v2909_v49 = vmul.f32 %v12586_v27, %v12586_v27  ;;  %v8300_v56 = vpack.c.bf16 %v3124_v40, %v3123_v48  ;;  %v3187_v18 = vld [vmem:[%s14832_s8 + $0x850] sm:$0xff]  ;;  %v3189_v39 = vld [vmem:[%s14832_s8 + $0x860] sm:$0xff] }
 0x3d0   : > { %3506 = vmatprep.mubr.f32.mxu0 %v12578_v57  ;;  %v2910_v2 = vmul.f32 %v12578_v57, %v12578_v57  ;;  %v3191_v40 = vld [vmem:[%s14832_s8 + $0x870] sm:$0xff] }
 0x3d1   : > { %8241 = vmatpush3.bf16.msra.mxu1 %v8240_v30  ;;  %3507 = vmatmul.mubr.f32.vlgmr.msra.gmra.mrb[14].mxu0 %v12586_v27  ;;  %v3136_v30 = vld [vmem:[%s14832_s8 + $0x6b8] sm:$0xff] }
 0x3d2   : > { %8243 = vmatprep.subr.bf16.mxu1 %v8242_v0  ;;  %3511 = vmatprep.mubr.f32.mxu0 %v2910_v2  ;;  %v3089_v0 = vld [vmem:[%s14832_s8 + $0x540] sm:$0xff] }
 0x3d3   : > { %8249 = vmatpush3.bf16.msra.mxu0 %v8248_v42  ;;  %v3108_v42 = vld [vmem:[%s14832_s8 + $0x5d8] sm:$0xff]  ;;  %v3137_v2 = vld [vmem:[%s14832_s8 + $0x6c0] sm:$0xff]  ;;  %v8264_v6 = vpack.c.bf16 %v3090_v12, %v3089_v0  ;;  %v3127_v12 = vld [vmem:[%s14832_s8 + $0x670] sm:$0xff] }
 0x3d4   : > { %8251 = vmatprep.subr.bf16.mxu0 %v8250_v31  ;;  %v8290_v31 = vpack.c.bf16 %v3136_v30, %v3135_v33  ;;  %v8266_v5 = vpack.c.bf16 %v3108_v42, %v3107_v8  ;;  %v3144_v33 = vld [vmem:[%s14832_s8 + $0x6f8] sm:$0xff] }
 0x3d5   : > { %8245 = vmatpush3.bf16.msra.mxu1 %v8244_v54  ;;  %3512 = vmatmul.mubr.f32.gmra.mrb[16].mxu0 %v2909_v49  ;;  %v3138_v54 = vld [vmem:[%s14832_s8 + $0x6c8] sm:$0xff] }
 0x3d6   : > { %8279 = vmatprep.subr.bf16.mxu1 %v8278_v21  ;;  %v3092_v21 = vld [vmem:[%s14832_s8 + $0x558] sm:$0xff]  ;;  %v8294_v13 = vpack.c.bf16 %v3138_v54, %v3137_v2  ;;  %v3122_v49 = vld [vmem:[%s14832_s8 + $0x648] sm:$0xff]  ;;  %v14958_v54 = vmov 0.0|0.0  }
 0x3d7   : > { %8253 = vmatpush3.bf16.msra.mxu0 %v8252_v1  ;;  %v3121_v1 = vld [vmem:[%s14832_s8 + $0x640] sm:$0xff]  ;;  %v8268_v28 = vpack.c.bf16 %v3092_v21, %v3091_v59 }
 0x3d8   : > { %3582 = vmatmul.mubr.f32.vlgmr.msra.gmra.mrb[16].mxu1 %v12632_v55  ;;  %8255 = vmatprep.subr.bf16.mxu0 %v8254_v11  ;;  %v3139_v11 = vld [vmem:[%s14832_s8 + $0x6d0] sm:$0xff]  ;;  %v9651_v59 = vld [vmem:[%s14831_s7] sm:$0xff] }
 0x3d9   : > { %3586 = vmatprep.mubr.f32.mxu1 %v2912_v9  ;;  %8281 = vmatpush3.bf16.msra.mxu1 %v8280_v51  ;;  %v12655_v41 = vpop.f32.mrb[6].mxu0  ;;  %v8270_v51 = vpack.c.bf16 %v3110_v52, %v3109_v60  ;;  %v8298_v9 = vpack.c.bf16 %v3140_v10, %v3139_v11  ;;  %v3181_v60 = vld [vmem:[%s14832_s8 + $0x820] sm:$0xff]  ;;  %v3182_v52 = vld [vmem:[%s14832_s8 + $0x828] sm:$0xff]  ;;  %v15140_v11 = vmov 2  }
 0x3da   : > { %v2740_v14 = vpop.f32.mrb[7].mxu0  ;;  %8283 = vmatprep.subr.bf16.mxu1 %v8282_v35  ;;  %v8296_v35 = vpack.c.bf16 %v3122_v49, %v3121_v1  ;;  %v2739_v42 = vadd.f32 %v12655_v41, %v12169_v45  ;;  %v3179_v41 = vld [vmem:[%s14832_s8 + $0x810] sm:$0xff]  ;;  %4004 = vrot.lane.b32.xlu1 %v9651_v59, %s9737_s21  ;;  %v3184_v49 = vld [vmem:[%s14832_s8 + $0x838] sm:$0xff] }
 0x3db   : > { %v2741_v24 = vadd.f32 %v2740_v14, %v12169_v45  ;;  %8257 = vmatpush3.bf16.msra.mxu0 %v8256_v29  ;;  %v3141_v29 = vld [vmem:[%s14832_s8 + $0x6e0] sm:$0xff]  ;;  %v3183_v1 = vld [vmem:[%s14832_s8 + $0x830] sm:$0xff] }
 0x3dc   : > { %3587 = vmatmul.mubr.f32.gmra.mrb[18].mxu1 %v2911_v34  ;;  %8259 = vmatprep.subr.bf16.mxu0 %v8258_v63  ;;  %v3142_v63 = vld [vmem:[%s14832_s8 + $0x6e8] sm:$0xff]  ;;  %v3161_v14 = vld [vmem:[%s14832_s8 + $0x780] sm:$0xff]  ;;  %v12791_v2 = vmax.f32 %v2739_v42, 0.0  ;;  %v8352_v10 = vpack.c.bf16 %v3184_v49, %v3183_v1  ;;  %v3148_v1 = vld [vmem:[%s14832_s8 + $0x718] sm:$0xff] }
 0x3dd   : > { %v12684_v20 = vmax.f32 %v2741_v24, 0.0  ;;  %8285 = vmatpush3.bf16.msra.mxu1 %v8284_v23  ;;  %v3095_v23 = vld [vmem:[%s14832_s8 + $0x570] sm:$0xff]  ;;  %v3162_v34 = vld [vmem:[%s14832_s8 + $0x788] sm:$0xff] }
 0x3de   : > { %8287 = vmatprep.subr.bf16.mxu1 %v8286_v22  ;;  %v8302_v22 = vpack.c.bf16 %v3142_v63, %v3141_v29  ;;  %v3143_v24 = vld [vmem:[%s14832_s8 + $0x6f0] sm:$0xff]  ;;  %v8276_v30 = vpack.c.bf16 %v3096_v38, %v3095_v23  ;;  %3995 = vperm.xlu1 %9051, %v9651_v59   ;;  %v3192_v29 = vld [vmem:[%s14832_s8 + $0x878] sm:$0xff]  ;;  %v3205_v59 = vld [vmem:[%s14832_s8 + $0x8e0] sm:$0xf] }
 0x3df   : > { %3731 = vmatprep.mubr.f32.mxu1 %v12684_v20  ;;  %8261 = vmatpush3.bf16.msra.mxu0 %v8260_v32  ;;  %v8310_v32 = vpack.c.bf16 %v3162_v34, %v3161_v14  ;;  %v8306_v0 = vpack.c.bf16 %v3144_v33, %v3143_v24  ;;  %v8364_v63 = vpack.c.bf16 %v3192_v29, %v3191_v40  ;;  %v3195_v38 = vld [vmem:[%s14832_s8 + $0x890] sm:$0xff]  ;;  %v3197_v34 = vld [vmem:[%s14832_s8 + $0x8a0] sm:$0xff]  ;;  %v3200_v24 = vld [vmem:[%s14832_s8 + $0x8b8] sm:$0xff] }
 0x3e0   : > { %8263 = vmatprep.subr.bf16.mxu0 %v8262_v25  ;;  %v8304_v25 = vpack.c.bf16 %v3126_v61, %v3125_v16  ;;  %v3199_v61 = vld [vmem:[%s14832_s8 + $0x8b0] sm:$0xff]  ;;  %v3152_v29 = vld [vmem:[%s14832_s8 + $0x738] sm:$0xff] }
 0x3e1   : > { %8289 = vmatpush3.bf16.msra.mxu1 %v8288_v3  ;;  %v3128_v3 = vld [vmem:[%s14832_s8 + $0x678] sm:$0xff]  ;;  %v8376_v33 = vpack.c.bf16 %v3200_v24, %v3199_v61  ;;  %v3151_v40 = vld [vmem:[%s14832_s8 + $0x730] sm:$0xff] }
 0x3e2   : > { %8291 = vmatprep.subr.bf16.mxu1 %v8290_v31  ;;  %v8308_v8 = vpack.c.bf16 %v3128_v3, %v3127_v12  ;;  %v3177_v31 = vld [vmem:[%s14832_s8 + $0x800] sm:$0xff]  ;;  %9338 = vset.pattern.permute.xlu1 %v15140_v11  ;;  %v3204_v12 = vld [vmem:[%s14832_s8 + $0x8d8] sm:$0xff]  ;;  %v3155_v61 = vld [vmem:[%s14832_s8 + $0x750] sm:$0xff] }
 0x3e3   : > { %8265 = vmatpush3.bf16.msra.mxu0 %v8264_v6  ;;  %v8343_v17 = vpack.c.bf16 %v3178_v47, %v3177_v31  ;;  %v3180_v6 = vld [vmem:[%s14832_s8 + $0x818] sm:$0xff]  ;;  %v3145_v47 = vld [vmem:[%s14832_s8 + $0x700] sm:$0xff] }
 0x3e4   : > { %8267 = vmatprep.subr.bf16.mxu0 %v8266_v5  ;;  %v2916_v5 = vmul.f32 %v12684_v20, %v12684_v20  ;;  %v8346_v21 = vpack.c.bf16 %v3180_v6, %v3179_v41  ;;  %v3163_v6 = vld [vmem:[%s14832_s8 + $0x790] sm:$0xff]  ;;  %v3165_v11 = vld [vmem:[%s14832_s8 + $0x7a0] sm:$0xff]  ;;  %v3156_v24 = vld [vmem:[%s14832_s8 + $0x758] sm:$0xff] }
 0x3e5   : > { %8293 = vmatpush3.bf16.msra.mxu1 %v8292_v37  ;;  %v2915_v37 = vmul.f32 %v12791_v2, %v12791_v2 }
 0x3e6   : > { %8295 = vmatprep.subr.bf16.mxu1 %v8294_v13  ;;  %v8349_v13 = vpack.c.bf16 %v3182_v52, %v3181_v60 }
 0x3e7   : > { %8269 = vmatpush3.bf16.msra.mxu0 %v8268_v28  ;;  %v3185_v28 = vld [vmem:[%s14832_s8 + $0x840] sm:$0xff] }
 0x3e8   : > { %8271 = vmatprep.subr.bf16.mxu0 %v8270_v51  ;;  %v3186_v51 = vld [vmem:[%s14832_s8 + $0x848] sm:$0xff] }
 0x3e9   : > { %8297 = vmatpush3.bf16.msra.mxu1 %v8296_v35  ;;  %v8355_v15 = vpack.c.bf16 %v3186_v51, %v3185_v28  ;;  %v3188_v35 = vld [vmem:[%s14832_s8 + $0x858] sm:$0xff] }
 0x3ea   : > { %8299 = vmatprep.subr.bf16.mxu1 %v8298_v9  ;;  %v8358_v19 = vpack.c.bf16 %v3188_v35, %v3187_v18  ;;  %v3190_v9 = vld [vmem:[%s14832_s8 + $0x868] sm:$0xff]  ;;  %v3149_v18 = vld [vmem:[%s14832_s8 + $0x720] sm:$0xff] }
 0x3eb   : > { %8273 = vmatpush3.bf16.msra.mxu0 %v8272_v36  ;;  %v8361_v48 = vpack.c.bf16 %v3190_v9, %v3189_v39  ;;  %v3193_v36 = vld [vmem:[%s14832_s8 + $0x880] sm:$0xff]  ;;  %v3150_v35 = vld [vmem:[%s14832_s8 + $0x728] sm:$0xff]  ;;  %v3168_v39 = vld [vmem:[%s14832_s8 + $0x7b8] sm:$0xff] }
 0x3ec   : > { %8275 = vmatprep.subr.bf16.mxu0 %v8274_v4  ;;  %v3194_v4 = vld [vmem:[%s14832_s8 + $0x888] sm:$0xff]  ;;  %v8320_v9 = vpack.c.bf16 %v3150_v35, %v3149_v18 }
 0x3ed   : > { %8301 = vmatpush3.bf16.msra.mxu1 %v8300_v56  ;;  %v8367_v23 = vpack.c.bf16 %v3194_v4, %v3193_v36  ;;  %v3196_v56 = vld [vmem:[%s14832_s8 + $0x898] sm:$0xff]  ;;  %v3170_v36 = vld [vmem:[%s14832_s8 + $0x7c8] sm:$0xff]  ;;  %v8324_v4 = vpack.c.bf16 %v3152_v29, %v3151_v40 }
 0x3ee   : > { %8303 = vmatprep.subr.bf16.mxu1 %v8302_v22  ;;  %v8370_v14 = vpack.c.bf16 %v3196_v56, %v3195_v38  ;;  %v3198_v22 = vld [vmem:[%s14832_s8 + $0x8a8] sm:$0xff]  ;;  %v3153_v38 = vld [vmem:[%s14832_s8 + $0x740] sm:$0xff] }
 0x3ef   : > { %8277 = vmatpush3.bf16.msra.mxu0 %v8276_v30  ;;  %v8373_v16 = vpack.c.bf16 %v3198_v22, %v3197_v34  ;;  %v3201_v30 = vld [vmem:[%s14832_s8 + $0x8c0] sm:$0xff]  ;;  %v3154_v56 = vld [vmem:[%s14832_s8 + $0x748] sm:$0xff]  ;;  %v3172_v34 = vld [vmem:[%s14832_s8 + $0x7d8] sm:$0xff] }
 0x3f0   : > { %8311 = vmatprep.subr.bf16.mxu0 %v8310_v32  ;;  %v3202_v32 = vld [vmem:[%s14832_s8 + $0x8c8] sm:$0xff]  ;;  %v8328_v22 = vpack.c.bf16 %v3154_v56, %v3153_v38 }
 0x3f1   : > { %8305 = vmatpush3.bf16.msra.mxu1 %v8304_v25  ;;  %v8379_v25 = vpack.c.bf16 %v3202_v32, %v3201_v30  ;;  %v3174_v30 = vld [vmem:[%s14832_s8 + $0x7e8] sm:$0xff]  ;;  %v8332_v32 = vpack.c.bf16 %v3156_v24, %v3155_v61 }
 0x3f2   : > { %8307 = vmatprep.subr.bf16.mxu1 %v8306_v0  ;;  %v3203_v0 = vld [vmem:[%s14832_s8 + $0x8d0] sm:$0xff]  ;;  %v3905_v29 = vld [vmem:[%s14830_s6 + $0x8] sm:$0xff] }
 0x3f3   : > { %v8382_v3 = vpack.c.bf16 %v3204_v12, %v3203_v0  ;;  %v3157_v0 = vld [vmem:[%s14832_s8 + $0x760] sm:$0xff]  ;;  %v3158_v12 = vld [vmem:[%s14832_s8 + $0x768] sm:$0xff] }
 0x3f5   : > { %8309 = vmatpush3.bf16.msra.mxu1 %v8308_v8 }
 0x3f6   : > { %8342 = vmatprep.subr.bf16.mxu1 %v14958_v54 }
 0x3f8   : > { %3732 = vmatmul.mubr.f32.vlgmr.msra.gmra.mrb[20].mxu1 %v12791_v2 }
 0x3f9   : > { %3736 = vmatprep.mubr.f32.mxu1 %v2916_v5  ;;  %8344 = vmatpush1.bf16.msra.mxu1 %v8343_v17  ;;  %v3146_v17 = vld [vmem:[%s14832_s8 + $0x708] sm:$0xff]  ;;  %v3164_v5 = vld [vmem:[%s14832_s8 + $0x798] sm:$0xff] }
 0x3fa   : > { %8345 = vmatprep.subr.bf16.mxu1 %v14958_v54  ;;  %v8314_v52 = vpack.c.bf16 %v3164_v5, %v3163_v6  ;;  %v3907_v6 = vld [vmem:[%s374_s11 + $0x8] sm:$0x3] }
 0x3fc   : > { %3737 = vmatmul.mubr.f32.gmra.mrb[22].mxu1 %v2915_v37  ;;  %v8312_v37 = vpack.c.bf16 %v3146_v17, %v3145_v47  ;;  %v3159_v47 = vld [vmem:[%s14832_s8 + $0x770] sm:$0xff]  ;;  %v3160_v17 = vld [vmem:[%s14832_s8 + $0x778] sm:$0xff] }
 0x3fd   : > { %8347 = vmatpush1.bf16.msra.mxu1 %v8346_v21 }
 0x3fe   : > { %8348 = vmatprep.subr.bf16.mxu1 %v14958_v54 }
 0x401   : > { %8350 = vmatpush1.bf16.msra.mxu1 %v8349_v13  ;;  %v3147_v13 = vld [vmem:[%s14832_s8 + $0x710] sm:$0xff] }
 0x402   : > { %8351 = vmatprep.subr.bf16.mxu1 %v14958_v54  ;;  %v8316_v28 = vpack.c.bf16 %v3148_v1, %v3147_v13 }
 0x405   : > { %8353 = vmatpush1.bf16.msra.mxu1 %v8352_v10  ;;  %v3166_v10 = vld [vmem:[%s14832_s8 + $0x7a8] sm:$0xff] }
 0x406   : > { %8354 = vmatprep.subr.bf16.mxu1 %v14958_v54 }
 0x409   : > { %8356 = vmatpush1.bf16.msra.mxu1 %v8355_v15  ;;  %v8318_v15 = vpack.c.bf16 %v3166_v10, %v3165_v11 }
 0x40a   : > { %8357 = vmatprep.subr.bf16.mxu1 %v14958_v54 }
 0x40d   : > { %8359 = vmatpush1.bf16.msra.mxu1 %v8358_v19  ;;  %v3167_v19 = vld [vmem:[%s14832_s8 + $0x7b0] sm:$0xff] }
 0x40e   : > { %8360 = vmatprep.subr.bf16.mxu1 %v14958_v54 }
 0x411   : > { %8362 = vmatpush1.bf16.msra.mxu1 %v8361_v48  ;;  %v8322_v48 = vpack.c.bf16 %v3168_v39, %v3167_v19 }
 0x412   : > { %8363 = vmatprep.subr.bf16.mxu1 %v14958_v54 }
 0x415   : > { %8365 = vmatpush1.bf16.msra.mxu1 %v8364_v63  ;;  %v3169_v63 = vld [vmem:[%s14832_s8 + $0x7c0] sm:$0xff] }
 0x416   : > { %8366 = vmatprep.subr.bf16.mxu1 %v14958_v54 }
 0x419   : > { %8368 = vmatpush1.bf16.msra.mxu1 %v8367_v23  ;;  %v8326_v23 = vpack.c.bf16 %v3170_v36, %v3169_v63 }
 0x41a   : > { %8369 = vmatprep.subr.bf16.mxu1 %v14958_v54 }
 0x41d   : > { %8371 = vmatpush1.bf16.msra.mxu1 %v8370_v14  ;;  %v3171_v14 = vld [vmem:[%s14832_s8 + $0x7d0] sm:$0xff] }
 0x41e   : > { %8372 = vmatprep.subr.bf16.mxu1 %v14958_v54 }
 0x421   : > { %8374 = vmatpush1.bf16.msra.mxu1 %v8373_v16  ;;  %v8330_v16 = vpack.c.bf16 %v3172_v34, %v3171_v14 }
 0x422   : > { %8375 = vmatprep.subr.bf16.mxu1 %v14958_v54 }
 0x425   : > { %8377 = vmatpush1.bf16.msra.mxu1 %v8376_v33  ;;  %v3173_v33 = vld [vmem:[%s14832_s8 + $0x7e0] sm:$0xff] }
 0x426   : > { %8378 = vmatprep.subr.bf16.mxu1 %v14958_v54 }
 0x429   : > { %8380 = vmatpush1.bf16.msra.mxu1 %v8379_v25  ;;  %v8334_v25 = vpack.c.bf16 %v3174_v30, %v3173_v33 }
 0x42a   : > { %8381 = vmatprep.subr.bf16.mxu1 %v14958_v54  ;;  %v2667_v8 = vpop.f32.mrb[4].mxu1 }
 0x42b   : > { %v2668_v42 = vadd.f32 %v2667_v8, %v12169_v45  ;;  %v2669_v31 = vpop.f32.mrb[5].mxu1  ;;  %v3176_v8 = vld [vmem:[%s14832_s8 + $0x7f8] sm:$0xff] }
 0x42c   : > { %v2670_v41 = vadd.f32 %v2669_v31, %v12169_v45 }
 0x42d   : > { %8383 = vmatpush1.bf16.msra.mxu1 %v8382_v3  ;;  %v12914_v60 = vmax.f32 %v2668_v42, 0.0  ;;  %v3175_v3 = vld [vmem:[%s14832_s8 + $0x7f0] sm:$0xff]  ;;  %v8336_v42 = vpack.c.bf16 %v3158_v12, %v3157_v0 }
 0x42e   : > { %3873 = vmatprep.subr.mxu1 %v15086_v58  ;;  %v12912_v21 = vmax.f32 %v2670_v41, 0.0  ;;  %v8338_v31 = vpack.c.bf16 %v3176_v8, %v3175_v3  ;;  %v3906_v41 = vld [vmem:[%s374_s11] sm:$0xff] }
 0x42f   : > { %v2913_v51 = vmul.f32 %v12914_v60, %v12914_v60  ;;  %v8384_v1 = vpack.c.bf16 %v3907_v6, %v3906_v41 }
 0x430   : > { %3656 = vmatprep.mubr.f32.mxu0 %v12912_v21  ;;  %v2914_v49 = vmul.f32 %v12912_v21, %v12912_v21 }
 0x431   : > { %7532 = vmatpush1.msk.msra.mxu1 %vm3213_vm9, %v3205_v59  ;;  %3657 = vmatmul.mubr.f32.vlgmr.msra.gmra.mrb[18].mxu0 %v12914_v60 }
 0x432   : > { %3661 = vmatprep.mubr.f32.mxu0 %v2914_v49  ;;  %8313 = vmatpush3.bf16.msra.mxu0 %v8312_v37  ;;  %v8340_v37 = vpack.c.bf16 %v3160_v17, %v3159_v47 }
 0x433   : > { %8315 = vmatprep.subr.bf16.mxu0 %v8314_v52 }
 0x435   : > { %3662 = vmatmul.mubr.f32.gmra.mrb[20].mxu0 %v2913_v51 }
 0x436   : > { %8317 = vmatpush3.bf16.msra.mxu0 %v8316_v28 }
 0x437   : > { %8319 = vmatprep.subr.bf16.mxu0 %v8318_v15 }
 0x43a   : > { %8321 = vmatpush3.bf16.msra.mxu0 %v8320_v9 }
 0x43b   : > { %8323 = vmatprep.subr.bf16.mxu0 %v8322_v48  ;;  %v3904_v48 = vld [vmem:[%s14830_s6] sm:$0xff] }
 0x43e   : > { %8325 = vmatpush3.bf16.msra.mxu0 %v8324_v4 }
 0x43f   : > { %8327 = vmatprep.subr.bf16.mxu0 %v8326_v23 }
 0x442   : > { %8329 = vmatpush3.bf16.msra.mxu0 %v8328_v22 }
 0x443   : > { %8331 = vmatprep.subr.bf16.mxu0 %v8330_v16 }
 0x446   : > { %8333 = vmatpush3.bf16.msra.mxu0 %v8332_v32 }
 0x447   : > { %8335 = vmatprep.subr.bf16.mxu0 %v8334_v25 }
 0x44a   : > { %v2809_v5 = vpop.f32.mrb[6].mxu1  ;;  %8337 = vmatpush3.bf16.msra.mxu0 %v8336_v42 }
 0x44b   : > { %v2811_v59 = vpop.f32.mrb[7].mxu1  ;;  %v2810_v52 = vadd.f32 %v2809_v5, %v12169_v45  ;;  %8339 = vmatprep.subr.bf16.mxu0 %v8338_v31 }
 0x44c   : > { %v2812_v13 = vadd.f32 %v2811_v59, %v12169_v45  ;;  %v4005_v63 = vpop.permute.xlu1 %4004 }
 0x44d   : > { %v13014_v15 = vmax.f32 %v2810_v52, 0.0  ;;  %8676 = vpush %v4005_v63 }
 0x44e   : > { %v13011_v11 = vmax.f32 %v2812_v13, 0.0  ;;  %v2880_v10 = vpop.f32.mrb[8].mxu0  ;;  %8341 = vmatpush3.bf16.msra.mxu0 %v8340_v37 }
 0x44f   : > { %v2881_v28 = vadd.f32 %v2880_v10, %v12169_v45  ;;  %v2882_v51 = vpop.f32.mrb[9].mxu0  ;;  %8386 = vmatprep.subr.msk.bf16.mxu0 %vm13007_vm12, %v8384_v1  ;;  %v2917_v9 = vmul.f32 %v13014_v15, %v13014_v15 }
 0x450   : > { %v2883_v18 = vadd.f32 %v2882_v51, %v12169_v45  ;;  %3806 = vmatprep.mubr.f32.mxu0 %v13011_v11  ;;  %v2918_v35 = vmul.f32 %v13011_v11, %v13011_v11 }
 0x451   : > { %3807 = vmatmul.mubr.f32.vlgmr.msra.gmra.mrb[22].mxu0 %v13014_v15  ;;  %v13025_v39 = vmax.f32 %v2881_v28, 0.0 }
 0x452   : > { %v13022_v19 = vmax.f32 %v2883_v18, 0.0  ;;  %3811 = vmatprep.mubr.f32.mxu0 %v2918_v35  ;;  %8389 = vmatpush3.bf16.msk.msra.mxu0 %vm13007_vm12, %v8384_v1 }
 0x453   : > { %v2919_v40 = vmul.f32 %v13025_v39, %v13025_v39 }
 0x454   : > { %v2920_v45 = vmul.f32 %v13022_v19, %v13022_v19  ;;  %7533 = vmatprep.mubr.msk.f32.mxu1 %vm3206_vm13, %v13022_v19 }
 0x455   : > { %3882 = vmatmul.mubr.f32.vlgmr.msra.gmra.mrb[24].mxu1 %v13025_v39  ;;  %3812 = vmatmul.mubr.f32.gmra.mrb[24].mxu0 %v2917_v9 }
 0x456   : > { %7534 = vmatprep.mubr.msk.f32.mxu1 %vm3206_vm13, %v2920_v45  ;;  %7918 = vmatprep.mubr.msk.f32.mxu0 %vm3908_vm14, %v3904_v48 }
 0x459   : > { %3887 = vmatmul.mubr.f32.gmra.mrb[26].mxu1 %v2919_v40  ;;  %7919 = vmatmul.mubr.msk.f32.vlgmr.msra.gmra.mrb[26].mxu0 %vm3908_vm14, %v3905_v29 }
 0x45a   : > { %4537 = vmatprep.mubr.f32.mxu1 %v15086_v58  ;;  %4152 = vmatprep.mubr.f32.mxu0 %v15086_v58 }
 0x46a   : > { %v7628_v36 = vpop.f32.mrb[8].mxu1 }
 0x46b   : > { %v7629_v4 = vpop.f32.mrb[9].mxu1 }
 0x46c   : > { %v7630_v23 = vadd.f32 %v7629_v4, %v7628_v36  ;;  %v4018_v4 = vld [vmem:[%s14833_s9] sm:$0xff] }
 0x46e   : > { %v7631_v38 = vpop.f32.mrb[10].mxu1  ;;  %v7666_v56 = vpop.f32.mrb[10].mxu0 }
 0x46f   : > { %v7632_v14 = vpop.f32.mrb[11].mxu1  ;;  %v7667_v34 = vpop.f32.mrb[11].mxu0 }
 0x470   : > { %v7633_v22 = vadd.f32 %v7632_v14, %v7631_v38  ;;  %v7668_v16 = vadd.f32 %v7667_v34, %v7666_v56  ;;  %v4036_v38 = vcombine.high %v4018_v4, %v4018_v4  ;;  %v13058_v14 = vld [vmem:[%s14833_s9 + $0x8] sm:$0xff]  ;;  %v13063_v34 = vld [vmem:[%s14833_s9 + $0x38] sm:$0xff] }
 0x472   : > { %v3359_v61 = vadd.f32 %v7668_v16, %v7630_v23  ;;  %v7669_v24 = vpop.f32.mrb[12].mxu0  ;;  %v4023_v23 = vld [vmem:[%s14833_s9 + $0x28] sm:$0xff]  ;;  %7538 = vmatprep.subr.msk.mxu0 %vm3213_vm9, %v4036_v38  ;;  %v4043_v16 = vcombine.high %v13063_v34, %v13063_v34  ;;  %v3996_v38 = vpop.permute.xlu1 %3995 }
 0x473   : > { %v7670_v33 = vpop.f32.mrb[13].mxu0  ;;  %v4041_v56 = vcombine.high %v4023_v23, %v4023_v23  ;;  %7539 = vmatpush1.msk.msra.mxu0 %vm3213_vm9, %v4018_v4 }
 0x474   : > { %v7671_v30 = vadd.f32 %v7670_v33, %v7669_v24 }
 0x475   : > { %7558 = vmatprep.subr.msk.mxu1 %vm3213_vm9, %v4041_v56 }
 0x476   : > { %v3364_v32 = vadd.f32 %v7671_v30, %v7633_v22  ;;  %7559 = vmatpush1.msk.msra.mxu1 %vm3213_vm9, %v4023_v23  ;;  %v4037_v22 = vcombine.high %v13058_v14, %v13058_v14 }
 0x477   : > { %7566 = vmatprep.subr.msk.mxu1 %vm3213_vm9, %v4043_v16 }
 0x478   : > { %7542 = vmatprep.subr.msk.mxu0 %vm3213_vm9, %v4037_v22 }
 0x47e   : > { %s8677_s26 = spop %8676 }
 0x48b   : > { %v7704_v25 = vpop.f32.mrb[12].mxu1 }
 0x48c   : > { %v7705_v0 = vpop.f32.mrb[13].mxu1 }
 0x48d   : > { %v7706_v12 = vadd.f32 %v7705_v0, %v7704_v25 }
 0x48f   : > { %v3434_v3 = vadd.f32 %v7706_v12, %v3359_v61  ;;  %v7707_v8 = vpop.f32.mrb[14].mxu1 }
 0x490   : > { %v7708_v42 = vpop.f32.mrb[15].mxu1 }
 0x491   : > { %v7709_v31 = vadd.f32 %v7708_v42, %v7707_v8 }
 0x493   : > { %v3439_v47 = vadd.f32 %v7709_v31, %v3364_v32 }
 0x4a4   : > { %v7742_v17 = vpop.f32.mrb[14].mxu0 }
 0x4a5   : > { %v7743_v41 = vpop.f32.mrb[15].mxu0 }
 0x4a6   : > { %v7744_v6 = vadd.f32 %v7743_v41, %v7742_v17 }
 0x4a8   : > { %v3509_v5 = vadd.f32 %v7744_v6, %v3434_v3  ;;  %v7745_v59 = vpop.f32.mrb[16].mxu0 }
 0x4a9   : > { %v7746_v37 = vpop.f32.mrb[17].mxu0 }
 0x4aa   : > { %v7747_v52 = vadd.f32 %v7746_v37, %v7745_v59 }
 0x4ab   : > { %v7780_v13 = vpop.f32.mrb[16].mxu1 }
 0x4ac   : > { %v7781_v1 = vpop.f32.mrb[17].mxu1  ;;  %v3514_v49 = vadd.f32 %v7747_v52, %v3439_v47 }
 0x4ad   : > { %v7782_v10 = vadd.f32 %v7781_v1, %v7780_v13  ;;  %v4001_v13 = vpop.permute.xlu0 %4000 }
 0x4af   : > { %v3584_v28 = vadd.f32 %v7782_v10, %v3509_v5  ;;  %v7783_v51 = vpop.f32.mrb[18].mxu1 }
 0x4b0   : > { %v7784_v18 = vpop.f32.mrb[19].mxu1 }
 0x4b1   : > { %v7785_v35 = vadd.f32 %v7784_v18, %v7783_v51 }
 0x4b3   : > { %v3589_v45 = vadd.f32 %v7785_v35, %v3514_v49  ;;  %v4007_v49 = vstv %s8677_s26  ;;  %s15145_s26 = smov 102  }
 0x4cb   : > { %v7856_v9 = vpop.f32.mrb[20].mxu1 }
 0x4cc   : > { %v7857_v48 = vpop.f32.mrb[21].mxu1 }
 0x4cd   : > { %v7858_v40 = vadd.f32 %v7857_v48, %v7856_v9 }
 0x4cf   : > { %v7859_v29 = vpop.f32.mrb[22].mxu1 }
 0x4d0   : > { %v7860_v63 = vpop.f32.mrb[23].mxu1 }
 0x4d1   : > { %v7861_v36 = vadd.f32 %v7860_v63, %v7859_v29 }
 0x504   : > { %v7818_v61 = vpop.f32.mrb[18].mxu0 }
 0x505   : > { %v7819_v24 = vpop.f32.mrb[19].mxu0 }
 0x506   : > { %v7820_v33 = vadd.f32 %v7819_v24, %v7818_v61 }
 0x508   : > { %v3659_v30 = vadd.f32 %v7820_v33, %v3584_v28  ;;  %v7821_v32 = vpop.f32.mrb[20].mxu0 }
 0x509   : > { %v7822_v25 = vpop.f32.mrb[21].mxu0 }
 0x50a   : > { %v7823_v0 = vadd.f32 %v7822_v25, %v7821_v32  ;;  %v3734_v12 = vadd.f32 %v7858_v40, %v3659_v30  ;;  %v4020_v25 = vld [vmem:[%s14833_s9 + $0x10] sm:$0xff] }
 0x50c   : > { %v3664_v3 = vadd.f32 %v7823_v0, %v3589_v45 }
 0x50e   : > { %v3739_v8 = vadd.f32 %v7861_v36, %v3664_v3  ;;  %v4038_v3 = vcombine.high %v4020_v25, %v4020_v25 }
 0x524   : > { %v7894_v42 = vpop.f32.mrb[22].mxu0 }
 0x525   : > { %v7895_v31 = vpop.f32.mrb[23].mxu0 }
 0x526   : > { %v7896_v47 = vadd.f32 %v7895_v31, %v7894_v42  ;;  %v4021_v31 = vld [vmem:[%s14833_s9 + $0x18] sm:$0xff] }
 0x528   : > { %v3883_v17 = vpop.f32.mrb[24].mxu1  ;;  %v7897_v41 = vpop.f32.mrb[24].mxu0  ;;  %v3809_v6 = vadd.f32 %v7896_v47, %v3734_v12  ;;  %v4039_v47 = vcombine.high %v4021_v31, %v4021_v31 }
 0x529   : > { %v3885_v5 = vpop.f32.mrb[25].mxu1  ;;  %v7898_v59 = vpop.f32.mrb[25].mxu0 }
 0x52a   : > { %v3884_v37 = vadd.f32 %v3883_v17, %v3809_v6  ;;  %v7899_v52 = vadd.f32 %v7898_v59, %v7897_v41  ;;  %v4024_v17 = vld [vmem:[%s14833_s9 + $0x30] sm:$0xff]  ;;  %v4026_v6 = vld [vmem:[%s14833_s9 + $0x40] sm:$0xff] }
 0x52b   : > { %v4042_v41 = vcombine.high %v4024_v17, %v4024_v17  ;;  %v4044_v5 = vcombine.high %v4026_v6, %v4026_v6 }
 0x52c   : > { %v3888_v1 = vpop.f32.mrb[26].mxu1  ;;  %v3892_v10 = vmul.f32 0.0025, %v3884_v37  ;;  %v3814_v28 = vadd.f32 %v7899_v52, %v3739_v8  ;;  %v7920_v18 = vpop.f32.mrb[26].mxu0 }
 0x52d   : > { %v3890_v51 = vpop.f32.mrb[27].mxu1  ;;  %v4003_v35 = vadd.f32 %v7920_v18, %v4001_v13  ;;  %v3985_v45 = vpop.f32.mrb[27].mxu0 }
 0x52e   : > { %v3893_v9 = vmul.f32 %v3892_v10, %v3884_v37  ;;  %v3889_v48 = vadd.f32 %v3888_v1, %v3814_v28  ;;  %v4009_v40 = vmul.f32 %v4007_v49, %v3892_v10  ;;  %v3998_v61 = vadd.f32 %v3996_v38, %v3985_v45 }
 0x530   : > { %v3894_v29 = vsub.f32 %v3889_v48, %v3893_v9  ;;  %v4010_v63 = vadd.f32 %v4009_v40, %v4003_v35 }
 0x532   : > { %v3895_v36 = vmul.f32 0.0025062656, %v3894_v29 }
 0x534   : > { %v3896_v4 = vmax.f32 %v3895_v36, 0.0 }
 0x536   : > { %9645 = vrsqrt.f32 %v3896_v4  ;;  %vm3899_vm15 = vcmp.eq.f32.partialorder %v3896_v4, inf  ;;  %v3902_v22 = vand.u32 2147483648, %v3896_v4  ;;  %vm3901_vm10 = vcmp.eq.f32.partialorder %v3896_v4, 0.0 }
 0x540   : > { %v9646_v23 = vpop.eup %9645 }
 0x541   : > { %v3898_v56 = vmul.f32 %v9646_v23, %v3896_v4 }
 0x543   : > { %v3900_v16 = vsel %vm3899_vm15, %v3896_v4, %v3898_v56 }
 0x544   : > { %v3903_v24 = vsel %vm3901_vm10, %v3902_v22, %v3900_v16 }
 0x545   : > { %v4011_v33 = vmul.f32 %v4007_v49, %v3903_v24  ;;  %v4013_v30 = vadd.f32 1e-09, %v3903_v24 }
 0x547   : > { %9647 = vrcp.f32 %v4013_v30  ;;  %v4012_v32 = vadd.f32 %v4011_v33, %v3998_v61 }
 0x551   : > { %v9648_v0 = vpop.eup %9647 }
 0x552   : > { %v4015_v12 = vmul.f32 %v9648_v0, %v4012_v32 }
 0x554   : > { %7540 = vmatmul.mubr.msk.f32.vlgmr.msra.gmra.mrb[28].mxu0 %vm4045_vm11, %v4015_v12  ;;  %7560 = vmatmul.mubr.msk.f32.vlgmr.msra.gmra.mrb[28].mxu1 %vm4045_vm11, %v4015_v12  ;;  %v4016_v8 = vmul.f32 %v4015_v12, %v3892_v10 }
 0x555   : > { %4158 = vmatprep.mubr.f32.mxu0 %v15086_v58  ;;  %4543 = vmatprep.mubr.f32.mxu1 %v15086_v58 }
 0x556   : > { %v4017_v42 = vsub.f32 %v4010_v63, %v4016_v8  ;;  %7543 = vmatpush1.msk.msra.mxu0 %vm3213_vm9, %v13058_v14  ;;  %7567 = vmatpush1.msk.msra.mxu1 %vm3213_vm9, %v13063_v34  ;;  %v4022_v14 = vld [vmem:[%s14833_s9 + $0x20] sm:$0xff] }
 0x557   : > { %7546 = vmatprep.subr.msk.mxu0 %vm3213_vm9, %v4038_v3  ;;  %v4040_v34 = vcombine.high %v4022_v14, %v4022_v14 }
 0x558   : > { %7541 = vmatmul.mubr.msk.f32.gmra.mrb[30].mxu0 %vm4045_vm11, %v4017_v42  ;;  %7561 = vmatmul.mubr.msk.f32.gmra.mrb[30].mxu1 %vm4045_vm11, %v4017_v42 }
 0x559   : > { %4229 = vmatprep.mubr.f32.mxu0 %v15086_v58  ;;  %4691 = vmatprep.mubr.f32.mxu1 %v15086_v58 }
 0x55c   : > { %7544 = vmatmul.mubr.msk.f32.vlgmr.msra.gmra.mrb[32].mxu0 %vm4045_vm11, %v4015_v12  ;;  %7568 = vmatmul.mubr.msk.f32.vlgmr.msra.gmra.mrb[32].mxu1 %vm4045_vm11, %v4015_v12 }
 0x55d   : > { %4235 = vmatprep.mubr.f32.mxu0 %v15086_v58  ;;  %4697 = vmatprep.mubr.f32.mxu1 %v15086_v58 }
 0x55e   : > { %7547 = vmatpush1.msk.msra.mxu0 %vm3213_vm9, %v4020_v25 }
 0x55f   : > { %7550 = vmatprep.subr.msk.mxu0 %vm3213_vm9, %v4039_v47 }
 0x560   : > { %7545 = vmatmul.mubr.msk.f32.gmra.mrb[34].mxu0 %vm4045_vm11, %v4017_v42  ;;  %7569 = vmatmul.mubr.msk.f32.gmra.mrb[34].mxu1 %vm4045_vm11, %v4017_v42 }
 0x561   : > { %4306 = vmatprep.mubr.f32.mxu0 %v15086_v58  ;;  %5475 = vmatprep.mubr.f32.mxu1 %v15086_v58 }
 0x564   : > { %7548 = vmatmul.mubr.msk.f32.vlgmr.msra.gmra.mrb[36].mxu0 %vm4045_vm11, %v4015_v12 }
 0x565   : > { %4312 = vmatprep.mubr.f32.mxu0 %v15086_v58  ;;  %7551 = vmatpush1.msk.msra.mxu0 %vm3213_vm9, %v4021_v31 }
 0x566   : > { %7554 = vmatprep.subr.msk.mxu0 %vm3213_vm9, %v4040_v34 }
 0x568   : > { %7549 = vmatmul.mubr.msk.f32.gmra.mrb[38].mxu0 %vm4045_vm11, %v4017_v42 }
 0x569   : > { %4383 = vmatprep.mubr.f32.mxu0 %v15086_v58 }
 0x56c   : > { %7552 = vmatmul.mubr.msk.f32.vlgmr.msra.gmra.mrb[40].mxu0 %vm4045_vm11, %v4015_v12 }
 0x56d   : > { %4389 = vmatprep.mubr.f32.mxu0 %v15086_v58  ;;  %7555 = vmatpush1.msk.msra.mxu0 %vm3213_vm9, %v4022_v14 }
 0x56e   : > { %7562 = vmatprep.subr.msk.mxu0 %vm3213_vm9, %v4042_v41 }
 0x570   : > { %7553 = vmatmul.mubr.msk.f32.gmra.mrb[42].mxu0 %vm4045_vm11, %v4017_v42 }
 0x571   : > { %4460 = vmatprep.mubr.f32.mxu0 %v15086_v58 }
 0x574   : > { %7556 = vmatmul.mubr.msk.f32.vlgmr.msra.gmra.mrb[44].mxu0 %vm4045_vm11, %v4015_v12 }
 0x575   : > { %4466 = vmatprep.mubr.f32.mxu0 %v15086_v58  ;;  %7563 = vmatpush1.msk.msra.mxu0 %vm3213_vm9, %v4024_v17 }
 0x576   : > { %7570 = vmatprep.subr.msk.mxu0 %vm3213_vm9, %v4044_v5 }
 0x578   : > { %7557 = vmatmul.mubr.msk.f32.gmra.mrb[46].mxu0 %vm4045_vm11, %v4017_v42 }
 0x579   : > { %4614 = vmatprep.mubr.f32.mxu0 %v15086_v58 }
 0x57c   : > { %7564 = vmatmul.mubr.msk.f32.vlgmr.msra.gmra.mrb[48].mxu0 %vm4045_vm11, %v4015_v12 }
 0x57d   : > { %4620 = vmatprep.mubr.f32.mxu0 %v15086_v58  ;;  %7571 = vmatpush1.msk.msra.mxu0 %vm3213_vm9, %v4026_v6 }
 0x580   : > { %7565 = vmatmul.mubr.msk.f32.gmra.mrb[50].mxu0 %vm4045_vm11, %v4017_v42 }
 0x581   : > { %4768 = vmatprep.mubr.f32.mxu0 %v15086_v58 }
 0x584   : > { %7572 = vmatmul.mubr.msk.f32.vlgmr.msra.gmra.mrb[52].mxu0 %vm4045_vm11, %v4015_v12 }
 0x585   : > { %4774 = vmatprep.mubr.f32.mxu0 %v15086_v58 }
 0x588   : > { %7573 = vmatmul.mubr.msk.f32.gmra.mrb[54].mxu0 %vm4045_vm11, %v4017_v42 }
 0x589   : > { %5546 = vmatprep.mubr.f32.mxu0 %v15086_v58 }
 0x627   : > { %v4154_v59 = vpop.f32.mrb[28].mxu0  ;;  %v4539_v37 = vpop.f32.mrb[28].mxu1 }
 0x628   : > { %v4156_v52 = vpop.f32.mrb[29].mxu0  ;;  %v4541_v13 = vpop.f32.mrb[29].mxu1  ;;  %v4781_v1 = vmul.f32 %v4154_v59, %v12255_v26  ;;  %v4791_v49 = vmul.f32 %v4539_v37, %v12914_v60 }
 0x629   : > { %v4782_v10 = vmul.f32 %v4156_v52, %v12201_v53  ;;  %v4792_v28 = vmul.f32 %v4541_v13, %v12912_v21 }
 0x62b   : > { %v4160_v51 = vpop.f32.mrb[30].mxu0  ;;  %v4545_v18 = vpop.f32.mrb[30].mxu1 }
 0x62c   : > { %v13140_v35 = vadd.f32 %v4781_v1, %v4160_v51  ;;  %v13142_v45 = vadd.f32 %v4791_v49, %v4545_v18  ;;  %v4162_v9 = vpop.f32.mrb[31].mxu0  ;;  %v4547_v48 = vpop.f32.mrb[31].mxu1 }
 0x62d   : > { %v13144_v40 = vadd.f32 %v4782_v10, %v4162_v9  ;;  %v13146_v29 = vadd.f32 %v4792_v28, %v4547_v48 }
 0x62e   : > { %5333 = vrot.lane.b32.xlu0 %v13140_v35, %s15143_s2 }
 0x62f   : > { %v4231_v26 = vpop.f32.mrb[32].mxu0  ;;  %v4693_v60 = vpop.f32.mrb[32].mxu1  ;;  %v9058_v53 = vpack.i.bf16 %v13146_v29, %v13142_v45 }
 0x630   : > { %v4233_v21 = vpop.f32.mrb[33].mxu0  ;;  %v4695_v63 = vpop.f32.mrb[33].mxu1  ;;  %v4783_v36 = vmul.f32 %v4231_v26, %v12290_v7  ;;  %v4795_v4 = vmul.f32 %v4693_v60, %v13014_v15 }
 0x631   : > { %9059 = vrot.lane.b32.xlu1 %v9058_v53, %s15144_s12  ;;  %v4784_v23 = vmul.f32 %v4233_v21, %v12199_v50  ;;  %v4796_v38 = vmul.f32 %v4695_v63, %v13011_v11 }
 0x632   : > { %5353 = vrot.lane.b32.xlu0 %v13142_v45, %s15143_s2 }
 0x633   : > { %v4237_v56 = vpop.f32.mrb[34].mxu0  ;;  %v4699_v22 = vpop.f32.mrb[34].mxu1 }
 0x634   : > { %v13159_v16 = vadd.f32 %v4783_v36, %v4237_v56  ;;  %v13161_v61 = vadd.f32 %v4795_v4, %v4699_v22  ;;  %v4239_v24 = vpop.f32.mrb[35].mxu0  ;;  %v4701_v33 = vpop.f32.mrb[35].mxu1 }
 0x635   : > { %v13163_v30 = vadd.f32 %v4784_v23, %v4239_v24  ;;  %v13165_v7 = vadd.f32 %v4796_v38, %v4701_v33  ;;  %9074 = vrot.lane.b32.xlu1 %v9058_v53, %s15145_s26 }
 0x636   : > { %5335 = vrot.lane.b32.xlu0 %v13144_v40, %s15143_s2  ;;  %v9088_v0 = vpack.i.bf16 %v13159_v16, %v13144_v40 }
 0x637   : > { %v4308_v50 = vpop.f32.mrb[36].mxu0  ;;  %v9163_v63 = vpack.i.bf16 %v13165_v7, %v13161_v61 }
 0x638   : > { %v4310_v15 = vpop.f32.mrb[37].mxu0  ;;  %v4785_v11 = vmul.f32 %v4308_v50, %v12474_v62 }
 0x639   : > { %9084 = vrot.lane.b32.xlu1 %v9058_v53, %s15146_s30  ;;  %v4786_v32 = vmul.f32 %v4310_v15, %v12298_v43 }
 0x63a   : > { %9054 = vrot.lane.b32.xlu0 %v9058_v53, %s15147_s29 }
 0x63b   : > { %v4314_v25 = vpop.f32.mrb[38].mxu0 }
 0x63c   : > { %v13176_v12 = vadd.f32 %v4785_v11, %v4314_v25  ;;  %v4316_v3 = vpop.f32.mrb[39].mxu0 }
 0x63d   : > { %v13178_v8 = vadd.f32 %v4786_v32, %v4316_v3  ;;  %9089 = vrot.lane.b32.xlu1 %v9088_v0, %s15147_s29 }
 0x63e   : > { %9064 = vrot.lane.b32.xlu0 %v9058_v53, %s15148_s18 }
 0x63f   : > { %v4385_v42 = vpop.f32.mrb[40].mxu0 }
 0x640   : > { %v4387_v31 = vpop.f32.mrb[41].mxu0  ;;  %v4787_v62 = vmul.f32 %v4385_v42, %v12586_v27 }
 0x641   : > { %9099 = vrot.lane.b32.xlu1 %v9088_v0, %s15148_s18  ;;  %v4788_v43 = vmul.f32 %v4387_v31, %v12578_v57 }
 0x642   : > { %9069 = vrot.lane.b32.xlu0 %v9058_v53, %s15149_s20 }
 0x643   : > { %v4391_v47 = vpop.f32.mrb[42].mxu0 }
 0x644   : > { %v13186_v14 = vadd.f32 %v4787_v62, %v4391_v47  ;;  %v4393_v34 = vpop.f32.mrb[43].mxu0 }
 0x645   : > { %v13188_v17 = vadd.f32 %v4788_v43, %v4393_v34  ;;  %9104 = vrot.lane.b32.xlu1 %v9088_v0, %s15149_s20 }
 0x646   : > { %9079 = vrot.lane.b32.xlu0 %v9058_v53, %s15150_s0 }
 0x647   : > { %v4462_v41 = vpop.f32.mrb[44].mxu0 }
 0x648   : > { %v4464_v6 = vpop.f32.mrb[45].mxu0  ;;  %v4789_v27 = vmul.f32 %v4462_v41, %v12632_v55  ;;  %v9123_v55 = vpack.i.bf16 %v13163_v30, %v13140_v35 }
 0x649   : > { %9114 = vrot.lane.b32.xlu1 %v9088_v0, %s15150_s0  ;;  %v4790_v57 = vmul.f32 %v4464_v6, %v12501_v44 }
 0x64a   : > { %5355 = vrot.lane.b32.xlu0 %v13146_v29, %s15143_s2 }
 0x64b   : > { %v4468_v5 = vpop.f32.mrb[46].mxu0 }
 0x64c   : > { %v13197_v59 = vadd.f32 %v4789_v27, %v4468_v5  ;;  %v4470_v37 = vpop.f32.mrb[47].mxu0 }
 0x64d   : > { %v13199_v52 = vadd.f32 %v4790_v57, %v4470_v37  ;;  %5337 = vrot.lane.b32.xlu1 %v13159_v16, %s15143_s2 }
 0x64e   : > { %9094 = vrot.lane.b32.xlu0 %v9088_v0, %s15144_s12 }
 0x64f   : > { %v4616_v13 = vpop.f32.mrb[48].mxu0  ;;  %v9253_v36 = vpack.i.bf16 %v13199_v52, %v13197_v59 }
 0x650   : > { %v4618_v1 = vpop.f32.mrb[49].mxu0  ;;  %v4793_v44 = vmul.f32 %v4616_v13, %v12791_v2 }
 0x651   : > { %9124 = vrot.lane.b32.xlu1 %v9123_v55, %s15147_s29  ;;  %v4794_v49 = vmul.f32 %v4618_v1, %v12684_v20 }
 0x652   : > { %9109 = vrot.lane.b32.xlu0 %v9088_v0, %s15145_s26 }
 0x653   : > { %v4622_v10 = vpop.f32.mrb[50].mxu0 }
 0x654   : > { %v13210_v28 = vadd.f32 %v4793_v44, %v4622_v10  ;;  %v4624_v51 = vpop.f32.mrb[51].mxu0 }
 0x655   : > { %v13212_v18 = vadd.f32 %v4794_v49, %v4624_v51  ;;  %9134 = vrot.lane.b32.xlu1 %v9123_v55, %s15148_s18 }
 0x656   : > { %9119 = vrot.lane.b32.xlu0 %v9088_v0, %s15146_s30 }
 0x657   : > { %v4770_v9 = vpop.f32.mrb[52].mxu0  ;;  %v9303_v24 = vpack.i.bf16 %v13212_v18, %v13210_v28 }
 0x658   : > { %v4772_v48 = vpop.f32.mrb[53].mxu0  ;;  %v4797_v2 = vmul.f32 %v4770_v9, %v13025_v39  ;;  %v9218_v39 = vpack.i.bf16 %v13188_v17, %v13186_v14 }
 0x659   : > { %9139 = vrot.lane.b32.xlu1 %v9123_v55, %s15149_s20  ;;  %v4798_v20 = vmul.f32 %v4772_v48, %v13022_v19  ;;  %v9188_v19 = vpack.i.bf16 %v13178_v8, %v13176_v12 }
 0x65a   : > { %9129 = vrot.lane.b32.xlu0 %v9123_v55, %s15144_s12 }
 0x65b   : > { %v4776_v26 = vpop.f32.mrb[54].mxu0 }
 0x65c   : > { %v13220_v60 = vadd.f32 %v4797_v2, %v4776_v26  ;;  %v4778_v53 = vpop.f32.mrb[55].mxu0 }
 0x65d   : > { %v13222_v21 = vadd.f32 %v4798_v20, %v4778_v53  ;;  %9149 = vrot.lane.b32.xlu1 %v9123_v55, %s15150_s0 }
 0x65e   : > { %15151 = vst [vmem:[#allocation14_spill] sm:$0xff] %v13220_v60  ;;  %9144 = vrot.lane.b32.xlu0 %v9123_v55, %s15145_s26 }
 0x65f   : > { %15152 = vst [vmem:[#allocation12_spill] sm:$0xff] %v13222_v21  ;;  %v9333_v13 = vpack.i.bf16 %v13222_v21, %v13220_v60 }
 0x661   : > { %9164 = vrot.lane.b32.xlu1 %v9163_v63, %s15144_s12 }
 0x662   : > { %9154 = vrot.lane.b32.xlu0 %v9123_v55, %s15146_s30 }
 0x665   : > { %9179 = vrot.lane.b32.xlu1 %v9163_v63, %s15145_s26 }
 0x666   : > { %5339 = vrot.lane.b32.xlu0 %v13163_v30, %s15143_s2 }
 0x669   : > { %5341 = vrot.lane.b32.xlu1 %v13176_v12, %s15143_s2 }
 0x66a   : > { %9159 = vrot.lane.b32.xlu0 %v9163_v63, %s15147_s29 }
 0x66d   : > { %9189 = vrot.lane.b32.xlu1 %v9188_v19, %s15144_s12 }
 0x66e   : > { %9169 = vrot.lane.b32.xlu0 %v9163_v63, %s15148_s18 }
 0x671   : > { %9199 = vrot.lane.b32.xlu1 %v9188_v19, %s15149_s20 }
 0x672   : > { %9174 = vrot.lane.b32.xlu0 %v9163_v63, %s15149_s20 }
 0x675   : > { %9214 = vrot.lane.b32.xlu1 %v9188_v19, %s15146_s30 }
 0x676   : > { %9184 = vrot.lane.b32.xlu0 %v9188_v19, %s15147_s29 }
 0x679   : > { %5343 = vrot.lane.b32.xlu1 %v13178_v8, %s15143_s2 }
 0x67a   : > { %9194 = vrot.lane.b32.xlu0 %v9188_v19, %s15148_s18 }
 0x67d   : > { %9219 = vrot.lane.b32.xlu1 %v9218_v39, %s15147_s29 }
 0x67e   : > { %9204 = vrot.lane.b32.xlu0 %v9188_v19, %s15145_s26 }
 0x681   : > { %9224 = vrot.lane.b32.xlu1 %v9218_v39, %s15144_s12 }
 0x682   : > { %9209 = vrot.lane.b32.xlu0 %v9188_v19, %s15150_s0 }
 0x685   : > { %9239 = vrot.lane.b32.xlu1 %v9218_v39, %s15145_s26 }
 0x686   : > { %5345 = vrot.lane.b32.xlu0 %v13186_v14, %s15143_s2 }
 0x689   : > { %9249 = vrot.lane.b32.xlu1 %v9218_v39, %s15146_s30 }
 0x68a   : > { %9229 = vrot.lane.b32.xlu0 %v9218_v39, %s15148_s18 }
 0x68d   : > { %5349 = vrot.lane.b32.xlu1 %v13197_v59, %s15143_s2 }
 0x68e   : > { %9234 = vrot.lane.b32.xlu0 %v9218_v39, %s15149_s20 }
 0x691   : > { %9254 = vrot.lane.b32.xlu1 %v9253_v36, %s15147_s29 }
 0x692   : > { %9244 = vrot.lane.b32.xlu0 %v9218_v39, %s15150_s0 }
 0x695   : > { %9264 = vrot.lane.b32.xlu1 %v9253_v36, %s15148_s18 }
 0x696   : > { %5347 = vrot.lane.b32.xlu0 %v13188_v17, %s15143_s2 }
 0x699   : > { %9274 = vrot.lane.b32.xlu1 %v9253_v36, %s15145_s26 }
 0x69a   : > { %9259 = vrot.lane.b32.xlu0 %v9253_v36, %s15144_s12 }
 0x69d   : > { %9279 = vrot.lane.b32.xlu1 %v9253_v36, %s15150_s0 }
 0x69e   : > { %9269 = vrot.lane.b32.xlu0 %v9253_v36, %s15149_s20 }
 0x6a0   : > { %v13272_v4 = vpop.permute.xlu0 %5333 }
 0x6a1   : > { %9294 = vrot.lane.b32.xlu1 %v9163_v63, %s15146_s30 }
 0x6a2   : > { %9284 = vrot.lane.b32.xlu0 %v9253_v36, %s15146_s30 }
 0x6a3   : > { %v13276_v23 = vpop.permute.xlu1 %9059 }
 0x6a4   : > { %v13278_v38 = vpop.permute.xlu0 %5353 }
 0x6a5   : > { %5351 = vrot.lane.b32.xlu1 %v13199_v52, %s15143_s2 }
 0x6a6   : > { %9289 = vrot.lane.b32.xlu0 %v9163_v63, %s15150_s0 }
 0x6a7   : > { %v13283_v56 = vpop.permute.xlu1 %9074 }
 0x6a8   : > { %v13285_v22 = vpop.permute.xlu0 %5335 }
 0x6a9   : > { %5357 = vrot.lane.b32.xlu1 %v13210_v28, %s15143_s2 }
 0x6aa   : > { %9304 = vrot.lane.b32.xlu0 %v9303_v24, %s15144_s12 }
 0x6ab   : > { %v13292_v33 = vpop.permute.xlu1 %9084 }
 0x6ac   : > { %v13294_v50 = vpop.permute.xlu0 %9054 }
 0x6ad   : > { %9299 = vrot.lane.b32.xlu1 %v9303_v24, %s15147_s29 }
 0x6ae   : > { %9314 = vrot.lane.b32.xlu0 %v9303_v24, %s15149_s20 }
 0x6af   : > { %v13298_v15 = vpop.permute.xlu1 %9089 }
 0x6b0   : > { %v9092_v11 = vunpack.i.h.bf16 %v13298_v15  ;;  %v9091_v32 = vunpack.i.l.bf16 %v13298_v15  ;;  %v13302_v25 = vpop.permute.xlu0 %9064 }
 0x6b1   : > { %9309 = vrot.lane.b32.xlu1 %v9303_v24, %s15148_s18 }
 0x6b2   : > { %9329 = vrot.lane.b32.xlu0 %v9303_v24, %s15146_s30  ;;  %v4873_v0 = vsel %vm582_vm0, %v9091_v32, %v9092_v11 }
 0x6b3   : > { %v13309_v3 = vpop.permute.xlu1 %9099  ;;  %v8390_v42 = vpack.c.bf16 %v4873_v0, %v13144_v40 }
 0x6b4   : > { %v13312_v31 = vpop.permute.xlu0 %9069  ;;  %v14964_v57 = vunpack.i.h.bf16 %v13309_v3  ;;  %v9101_v5 = vunpack.i.l.bf16 %v13309_v3 }
 0x6b5   : > { %8391 = vmatprep.subr.bf16.mxu1 %v8390_v42  ;;  %9319 = vrot.lane.b32.xlu1 %v9303_v24, %s15145_s26 }
 0x6b6   : > { %5359 = vrot.lane.b32.xlu0 %v13212_v18, %s15143_s2  ;;  %v5015_v9 = vsel %vm856_vm2, %v9101_v5, %v14964_v57 }
 0x6b7   : > { %v13317_v62 = vpop.permute.xlu1 %9104 }
 0x6b8   : > { %v13319_v43 = vpop.permute.xlu0 %9079  ;;  %v14961_v63 = vunpack.i.h.bf16 %v13317_v62  ;;  %v9106_v19 = vunpack.i.l.bf16 %v13317_v62 }
 0x6b9   : > { %9324 = vrot.lane.b32.xlu1 %v9303_v24, %s15150_s0 }
 0x6ba   : > { %4939 = vrot.lane.b32.xlu0 %v13220_v60, %s15144_s12  ;;  %v5086_v54 = vsel %vm993_vm3, %v9106_v19, %v14961_v63 }
 0x6bb   : > { %v13324_v47 = vpop.permute.xlu1 %9114 }
 0x6bc   : > { %v13326_v40 = vpop.permute.xlu0 %5355 }
 0x6bd   : > { %5010 = vrot.lane.b32.xlu1 %v13220_v60, %s15148_s18 }
 0x6be   : > { %5081 = vrot.lane.b32.xlu0 %v13220_v60, %s15149_s20 }
 0x6bf   : > { %v13332_v34 = vpop.permute.xlu1 %5337 }
 0x6c0   : > { %v13334_v41 = vpop.permute.xlu0 %9094 }
 0x6c1   : > { %v14965_v6 = vunpack.i.h.bf16 %v13334_v41  ;;  %v9096_v27 = vunpack.i.l.bf16 %v13334_v41  ;;  %5152 = vrot.lane.b32.xlu1 %v13220_v60, %s15145_s26 }
 0x6c2   : > { %5223 = vrot.lane.b32.xlu0 %v13220_v60, %s15150_s0 }
 0x6c3   : > { %v13344_v37 = vpop.permute.xlu1 %9124  ;;  %v4944_v44 = vsel %vm719_vm1, %v9096_v27, %v14965_v6 }
 0x6c4   : > { %v9126_v55 = vunpack.i.l.bf16 %v13344_v37  ;;  %v13349_v1 = vpop.permute.xlu0 %9109  ;;  %v8394_v2 = vpack.c.bf16 %v5015_v9, %v4944_v44 }
 0x6c5   : > { %9334 = vrot.lane.b32.xlu1 %v9333_v13, %s15147_s29  ;;  %v14960_v20 = vunpack.i.h.bf16 %v13349_v1  ;;  %v9111_v26 = vunpack.i.l.bf16 %v13349_v1 }
 0x6c6   : > { %v4872_v49 = vsel %vm582_vm0, %v9126_v55, %v9091_v32  ;;  %5363 = vrot.lane.b32.xlu0 %v13165_v7, %s15143_s2 }
 0x6c7   : > { %v13358_v10 = vpop.permute.xlu1 %9134  ;;  %v8392_v51 = vpack.c.bf16 %v4872_v49, %v13140_v35  ;;  %v5157_v0 = vsel %vm1130_vm4, %v9111_v26, %v14960_v20  ;;  %v14962_v49 = vunpack.i.h.bf16 %v13324_v47 }
 0x6c8   : > { %v13364_v48 = vpop.permute.xlu0 %9119  ;;  %v9136_v35 = vunpack.i.l.bf16 %v13358_v10 }
 0x6c9   : > { %8393 = vmatpush1.bf16.msra.mxu1 %v8392_v51  ;;  %5361 = vrot.lane.b32.xlu1 %v13161_v61, %s15143_s2  ;;  %v14963_v24 = vunpack.i.h.bf16 %v13364_v48  ;;  %v9121_v32 = vunpack.i.l.bf16 %v13364_v48  ;;  %v9116_v51 = vunpack.i.l.bf16 %v13324_v47 }
 0x6ca   : > { %8395 = vmatprep.subr.bf16.mxu1 %v8394_v2  ;;  %4941 = vrot.lane.b32.xlu0 %v13222_v21, %s15144_s12  ;;  %v5014_v42 = vsel %vm856_vm2, %v9136_v35, %v9101_v5  ;;  %v8398_v5 = vpack.c.bf16 %v5157_v0, %v5086_v54 }
 0x6cb   : > { %v13373_v53 = vpop.permute.xlu1 %9139  ;;  %v5228_v0 = vsel %vm1267_vm5, %v9116_v51, %v14962_v49 }
 0x6cc   : > { %v13377_v39 = vpop.permute.xlu0 %9129  ;;  %v9141_v13 = vunpack.i.l.bf16 %v13373_v53 }
 0x6cd   : > { %v9131_v36 = vunpack.i.l.bf16 %v13377_v39  ;;  %5294 = vrot.lane.b32.xlu1 %v13220_v60, %s15146_s30 }
 0x6ce   : > { %5083 = vrot.lane.b32.xlu0 %v13222_v21, %s15149_s20  ;;  %v5085_v35 = vsel %vm993_vm3, %v9141_v13, %v9106_v19 }
 0x6cf   : > { %v4943_v55 = vsel %vm719_vm1, %v9131_v36, %v9096_v27  ;;  %v13392_v44 = vpop.permute.xlu1 %9149  ;;  %v5299_v27 = vsel %vm1404_vm6, %v9121_v32, %v14963_v24 }
 0x6d0   : > { %v13396_v9 = vpop.permute.xlu0 %9144  ;;  %v8396_v2 = vpack.c.bf16 %v5014_v42, %v4943_v55  ;;  %v9151_v36 = vunpack.i.l.bf16 %v13392_v44  ;;  %v8402_v19 = vpack.c.bf16 %v5299_v27, %v5228_v0  ;;  %v5370_v27 = vsel %vm1541_vm7, %v13285_v22, %v13332_v34 }
 0x6d1   : > { %v9146_v20 = vunpack.i.l.bf16 %v13396_v9  ;;  %5365 = vrot.lane.b32.xlu1 %v13220_v60, %s15143_s2 }
 0x6d2   : > { %8397 = vmatpush1.bf16.msra.mxu1 %v8396_v2  ;;  %5225 = vrot.lane.b32.xlu0 %v13222_v21, %s15150_s0 }
 0x6d3   : > { %v5156_v42 = vsel %vm1130_vm4, %v9146_v20, %v9111_v26  ;;  %v13412_v55 = vpop.permute.xlu1 %9164  ;;  %8399 = vmatprep.subr.bf16.mxu1 %v8398_v5  ;;  %v5227_v20 = vsel %vm1267_vm5, %v9151_v36, %v9116_v51  ;;  %v5369_v36 = vsel %vm1541_vm7, %v13272_v4, %v13285_v22  ;;  %v9127_v4 = vunpack.i.h.bf16 %v13344_v37 }
 0x6d4   : > { %v13414_v63 = vpop.permute.xlu0 %9154  ;;  %v8400_v54 = vpack.c.bf16 %v5156_v42, %v5085_v35 }
 0x6d5   : > { %v9156_v2 = vunpack.i.l.bf16 %v13414_v63  ;;  %5012 = vrot.lane.b32.xlu1 %v13222_v21, %s15148_s18 }
 0x6d6   : > { %8401 = vmatpush1.bf16.msra.mxu1 %v8400_v54  ;;  %5367 = vrot.lane.b32.xlu0 %v13222_v21, %s15143_s2 }
 0x6d7   : > { %v5298_v26 = vsel %vm1404_vm6, %v9156_v2, %v9121_v32  ;;  %v13426_v13 = vpop.permute.xlu1 %9179  ;;  %8403 = vmatprep.subr.bf16.mxu1 %v8402_v19  ;;  %v13442_v32 = vld [vmem:[%s14828_s4] sm:$0xff] }
 0x6d8   : > { %v13428_v5 = vpop.permute.xlu0 %5339  ;;  %v8404_v35 = vpack.c.bf16 %v5298_v26, %v5227_v20  ;;  %v9652_v2 = vld [vmem:[%s14831_s7] sm:$0xff] }
 0x6d9   : > { %5154 = vrot.lane.b32.xlu1 %v13222_v21, %s15145_s26 }
 0x6da   : > { %8405 = vmatpush1.bf16.msra.mxu1 %v8404_v35 }
 0x6db   : > { %5427 = vmatprep.subr.mxu1 %v5370_v27  ;;  %v13435_v42 = vpop.permute.xlu1 %5341  ;;  %v4874_v27 = vsel %vm582_vm0, %v9092_v11, %v9127_v4  ;;  %v15153_v11 = vunpack.i.h.bf16 %v13334_v41 }
 0x6dc   : > { %v13437_v51 = vpop.permute.xlu0 %9159  ;;  %v8408_v15 = vpack.c.bf16 %v4874_v27, %v13159_v16  ;;  %v15155_v16 = vunpack.i.h.bf16 %v13309_v3  ;;  %v9157_v3 = vunpack.i.h.bf16 %v13414_v63  ;;  %v15158_v63 = vunpack.i.h.bf16 %v13317_v62 }
 0x6dd   : > { %5296 = vrot.lane.b32.xlu1 %v13222_v21, %s15146_s30 }
 0x6de   : > { %5428 = vmatpush1.msra.mxu1 %v5369_v36  ;;  %v9132_v36 = vunpack.i.h.bf16 %v13377_v39 }
 0x6df   : > { %v13449_v54 = vpop.permute.xlu1 %9189  ;;  %7574 = vmatmul.mubr.msk.f32.vlgmr.msra.gmra.mrb[36].mxu1 %vm2242_vm8, %v13442_v32 }
 0x6e0   : > { %v13453_v0 = vpop.permute.xlu0 %9169  ;;  %5617 = vmatprep.mubr.f32.mxu1 %v15086_v58  ;;  %v4945_v39 = vsel %vm719_vm1, %v15153_v11, %v9132_v36  ;;  %v15154_v21 = vunpack.i.l.bf16 %v13449_v54 }
 0x6e1   : > { %5405 = vperm.xlu1 %9338, %v9652_v2   ;;  %v9147_v2 = vunpack.i.h.bf16 %v13396_v9 }
 0x6e3   : > { %v13459_v19 = vpop.permute.xlu1 %9199 }
 0x6e4   : > { %v13461_v20 = vpop.permute.xlu0 %9174 }
 0x6e5   : > { %9634 = vset.pattern.permute.xlu1 %v15130_v46  ;;  %v9137_v46 = vunpack.i.h.bf16 %v13358_v10 }
 0x6e7   : > { %v13465_v22 = vpop.permute.xlu1 %9214  ;;  %v5016_v41 = vsel %vm856_vm2, %v15155_v16, %v9137_v46 }
 0x6e8   : > { %v9185_v26 = vpop.permute.xlu0 %9184 }
 0x6e9   : > { %v9186_v35 = vunpack.i.l.bf16 %v9185_v26  ;;  %v9187_v6 = vunpack.i.h.bf16 %v9185_v26  ;;  %v9142_v26 = vunpack.i.h.bf16 %v13373_v53 }
 0x6eb   : > { %v13472_v49 = vpop.permute.xlu1 %5343  ;;  %v4875_v24 = vsel %vm582_vm0, %v9127_v4, %v9186_v35  ;;  %v8412_v4 = vpack.c.bf16 %v5016_v41, %v4945_v39  ;;  %v15157_v39 = vunpack.i.l.bf16 %v13459_v19  ;;  %v5087_v16 = vsel %vm993_vm3, %v15158_v63, %v9142_v26 }
 0x6ec   : > { %v13476_v57 = vpop.permute.xlu0 %9194  ;;  %v8406_v37 = vpack.c.bf16 %v4875_v24, %v13163_v30  ;;  %v4946_v30 = vsel %vm719_vm1, %v9132_v36, %v15154_v21  ;;  %v15156_v21 = vunpack.i.h.bf16 %v13349_v1  ;;  %v9152_v41 = vunpack.i.h.bf16 %v13392_v44 }
 0x6ed   : > { %v9196_v60 = vunpack.i.l.bf16 %v13476_v57  ;;  %v5088_v1 = vsel %vm993_vm3, %v9142_v26, %v15157_v39 }
 0x6ee   : > { %8407 = vmatprep.subr.bf16.mxu0 %v8406_v37  ;;  %v5158_v36 = vsel %vm1130_vm4, %v15156_v21, %v9147_v2 }
 0x6ef   : > { %8409 = vmatpush1.bf16.msra.mxu0 %v8408_v15  ;;  %v13486_v10 = vpop.permute.xlu1 %9219  ;;  %v5017_v24 = vsel %vm856_vm2, %v9137_v46, %v9196_v60  ;;  %v4876_v15 = vsel %vm582_vm0, %v9186_v35, %v9187_v6  ;;  %v9216_v46 = vunpack.i.l.bf16 %v13465_v22 }
 0x6f0   : > { %v9221_v9 = vunpack.i.l.bf16 %v13486_v10  ;;  %v13497_v27 = vpop.permute.xlu0 %9204  ;;  %v8410_v37 = vpack.c.bf16 %v5017_v24, %v4946_v30 }
 0x6f1   : > { %v9206_v11 = vunpack.i.l.bf16 %v13497_v27 }
 0x6f2   : > { %8411 = vmatprep.subr.bf16.mxu0 %v8410_v37  ;;  %v4877_v53 = vsel %vm582_vm0, %v9187_v6, %v9221_v9 }
 0x6f3   : > { %8413 = vmatpush1.bf16.msra.mxu0 %v8412_v4  ;;  %v13509_v30 = vpop.permute.xlu1 %9224  ;;  %v8422_v35 = vpack.c.bf16 %v4877_v53, %v13178_v8  ;;  %v5159_v24 = vsel %vm1130_vm4, %v9147_v2, %v9206_v11  ;;  %v8424_v4 = vpack.c.bf16 %v4876_v15, %v13176_v12  ;;  %v8416_v8 = vpack.c.bf16 %v5158_v36, %v5087_v16 }
 0x6f4   : > { %v13520_v6 = vpop.permute.xlu0 %9209  ;;  %v8414_v37 = vpack.c.bf16 %v5159_v24, %v5088_v1  ;;  %v15159_v53 = vunpack.i.h.bf16 %v13364_v48  ;;  %v5301_v2 = vsel %vm1404_vm6, %v9157_v3, %v9216_v46  ;;  %v15160_v12 = vunpack.i.h.bf16 %v13324_v47 }
 0x6f5   : > { %v9211_v21 = vunpack.i.l.bf16 %v13520_v6  ;;  %8423 = vmatprep.subr.bf16.mxu1 %v8422_v35  ;;  %v9197_v35 = vunpack.i.h.bf16 %v13476_v57  ;;  %v9226_v1 = vunpack.i.l.bf16 %v13509_v30  ;;  %v9192_v47 = vunpack.i.h.bf16 %v13449_v54 }
 0x6f6   : > { %v5300_v39 = vsel %vm1404_vm6, %v15159_v53, %v9157_v3  ;;  %8415 = vmatprep.subr.bf16.mxu0 %v8414_v37  ;;  %8425 = vmatpush1.bf16.msra.mxu1 %v8424_v4  ;;  %v5229_v26 = vsel %vm1267_vm5, %v15160_v12, %v9152_v41  ;;  %v5372_v3 = vsel %vm1541_vm7, %v13428_v5, %v13435_v42  ;;  %v9207_v57 = vunpack.i.h.bf16 %v13497_v27 }
 0x6f7   : > { %8417 = vmatpush1.bf16.msra.mxu0 %v8416_v8  ;;  %v13527_v62 = vpop.permute.xlu1 %9239  ;;  %v5230_v44 = vsel %vm1267_vm5, %v9152_v41, %v9211_v21  ;;  %v8420_v36 = vpack.c.bf16 %v5300_v39, %v5229_v26  ;;  %v5018_v41 = vsel %vm856_vm2, %v9196_v60, %v9197_v35  ;;  %v5371_v37 = vsel %vm1541_vm7, %v13332_v34, %v13428_v5 }
 0x6f8   : > { %v13536_v15 = vpop.permute.xlu0 %5345  ;;  %v8418_v48 = vpack.c.bf16 %v5301_v2, %v5230_v44  ;;  %v9241_v4 = vunpack.i.l.bf16 %v13527_v62  ;;  %v4948_v53 = vsel %vm719_vm1, %v9192_v47, %v9226_v1  ;;  %v15161_v44 = vunpack.i.l.bf16 %v13449_v54 }
 0x6f9   : > { %v9202_v27 = vunpack.i.h.bf16 %v13459_v19  ;;  %v9222_v2 = vunpack.i.h.bf16 %v13486_v10  ;;  %v5160_v54 = vsel %vm1130_vm4, %v9206_v11, %v9207_v57 }
 0x6fa   : > { %8419 = vmatprep.subr.bf16.mxu0 %v8418_v48  ;;  %v4947_v60 = vsel %vm719_vm1, %v15161_v44, %v9192_v47  ;;  %v9217_v48 = vunpack.i.h.bf16 %v13465_v22 }
 0x6fb   : > { %8421 = vmatpush1.bf16.msra.mxu0 %v8420_v36  ;;  %v13540_v24 = vpop.permute.xlu1 %9249  ;;  %v8428_v26 = vpack.c.bf16 %v5018_v41, %v4947_v60  ;;  %v9212_v36 = vunpack.i.h.bf16 %v13520_v6  ;;  %v5161_v41 = vsel %vm1130_vm4, %v9207_v57, %v9241_v4  ;;  %v4878_v44 = vsel %vm582_vm0, %v9221_v9, %v9222_v2 }
 0x6fc   : > { %5498 = vmatprep.subr.mxu0 %v5372_v3  ;;  %v13546_v63 = vpop.permute.xlu0 %9229 }
 0x6fd   : > { %v9231_v16 = vunpack.i.l.bf16 %v13546_v63  ;;  %v5231_v57 = vsel %vm1267_vm5, %v9211_v21, %v9212_v36  ;;  %v9242_v21 = vunpack.i.h.bf16 %v13527_v62 }
 0x6ff   : > { %5499 = vmatpush1.msra.mxu0 %v5371_v37  ;;  %v13555_v8 = vpop.permute.xlu1 %5349  ;;  %v5019_v39 = vsel %vm856_vm2, %v9197_v35, %v9231_v16  ;;  %v9251_v35 = vunpack.i.l.bf16 %v13540_v24  ;;  %v15162_v37 = vunpack.i.l.bf16 %v13459_v19  ;;  %v9232_v19 = vunpack.i.h.bf16 %v13546_v63 }
 0x700   : > { %7575 = vmatmul.mubr.msk.f32.vlgmr.msra.gmra.mrb[56].mxu0 %vm2242_vm8, %v13442_v32  ;;  %v13567_v34 = vpop.permute.xlu0 %9234  ;;  %v8426_v5 = vpack.c.bf16 %v5019_v39, %v4948_v53 }
 0x701   : > { %v9236_v12 = vunpack.i.l.bf16 %v13567_v34  ;;  %5688 = vmatprep.mubr.f32.mxu0 %v15086_v58  ;;  %v5089_v53 = vsel %vm993_vm3, %v15162_v37, %v9202_v27  ;;  %v5303_v22 = vsel %vm1404_vm6, %v9217_v48, %v9251_v35 }
 0x702   : > { %8427 = vmatprep.subr.bf16.mxu1 %v8426_v5  ;;  %v8432_v5 = vpack.c.bf16 %v5160_v54, %v5089_v53  ;;  %v8440_v54 = vpack.c.bf16 %v4878_v44, %v13186_v14  ;;  %v9086_v53 = vunpack.i.l.bf16 %v13292_v33 }
 0x703   : > { %8429 = vmatpush1.bf16.msra.mxu1 %v8428_v26  ;;  %v9255_v3 = vpop.permute.xlu1 %9254  ;;  %v5090_v47 = vsel %vm993_vm3, %v9202_v27, %v9236_v12  ;;  %v5302_v26 = vsel %vm1404_vm6, %v9216_v46, %v9217_v48  ;;  %v9227_v46 = vunpack.i.h.bf16 %v13509_v30  ;;  %v5020_v48 = vsel %vm856_vm2, %v9231_v16, %v9232_v19 }
 0x704   : > { %v9256_v11 = vunpack.i.l.bf16 %v9255_v3  ;;  %v13585_v39 = vpop.permute.xlu0 %9244  ;;  %v8430_v6 = vpack.c.bf16 %v5161_v41, %v5090_v47  ;;  %v9257_v37 = vunpack.i.h.bf16 %v9255_v3  ;;  %v9061_v3 = vunpack.i.l.bf16 %v13276_v23 }
 0x705   : > { %v9246_v60 = vunpack.i.l.bf16 %v13585_v39  ;;  %v8436_v41 = vpack.c.bf16 %v5302_v26, %v5231_v57  ;;  %v9066_v57 = vunpack.i.l.bf16 %v13302_v25  ;;  %v4949_v16 = vsel %vm719_vm1, %v9226_v1, %v9227_v46 }
 0x706   : > { %8431 = vmatprep.subr.bf16.mxu1 %v8430_v6  ;;  %v4879_v27 = vsel %vm582_vm0, %v9222_v2, %v9256_v11  ;;  %v5374_v6 = vsel %vm1541_vm7, %v13472_v49, %v13536_v15  ;;  %v4880_v14 = vsel %vm582_vm0, %v9256_v11, %v9257_v37 }
 0x707   : > { %8433 = vmatpush1.bf16.msra.mxu1 %v8432_v5  ;;  %v9265_v47 = vpop.permute.xlu1 %9264  ;;  %v8438_v10 = vpack.c.bf16 %v4879_v27, %v13188_v17  ;;  %v5232_v9 = vsel %vm1267_vm5, %v9212_v36, %v9246_v60  ;;  %v9056_v17 = vunpack.i.l.bf16 %v13294_v50  ;;  %v9076_v36 = vunpack.i.l.bf16 %v13283_v56 }
 0x708   : > { %v13606_v63 = vpop.permute.xlu0 %5347  ;;  %v8434_v2 = vpack.c.bf16 %v5303_v22, %v5232_v9  ;;  %v9267_v44 = vunpack.i.h.bf16 %v9265_v47  ;;  %v9266_v5 = vunpack.i.l.bf16 %v9265_v47  ;;  %v5373_v47 = vsel %vm1541_vm7, %v13435_v42, %v13472_v49 }
 0x709   : > { %8439 = vmatprep.subr.bf16.mxu0 %v8438_v10  ;;  %v4881_v26 = vsel %vm582_vm0, %v9257_v37, %v9056_v17  ;;  %v5162_v10 = vsel %vm1130_vm4, %v9241_v4, %v9242_v21  ;;  %v9237_v9 = vunpack.i.h.bf16 %v13567_v34  ;;  %v8456_v1 = vpack.c.bf16 %v4880_v14, %v13197_v59 }
 0x70a   : > { %8435 = vmatprep.subr.bf16.mxu1 %v8434_v2  ;;  %8441 = vmatpush1.bf16.msra.mxu0 %v8440_v54  ;;  %v8444_v2 = vpack.c.bf16 %v5020_v48, %v4949_v16  ;;  %v8454_v30 = vpack.c.bf16 %v4881_v26, %v13199_v52  ;;  %v5023_v42 = vsel %vm856_vm2, %v9267_v44, %v9066_v57  ;;  %v9071_v48 = vunpack.i.l.bf16 %v13312_v31 }
 0x70b   : > { %8437 = vmatpush1.bf16.msra.mxu1 %v8436_v41  ;;  %v9275_v27 = vpop.permute.xlu1 %9274 }
 0x70c   : > { %5569 = vmatprep.subr.mxu1 %v5374_v6  ;;  %v9260_v11 = vpop.permute.xlu0 %9259  ;;  %v9277_v54 = vunpack.i.h.bf16 %v9275_v27  ;;  %v9276_v41 = vunpack.i.l.bf16 %v9275_v27  ;;  %v5021_v6 = vsel %vm856_vm2, %v9232_v19, %v9266_v5  ;;  %v5091_v19 = vsel %vm993_vm3, %v9236_v12, %v9237_v9 }
 0x70d   : > { %v9262_v22 = vunpack.i.h.bf16 %v9260_v11  ;;  %v9261_v37 = vunpack.i.l.bf16 %v9260_v11  ;;  %v9247_v27 = vunpack.i.h.bf16 %v13585_v39  ;;  %v5022_v11 = vsel %vm856_vm2, %v9266_v5, %v9267_v44 }
 0x70e   : > { %v5165_v34 = vsel %vm1130_vm4, %v9277_v54, %v9076_v36  ;;  %v9252_v5 = vunpack.i.h.bf16 %v13540_v24  ;;  %v9062_v24 = vunpack.i.h.bf16 %v13276_v23 }
 0x70f   : > { %5570 = vmatpush1.msra.mxu1 %v5373_v47  ;;  %v13634_v62 = vpop.permute.xlu1 %9279  ;;  %v4950_v4 = vsel %vm719_vm1, %v9227_v46, %v9261_v37  ;;  %v4952_v49 = vsel %vm719_vm1, %v9262_v22, %v9061_v3  ;;  %v4951_v52 = vsel %vm719_vm1, %v9261_v37, %v9262_v22  ;;  %v5163_v22 = vsel %vm1130_vm4, %v9242_v21, %v9276_v41 }
 0x710   : > { %7576 = vmatmul.mubr.msk.f32.vlgmr.msra.gmra.mrb[38].mxu1 %vm2242_vm8, %v13442_v32  ;;  %v9270_v59 = vpop.permute.xlu0 %9269  ;;  %8455 = vmatprep.subr.bf16.mxu1 %v8454_v30  ;;  %v8442_v46 = vpack.c.bf16 %v5021_v6, %v4950_v4  ;;  %v8458_v14 = vpack.c.bf16 %v5023_v42, %v4952_v49  ;;  %v9281_v47 = vunpack.i.l.bf16 %v13634_v62  ;;  %v9282_v12 = vunpack.i.h.bf16 %v13634_v62 }
 0x711   : > { %v9272_v26 = vunpack.i.h.bf16 %v9270_v59  ;;  %v9271_v16 = vunpack.i.l.bf16 %v9270_v59  ;;  %8457 = vmatpush1.bf16.msra.mxu1 %v8456_v1  ;;  %5759 = vmatprep.mubr.f32.mxu1 %v15086_v58  ;;  %v8460_v30 = vpack.c.bf16 %v5022_v11, %v4951_v52  ;;  %v9081_v42 = vunpack.i.l.bf16 %v13319_v43 }
 0x712   : > { %8443 = vmatprep.subr.bf16.mxu0 %v8442_v46  ;;  %8459 = vmatprep.subr.bf16.mxu1 %v8458_v14  ;;  %v9057_v52 = vunpack.i.h.bf16 %v13294_v50  ;;  %v5164_v46 = vsel %vm1130_vm4, %v9276_v41, %v9277_v54  ;;  %v5234_v14 = vsel %vm1267_vm5, %v9247_v27, %v9281_v47 }
 0x713   : > { %v13660_v37 = vpop.permute.xlu1 %9294  ;;  %8445 = vmatpush1.bf16.msra.mxu0 %v8444_v2  ;;  %v5092_v1 = vsel %vm993_vm3, %v9237_v9, %v9271_v16  ;;  %v5094_v44 = vsel %vm993_vm3, %v9272_v26, %v9071_v48  ;;  %v5093_v21 = vsel %vm993_vm3, %v9271_v16, %v9272_v26  ;;  %v8448_v2 = vpack.c.bf16 %v5162_v10, %v5091_v19 }
 0x714   : > { %v9285_v4 = vpop.permute.xlu0 %9284  ;;  %v8446_v6 = vpack.c.bf16 %v5163_v22, %v5092_v1  ;;  %v8462_v49 = vpack.c.bf16 %v5165_v34, %v5094_v44  ;;  %v5233_v9 = vsel %vm1267_vm5, %v9246_v60, %v9247_v27  ;;  %v8464_v16 = vpack.c.bf16 %v5164_v46, %v5093_v21 }
 0x715   : > { %v9287_v62 = vunpack.i.h.bf16 %v9285_v4  ;;  %v9286_v59 = vunpack.i.l.bf16 %v9285_v4  ;;  %8461 = vmatpush1.bf16.msra.mxu1 %v8460_v30  ;;  %v5236_v10 = vsel %vm1267_vm5, %v9282_v12, %v9081_v42  ;;  %v5304_v60 = vsel %vm1404_vm6, %v9251_v35, %v9252_v5 }
 0x716   : > { %8447 = vmatprep.subr.bf16.mxu0 %v8446_v6  ;;  %8463 = vmatprep.subr.bf16.mxu1 %v8462_v49  ;;  %v8452_v22 = vpack.c.bf16 %v5304_v60, %v5233_v9  ;;  %v9067_v34 = vunpack.i.h.bf16 %v13302_v25  ;;  %v9072_v30 = vunpack.i.h.bf16 %v13312_v31  ;;  %v5235_v1 = vsel %vm1267_vm5, %v9281_v47, %v9282_v12 }
 0x717   : > { %v5352_v26 = vpop.permute.xlu1 %5351  ;;  %8449 = vmatpush1.bf16.msra.mxu0 %v8448_v2  ;;  %v5305_v11 = vsel %vm1404_vm6, %v9252_v5, %v9286_v59  ;;  %v5307_v39 = vsel %vm1404_vm6, %v9287_v62, %v9086_v53  ;;  %v5306_v54 = vsel %vm1404_vm6, %v9286_v59, %v9287_v62  ;;  %v9077_v35 = vunpack.i.h.bf16 %v13283_v56 }
 0x718   : > { %v13686_v41 = vpop.permute.xlu0 %9289  ;;  %v8450_v19 = vpack.c.bf16 %v5305_v11, %v5234_v14  ;;  %v8466_v27 = vpack.c.bf16 %v5307_v39, %v5236_v10  ;;  %v5376_v5 = vsel %vm1541_vm7, %v13606_v63, %v13555_v8  ;;  %v8468_v21 = vpack.c.bf16 %v5306_v54, %v5235_v1 }
 0x719   : > { %8465 = vmatpush1.bf16.msra.mxu1 %v8464_v16  ;;  %v4882_v4 = vsel %vm582_vm0, %v9056_v17, %v9057_v52  ;;  %v5378_v12 = vsel %vm1541_vm7, %v5352_v26, %v13278_v38  ;;  %v13708_v6 = vsel %vm856_vm2, %v9066_v57, %v9067_v34  ;;  %v13715_v50 = vsel %vm993_vm3, %v9071_v48, %v9072_v30 }
 0x71a   : > { %8451 = vmatprep.subr.bf16.mxu0 %v8450_v19  ;;  %8467 = vmatprep.subr.bf16.mxu1 %v8466_v27  ;;  %v5375_v17 = vsel %vm1541_vm7, %v13536_v15, %v13606_v63  ;;  %v13723_v49 = vsel %vm719_vm1, %v9061_v3, %v9062_v24  ;;  %v13730_v57 = vsel %vm1130_vm4, %v9076_v36, %v9077_v35  ;;  %v9161_v59 = vunpack.i.l.bf16 %v13437_v51 }
 0x71b   : > { %8453 = vmatpush1.bf16.msra.mxu0 %v8452_v22  ;;  %v13693_v44 = vpop.permute.xlu1 %5357  ;;  %v8472_v62 = vpack.c.bf16 %v4882_v4, %v13142_v45  ;;  %v5377_v63 = vsel %vm1541_vm7, %v13555_v8, %v5352_v26  ;;  %v8476_v36 = vpack.c.bf16 %v13708_v6, %v13723_v49  ;;  %v8480_v45 = vpack.c.bf16 %v13730_v57, %v13715_v50 }
 0x71c   : > { %5640 = vmatprep.subr.mxu0 %v5376_v5  ;;  %v9305_v47 = vpop.permute.xlu0 %9304  ;;  %v9166_v46 = vunpack.i.l.bf16 %v13412_v55  ;;  %v9171_v16 = vunpack.i.l.bf16 %v13453_v0  ;;  %v9181_v49 = vunpack.i.l.bf16 %v13426_v13  ;;  %v5380_v57 = vsel %vm1541_vm7, %v13326_v40, %v13693_v44 }
 0x71d   : > { %8469 = vmatpush1.bf16.msra.mxu1 %v8468_v21  ;;  %v9307_v3 = vunpack.i.h.bf16 %v9305_v47  ;;  %v9306_v9 = vunpack.i.l.bf16 %v9305_v47 }
 0x71e   : > { %5711 = vmatprep.subr.mxu1 %v5378_v12 }
 0x71f   : > { %5641 = vmatpush1.msra.mxu0 %v5375_v17  ;;  %v9300_v48 = vpop.permute.xlu1 %9299  ;;  %v4955_v1 = vsel %vm719_vm1, %v9306_v9, %v9307_v3  ;;  %v4954_v5 = vsel %vm719_vm1, %v9062_v24, %v9306_v9  ;;  %v9176_v24 = vunpack.i.l.bf16 %v13461_v20 }
 0x720   : > { %v9302_v2 = vunpack.i.h.bf16 %v9300_v48  ;;  %v9301_v15 = vunpack.i.l.bf16 %v9300_v48  ;;  %7577 = vmatmul.mubr.msk.f32.vlgmr.msra.gmra.mrb[58].mxu0 %vm2242_vm8, %v13442_v32  ;;  %v9315_v23 = vpop.permute.xlu0 %9314 }
 0x721   : > { %5712 = vmatpush1.msra.mxu1 %v5377_v63  ;;  %5830 = vmatprep.mubr.f32.mxu0 %v15086_v58  ;;  %v9317_v54 = vunpack.i.h.bf16 %v9315_v23  ;;  %v9316_v19 = vunpack.i.l.bf16 %v9315_v23 }
 0x722   : > { %v4884_v14 = vsel %vm582_vm0, %v9301_v15, %v9302_v2  ;;  %7578 = vmatmul.mubr.msk.f32.vlgmr.msra.gmra.mrb[40].mxu1 %vm2242_vm8, %v13442_v32  ;;  %v4883_v8 = vsel %vm582_vm0, %v9057_v52, %v9301_v15  ;;  %v4885_v26 = vsel %vm582_vm0, %v9302_v2, %v9161_v59 }
 0x723   : > { %v9310_v11 = vpop.permute.xlu1 %9309  ;;  %v8470_v10 = vpack.c.bf16 %v4883_v8, %v13146_v29  ;;  %v8486_v39 = vpack.c.bf16 %v4885_v26, %v13212_v18  ;;  %v8488_v60 = vpack.c.bf16 %v4884_v14, %v13210_v28  ;;  %5901 = vmatprep.mubr.f32.mxu1 %v15086_v58  ;;  %v4956_v29 = vsel %vm719_vm1, %v9307_v3, %v9166_v46 }
 0x724   : > { %v9312_v27 = vunpack.i.h.bf16 %v9310_v11  ;;  %v9311_v22 = vunpack.i.l.bf16 %v9310_v11  ;;  %v9330_v52 = vpop.permute.xlu0 %9329  ;;  %v9082_v18 = vunpack.i.h.bf16 %v13319_v43  ;;  %v5097_v48 = vsel %vm993_vm3, %v9316_v19, %v9317_v54 }
 0x725   : > { %8471 = vmatprep.subr.bf16.mxu0 %v8470_v10  ;;  %8487 = vmatprep.subr.bf16.mxu1 %v8486_v39  ;;  %v9332_v25 = vunpack.i.h.bf16 %v9330_v52  ;;  %v5096_v23 = vsel %vm993_vm3, %v9072_v30, %v9316_v19  ;;  %v5098_v63 = vsel %vm993_vm3, %v9317_v54, %v9176_v24  ;;  %v9087_v3 = vunpack.i.h.bf16 %v13292_v33 }
 0x726   : > { %v5026_v28 = vsel %vm856_vm2, %v9311_v22, %v9312_v27  ;;  %8473 = vmatpush1.bf16.msra.mxu0 %v8472_v62  ;;  %8489 = vmatpush1.bf16.msra.mxu1 %v8488_v60  ;;  %v5025_v21 = vsel %vm856_vm2, %v9067_v34, %v9311_v22  ;;  %v5027_v4 = vsel %vm856_vm2, %v9312_v27, %v9171_v16  ;;  %v9331_v34 = vunpack.i.l.bf16 %v9330_v52 }
 0x727   : > { %v9320_v47 = vpop.permute.xlu1 %9319  ;;  %v8474_v12 = vpack.c.bf16 %v5025_v21, %v4954_v5  ;;  %v8490_v6 = vpack.c.bf16 %v5027_v4, %v4956_v29  ;;  %v8492_v17 = vpack.c.bf16 %v5026_v28, %v4955_v1  ;;  %v9296_v30 = vunpack.i.l.bf16 %v13660_v37 }
 0x728   : > { %v9322_v62 = vunpack.i.h.bf16 %v9320_v47  ;;  %v9321_v2 = vunpack.i.l.bf16 %v9320_v47  ;;  %v13772_v15 = vpop.permute.xlu0 %5359  ;;  %v5237_v39 = vsel %vm1267_vm5, %v9081_v42, %v9082_v18  ;;  %v5309_v19 = vsel %vm1404_vm6, %v9087_v3, %v9331_v34 }
 0x729   : > { %8475 = vmatprep.subr.bf16.mxu0 %v8474_v12  ;;  %8491 = vmatprep.subr.bf16.mxu1 %v8490_v6  ;;  %v5311_v27 = vsel %vm1404_vm6, %v9332_v25, %v9296_v30  ;;  %v5308_v52 = vsel %vm1404_vm6, %v9086_v53, %v9087_v3  ;;  %v9162_v53 = vunpack.i.h.bf16 %v13437_v51  ;;  %v9172_v47 = vunpack.i.h.bf16 %v13453_v0 }
 0x72a   : > { %v5168_v9 = vsel %vm1130_vm4, %v9321_v2, %v9322_v62  ;;  %8477 = vmatpush1.bf16.msra.mxu0 %v8476_v36  ;;  %8493 = vmatpush1.bf16.msra.mxu1 %v8492_v17  ;;  %v5167_v14 = vsel %vm1130_vm4, %v9077_v35, %v9321_v2  ;;  %v5169_v31 = vsel %vm1130_vm4, %v9322_v62, %v9181_v49  ;;  %v9291_v36 = vunpack.i.l.bf16 %v13686_v41 }
 0x72b   : > { %v9325_v8 = vpop.permute.xlu1 %9324  ;;  %v8478_v26 = vpack.c.bf16 %v5167_v14, %v5096_v23  ;;  %v8494_v11 = vpack.c.bf16 %v5169_v31, %v5098_v63  ;;  %v8496_v10 = vpack.c.bf16 %v5168_v9, %v5097_v48  ;;  %v5310_v35 = vsel %vm1404_vm6, %v9331_v34, %v9332_v25 }
 0x72c   : > { %v9327_v60 = vunpack.i.h.bf16 %v9325_v8  ;;  %v9326_v56 = vunpack.i.l.bf16 %v9325_v8  ;;  %v13793_v54 = vpop.permute.xlu0 %4939  ;;  %v8484_v50 = vpack.c.bf16 %v5308_v52, %v5237_v39  ;;  %v4886_v17 = vsel %vm582_vm0, %v9161_v59, %v9162_v53  ;;  %v15163_v8 = vld [vmem:[#allocation12_spill] sm:$0xff] }
 0x72d   : > { %8479 = vmatprep.subr.bf16.mxu0 %v8478_v26  ;;  %8495 = vmatprep.subr.bf16.mxu1 %v8494_v11  ;;  %v9167_v48 = vunpack.i.h.bf16 %v13412_v55  ;;  %v9182_v62 = vunpack.i.h.bf16 %v13426_v13  ;;  %v8504_v63 = vpack.c.bf16 %v4886_v17, %v13161_v61  ;;  %v5028_v3 = vsel %vm856_vm2, %v9171_v16, %v9172_v47  ;;  %v15164_v26 = vld [vmem:[#allocation14_spill] sm:$0xff] }
 0x72e   : > { %v5239_v43 = vsel %vm1267_vm5, %v9326_v56, %v9327_v60  ;;  %8481 = vmatpush1.bf16.msra.mxu0 %v8480_v45  ;;  %8497 = vmatpush1.bf16.msra.mxu1 %v8496_v10  ;;  %v5238_v42 = vsel %vm1267_vm5, %v9082_v18, %v9326_v56  ;;  %v5240_v22 = vsel %vm1267_vm5, %v9327_v60, %v9291_v36  ;;  %v9177_v9 = vunpack.i.h.bf16 %v13461_v20 }
 0x72f   : > { %v13811_v1 = vpop.permute.xlu1 %5010  ;;  %v8482_v5 = vpack.c.bf16 %v5309_v19, %v5238_v42  ;;  %v8498_v29 = vpack.c.bf16 %v5311_v27, %v5240_v22  ;;  %v8500_v28 = vpack.c.bf16 %v5310_v35, %v5239_v43  ;;  %v5379_v18 = vsel %vm1541_vm7, %v13278_v38, %v13326_v40 }
 0x730   : > { %v13813_v21 = vpop.permute.xlu0 %5081  ;;  %v5029_v38 = vsel %vm856_vm2, %v9172_v47, %v13811_v1  ;;  %v4958_v23 = vsel %vm719_vm1, %v9167_v48, %v13793_v54  ;;  %v4957_v0 = vsel %vm719_vm1, %v9166_v46, %v9167_v48  ;;  %v5099_v55 = vsel %vm993_vm3, %v9176_v24, %v9177_v9 }
 0x731   : > { %8483 = vmatprep.subr.bf16.mxu0 %v8482_v5  ;;  %8499 = vmatprep.subr.bf16.mxu1 %v8498_v29  ;;  %v8506_v14 = vpack.c.bf16 %v5029_v38, %v4958_v23  ;;  %v8508_v10 = vpack.c.bf16 %v5028_v3, %v4957_v0  ;;  %v9292_v46 = vunpack.i.h.bf16 %v13686_v41  ;;  %v5170_v35 = vsel %vm1130_vm4, %v9181_v49, %v9182_v62 }
 0x732   : > { %8485 = vmatpush1.bf16.msra.mxu0 %v8484_v50  ;;  %8501 = vmatpush1.bf16.msra.mxu1 %v8500_v28  ;;  %v8512_v20 = vpack.c.bf16 %v5170_v35, %v5099_v55 }
 0x733   : > { %5782 = vmatprep.subr.mxu0 %v5380_v57  ;;  %v13818_v33 = vpop.permute.xlu1 %5152  ;;  %v5241_v24 = vsel %vm1267_vm5, %v9291_v36, %v9292_v46 }
 0x734   : > { %v13821_v45 = vpop.permute.xlu0 %5223  ;;  %v5171_v31 = vsel %vm1130_vm4, %v9182_v62, %v13818_v33 }
 0x735   : > { %v5242_v27 = vsel %vm1267_vm5, %v9292_v46, %v13821_v45 }
 0x736   : > { %5783 = vmatpush1.msra.mxu0 %v5379_v18 }
 0x737   : > { %7579 = vmatmul.mubr.msk.f32.vlgmr.msra.gmra.mrb[60].mxu0 %vm2242_vm8, %v13442_v32  ;;  %v9335_v4 = vpop.permute.xlu1 %9334 }
 0x738   : > { %v9337_v12 = vunpack.i.h.bf16 %v9335_v4  ;;  %v9336_v6 = vunpack.i.l.bf16 %v9335_v4  ;;  %5972 = vmatprep.mubr.f32.mxu0 %v15086_v58  ;;  %v13838_v2 = vpop.permute.xlu0 %5363 }
 0x73a   : > { %v4887_v40 = vsel %vm582_vm0, %v9162_v53, %v9336_v6  ;;  %v4888_v51 = vsel %vm582_vm0, %v9336_v6, %v9337_v12  ;;  %v8518_v61 = vpack.c.bf16 %v9337_v12, %v15163_v8 }
 0x73b   : > { %v5362_v25 = vpop.permute.xlu1 %5361  ;;  %v8502_v34 = vpack.c.bf16 %v4887_v40, %v13165_v7  ;;  %v5381_v7 = vsel %vm1541_vm7, %v13693_v44, %v13772_v15  ;;  %v8520_v11 = vpack.c.bf16 %v4888_v51, %v15164_v26  ;;  %v9297_v44 = vunpack.i.h.bf16 %v13660_v37 }
 0x73c   : > { %v5382_v59 = vsel %vm1541_vm7, %v13772_v15, %v5362_v25  ;;  %v5100_v15 = vsel %vm993_vm3, %v9177_v9, %v13813_v21  ;;  %v4942_v39 = vpop.permute.xlu0 %4941  ;;  %v5383_v57 = vsel %vm1541_vm7, %v5362_v25, %v13838_v2 }
 0x73d   : > { %5853 = vmatprep.subr.mxu1 %v5382_v59  ;;  %8503 = vmatprep.subr.bf16.mxu0 %v8502_v34  ;;  %v8510_v60 = vpack.c.bf16 %v5171_v31, %v5100_v15  ;;  %v5312_v42 = vsel %vm1404_vm6, %v9296_v30, %v9297_v44  ;;  %v4959_v49 = vsel %vm719_vm1, %v13793_v54, %v4942_v39 }
 0x73e   : > { %5854 = vmatpush1.msra.mxu1 %v5381_v7  ;;  %8505 = vmatpush1.bf16.msra.mxu0 %v8504_v63  ;;  %v8516_v29 = vpack.c.bf16 %v5312_v42, %v5241_v24 }
 0x73f   : > { %7580 = vmatmul.mubr.msk.f32.vlgmr.msra.gmra.mrb[42].mxu1 %vm2242_vm8, %v13442_v32  ;;  %v5295_v16 = vpop.permute.xlu1 %5294  ;;  %8507 = vmatprep.subr.bf16.mxu0 %v8506_v14 }
 0x740   : > { %8519 = vmatprep.subr.bf16.mxu1 %v8518_v61  ;;  %6043 = vmatprep.mubr.f32.mxu1 %v15086_v58  ;;  %v5313_v56 = vsel %vm1404_vm6, %v9297_v44, %v5295_v16  ;;  %v5084_v22 = vpop.permute.xlu0 %5083 }
 0x741   : > { %8521 = vmatpush1.bf16.msra.mxu1 %v8520_v11  ;;  %v8514_v43 = vpack.c.bf16 %v5313_v56, %v5242_v27  ;;  %v5101_v30 = vsel %vm993_vm3, %v13813_v21, %v5084_v22 }
 0x742   : > { %8509 = vmatpush1.bf16.msra.mxu0 %v8508_v10 }
 0x743   : > { %v5366_v19 = vpop.permute.xlu1 %5365  ;;  %8511 = vmatprep.subr.bf16.mxu0 %v8510_v60 }
 0x744   : > { %v5384_v36 = vsel %vm1541_vm7, %v13838_v2, %v5366_v19  ;;  %v5226_v50 = vpop.permute.xlu0 %5225 }
 0x745   : > { %v5243_v18 = vsel %vm1267_vm5, %v13821_v45, %v5226_v50 }
 0x746   : > { %8513 = vmatpush1.bf16.msra.mxu0 %v8512_v20 }
 0x747   : > { %v5013_v13 = vpop.permute.xlu1 %5012  ;;  %8515 = vmatprep.subr.bf16.mxu0 %v8514_v43 }
 0x748   : > { %v5030_v52 = vsel %vm856_vm2, %v13811_v1, %v5013_v13  ;;  %v8522_v5 = vpack.c.bf16 %v5013_v13, %v4942_v39  ;;  %v5368_v47 = vpop.permute.xlu0 %5367 }
 0x749   : > { %v8524_v41 = vpack.c.bf16 %v5030_v52, %v4959_v49  ;;  %v5385_v12 = vsel %vm1541_vm7, %v5366_v19, %v5368_v47 }
 0x74a   : > { %8517 = vmatpush1.bf16.msra.mxu0 %v8516_v29  ;;  %8523 = vmatprep.subr.bf16.mxu1 %v8522_v5 }
 0x74b   : > { %v5155_v37 = vpop.permute.xlu1 %5154  ;;  %5924 = vmatprep.subr.mxu0 %v5384_v36  ;;  %8525 = vmatpush1.bf16.msra.mxu1 %v8524_v41 }
 0x74c   : > { %v5172_v54 = vsel %vm1130_vm4, %v13818_v33, %v5155_v37  ;;  %v8526_v28 = vpack.c.bf16 %v5155_v37, %v5084_v22 }
 0x74d   : > { %v8528_v1 = vpack.c.bf16 %v5172_v54, %v5101_v30 }
 0x74e   : > { %5925 = vmatpush1.msra.mxu0 %v5383_v57  ;;  %8527 = vmatprep.subr.bf16.mxu1 %v8526_v28 }
 0x74f   : > { %v5297_v53 = vpop.permute.xlu1 %5296  ;;  %7581 = vmatmul.mubr.msk.f32.vlgmr.msra.gmra.mrb[62].mxu0 %vm2242_vm8, %v13442_v32  ;;  %8529 = vmatpush1.bf16.msra.mxu1 %v8528_v1 }
 0x750   : > { %v5314_v21 = vsel %vm1404_vm6, %v5295_v16, %v5297_v53  ;;  %v8530_v4 = vpack.c.bf16 %v5297_v53, %v5226_v50  ;;  %6718 = vmatprep.mubr.f32.mxu0 %v15086_v58 }
 0x751   : > { %v8532_v33 = vpack.c.bf16 %v5314_v21, %v5243_v18 }
 0x752   : > { %8531 = vmatprep.subr.bf16.mxu1 %v8530_v4 }
 0x753   : > { %8533 = vmatpush1.bf16.msra.mxu1 %v8532_v33 }
 0x754   : > { %5995 = vmatprep.subr.mxu1 %v5368_v47 }
 0x757   : > { %5996 = vmatpush1.msra.mxu1 %v5385_v12 }
 0x758   : > { %7582 = vmatmul.mubr.msk.f32.vlgmr.msra.gmra.mrb[44].mxu1 %vm2242_vm8, %v13442_v32 }
 0x759   : > { %6789 = vmatprep.mubr.f32.mxu1 %v15086_v58 }
 0x760   : > { %v13905_v6 = vpop.permute.xlu1 %5405 }
 0x7b2   : > { %v5477_v45 = vpop.f32.mrb[36].mxu1 }
 0x7b3   : > { %v5479_v17 = vpop.f32.mrb[37].mxu1  ;;  %v5478_v48 = vadd.f32 %v5477_v45, %v13905_v6 }
 0x7b4   : > { %v5480_v38 = vadd.f32 %v5479_v17, %v13905_v6 }
 0x7b5   : > { %v13909_v40 = vmax.f32 %v5478_v48, 0.0 }
 0x7b6   : > { %v13911_v62 = vmax.f32 %v5480_v38, 0.0 }
 0x7b7   : > { %6577 = vrot.lane.b32.xlu0 %v13909_v40, %s15143_s2 }
 0x7bb   : > { %6579 = vrot.lane.b32.xlu0 %v13911_v62, %s15143_s2 }
 0x7d3   : > { %v5548_v32 = vpop.f32.mrb[56].mxu0 }
 0x7d4   : > { %v5549_v2 = vadd.f32 %v5548_v32, %v13905_v6  ;;  %v5550_v25 = vpop.f32.mrb[57].mxu0 }
 0x7d5   : > { %v5551_v51 = vadd.f32 %v5550_v25, %v13905_v6 }
 0x7d6   : > { %v13918_v34 = vmax.f32 %v5549_v2, 0.0 }
 0x7d7   : > { %v13929_v63 = vmax.f32 %v5551_v51, 0.0 }
 0x7d8   : > { %v9349_v23 = vpack.i.bf16 %v13918_v34, %v13911_v62 }
 0x7d9   : > { %v9374_v9 = vpack.i.bf16 %v13929_v63, %v13909_v40 }
 0x7da   : > { %9350 = vrot.lane.b32.xlu1 %v9349_v23, %s15148_s18  ;;  %9340 = vrot.lane.b32.xlu0 %v9349_v23, %s15147_s29 }
 0x7de   : > { %9360 = vrot.lane.b32.xlu1 %v9349_v23, %s15145_s26  ;;  %9345 = vrot.lane.b32.xlu0 %v9349_v23, %s15144_s12 }
 0x7e2   : > { %9365 = vrot.lane.b32.xlu1 %v9349_v23, %s15150_s0  ;;  %9355 = vrot.lane.b32.xlu0 %v9349_v23, %s15149_s20 }
 0x7e3   : > { %v5619_v59 = vpop.f32.mrb[38].mxu1 }
 0x7e4   : > { %v5621_v3 = vpop.f32.mrb[39].mxu1  ;;  %v5620_v7 = vadd.f32 %v5619_v59, %v13905_v6 }
 0x7e5   : > { %v5622_v14 = vadd.f32 %v5621_v3, %v13905_v6 }
 0x7e6   : > { %6581 = vrot.lane.b32.xlu1 %v13918_v34, %s15143_s2  ;;  %9370 = vrot.lane.b32.xlu0 %v9349_v23, %s15146_s30  ;;  %v13944_v8 = vmax.f32 %v5620_v7, 0.0 }
 0x7e7   : > { %v13946_v61 = vmax.f32 %v5622_v14, 0.0 }
 0x7e9   : > { %v9409_v11 = vpack.i.bf16 %v13946_v61, %v13944_v8 }
 0x7ea   : > { %9375 = vrot.lane.b32.xlu1 %v9374_v9, %s15147_s29  ;;  %9380 = vrot.lane.b32.xlu0 %v9374_v9, %s15144_s12 }
 0x7ee   : > { %9385 = vrot.lane.b32.xlu1 %v9374_v9, %s15148_s18  ;;  %9390 = vrot.lane.b32.xlu0 %v9374_v9, %s15149_s20 }
 0x7f2   : > { %9395 = vrot.lane.b32.xlu1 %v9374_v9, %s15145_s26  ;;  %9405 = vrot.lane.b32.xlu0 %v9374_v9, %s15146_s30 }
 0x7f3   : > { %v5690_v31 = vpop.f32.mrb[58].mxu0 }
 0x7f4   : > { %v5692_v0 = vpop.f32.mrb[59].mxu0  ;;  %v5691_v44 = vadd.f32 %v5690_v31, %v13905_v6 }
 0x7f5   : > { %v5761_v16 = vpop.f32.mrb[40].mxu1  ;;  %v5693_v15 = vadd.f32 %v5692_v0, %v13905_v6 }
 0x7f6   : > { %v5763_v26 = vpop.f32.mrb[41].mxu1  ;;  %9400 = vrot.lane.b32.xlu1 %v9374_v9, %s15150_s0  ;;  %6583 = vrot.lane.b32.xlu0 %v13929_v63, %s15143_s2  ;;  %v13964_v10 = vmax.f32 %v5691_v44, 0.0  ;;  %v5762_v19 = vadd.f32 %v5761_v16, %v13905_v6 }
 0x7f7   : > { %v13966_v55 = vmax.f32 %v5693_v15, 0.0  ;;  %v5764_v27 = vadd.f32 %v5763_v26, %v13905_v6 }
 0x7f8   : > { %v13982_v20 = vmax.f32 %v5762_v19, 0.0 }
 0x7f9   : > { %v9444_v60 = vpack.i.bf16 %v13966_v55, %v13964_v10  ;;  %v13984_v24 = vmax.f32 %v5764_v27, 0.0 }
 0x7fa   : > { %6585 = vrot.lane.b32.xlu1 %v13944_v8, %s15143_s2  ;;  %9410 = vrot.lane.b32.xlu0 %v9409_v11, %s15147_s29 }
 0x7fb   : > { %v9484_v43 = vpack.i.bf16 %v13984_v24, %v13982_v20 }
 0x7fe   : > { %9415 = vrot.lane.b32.xlu1 %v9409_v11, %s15144_s12  ;;  %9420 = vrot.lane.b32.xlu0 %v9409_v11, %s15148_s18 }
 0x802   : > { %9430 = vrot.lane.b32.xlu1 %v9409_v11, %s15145_s26  ;;  %9425 = vrot.lane.b32.xlu0 %v9409_v11, %s15149_s20 }
 0x806   : > { %9435 = vrot.lane.b32.xlu1 %v9409_v11, %s15150_s0  ;;  %9440 = vrot.lane.b32.xlu0 %v9409_v11, %s15146_s30 }
 0x80a   : > { %v5832_v46 = vpop.f32.mrb[60].mxu0  ;;  %6587 = vrot.lane.b32.xlu1 %v13946_v61, %s15143_s2  ;;  %6589 = vrot.lane.b32.xlu0 %v13964_v10, %s15143_s2 }
 0x80b   : > { %v5834_v39 = vpop.f32.mrb[61].mxu0  ;;  %v5833_v13 = vadd.f32 %v5832_v46, %v13905_v6 }
 0x80c   : > { %v5835_v49 = vadd.f32 %v5834_v39, %v13905_v6 }
 0x80d   : > { %v14000_v52 = vmax.f32 %v5833_v13, 0.0 }
 0x80e   : > { %9445 = vrot.lane.b32.xlu1 %v9444_v60, %s15147_s29  ;;  %9455 = vrot.lane.b32.xlu0 %v9444_v60, %s15148_s18  ;;  %v14002_v5 = vmax.f32 %v5835_v49, 0.0 }
 0x810   : > { %v9514_v36 = vpack.i.bf16 %v14002_v5, %v14000_v52 }
 0x812   : > { %v5903_v56 = vpop.f32.mrb[42].mxu1  ;;  %9450 = vrot.lane.b32.xlu1 %v9444_v60, %s15144_s12  ;;  %9465 = vrot.lane.b32.xlu0 %v9444_v60, %s15145_s26 }
 0x813   : > { %v5905_v35 = vpop.f32.mrb[43].mxu1  ;;  %v5904_v37 = vadd.f32 %v5903_v56, %v13905_v6 }
 0x814   : > { %v5906_v30 = vadd.f32 %v5905_v35, %v13905_v6 }
 0x815   : > { %v14020_v54 = vmax.f32 %v5904_v37, 0.0 }
 0x816   : > { %9460 = vrot.lane.b32.xlu1 %v9444_v60, %s15149_s20  ;;  %9470 = vrot.lane.b32.xlu0 %v9444_v60, %s15150_s0  ;;  %v14022_v28 = vmax.f32 %v5906_v30, 0.0 }
 0x818   : > { %v9554_v50 = vpack.i.bf16 %v14022_v28, %v14020_v54 }
 0x81a   : > { %9475 = vrot.lane.b32.xlu1 %v9444_v60, %s15146_s30  ;;  %6591 = vrot.lane.b32.xlu0 %v13966_v55, %s15143_s2 }
 0x81e   : > { %6593 = vrot.lane.b32.xlu1 %v13982_v20, %s15143_s2  ;;  %9485 = vrot.lane.b32.xlu0 %v9484_v43, %s15144_s12 }
 0x822   : > { %9480 = vrot.lane.b32.xlu1 %v9484_v43, %s15147_s29  ;;  %9500 = vrot.lane.b32.xlu0 %v9484_v43, %s15145_s26  ;;  %v5974_v42 = vpop.f32.mrb[62].mxu0 }
 0x823   : > { %v5976_v22 = vpop.f32.mrb[63].mxu0  ;;  %v5975_v53 = vadd.f32 %v5974_v42, %v13905_v6 }
 0x824   : > { %v5977_v18 = vadd.f32 %v5976_v22, %v13905_v6 }
 0x825   : > { %v14046_v33 = vmax.f32 %v5975_v53, 0.0 }
 0x826   : > { %9490 = vrot.lane.b32.xlu1 %v9484_v43, %s15148_s18  ;;  %9510 = vrot.lane.b32.xlu0 %v9484_v43, %s15146_s30  ;;  %v14048_v47 = vmax.f32 %v5977_v18, 0.0 }
 0x828   : > { %v9584_v2 = vpack.i.bf16 %v14048_v47, %v14046_v33 }
 0x829   : > { %v14029_v1 = vpop.permute.xlu0 %6577 }
 0x82a   : > { %9495 = vrot.lane.b32.xlu1 %v9484_v43, %s15149_s20  ;;  %6597 = vrot.lane.b32.xlu0 %v14000_v52, %s15143_s2 }
 0x82b   : > { %v6045_v29 = vpop.f32.mrb[44].mxu1 }
 0x82c   : > { %v6047_v41 = vpop.f32.mrb[45].mxu1  ;;  %v6046_v9 = vadd.f32 %v6045_v29, %v13905_v6 }
 0x82d   : > { %v14036_v57 = vpop.permute.xlu0 %6579  ;;  %v6048_v7 = vadd.f32 %v6047_v41, %v13905_v6 }
 0x82e   : > { %9505 = vrot.lane.b32.xlu1 %v9484_v43, %s15150_s0  ;;  %9515 = vrot.lane.b32.xlu0 %v9514_v36, %s15147_s29  ;;  %v14101_v39 = vmax.f32 %v6046_v9, 0.0 }
 0x82f   : > { %v14103_v60 = vmax.f32 %v6048_v7, 0.0 }
 0x832   : > { %6595 = vrot.lane.b32.xlu1 %v13984_v24, %s15143_s2  ;;  %9525 = vrot.lane.b32.xlu0 %v9514_v36, %s15148_s18 }
 0x836   : > { %9520 = vrot.lane.b32.xlu1 %v9514_v36, %s15144_s12  ;;  %9535 = vrot.lane.b32.xlu0 %v9514_v36, %s15145_s26 }
 0x83a   : > { %9530 = vrot.lane.b32.xlu1 %v9514_v36, %s15149_s20  ;;  %9540 = vrot.lane.b32.xlu0 %v9514_v36, %s15150_s0 }
 0x83e   : > { %9545 = vrot.lane.b32.xlu1 %v9514_v36, %s15146_s30  ;;  %6599 = vrot.lane.b32.xlu0 %v14002_v5, %s15143_s2 }
 0x842   : > { %6601 = vrot.lane.b32.xlu1 %v14020_v54, %s15143_s2  ;;  %9555 = vrot.lane.b32.xlu0 %v9554_v50, %s15144_s12 }
 0x846   : > { %9550 = vrot.lane.b32.xlu1 %v9554_v50, %s15147_s29  ;;  %9570 = vrot.lane.b32.xlu0 %v9554_v50, %s15145_s26 }
 0x84a   : > { %9560 = vrot.lane.b32.xlu1 %v9554_v50, %s15148_s18  ;;  %9580 = vrot.lane.b32.xlu0 %v9554_v50, %s15146_s30 }
 0x84c   : > { %v14042_v21 = vpop.permute.xlu1 %9350  ;;  %v14044_v4 = vpop.permute.xlu0 %9340 }
 0x84d   : > { %v9343_v12 = vunpack.i.h.bf16 %v14044_v4  ;;  %v9342_v45 = vunpack.i.l.bf16 %v14044_v4  ;;  %v9353_v0 = vunpack.i.h.bf16 %v14042_v21  ;;  %v9352_v16 = vunpack.i.l.bf16 %v14042_v21 }
 0x84e   : > { %9565 = vrot.lane.b32.xlu1 %v9554_v50, %s15149_s20  ;;  %6603 = vrot.lane.b32.xlu0 %v14022_v28, %s15143_s2 }
 0x84f   : > { %v6124_v17 = vsel %vm582_vm0, %v9342_v45, %v9343_v12  ;;  %v6264_v22 = vsel %vm856_vm2, %v9352_v16, %v9353_v0 }
 0x850   : > { %v14058_v48 = vpop.permute.xlu1 %9360  ;;  %v14060_v38 = vpop.permute.xlu0 %9345  ;;  %v8534_v32 = vpack.c.bf16 %v6124_v17, %v13911_v62 }
 0x851   : > { %v9348_v59 = vunpack.i.h.bf16 %v14060_v38  ;;  %v9347_v3 = vunpack.i.l.bf16 %v14060_v38  ;;  %v9363_v27 = vunpack.i.h.bf16 %v14058_v48  ;;  %v9362_v43 = vunpack.i.l.bf16 %v14058_v48 }
 0x852   : > { %9575 = vrot.lane.b32.xlu1 %v9554_v50, %s15150_s0  ;;  %8535 = vmatprep.subr.bf16.mxu0 %v8534_v32  ;;  %v9619_v32 = vpack.i.bf16 %v14103_v60, %v14101_v39 }
 0x853   : > { %9585 = vrot.lane.b32.xlu0 %v9584_v2, %s15147_s29  ;;  %v6194_v11 = vsel %vm719_vm1, %v9347_v3, %v9348_v59 }
 0x854   : > { %v14067_v25 = vpop.permute.xlu1 %9365  ;;  %v14069_v23 = vpop.permute.xlu0 %9355 }
 0x855   : > { %v9358_v44 = vunpack.i.h.bf16 %v14069_v23  ;;  %v9357_v6 = vunpack.i.l.bf16 %v14069_v23  ;;  %v9368_v30 = vunpack.i.h.bf16 %v14067_v25  ;;  %v9367_v50 = vunpack.i.l.bf16 %v14067_v25 }
 0x856   : > { %6535 = vrot.lane.b32.xlu1 %v14046_v33, %s15146_s30 }
 0x857   : > { %9595 = vrot.lane.b32.xlu0 %v9584_v2, %s15148_s18  ;;  %v6334_v37 = vsel %vm993_vm3, %v9357_v6, %v9358_v44 }
 0x858   : > { %v14074_v51 = vpop.permute.xlu1 %6581  ;;  %v14076_v62 = vpop.permute.xlu0 %9370 }
 0x859   : > { %v9373_v13 = vunpack.i.h.bf16 %v14076_v62  ;;  %v9372_v49 = vunpack.i.l.bf16 %v14076_v62 }
 0x85a   : > { %6605 = vrot.lane.b32.xlu1 %v14046_v33, %s15143_s2 }
 0x85b   : > { %9605 = vrot.lane.b32.xlu0 %v9584_v2, %s15145_s26  ;;  %v6544_v9 = vsel %vm1404_vm6, %v9372_v49, %v9373_v13 }
 0x85c   : > { %v14085_v14 = vpop.permute.xlu1 %9375  ;;  %v14087_v31 = vpop.permute.xlu0 %9380 }
 0x85d   : > { %v9377_v26 = vunpack.i.l.bf16 %v14085_v14  ;;  %v9382_v46 = vunpack.i.l.bf16 %v14087_v31 }
 0x85e   : > { %9590 = vrot.lane.b32.xlu1 %v9584_v2, %s15144_s12 }
 0x85f   : > { %v6123_v15 = vsel %vm582_vm0, %v9377_v26, %v9342_v45  ;;  %9610 = vrot.lane.b32.xlu0 %v9584_v2, %s15150_s0  ;;  %v6193_v29 = vsel %vm719_vm1, %v9382_v46, %v9347_v3 }
 0x860   : > { %v8536_v56 = vpack.c.bf16 %v6123_v15, %v13909_v40  ;;  %v14106_v35 = vpop.permute.xlu1 %9385  ;;  %v14108_v19 = vpop.permute.xlu0 %9390  ;;  %v8538_v40 = vpack.c.bf16 %v6264_v22, %v6194_v11 }
 0x861   : > { %v9387_v42 = vunpack.i.l.bf16 %v14106_v35  ;;  %v9392_v36 = vunpack.i.l.bf16 %v14108_v19 }
 0x862   : > { %8537 = vmatpush1.bf16.msra.mxu0 %v8536_v56  ;;  %9600 = vrot.lane.b32.xlu1 %v9584_v2, %s15149_s20  ;;  %v6404_v2 = vsel %vm1130_vm4, %v9362_v43, %v9363_v27  ;;  %v6474_v56 = vsel %vm1267_vm5, %v9367_v50, %v9368_v30 }
 0x863   : > { %v6263_v41 = vsel %vm856_vm2, %v9387_v42, %v9352_v16  ;;  %6329 = vrot.lane.b32.xlu0 %v14101_v39, %s15149_s20  ;;  %8539 = vmatprep.subr.bf16.mxu0 %v8538_v40  ;;  %v8542_v3 = vpack.c.bf16 %v6404_v2, %v6334_v37  ;;  %v6333_v7 = vsel %vm993_vm3, %v9392_v36, %v9357_v6  ;;  %v9378_v6 = vunpack.i.h.bf16 %v14085_v14 }
 0x864   : > { %v8540_v53 = vpack.c.bf16 %v6263_v41, %v6193_v29  ;;  %v14129_v18 = vpop.permute.xlu1 %9395  ;;  %v14131_v45 = vpop.permute.xlu0 %9405  ;;  %v8546_v22 = vpack.c.bf16 %v6544_v9, %v6474_v56  ;;  %v6614_v14 = vsel %vm1541_vm7, %v14036_v57, %v14074_v51 }
 0x865   : > { %v9397_v17 = vunpack.i.l.bf16 %v14129_v18  ;;  %v9407_v26 = vunpack.i.l.bf16 %v14131_v45 }
 0x866   : > { %8541 = vmatpush1.bf16.msra.mxu0 %v8540_v53  ;;  %6399 = vrot.lane.b32.xlu1 %v14101_v39, %s15145_s26  ;;  %v6613_v53 = vsel %vm1541_vm7, %v14029_v1, %v14036_v57  ;;  %v14196_v1 = vld [vmem:[%s14829_s5] sm:$0x1] }
 0x867   : > { %v6403_v16 = vsel %vm1130_vm4, %v9397_v17, %v9362_v43  ;;  %9620 = vrot.lane.b32.xlu0 %v9619_v32, %s15144_s12  ;;  %8543 = vmatprep.subr.bf16.mxu0 %v8542_v3  ;;  %v6543_v43 = vsel %vm1404_vm6, %v9407_v26, %v9372_v49  ;;  %v6125_v49 = vsel %vm582_vm0, %v9343_v12, %v9378_v6  ;;  %v9388_v17 = vunpack.i.h.bf16 %v14106_v35  ;;  %s9658_s12 = sshll.u32 %s9741_s28, 4  ;;  %s9659_s12 = int_to_ptr.vmem [resolvable:$false] %s9658_s12 }
 0x868   : > { %v8544_v11 = vpack.c.bf16 %v6403_v16, %v6333_v7  ;;  %v14148_v15 = vpop.permute.xlu1 %9400  ;;  %v14150_v46 = vpop.permute.xlu0 %6583  ;;  %v9383_v12 = vunpack.i.h.bf16 %v14087_v31  ;;  %v9629_v7 = vpack.i.bf16 %v14101_v39, %v14048_v47  ;;  %v8552_v57 = vpack.c.bf16 %v6125_v49, %v13918_v34 }
 0x869   : > { %v9402_v42 = vunpack.i.l.bf16 %v14148_v15  ;;  %v6265_v31 = vsel %vm856_vm2, %v9353_v0, %v9388_v17  ;;  %v9398_v35 = vunpack.i.h.bf16 %v14129_v18  ;;  %v9403_v38 = vunpack.i.h.bf16 %v14148_v15 }
 0x86a   : > { %8545 = vmatpush1.bf16.msra.mxu0 %v8544_v11  ;;  %9615 = vrot.lane.b32.xlu1 %v9619_v32, %s15147_s29  ;;  %v9393_v11 = vunpack.i.h.bf16 %v14108_v19  ;;  %v6195_v18 = vsel %vm719_vm1, %v9348_v59, %v9383_v12 }
 0x86b   : > { %v6473_v40 = vsel %vm1267_vm5, %v9402_v42, %v9367_v50  ;;  %6469 = vrot.lane.b32.xlu0 %v14101_v39, %s15150_s0  ;;  %8547 = vmatprep.subr.bf16.mxu0 %v8546_v22  ;;  %v8556_v42 = vpack.c.bf16 %v6265_v31, %v6195_v18  ;;  %v6405_v22 = vsel %vm1130_vm4, %v9363_v27, %v9398_v35  ;;  %v9408_v27 = vunpack.i.h.bf16 %v14131_v45 }
 0x86c   : > { %v8548_v29 = vpack.c.bf16 %v6543_v43, %v6473_v40  ;;  %v14162_v41 = vpop.permute.xlu1 %6585  ;;  %v14164_v36 = vpop.permute.xlu0 %9410  ;;  %v6335_v48 = vsel %vm993_vm3, %v9358_v44, %v9393_v11  ;;  %v6475_v23 = vsel %vm1267_vm5, %v9368_v30, %v9403_v38 }
 0x86d   : > { %v9412_v37 = vunpack.i.l.bf16 %v14164_v36  ;;  %v6616_v62 = vsel %vm1541_vm7, %v14150_v46, %v14162_v41 }
 0x86e   : > { %8549 = vmatpush1.bf16.msra.mxu0 %v8548_v29  ;;  %9625 = vrot.lane.b32.xlu1 %v9619_v32, %s15148_s18 }
 0x86f   : > { %6607 = vrot.lane.b32.xlu0 %v14048_v47, %s15143_s2  ;;  %6670 = vmatprep.subr.mxu0 %v6614_v14  ;;  %v6126_v50 = vsel %vm582_vm0, %v9378_v6, %v9412_v37  ;;  %v8560_v14 = vpack.c.bf16 %v6405_v22, %v6335_v48 }
 0x870   : > { %v14183_v32 = vpop.permute.xlu1 %9415  ;;  %v14185_v2 = vpop.permute.xlu0 %9420  ;;  %v8550_v4 = vpack.c.bf16 %v6126_v50, %v13929_v63 }
 0x871   : > { %v9417_v3 = vunpack.i.l.bf16 %v14183_v32  ;;  %v9422_v9 = vunpack.i.l.bf16 %v14185_v2 }
 0x872   : > { %6671 = vmatpush1.msra.mxu0 %v6613_v53  ;;  %8551 = vmatprep.subr.bf16.mxu1 %v8550_v4  ;;  %v9413_v4 = vunpack.i.h.bf16 %v14164_v36  ;;  %v6615_v36 = vsel %vm1541_vm7, %v14074_v51, %v14150_v46 }
 0x873   : > { %6331 = vrot.lane.b32.xlu0 %v14103_v60, %s15149_s20  ;;  %9630 = vrot.lane.b32.xlu1 %v9629_v7, %s15146_s30  ;;  %v6196_v63 = vsel %vm719_vm1, %v9383_v12, %v9417_v3  ;;  %v6266_v26 = vsel %vm856_vm2, %v9388_v17, %v9422_v9  ;;  %v6545_v17 = vsel %vm1404_vm6, %v9373_v13, %v9408_v27  ;;  %s8678_s20 = smul.u32 272, %s9818_s17 }
 0x874   : > { %8553 = vmatpush1.bf16.msra.mxu1 %v8552_v57  ;;  %v14209_v16 = vpop.permute.xlu1 %9430  ;;  %v14211_v34 = vpop.permute.xlu0 %9425  ;;  %7583 = vmatmul.mubr.msk.f32.vlgmr.msra.gmra.mrb[64].mxu0 %vm2242_vm8, %v14196_v1  ;;  %v8554_v56 = vpack.c.bf16 %v6266_v26, %v6196_v63  ;;  %v8564_v25 = vpack.c.bf16 %v6545_v17, %v6475_v23  ;;  %v6127_v13 = vsel %vm582_vm0, %v9412_v37, %v9413_v4  ;;  %v9418_v57 = vunpack.i.h.bf16 %v14183_v32 }
 0x875   : > { %v9432_v21 = vunpack.i.l.bf16 %v14209_v16  ;;  %v9427_v0 = vunpack.i.l.bf16 %v14211_v34  ;;  %6860 = vmatprep.mubr.f32.mxu0 %v15086_v58  ;;  %v9423_v63 = vunpack.i.h.bf16 %v14185_v2  ;;  %v8568_v18 = vpack.c.bf16 %v6127_v13, %v13944_v8  ;;  %s14778_s27 = scalar_lea.hbm %s14834_s10, %s8678_s20 }
 0x876   : > { %8555 = vmatprep.subr.bf16.mxu1 %v8554_v56  ;;  %v9433_v51 = vunpack.i.h.bf16 %v14209_v16  ;;  %v9428_v46 = vunpack.i.h.bf16 %v14211_v34 }
 0x877   : > { %6471 = vrot.lane.b32.xlu0 %v14103_v60, %s15150_s0  ;;  %6609 = vrot.lane.b32.xlu1 %v14101_v39, %s15143_s2  ;;  %v6336_v19 = vsel %vm993_vm3, %v9393_v11, %v9427_v0  ;;  %v6406_v43 = vsel %vm1130_vm4, %v9398_v35, %v9432_v21  ;;  %v9653_v35 = vld [vmem:[%s14831_s7] sm:$0xff] }
 0x878   : > { %v14236_v59 = vpop.permute.xlu1 %9435  ;;  %v14238_v6 = vpop.permute.xlu0 %9440  ;;  %8557 = vmatpush1.bf16.msra.mxu1 %v8556_v42  ;;  %v8558_v15 = vpack.c.bf16 %v6406_v43, %v6336_v19  ;;  %v6197_v42 = vsel %vm719_vm1, %v9417_v3, %v9418_v57  ;;  %v6267_v19 = vsel %vm856_vm2, %v9422_v9, %v9423_v63  ;;  %v6407_v43 = vsel %vm1130_vm4, %v9432_v21, %v9433_v51 }
 0x879   : > { %v9437_v40 = vunpack.i.l.bf16 %v14236_v59  ;;  %v9442_v29 = vunpack.i.l.bf16 %v14238_v6  ;;  %v8572_v22 = vpack.c.bf16 %v6267_v19, %v6197_v42  ;;  %v6337_v48 = vsel %vm993_vm3, %v9427_v0, %v9428_v46 }
 0x87a   : > { %8559 = vmatprep.subr.bf16.mxu1 %v8558_v15  ;;  %v9443_v15 = vunpack.i.h.bf16 %v14238_v6  ;;  %v8576_v0 = vpack.c.bf16 %v6407_v43, %v6337_v48 }
 0x87b   : > { %6611 = vrot.lane.b32.xlu0 %v14103_v60, %s15143_s2  ;;  %6401 = vrot.lane.b32.xlu1 %v14103_v60, %s15145_s26  ;;  %v6476_v49 = vsel %vm1267_vm5, %v9403_v38, %v9437_v40  ;;  %v6546_v50 = vsel %vm1404_vm6, %v9408_v27, %v9442_v29  ;;  %v9438_v27 = vunpack.i.h.bf16 %v14236_v59  ;;  %s9660_s2 = scalar_lea.vmem %s9659_s12, 544 }
 0x87c   : > { %v14259_v44 = vpop.permute.xlu1 %6587  ;;  %v14261_v45 = vpop.permute.xlu0 %6589  ;;  %8561 = vmatpush1.bf16.msra.mxu1 %v8560_v14  ;;  %v8562_v53 = vpack.c.bf16 %v6546_v50, %v6476_v49  ;;  %v6547_v17 = vsel %vm1404_vm6, %v9442_v29, %v9443_v15 }
 0x87d   : > { %v6618_v29 = vsel %vm1541_vm7, %v14259_v44, %v14261_v45 }
 0x87e   : > { %8563 = vmatprep.subr.bf16.mxu1 %v8562_v53  ;;  %v6477_v53 = vsel %vm1267_vm5, %v9437_v40, %v9438_v27 }
 0x87f   : > { %6541 = vrot.lane.b32.xlu1 %v14103_v60, %s15146_s30  ;;  %v8580_v40 = vpack.c.bf16 %v6547_v17, %v6477_v53  ;;  %s363_s30 = sand.u32 1, %s9708_s14  }
 0x880   : > { %v14272_v30 = vpop.permute.xlu1 %9445  ;;  %v14274_v12 = vpop.permute.xlu0 %9455  ;;  %8565 = vmatpush1.bf16.msra.mxu1 %v8564_v25  ;;  %s8674_s29 = smul.u32 17, %s363_s30  ;;  %s7432_s17 = scalar_lea.sflag [#allocation3], %s363_s30 }
 0x881   : > { %v9447_v7 = vunpack.i.l.bf16 %v14272_v30  ;;  %6741 = vmatprep.subr.mxu1 %v6616_v62  ;;  %v9457_v60 = vunpack.i.l.bf16 %v14274_v12  ;;  %v9448_v6 = vunpack.i.h.bf16 %v14272_v30  ;;  %v9458_v19 = vunpack.i.h.bf16 %v14274_v12 }
 0x882   : > { %s14752_s18 = scalar_lea.vmem [#allocation2], %s8674_s29 }
 0x883   : > { %v6128_v31 = vsel %vm582_vm0, %v9413_v4, %v9447_v7  ;;  %6648 = vperm.xlu1 %9634, %v9653_v35   ;;  %v6268_v32 = vsel %vm856_vm2, %v9423_v63, %v9457_v60  ;;  %v6617_v35 = vsel %vm1541_vm7, %v14162_v41, %v14259_v44  ;;  %s7446_s0 = sshll.u32 %s14752_s18, 4  ;;  %s14780_s0 = int_to_ptr.vmem [resolvable:$true] %s7446_s0 }
 0x884   : > { %v14295_v37 = vpop.permute.xlu1 %9450  ;;  %v14297_v26 = vpop.permute.xlu0 %9465  ;;  %v8566_v11 = vpack.c.bf16 %v6128_v31, %v13946_v61  ;;  %6742 = vmatpush1.msra.mxu1 %v6615_v36  ;;  %v6129_v36 = vsel %vm582_vm0, %v9447_v7, %v9448_v6  ;;  %s9654_s11 = scalar_lea.vmem %s14780_s0, 272  ;;  %p9661_p0 = scmp.lt.s32.totalorder %s14780_s0, %s9659_s12 }
 0x885   : > { %v9452_v56 = vunpack.i.l.bf16 %v14295_v37  ;;  %7584 = vmatmul.mubr.msk.f32.vlgmr.msra.gmra.mrb[46].mxu1 %vm2242_vm8, %v14196_v1  ;;  %v9467_v8 = vunpack.i.l.bf16 %v14297_v26  ;;  %v8584_v41 = vpack.c.bf16 %v6129_v36, %v13964_v10  ;;  %p9655_p11 = scmp.ne.s32.totalorder %s14780_s0, %s9654_s11  ;;  %p9662_p1 = scmp.lt.s32.totalorder %s9660_s2, %s9654_s11 }
 0x886   : > { %8567 = vmatprep.subr.bf16.mxu0 %v8566_v11  ;;  %6931 = vmatprep.mubr.f32.mxu1 %v15086_v58  ;;  %v9453_v11 = vunpack.i.h.bf16 %v14295_v37  ;;  %v9468_v37 = vunpack.i.h.bf16 %v14297_v26 }
 0x887   : > { %8569 = vmatpush1.bf16.msra.mxu0 %v8568_v18  ;;  %v6198_v61 = vsel %vm719_vm1, %v9418_v57, %v9452_v56  ;;  %v6408_v16 = vsel %vm1130_vm4, %v9433_v51, %v9467_v8  ;;  %p9656_p12 = pnand %p9655_p11, %p9835_p5  ;;  %p9663_p2 = por %p9662_p1, %p9661_p0 }
 0x888   : > { %v14319_v2 = vpop.permute.xlu1 %9460  ;;  %v14321_v3 = vpop.permute.xlu0 %9470  ;;  %v8570_v9 = vpack.c.bf16 %v6268_v32, %v6198_v61  ;;  %v6199_v30 = vsel %vm719_vm1, %v9452_v56, %v9453_v11 }
 0x889   : > { %v9462_v38 = vunpack.i.l.bf16 %v14319_v2  ;;  %v9472_v14 = vunpack.i.l.bf16 %v14321_v3  ;;  %v9463_v7 = vunpack.i.h.bf16 %v14319_v2  ;;  %p9657_p13 = pneg %p9656_p12 }
 0x88a   : > { %8571 = vmatprep.subr.bf16.mxu0 %v8570_v9  ;;  %v6269_v9 = vsel %vm856_vm2, %v9457_v60, %v9458_v19 }
 0x88b   : > { %8573 = vmatpush1.bf16.msra.mxu0 %v8572_v22  ;;  %v6338_v49 = vsel %vm993_vm3, %v9428_v46, %v9462_v38  ;;  %v6478_v4 = vsel %vm1267_vm5, %v9438_v27, %v9472_v14  ;;  %v8588_v43 = vpack.c.bf16 %v6269_v9, %v6199_v30  ;;  %v6339_v27 = vsel %vm993_vm3, %v9462_v38, %v9463_v7  ;;  %p9664_p3 = pnand %p9663_p2, %p9657_p13 }
 0x88c   : > { %v14338_v23 = vpop.permute.xlu1 %9475  ;;  %v14340_v21 = vpop.permute.xlu0 %6591  ;;  %v8574_v34 = vpack.c.bf16 %v6408_v16, %v6338_v49 }
 0x88d   : > { %v9477_v50 = vunpack.i.l.bf16 %v14338_v23 }
 0x88e   : > { %8575 = vmatprep.subr.bf16.mxu0 %v8574_v34  ;;  %v6409_v34 = vsel %vm1130_vm4, %v9467_v8, %v9468_v37 }
 0x88f   : > { %8577 = vmatpush1.bf16.msra.mxu0 %v8576_v0  ;;  %v6548_v25 = vsel %vm1404_vm6, %v9443_v15, %v9477_v50  ;;  %v9478_v15 = vunpack.i.h.bf16 %v14338_v23  ;;  %v9473_v0 = vunpack.i.h.bf16 %v14321_v3 }
 0x890   : > { %v14355_v62 = vpop.permute.xlu1 %6593  ;;  %v14357_v13 = vpop.permute.xlu0 %9485  ;;  %v8578_v59 = vpack.c.bf16 %v6548_v25, %v6478_v4  ;;  %v8592_v4 = vpack.c.bf16 %v6409_v34, %v6339_v27 }
 0x891   : > { %v9487_v18 = vunpack.i.l.bf16 %v14357_v13  ;;  %v6479_v23 = vsel %vm1267_vm5, %v9472_v14, %v9473_v0  ;;  %v6620_v3 = vsel %vm1541_vm7, %v14340_v21, %v14355_v62  ;;  %v9488_v14 = vunpack.i.h.bf16 %v14357_v13 }
 0x892   : > { %8579 = vmatprep.subr.bf16.mxu0 %v8578_v59 }
 0x893   : > { %8581 = vmatpush1.bf16.msra.mxu0 %v8580_v40  ;;  %v6549_v40 = vsel %vm1404_vm6, %v9477_v50, %v9478_v15  ;;  %v6201_v9 = vsel %vm719_vm1, %v9487_v18, %v9488_v14 }
 0x894   : > { %v9481_v57 = vpop.permute.xlu1 %9480  ;;  %v14363_v63 = vpop.permute.xlu0 %9500  ;;  %6812 = vmatprep.subr.mxu0 %v6618_v29  ;;  %v8596_v36 = vpack.c.bf16 %v6549_v40, %v6479_v23 }
 0x895   : > { %v9482_v31 = vunpack.i.l.bf16 %v9481_v57  ;;  %v9502_v32 = vunpack.i.l.bf16 %v14363_v63  ;;  %v9483_v49 = vunpack.i.h.bf16 %v9481_v57 }
 0x897   : > { %6813 = vmatpush1.msra.mxu0 %v6617_v35  ;;  %v6130_v42 = vsel %vm582_vm0, %v9448_v6, %v9482_v31  ;;  %v6410_v16 = vsel %vm1130_vm4, %v9468_v37, %v9502_v32  ;;  %v6131_v26 = vsel %vm582_vm0, %v9482_v31, %v9483_v49 }
 0x898   : > { %v14375_v51 = vpop.permute.xlu1 %9490  ;;  %v14377_v46 = vpop.permute.xlu0 %9510  ;;  %v8582_v61 = vpack.c.bf16 %v6130_v42, %v13966_v55  ;;  %7585 = vmatmul.mubr.msk.f32.vlgmr.msra.gmra.mrb[66].mxu0 %vm2242_vm8, %v14196_v1  ;;  %v6200_v55 = vsel %vm719_vm1, %v9453_v11, %v9487_v18  ;;  %v8600_v11 = vpack.c.bf16 %v6131_v26, %v13982_v20 }
 0x899   : > { %v9492_v44 = vunpack.i.l.bf16 %v14375_v51  ;;  %7002 = vmatprep.mubr.f32.mxu0 %v15086_v58  ;;  %v9512_v12 = vunpack.i.l.bf16 %v14377_v46  ;;  %v9493_v42 = vunpack.i.h.bf16 %v14375_v51  ;;  %v6619_v51 = vsel %vm1541_vm7, %v14261_v45, %v14340_v21 }
 0x89a   : > { %8583 = vmatprep.subr.bf16.mxu1 %v8582_v61  ;;  %v9503_v45 = vunpack.i.h.bf16 %v14363_v63 }
 0x89b   : > { %8585 = vmatpush1.bf16.msra.mxu1 %v8584_v41  ;;  %v6270_v10 = vsel %vm856_vm2, %v9458_v19, %v9492_v44  ;;  %v6550_v6 = vsel %vm1404_vm6, %v9478_v15, %v9512_v12  ;;  %v6271_v41 = vsel %vm856_vm2, %v9492_v44, %v9493_v42 }
 0x89c   : > { %v14398_v22 = vpop.permute.xlu1 %9495  ;;  %v14400_v56 = vpop.permute.xlu0 %6597  ;;  %v8586_v2 = vpack.c.bf16 %v6270_v10, %v6200_v55 }
 0x89d   : > { %v9497_v48 = vunpack.i.l.bf16 %v14398_v22  ;;  %v9498_v30 = vunpack.i.h.bf16 %v14398_v22  ;;  %v8604_v22 = vpack.c.bf16 %v6271_v41, %v6201_v9 }
 0x89e   : > { %8587 = vmatprep.subr.bf16.mxu1 %v8586_v2 }
 0x89f   : > { %8589 = vmatpush1.bf16.msra.mxu1 %v8588_v43  ;;  %v6340_v60 = vsel %vm993_vm3, %v9463_v7, %v9497_v48  ;;  %v6341_v43 = vsel %vm993_vm3, %v9497_v48, %v9498_v30  ;;  %v9513_v48 = vunpack.i.h.bf16 %v14377_v46 }
 0x8a0   : > { %v14414_v38 = vpop.permute.xlu1 %9505  ;;  %v14416_v53 = vpop.permute.xlu0 %9515  ;;  %v8590_v17 = vpack.c.bf16 %v6410_v16, %v6340_v60 }
 0x8a1   : > { %v9507_v25 = vunpack.i.l.bf16 %v14414_v38  ;;  %v9517_v59 = vunpack.i.l.bf16 %v14416_v53  ;;  %v9508_v13 = vunpack.i.h.bf16 %v14414_v38 }
 0x8a2   : > { %8591 = vmatprep.subr.bf16.mxu1 %v8590_v17 }
 0x8a3   : > { %8593 = vmatpush1.bf16.msra.mxu1 %v8592_v4  ;;  %v6480_v8 = vsel %vm1267_vm5, %v9473_v0, %v9507_v25  ;;  %v6132_v29 = vsel %vm582_vm0, %v9483_v49, %v9517_v59  ;;  %v6411_v49 = vsel %vm1130_vm4, %v9502_v32, %v9503_v45  ;;  %v6481_v17 = vsel %vm1267_vm5, %v9507_v25, %v9508_v13 }
 0x8a4   : > { %v14434_v57 = vpop.permute.xlu1 %6595  ;;  %v14436_v50 = vpop.permute.xlu0 %9525  ;;  %v8594_v31 = vpack.c.bf16 %v6550_v6, %v6480_v8  ;;  %v8598_v35 = vpack.c.bf16 %v6132_v29, %v13984_v24  ;;  %v8608_v0 = vpack.c.bf16 %v6411_v49, %v6341_v43  ;;  %v6551_v4 = vsel %vm1404_vm6, %v9512_v12, %v9513_v48 }
 0x8a5   : > { %v9527_v19 = vunpack.i.l.bf16 %v14436_v50  ;;  %v8612_v25 = vpack.c.bf16 %v6551_v4, %v6481_v17  ;;  %v9518_v6 = vunpack.i.h.bf16 %v14416_v53  ;;  %v6622_v29 = vsel %vm1541_vm7, %v14434_v57, %v14400_v56 }
 0x8a6   : > { %8595 = vmatprep.subr.bf16.mxu1 %v8594_v31  ;;  %8599 = vmatprep.subr.bf16.mxu0 %v8598_v35  ;;  %v6621_v35 = vsel %vm1541_vm7, %v14355_v62, %v14434_v57 }
 0x8a7   : > { %8597 = vmatpush1.bf16.msra.mxu1 %v8596_v36  ;;  %8601 = vmatpush1.bf16.msra.mxu0 %v8600_v11  ;;  %v6272_v10 = vsel %vm856_vm2, %v9493_v42, %v9527_v19  ;;  %v6133_v12 = vsel %vm582_vm0, %v9517_v59, %v9518_v6 }
 0x8a8   : > { %v14446_v61 = vpop.permute.xlu1 %9520  ;;  %v14448_v24 = vpop.permute.xlu0 %9535  ;;  %6883 = vmatprep.subr.mxu1 %v6620_v3  ;;  %v9528_v3 = vunpack.i.h.bf16 %v14436_v50  ;;  %v8616_v62 = vpack.c.bf16 %v6133_v12, %v14000_v52 }
 0x8a9   : > { %v9522_v20 = vunpack.i.l.bf16 %v14446_v61  ;;  %v9537_v7 = vunpack.i.l.bf16 %v14448_v24  ;;  %v9523_v36 = vunpack.i.h.bf16 %v14446_v61 }
 0x8aa   : > { %v6273_v61 = vsel %vm856_vm2, %v9527_v19, %v9528_v3 }
 0x8ab   : > { %6884 = vmatpush1.msra.mxu1 %v6619_v51  ;;  %v6202_v55 = vsel %vm719_vm1, %v9488_v14, %v9522_v20  ;;  %v6412_v15 = vsel %vm1130_vm4, %v9503_v45, %v9537_v7  ;;  %v6203_v57 = vsel %vm719_vm1, %v9522_v20, %v9523_v36  ;;  %v9538_v20 = vunpack.i.h.bf16 %v14448_v24 }
 0x8ac   : > { %v14467_v21 = vpop.permute.xlu1 %9530  ;;  %v14469_v44 = vpop.permute.xlu0 %9540  ;;  %v8602_v37 = vpack.c.bf16 %v6272_v10, %v6202_v55  ;;  %7586 = vmatmul.mubr.msk.f32.vlgmr.msra.gmra.mrb[48].mxu1 %vm2242_vm8, %v14196_v1  ;;  %v8620_v45 = vpack.c.bf16 %v6273_v61, %v6203_v57 }
 0x8ad   : > { %v9532_v2 = vunpack.i.l.bf16 %v14467_v21  ;;  %7073 = vmatprep.mubr.f32.mxu1 %v15086_v58  ;;  %v9542_v18 = vunpack.i.l.bf16 %v14469_v44  ;;  %v9533_v41 = vunpack.i.h.bf16 %v14467_v21  ;;  %v6413_v21 = vsel %vm1130_vm4, %v9537_v7, %v9538_v20 }
 0x8ae   : > { %8603 = vmatprep.subr.bf16.mxu0 %v8602_v37 }
 0x8af   : > { %8605 = vmatpush1.bf16.msra.mxu0 %v8604_v22  ;;  %v6342_v27 = vsel %vm993_vm3, %v9498_v30, %v9532_v2  ;;  %v6482_v63 = vsel %vm1267_vm5, %v9508_v13, %v9542_v18  ;;  %v6343_v22 = vsel %vm993_vm3, %v9532_v2, %v9533_v41  ;;  %v9543_v2 = vunpack.i.h.bf16 %v14469_v44 }
 0x8b0   : > { %v14488_v60 = vpop.permute.xlu1 %9545  ;;  %v14490_v16 = vpop.permute.xlu0 %6599  ;;  %v8606_v34 = vpack.c.bf16 %v6412_v15, %v6342_v27 }
 0x8b1   : > { %v9547_v38 = vunpack.i.l.bf16 %v14488_v60  ;;  %v9548_v43 = vunpack.i.h.bf16 %v14488_v60  ;;  %v6483_v60 = vsel %vm1267_vm5, %v9542_v18, %v9543_v2  ;;  %v6623_v12 = vsel %vm1541_vm7, %v14400_v56, %v14490_v16 }
 0x8b2   : > { %8607 = vmatprep.subr.bf16.mxu0 %v8606_v34 }
 0x8b3   : > { %8609 = vmatpush1.bf16.msra.mxu0 %v8608_v0  ;;  %v6552_v32 = vsel %vm1404_vm6, %v9513_v48, %v9547_v38  ;;  %v8624_v48 = vpack.c.bf16 %v6413_v21, %v6343_v22  ;;  %v6553_v17 = vsel %vm1404_vm6, %v9547_v38, %v9548_v43 }
 0x8b4   : > { %v14503_v40 = vpop.permute.xlu1 %6601  ;;  %v14505_v26 = vpop.permute.xlu0 %9555  ;;  %v8610_v8 = vpack.c.bf16 %v6552_v32, %v6482_v63 }
 0x8b5   : > { %v9557_v11 = vunpack.i.l.bf16 %v14505_v26  ;;  %v6624_v44 = vsel %vm1541_vm7, %v14490_v16, %v14503_v40 }
 0x8b6   : > { %8611 = vmatprep.subr.bf16.mxu0 %v8610_v8 }
 0x8b7   : > { %8613 = vmatpush1.bf16.msra.mxu0 %v8612_v25  ;;  %v8628_v25 = vpack.c.bf16 %v6553_v17, %v6483_v60 }
 0x8b8   : > { %v9551_v23 = vpop.permute.xlu1 %9550  ;;  %v14511_v31 = vpop.permute.xlu0 %9570  ;;  %6954 = vmatprep.subr.mxu0 %v6622_v29 }
 0x8b9   : > { %v9552_v46 = vunpack.i.l.bf16 %v9551_v23  ;;  %v9572_v30 = vunpack.i.l.bf16 %v14511_v31  ;;  %v9553_v50 = vunpack.i.h.bf16 %v9551_v23 }
 0x8bb   : > { %6955 = vmatpush1.msra.mxu0 %v6621_v35  ;;  %v6134_v42 = vsel %vm582_vm0, %v9518_v6, %v9552_v46  ;;  %v6414_v27 = vsel %vm1130_vm4, %v9538_v20, %v9572_v30  ;;  %v6135_v24 = vsel %vm582_vm0, %v9552_v46, %v9553_v50  ;;  %v9558_v35 = vunpack.i.h.bf16 %v14505_v26 }
 0x8bc   : > { %v14523_v14 = vpop.permute.xlu1 %9560  ;;  %v14525_v51 = vpop.permute.xlu0 %9580  ;;  %v8614_v53 = vpack.c.bf16 %v6134_v42, %v14002_v5  ;;  %7587 = vmatmul.mubr.msk.f32.vlgmr.msra.gmra.mrb[68].mxu0 %vm2242_vm8, %v14196_v1  ;;  %v6204_v5 = vsel %vm719_vm1, %v9523_v36, %v9557_v11  ;;  %v8632_v23 = vpack.c.bf16 %v6135_v24, %v14020_v54 }
 0x8bd   : > { %v9562_v59 = vunpack.i.l.bf16 %v14523_v14  ;;  %7144 = vmatprep.mubr.f32.mxu0 %v15086_v58  ;;  %v9582_v19 = vunpack.i.l.bf16 %v14525_v51  ;;  %v9583_v26 = vunpack.i.h.bf16 %v14525_v51 }
 0x8be   : > { %8615 = vmatprep.subr.bf16.mxu1 %v8614_v53 }
 0x8bf   : > { %8617 = vmatpush1.bf16.msra.mxu1 %v8616_v62  ;;  %v6274_v52 = vsel %vm856_vm2, %v9528_v3, %v9562_v59  ;;  %v6554_v32 = vsel %vm1404_vm6, %v9548_v43, %v9582_v19 }
 0x8c0   : > { %v14548_v55 = vpop.permute.xlu1 %9565  ;;  %v14550_v10 = vpop.permute.xlu0 %6603  ;;  %v8618_v9 = vpack.c.bf16 %v6274_v52, %v6204_v5  ;;  %v6205_v5 = vsel %vm719_vm1, %v9557_v11, %v9558_v35 }
 0x8c1   : > { %v9567_v37 = vunpack.i.l.bf16 %v14548_v55  ;;  %v9568_v16 = vunpack.i.h.bf16 %v14548_v55 }
 0x8c2   : > { %8619 = vmatprep.subr.bf16.mxu1 %v8618_v9 }
 0x8c3   : > { %8621 = vmatpush1.bf16.msra.mxu1 %v8620_v45  ;;  %v6344_v13 = vsel %vm993_vm3, %v9533_v41, %v9567_v37  ;;  %v6345_v22 = vsel %vm993_vm3, %v9567_v37, %v9568_v16 }
 0x8c4   : > { %v14568_v15 = vpop.permute.xlu1 %9575  ;;  %v8622_v49 = vpack.c.bf16 %v6414_v27, %v6344_v13 }
 0x8c5   : > { %v9577_v34 = vunpack.i.l.bf16 %v14568_v15  ;;  %v14571_v0 = vpop.permute.xlu0 %9585  ;;  %v9578_v20 = vunpack.i.h.bf16 %v14568_v15 }
 0x8c6   : > { %v9587_v63 = vunpack.i.l.bf16 %v14571_v0  ;;  %8623 = vmatprep.subr.bf16.mxu1 %v8622_v49 }
 0x8c7   : > { %8625 = vmatpush1.bf16.msra.mxu1 %v8624_v48  ;;  %v6484_v7 = vsel %vm1267_vm5, %v9543_v2, %v9577_v34  ;;  %v6485_v49 = vsel %vm1267_vm5, %v9577_v34, %v9578_v20  ;;  %v9588_v48 = vunpack.i.h.bf16 %v14571_v0 }
 0x8c8   : > { %v14587_v4 = vpop.permute.xlu1 %6535  ;;  %v8626_v38 = vpack.c.bf16 %v6554_v32, %v6484_v7  ;;  %v6136_v8 = vsel %vm582_vm0, %v9553_v50, %v9587_v63 }
 0x8c9   : > { %v14592_v6 = vpop.permute.xlu0 %9595  ;;  %v8630_v29 = vpack.c.bf16 %v6136_v8, %v14022_v28  ;;  %v9563_v28 = vunpack.i.h.bf16 %v14523_v14  ;;  %v9573_v14 = vunpack.i.h.bf16 %v14511_v31  ;;  %v6556_v21 = vsel %vm1404_vm6, %v9583_v26, %v14587_v4 }
 0x8ca   : > { %8627 = vmatprep.subr.bf16.mxu1 %v8626_v38  ;;  %v9597_v54 = vunpack.i.l.bf16 %v14592_v6  ;;  %v6555_v31 = vsel %vm1404_vm6, %v9582_v19, %v9583_v26  ;;  %v6137_v15 = vsel %vm582_vm0, %v9587_v63, %v9588_v48  ;;  %v9598_v8 = vunpack.i.h.bf16 %v14592_v6 }
 0x8cb   : > { %8631 = vmatprep.subr.bf16.mxu0 %v8630_v29  ;;  %8629 = vmatpush1.bf16.msra.mxu1 %v8628_v25  ;;  %v6275_v56 = vsel %vm856_vm2, %v9562_v59, %v9563_v28  ;;  %v6415_v55 = vsel %vm1130_vm4, %v9572_v30, %v9573_v14  ;;  %v8644_v24 = vpack.c.bf16 %v6555_v31, %v6485_v49 }
 0x8cc   : > { %8633 = vmatpush1.bf16.msra.mxu0 %v8632_v23  ;;  %7025 = vmatprep.subr.mxu1 %v6624_v44  ;;  %v14599_v18 = vpop.permute.xlu1 %6605  ;;  %v6276_v41 = vsel %vm856_vm2, %v9563_v28, %v9597_v54  ;;  %v8636_v61 = vpack.c.bf16 %v6275_v56, %v6205_v5  ;;  %v8640_v27 = vpack.c.bf16 %v6415_v55, %v6345_v22 }
 0x8cd   : > { %v14601_v46 = vpop.permute.xlu0 %9605  ;;  %v6626_v51 = vsel %vm1541_vm7, %v14550_v10, %v14599_v18  ;;  %v8648_v63 = vpack.c.bf16 %v6137_v15, %v14046_v33 }
 0x8ce   : > { %v9607_v53 = vunpack.i.l.bf16 %v14601_v46  ;;  %v9608_v25 = vunpack.i.h.bf16 %v14601_v46 }
 0x8cf   : > { %7026 = vmatpush1.msra.mxu1 %v6623_v12 }
 0x8d0   : > { %v14609_v36 = vpop.permute.xlu1 %9590  ;;  %7588 = vmatmul.mubr.msk.f32.vlgmr.msra.gmra.mrb[50].mxu1 %vm2242_vm8, %v14196_v1  ;;  %v6416_v43 = vsel %vm1130_vm4, %v9573_v14, %v9607_v53 }
 0x8d1   : > { %v14613_v42 = vpop.permute.xlu0 %9610  ;;  %v9592_v3 = vunpack.i.l.bf16 %v14609_v36  ;;  %7215 = vmatprep.mubr.f32.mxu1 %v15086_v58  ;;  %v9593_v34 = vunpack.i.h.bf16 %v14609_v36 }
 0x8d2   : > { %v9612_v62 = vunpack.i.l.bf16 %v14613_v42  ;;  %v9613_v22 = vunpack.i.h.bf16 %v14613_v42 }
 0x8d3   : > { %v6206_v57 = vsel %vm719_vm1, %v9558_v35, %v9592_v3  ;;  %v6625_v35 = vsel %vm1541_vm7, %v14503_v40, %v14550_v10  ;;  %v6207_v36 = vsel %vm719_vm1, %v9592_v3, %v9593_v34  ;;  %v6277_v40 = vsel %vm856_vm2, %v9597_v54, %v9598_v8 }
 0x8d4   : > { %v14631_v52 = vpop.permute.xlu1 %9600  ;;  %v8634_v59 = vpack.c.bf16 %v6276_v41, %v6206_v57  ;;  %v6486_v50 = vsel %vm1267_vm5, %v9578_v20, %v9612_v62  ;;  %v15165_v3 = vmov 0.0|0.0   ;;  %v6487_v46 = vsel %vm1267_vm5, %v9612_v62, %v9613_v22 }
 0x8d5   : > { %v14634_v9 = vpop.permute.xlu0 %6329  ;;  %v9602_v45 = vunpack.i.l.bf16 %v14631_v52  ;;  %v8642_v17 = vpack.c.bf16 %v6556_v21, %v6486_v50  ;;  %v9603_v44 = vunpack.i.h.bf16 %v14631_v52 }
 0x8d6   : > { %8635 = vmatprep.subr.bf16.mxu0 %v8634_v59 }
 0x8d7   : > { %8637 = vmatpush1.bf16.msra.mxu0 %v8636_v61  ;;  %v6346_v11 = vsel %vm993_vm3, %v9568_v16, %v9602_v45  ;;  %v6347_v14 = vsel %vm993_vm3, %v9602_v45, %v9603_v44  ;;  %v6348_v52 = vsel %vm993_vm3, %v9603_v44, %v14634_v9  ;;  %v6417_v45 = vsel %vm1130_vm4, %v9607_v53, %v9608_v25 }
 0x8d8   : > { %v14651_v13 = vpop.permute.xlu1 %6399  ;;  %v8638_v37 = vpack.c.bf16 %v6416_v43, %v6346_v11  ;;  %v8656_v43 = vpack.c.bf16 %v6417_v45, %v6347_v14 }
 0x8d9   : > { %v9621_v2 = vpop.permute.xlu0 %9620  ;;  %v6418_v16 = vsel %vm1130_vm4, %v9608_v25, %v14651_v13 }
 0x8da   : > { %8639 = vmatprep.subr.bf16.mxu0 %v8638_v37  ;;  %v9622_v38 = vunpack.i.l.bf16 %v9621_v2  ;;  %v9623_v56 = vunpack.i.h.bf16 %v9621_v2  ;;  %v8654_v54 = vpack.c.bf16 %v6418_v16, %v6348_v52 }
 0x8db   : > { %8641 = vmatpush1.bf16.msra.mxu0 %v8640_v27 }
 0x8dc   : > { %v9616_v30 = vpop.permute.xlu1 %9615  ;;  %8643 = vmatprep.subr.bf16.mxu0 %v8642_v17  ;;  %v6208_v33 = vsel %vm719_vm1, %v9593_v34, %v9622_v38  ;;  %v6209_v6 = vsel %vm719_vm1, %v9622_v38, %v9623_v56 }
 0x8dd   : > { %v14662_v7 = vpop.permute.xlu0 %6469  ;;  %v9618_v32 = vunpack.i.h.bf16 %v9616_v30  ;;  %v9617_v60 = vunpack.i.l.bf16 %v9616_v30 }
 0x8de   : > { %v6488_v50 = vsel %vm1267_vm5, %v9613_v22, %v14662_v7 }
 0x8df   : > { %8645 = vmatpush1.bf16.msra.mxu0 %v8644_v24  ;;  %v6138_v19 = vsel %vm582_vm0, %v9588_v48, %v9617_v60  ;;  %v6139_v29 = vsel %vm582_vm0, %v9617_v60, %v9618_v32  ;;  %vm9739_vm0 = vmmov 0  }
 0x8e0   : > { %v9626_v23 = vpop.permute.xlu1 %9625  ;;  %7096 = vmatprep.subr.mxu0 %v6626_v51  ;;  %v8646_v0 = vpack.c.bf16 %v6138_v19, %v14048_v47  ;;  %v8663_v57 = vpack.c.bf16 %v6139_v29, %v14101_v39  ;;  %v8652_v39 = vpack.c.bf16 %v6277_v40, %v6207_v36  ;;  %v9740_v51 = vmov 1966171168  }
 0x8e1   : > { %v9628_v12 = vunpack.i.h.bf16 %v9626_v23  ;;  %v9627_v28 = vunpack.i.l.bf16 %v9626_v23  ;;  %v6608_v47 = vpop.permute.xlu0 %6607  ;;  %v7314_v19 = vunpack.c.l.s4 %v9740_v51 }
 0x8e2   : > { %8647 = vmatprep.subr.bf16.mxu1 %v8646_v0  ;;  %v6627_v42 = vsel %vm1541_vm7, %v14599_v18, %v6608_v47 }
 0x8e3   : > { %7097 = vmatpush1.msra.mxu0 %v6625_v35  ;;  %8649 = vmatpush1.bf16.msra.mxu1 %v8648_v63  ;;  %v6278_v41 = vsel %vm856_vm2, %v9598_v8, %v9627_v28  ;;  %v6279_v10 = vsel %vm856_vm2, %v9627_v28, %v9628_v12  ;;  %v7315_v8 = vunpack.c.0.s8 %v7314_v19 }
 0x8e4   : > { %8662 = vmatprep.subr.bf16.mxu0 %v15165_v3  ;;  %7589 = vmatmul.mubr.msk.f32.vlgmr.msra.gmra.mrb[70].mxu0 %vm2242_vm8, %v14196_v1  ;;  %v8650_v5 = vpack.c.bf16 %v6278_v41, %v6208_v33  ;;  %v8666_v26 = vpack.c.bf16 %v6279_v10, %v6209_v6 }
 0x8e5   : > { %v9631_v59 = vpop.permute.xlu1 %9630  ;;  %8664 = vmatpush3.bf16.msra.mxu0 %v8663_v57  ;;  %7939 = vmatprep.mubr.msk.f32.mxu0 %vm9739_vm0, %v15086_v58  ;;  %v6332_v55 = vpop.permute.xlu0 %6331 }
 0x8e6   : > { %v9633_v61 = vunpack.i.h.bf16 %v9631_v59  ;;  %v9632_v20 = vunpack.i.l.bf16 %v9631_v59  ;;  %8651 = vmatprep.subr.bf16.mxu1 %v8650_v5  ;;  %8665 = vmatprep.subr.bf16.mxu0 %v15165_v3  ;;  %v6349_v49 = vsel %vm993_vm3, %v14634_v9, %v6332_v55 }
 0x8e7   : > { %8653 = vmatpush1.bf16.msra.mxu1 %v8652_v39 }
 0x8e8   : > { %8655 = vmatprep.subr.bf16.mxu1 %v8654_v54  ;;  %v6558_v11 = vsel %vm1404_vm6, %v9632_v20, %v9633_v61  ;;  %v6557_v27 = vsel %vm1404_vm6, %v14587_v4, %v9632_v20 }
 0x8e9   : > { %v6610_v37 = vpop.permute.xlu1 %6609  ;;  %8667 = vmatpush3.bf16.msra.mxu0 %v8666_v26  ;;  %v8658_v21 = vpack.c.bf16 %v6558_v11, %v6488_v50  ;;  %v8660_v53 = vpack.c.bf16 %v6557_v27, %v6487_v46  ;;  %v6472_v17 = vpop.permute.xlu0 %6471 }
 0x8ea   : > { %8668 = vmatprep.subr.bf16.mxu0 %v15165_v3  ;;  %v6628_v4 = vsel %vm1541_vm7, %v6608_v47, %v6610_v37  ;;  %v6489_v62 = vsel %vm1267_vm5, %v14662_v7, %v6472_v17 }
 0x8eb   : > { %8657 = vmatpush1.bf16.msra.mxu1 %v8656_v43 }
 0x8ec   : > { %8659 = vmatprep.subr.bf16.mxu1 %v8658_v21 }
 0x8ed   : > { %v6402_v2 = vpop.permute.xlu1 %6401 }
 0x8ee   : > { %v6419_v48 = vsel %vm1130_vm4, %v14651_v13, %v6402_v2  ;;  %v6612_v13 = vpop.permute.xlu0 %6611 }
 0x8ef   : > { %v8669_v31 = vpack.c.bf16 %v6419_v48, %v6349_v49  ;;  %8661 = vmatpush1.bf16.msra.mxu1 %v8660_v53  ;;  %v6629_v32 = vsel %vm1541_vm7, %v6610_v37, %v6612_v13 }
 0x8f0   : > { %7167 = vmatprep.subr.mxu1 %v6628_v4 }
 0x8f1   : > { %v6542_v30 = vpop.permute.xlu1 %6541  ;;  %8670 = vmatpush3.bf16.msra.mxu0 %v8669_v31 }
 0x8f2   : > { %v6559_v24 = vsel %vm1404_vm6, %v9633_v61, %v6542_v30  ;;  %8671 = vmatprep.subr.bf16.mxu0 %v15165_v3 }
 0x8f3   : > { %v8672_v9 = vpack.c.bf16 %v6559_v24, %v6489_v62  ;;  %7168 = vmatpush1.msra.mxu1 %v6627_v42 }
 0x8f4   : > { %7590 = vmatmul.mubr.msk.f32.vlgmr.msra.gmra.mrb[52].mxu1 %vm2242_vm8, %v14196_v1 }
 0x8f5   : > { %8673 = vmatpush3.bf16.msra.mxu0 %v8672_v9 }
 0x8f6   : > { %7937 = vmatprep.subr.mxu0 %v15086_v58  ;;  %v15166_v58 = vld [vmem:[#allocation5_spill] sm:$0xff] }
 0x8f7   : > { %v14735_v29 = vsub.s32 %v7315_v8, %v15166_v58 }
 0x8f9   : > { %7938 = vmatpush3.msra.mxu0 %v6629_v32 }
 0x8fa   : > { %7940 = vmatmul.mubr.msk.f32.vlgmr.msra.gmra.mrb[72].mxu0 %vm2242_vm8, %v14196_v1 }
 0x902   : > { %v14730_v18 = vpop.permute.xlu1 %6648 }
 0x947   : > { %v6720_v7 = vpop.f32.mrb[64].mxu0 }
 0x948   : > { %v6722_v60 = vpop.f32.mrb[65].mxu0  ;;  %v6721_v15 = vadd.f32 %v6720_v7, %v14730_v18 }
 0x949   : > { %v6723_v34 = vadd.f32 %v6722_v60, %v14730_v18 }
 0x94b   : > { %v7309_v38 = vcombine.low %v6721_v15, %v6723_v34  ;;  %v15167_v34 = vlaneseq }
 0x94d   : > { %v7319_v44 = vrot.slane %v7309_v38, %v14735_v29  ;;  %vm7428_vm1 = vcmp.lt.s32.totalorder %v15167_v34, 128 }
 0x958   : > { %v6791_v25 = vpop.f32.mrb[46].mxu1 }
 0x959   : > { %v6793_v23 = vpop.f32.mrb[47].mxu1  ;;  %v6792_v1 = vadd.f32 %v6791_v25, %v14730_v18 }
 0x95a   : > { %v6794_v0 = vadd.f32 %v6793_v23, %v14730_v18 }
 0x95c   : > { %v7310_v63 = vcombine.low %v6792_v1, %v6794_v0 }
 0x95e   : > { %v7326_v12 = vrot.slane %v7310_v63, %v14735_v29 }
 0x960   : > { %v7341_v28 = vcombine.low %v7319_v44, %v7326_v12 }
 0x962   : > { %v7349_v14 = vrot.slane %v7341_v28, %v14735_v29 }
 0x96b   : > { %v6862_v35 = vpop.f32.mrb[66].mxu0 }
 0x96c   : > { %v6864_v36 = vpop.f32.mrb[67].mxu0  ;;  %v6863_v56 = vadd.f32 %v6862_v35, %v14730_v18 }
 0x96d   : > { %v6865_v16 = vadd.f32 %v6864_v36, %v14730_v18 }
 0x96f   : > { %v7311_v57 = vcombine.low %v6863_v56, %v6865_v16 }
 0x971   : > { %v7333_v3 = vrot.slane %v7311_v57, %v14735_v29 }
 0x97f   : > { %v6933_v47 = vpop.f32.mrb[48].mxu1 }
 0x980   : > { %v6935_v33 = vpop.f32.mrb[49].mxu1  ;;  %v6934_v41 = vadd.f32 %v6933_v47, %v14730_v18 }
 0x981   : > { %v6936_v40 = vadd.f32 %v6935_v33, %v14730_v18 }
 0x983   : > { %v7312_v10 = vcombine.low %v6934_v41, %v6936_v40 }
 0x985   : > { %v7340_v5 = vrot.slane %v7312_v10, %v14735_v29 }
 0x987   : > { %v7342_v39 = vcombine.low %v7333_v3, %v7340_v5 }
 0x989   : > { %v7356_v52 = vrot.slane %v7342_v39, %v14735_v29 }
 0x98b   : > { %v7357_v59 = vcombine.low %v7349_v14, %v7356_v52 }
 0x98d   : > { %7424 = vst [vmem:[%s14752_s18] sm:$0xff] %v7357_v59 }
 0x98f   : > { %v7004_v6 = vpop.f32.mrb[68].mxu0 }
 0x990   : > { %v7005_v54 = vadd.f32 %v7004_v6, %v14730_v18  ;;  %v7006_v61 = vpop.f32.mrb[69].mxu0 }
 0x991   : > { %v7007_v20 = vadd.f32 %v7006_v61, %v14730_v18 }
 0x993   : > { %v7358_v22 = vcombine.low %v7005_v54, %v7007_v20 }
 0x995   : > { %v7368_v50 = vrot.slane %v7358_v22, %v14735_v29 }
 0x9a3   : > { %v7075_v26 = vpop.f32.mrb[50].mxu1 }
 0x9a4   : > { %v7076_v45 = vadd.f32 %v7075_v26, %v14730_v18  ;;  %v7077_v11 = vpop.f32.mrb[51].mxu1 }
 0x9a5   : > { %v7078_v43 = vadd.f32 %v7077_v11, %v14730_v18 }
 0x9a7   : > { %v7359_v55 = vcombine.low %v7076_v45, %v7078_v43 }
 0x9a9   : > { %v7375_v37 = vrot.slane %v7359_v55, %v14735_v29 }
 0x9ab   : > { %v7390_v27 = vcombine.low %v7368_v50, %v7375_v37 }
 0x9ad   : > { %v7398_v60 = vrot.slane %v7390_v27, %v14735_v29 }
 0x9b7   : > { %v7146_v21 = vpop.f32.mrb[70].mxu0 }
 0x9b8   : > { %v7147_v46 = vadd.f32 %v7146_v21, %v14730_v18  ;;  %v7148_v53 = vpop.f32.mrb[71].mxu0 }
 0x9b9   : > { %v7149_v2 = vadd.f32 %v7148_v53, %v14730_v18 }
 0x9bb   : > { %v7360_v49 = vcombine.low %v7147_v46, %v7149_v2 }
 0x9bd   : > { %v7382_v42 = vrot.slane %v7360_v49, %v14735_v29 }
 0x9c7   : > { %v7217_v48 = vpop.f32.mrb[52].mxu1 }
 0x9c8   : > { %v7218_v17 = vadd.f32 %v7217_v48, %v14730_v18  ;;  %v7219_v31 = vpop.f32.mrb[53].mxu1 }
 0x9c9   : > { %v7220_v4 = vadd.f32 %v7219_v31, %v14730_v18 }
 0x9cb   : > { %v7361_v30 = vcombine.low %v7218_v17, %v7220_v4 }
 0x9cd   : > { %v7389_v62 = vrot.slane %v7361_v30, %v14735_v29  ;;  %v7288_v24 = vpop.f32.mrb[72].mxu0 }
 0x9ce   : > { %v7289_v9 = vadd.f32 %v7288_v24, %v14730_v18  ;;  %v7941_v13 = vpop.f32.mrb[73].mxu0 }
 0x9cf   : > { %v7391_v32 = vcombine.low %v7382_v42, %v7389_v62 }
 0x9d0   : > { %v7413_v7 = vrot.slane %v7289_v9, %v14735_v29 }
 0x9d1   : > { %v7405_v15 = vrot.slane %v7391_v32, %v14735_v29 }
 0x9d2   : > { %v7420_v38 = vrot.slane %v7413_v7, %v14735_v29 }
 0x9d3   : > { %v7406_v51 = vcombine.low %v7398_v60, %v7405_v15 }
 0x9d4   : > { %7430 = vst.msk [vmem:[%s14752_s18 + $0x10] sm:$0x1] %vm7428_vm1, %v7420_v38 }
 0x9d5   : > { %7425 = vst [vmem:[%s14752_s18 + $0x8] sm:$0xff] %v7406_v51 }
 0x9d6   : > { %9667 = shalt.err (!%p9664_p3)
}
 0x9d7   : > { %s9668_s26 = scalar_lea.hbm %s14778_s27, 272  ;;  %s9672_s18 = scalar_lea.hbm %s14834_s10, 544 }
 0x9d8   : > { %p9669_p4 = scmp.ne.s32.totalorder %s14778_s27, %s9668_s26  ;;  %p9673_p9 = scmp.lt.u32.totalorder %s14778_s27, %s14834_s10 }
 0x9d9   : > { %p9674_p10 = scmp.lt.u32.totalorder %s9672_s18, %s9668_s26  ;;  %p9676_p12 = scmp.lt.u32.totalorder %s9668_s26, %s14778_s27 }
 0x9da   : > { %p9670_p7 = pnand %p9669_p4, %p9835_p5 }
 0x9db   : > { %p9675_p11 = por %p9674_p10, %p9673_p9 }
 0x9dc   : > { %p9671_p8 = pneg %p9670_p7 }
 0x9dd   : > { %p9677_p13 = por %p9676_p12, %p9675_p11 }
 0x9df   : > { %p9678_p0 = pnand %p9677_p13, %p9671_p8 }
 0x9e1   : > { %9681 = shalt.err (!%p9678_p0)
}
 0x9e2   : > { %8679 = dma.vmem_to_hbm [thread:$0]  (%p9835_p5), %s14780_s0, 272, %s14778_s27, %s7432_s17  }
 0x9e3 PF: > { %p8685_p1 = scmp.ge.s32.totalorder %s9716_s16, 2  ;;  %s7458_s21 = sand.u32 1, %s9704_s13  }
 0x9e4   : > { %s7459_s11 = scalar_lea.sflag [#allocation3], %s7458_s21 }
 0x9e5   : > { %p8682_p2 = pnand %p8685_p1, %p9839_p6 }
 0x9e7   : > { %9699 = dma.done.wait (!%p8682_p2), %s7459_s11, 272  }
 0x9e8   : > { %9701 = vsyncadd (!%p8682_p2), %s7459_s11, 4294967024  ;;  %p20_p3 = scmp.ge.s32.totalorder %s9822_s19, 4   ;;  %s15168_s13 = smov %s9708_s14 }
 0x9e9   : > { %s15169_s14 = smov %s9712_s15  ;;  %s15170_s15 = smov %s9833_s22 }
 0x9ea   : > { %s15171_s16 = smov %s9822_s19  ;;  %22 = sbr.rel (!%p20_p3) target bundleno = 6 (0x6), region = 98 }
 0x9f1   :  { %7464 = vsyncpa [#allocation3], 1 }
 0x9f2   :  { %7466 = vsyncpa [#allocation3 + $0x1], 1 }

</bundles_post_ra>
